<compile_context>
chip_gen: v5e
topology: v5e:2x2
jax: 0.10.0
libtpu: 0.0.40
codegen_flags: <defaults>
</compile_context>

<pallas_src>
import jax
import jax.numpy as jnp
from jax.experimental import pallas as pl
from jax.experimental.pallas import tpu as pltpu


# ----------------------------------------------------------------------------
# Fused kernel
# ----------------------------------------------------------------------------
def _gru_cell(h, gi_r, gi_z, gi_n, whh, bhh):
    """One GRU step for one direction. whh/bhh are per-gate lists [r, z, n]."""
    gh_r = jnp.dot(h, whh[0], preferred_element_type=jnp.float32) + bhh[0]
    gh_z = jnp.dot(h, whh[1], preferred_element_type=jnp.float32) + bhh[1]
    gh_n = jnp.dot(h, whh[2], preferred_element_type=jnp.float32) + bhh[2]
    r = jax.nn.sigmoid(gi_r + gh_r)
    z = jax.nn.sigmoid(gi_z + gh_z)
    n = jnp.tanh(gi_n + r * gh_n)             # PyTorch: b_hn inside r * (.)
    return (1.0 - z) * n + z * h


def _make_fused_kernel(T, B, H, L):
    """Kernel refs: x, (wih, bih, whh, bhh) per layer, proj_w, proj_b, out."""

    def kernel(*refs):
        x_ref = refs[0]
        pw_ref = refs[1 + 4 * L]
        pb_ref = refs[2 + 4 * L]
        o_ref = refs[3 + 4 * L]

        x = x_ref[...]                                   # [T*B, d_in] time-major
        h_lasts = []
        for layer in range(L):
            base = 1 + 4 * layer
            wih_ref, bih_ref, whh_ref, bhh_ref = refs[base:base + 4]

            # ---- hoisted input projections (off the serial path) ----------
            # leading axis of the packed weights = 2 directions x 3 gates(r,z,n)
            gi = [[jnp.dot(x, wih_ref[3 * d + g],
                           preferred_element_type=jnp.float32) + bih_ref[3 * d + g]
                   for g in range(3)] for d in range(2)]            # each [T*B, H]
            whh = [[whh_ref[3 * d + g] for g in range(3)] for d in range(2)]
            bhh = [[bhh_ref[3 * d + g] for g in range(3)] for d in range(2)]

            # ---- serial recurrence: only tiny h @ W_hh dots remain --------
            h_f = jnp.zeros((B, H), jnp.float32)         # PyTorch zero init
            h_b = jnp.zeros((B, H), jnp.float32)
            ys_f = [None] * T
            ys_b = [None] * T
            # Fully static unroll (== fori_loop(unroll=True) for static T);
            # fwd / bwd chains are independent so the scheduler overlaps them.
            for s in range(T):
                tf, tb = s, T - 1 - s
                h_f = _gru_cell(h_f,
                                gi[0][0][tf * B:(tf + 1) * B],
                                gi[0][1][tf * B:(tf + 1) * B],
                                gi[0][2][tf * B:(tf + 1) * B],
                                whh[0], bhh[0])
                h_b = _gru_cell(h_b,
                                gi[1][0][tb * B:(tb + 1) * B],
                                gi[1][1][tb * B:(tb + 1) * B],
                                gi[1][2][tb * B:(tb + 1) * B],
                                whh[1], bhh[1])
                ys_f[tf] = h_f
                ys_b[tb] = h_b
            h_lasts += [h_f, h_b]                        # order: l0f, l0b, l1f, l1b
            # next layer input: [y_fwd | y_bwd] in real-time order, stays in VMEM
            x = jnp.concatenate([jnp.concatenate(ys_f, axis=0),
                                 jnp.concatenate(ys_b, axis=0)], axis=-1)  # [T*B, 2H]

        # ---- last_emb_hidden.transpose(0,1).reshape(B,-1) == lane concat ----
        extr = jnp.concatenate(h_lasts, axis=-1)         # [B, 2*L*H]

        # ---- proj + LayerNorm(elementwise_affine=False) epilogue ------------
        y = jnp.dot(extr, pw_ref[...], preferred_element_type=jnp.float32) + pb_ref[...]
        mean = jnp.mean(y, axis=-1, keepdims=True)
        var = jnp.mean(jnp.square(y - mean), axis=-1, keepdims=True)
        o_ref[...] = (y - mean) * jax.lax.rsqrt(var + 1e-5)

    return kernel


def _const_spec(shape):
    zeros = (0,) * len(shape)
    return pl.BlockSpec(shape, lambda i, _z=zeros: _z)


# ----------------------------------------------------------------------------
# Model wrapper (parameter setup + the single fused pallas_call)
# ----------------------------------------------------------------------------
def _uniform(key, shape, scale):
    return jax.random.uniform(key, shape, jnp.float32, -scale, scale)


class ABCRNNEmbModelPallas:
    """emb_rnn (bidirectional multi-layer GRU) + proj + LayerNorm(no affine)."""

    def __init__(self, key, *, hidden_size=32, num_layers=2, output_size=64,
                 input_size=512):
        self.H, self.L, self.O, self.D = hidden_size, num_layers, output_size, input_size
        k = 1.0 / (hidden_size ** 0.5)
        keys = jax.random.split(key, num_layers * 4 + 2)
        ki = iter(keys)
        # Packed per-gate layout: leading axis = 2 directions x 3 gates (r,z,n)
        self.wih, self.bih, self.whh, self.bhh = [], [], [], []
        for layer in range(num_layers):
            d_in = input_size if layer == 0 else 2 * hidden_size
            self.wih.append(_uniform(next(ki), (6, d_in, hidden_size), k))
            self.bih.append(_uniform(next(ki), (6, 1, hidden_size), k))
            self.whh.append(_uniform(next(ki), (6, hidden_size, hidden_size), k))
            self.bhh.append(_uniform(next(ki), (6, 1, hidden_size), k))
        F = 2 * num_layers * hidden_size                 # self.hidden_size in PyTorch
        kp = 1.0 / (F ** 0.5)
        self.proj_w = _uniform(next(ki), (F, output_size), kp)
        self.proj_b = _uniform(next(ki), (1, output_size), kp)

    # ---- fused Pallas forward ------------------------------------------------
    def __call__(self, final_hidden_btd):
        B, T, D = final_hidden_btd.shape
        H, L, O = self.H, self.L, self.O
        # time-major flatten in the (cheap) XLA wrapper so per-step reads inside
        # the kernel are contiguous static row slices.
        x_flat = jnp.transpose(final_hidden_btd, (1, 0, 2)).reshape(T * B, D)

        args = [x_flat]
        in_specs = [_const_spec(x_flat.shape)]
        for layer in range(L):
            for arr in (self.wih[layer], self.bih[layer],
                        self.whh[layer], self.bhh[layer]):
                args.append(arr)
                in_specs.append(_const_spec(arr.shape))
        for arr in (self.proj_w, self.proj_b):
            args.append(arr)
            in_specs.append(_const_spec(arr.shape))

        return pl.pallas_call(
            _make_fused_kernel(T, B, H, L),
            out_shape=jax.ShapeDtypeStruct((B, O), jnp.float32),
            grid_spec=pltpu.PrefetchScalarGridSpec(
                num_scalar_prefetch=0,
                grid=(1,),
                in_specs=in_specs,
                out_specs=_const_spec((B, O))),
            compiler_params=pltpu.CompilerParams(
                dimension_semantics=("arbitrary",)),
        )(*args)

    # ---- pure-JAX reference (correctness check) -------------------------------
    def reference(self, final_hidden_btd):
        x = jnp.transpose(final_hidden_btd, (1, 0, 2))   # [T, B, D]
        h_lasts = []
        for layer in range(self.L):
            wih, bih = self.wih[layer], self.bih[layer]
            whh, bhh = self.whh[layer], self.bhh[layer]
            y_f, h_f = _gru_dir_ref(x, wih[0:3], bih[0:3], whh[0:3], bhh[0:3], False)
            y_b, h_b = _gru_dir_ref(x, wih[3:6], bih[3:6], whh[3:6], bhh[3:6], True)
            x = jnp.concatenate([y_f, y_b], axis=-1)
            h_lasts += [h_f, h_b]
        extr = jnp.concatenate(h_lasts, axis=-1)
        y = extr @ self.proj_w + self.proj_b
        mean = y.mean(-1, keepdims=True)
        var = jnp.square(y - mean).mean(-1, keepdims=True)
        return (y - mean) / jnp.sqrt(var + 1e-5)


def _gru_dir_ref(x_tm, wih, bih, whh, bhh, reverse):
    """Single-direction GRU over time-major x_tm [T, B, d_in]; per-gate weights."""
    B = x_tm.shape[1]
    H = whh.shape[-1]
    xs = x_tm[::-1] if reverse else x_tm

    def step(h, x_t):
        gi_r = x_t @ wih[0] + bih[0]
        gi_z = x_t @ wih[1] + bih[1]
        gi_n = x_t @ wih[2] + bih[2]
        gh_r = h @ whh[0] + bhh[0]
        gh_z = h @ whh[1] + bhh[1]
        gh_n = h @ whh[2] + bhh[2]
        r = jax.nn.sigmoid(gi_r + gh_r)
        z = jax.nn.sigmoid(gi_z + gh_z)
        n = jnp.tanh(gi_n + r * gh_n)
        h_new = (1.0 - z) * n + z * h
        return h_new, h_new

    h0 = jnp.zeros((B, H), jnp.float32)
    h_last, ys = jax.lax.scan(step, h0, xs)
    if reverse:
        ys = ys[::-1]
    return ys, h_last


if __name__ == "__main__":
    key = jax.random.PRNGKey(0)
    B, T, D = 2, 8, 512          # GRU input_size=512 is fixed by the module
    H, L, OUT = 32, 2, 64        # net_param.emb_rnn.{hidden_size,num_layers}, output_size

    k_model, k_x = jax.random.split(key)
    model = ABCRNNEmbModelPallas(k_model, hidden_size=H, num_layers=L,
                                 output_size=OUT, input_size=D)
    final_hidden = jax.random.normal(k_x, (B, T, D), jnp.float32)

    out = model(final_hidden)
    jax.block_until_ready(out)

    ref = model.reference(final_hidden)
    assert out.shape == (B, OUT), out.shape
    max_err = float(jnp.max(jnp.abs(out - ref)))
    assert max_err < 1e-3, max_err   # f32 everywhere; MXU vs XLA dot rounding only
    print("KERNEL_OK")
</pallas_src>

<mosaic_0001>
module attributes {stable_mosaic.version = 11 : i64} {
  func.func @kernel(%arg0: i32, %arg1: memref<16x512xf32, #tpu.memory_space<vmem>>, %arg2: memref<6x512x32xf32, #tpu.memory_space<vmem>>, %arg3: memref<6x1x32xf32, #tpu.memory_space<vmem>>, %arg4: memref<6x32x32xf32, #tpu.memory_space<vmem>>, %arg5: memref<6x1x32xf32, #tpu.memory_space<vmem>>, %arg6: memref<6x64x32xf32, #tpu.memory_space<vmem>>, %arg7: memref<6x1x32xf32, #tpu.memory_space<vmem>>, %arg8: memref<6x32x32xf32, #tpu.memory_space<vmem>>, %arg9: memref<6x1x32xf32, #tpu.memory_space<vmem>>, %arg10: memref<128x64xf32, #tpu.memory_space<vmem>>, %arg11: memref<1x64xf32, #tpu.memory_space<vmem>>, %arg12: memref<2x64xf32, #tpu.memory_space<vmem>>) attributes {dimension_semantics = [#tpu.dimension_semantics<arbitrary>], iteration_bounds = array<i64: 1>, scalar_prefetch = 0 : i64, scratch_operands = 0 : i64, tpu.core_type = #tpu.core_type<tc>, window_params = [{pipeline_mode = #tpu.pipeline_mode<synchronous>, transform_indices = @transform_0, window_bounds = array<i64: 16, 512>}, {pipeline_mode = #tpu.pipeline_mode<synchronous>, transform_indices = @transform_1, window_bounds = array<i64: 6, 512, 32>}, {pipeline_mode = #tpu.pipeline_mode<synchronous>, transform_indices = @transform_2, window_bounds = array<i64: 6, 1, 32>}, {pipeline_mode = #tpu.pipeline_mode<synchronous>, transform_indices = @transform_3, window_bounds = array<i64: 6, 32, 32>}, {pipeline_mode = #tpu.pipeline_mode<synchronous>, transform_indices = @transform_4, window_bounds = array<i64: 6, 1, 32>}, {pipeline_mode = #tpu.pipeline_mode<synchronous>, transform_indices = @transform_5, window_bounds = array<i64: 6, 64, 32>}, {pipeline_mode = #tpu.pipeline_mode<synchronous>, transform_indices = @transform_6, window_bounds = array<i64: 6, 1, 32>}, {pipeline_mode = #tpu.pipeline_mode<synchronous>, transform_indices = @transform_7, window_bounds = array<i64: 6, 32, 32>}, {pipeline_mode = #tpu.pipeline_mode<synchronous>, transform_indices = @transform_8, window_bounds = array<i64: 6, 1, 32>}, {pipeline_mode = #tpu.pipeline_mode<synchronous>, transform_indices = @transform_9, window_bounds = array<i64: 128, 64>}, {pipeline_mode = #tpu.pipeline_mode<synchronous>, transform_indices = @transform_10, window_bounds = array<i64: 1, 64>}, {pipeline_mode = #tpu.pipeline_mode<synchronous>, transform_indices = @transform_11, window_bounds = array<i64: 2, 64>}]} {
    %c0 = arith.constant 0 : index
    %c0_0 = arith.constant 0 : index
    %0 = vector.load %arg1[%c0, %c0_0] : memref<16x512xf32, #tpu.memory_space<vmem>>, vector<16x512xf32>
    %c0_1 = arith.constant 0 : index
    %c0_2 = arith.constant 0 : index
    %c0_3 = arith.constant 0 : index
    %1 = vector.load %arg2[%c0_1, %c0_2, %c0_3] : memref<6x512x32xf32, #tpu.memory_space<vmem>>, vector<1x512x32xf32>
    %2 = vector.shape_cast %1 : vector<1x512x32xf32> to vector<512x32xf32>
    %cst = arith.constant dense<0.000000e+00> : vector<16x32xf32>
    %3 = tpu.matmul %0, %2, %cst {dimension_numbers = #tpu.dot_dimension_numbers<[1], [0], [0], [1], [0, 0, 1, 1], [], []>} : vector<16x512xf32>, vector<512x32xf32>, vector<16x32xf32> -> vector<16x32xf32>
    %c0_4 = arith.constant 0 : index
    %c0_5 = arith.constant 0 : index
    %c0_6 = arith.constant 0 : index
    %4 = vector.load %arg3[%c0_4, %c0_5, %c0_6] : memref<6x1x32xf32, #tpu.memory_space<vmem>>, vector<1x1x32xf32>
    %5 = vector.shape_cast %4 : vector<1x1x32xf32> to vector<1x32xf32>
    %6 = vector.broadcast %5 : vector<1x32xf32> to vector<16x32xf32>
    %7 = arith.addf %3, %6 : vector<16x32xf32>
    %c1 = arith.constant 1 : index
    %c0_7 = arith.constant 0 : index
    %c0_8 = arith.constant 0 : index
    %8 = vector.load %arg2[%c1, %c0_7, %c0_8] : memref<6x512x32xf32, #tpu.memory_space<vmem>>, vector<1x512x32xf32>
    %9 = vector.shape_cast %8 : vector<1x512x32xf32> to vector<512x32xf32>
    %cst_9 = arith.constant dense<0.000000e+00> : vector<16x32xf32>
    %10 = tpu.matmul %0, %9, %cst_9 {dimension_numbers = #tpu.dot_dimension_numbers<[1], [0], [0], [1], [0, 0, 1, 1], [], []>} : vector<16x512xf32>, vector<512x32xf32>, vector<16x32xf32> -> vector<16x32xf32>
    %c1_10 = arith.constant 1 : index
    %c0_11 = arith.constant 0 : index
    %c0_12 = arith.constant 0 : index
    %11 = vector.load %arg3[%c1_10, %c0_11, %c0_12] : memref<6x1x32xf32, #tpu.memory_space<vmem>>, vector<1x1x32xf32>
    %12 = vector.shape_cast %11 : vector<1x1x32xf32> to vector<1x32xf32>
    %13 = vector.broadcast %12 : vector<1x32xf32> to vector<16x32xf32>
    %14 = arith.addf %10, %13 : vector<16x32xf32>
    %c2 = arith.constant 2 : index
    %c0_13 = arith.constant 0 : index
    %c0_14 = arith.constant 0 : index
    %15 = vector.load %arg2[%c2, %c0_13, %c0_14] : memref<6x512x32xf32, #tpu.memory_space<vmem>>, vector<1x512x32xf32>
    %16 = vector.shape_cast %15 : vector<1x512x32xf32> to vector<512x32xf32>
    %cst_15 = arith.constant dense<0.000000e+00> : vector<16x32xf32>
    %17 = tpu.matmul %0, %16, %cst_15 {dimension_numbers = #tpu.dot_dimension_numbers<[1], [0], [0], [1], [0, 0, 1, 1], [], []>} : vector<16x512xf32>, vector<512x32xf32>, vector<16x32xf32> -> vector<16x32xf32>
    %c2_16 = arith.constant 2 : index
    %c0_17 = arith.constant 0 : index
    %c0_18 = arith.constant 0 : index
    %18 = vector.load %arg3[%c2_16, %c0_17, %c0_18] : memref<6x1x32xf32, #tpu.memory_space<vmem>>, vector<1x1x32xf32>
    %19 = vector.shape_cast %18 : vector<1x1x32xf32> to vector<1x32xf32>
    %20 = vector.broadcast %19 : vector<1x32xf32> to vector<16x32xf32>
    %21 = arith.addf %17, %20 : vector<16x32xf32>
    %c3 = arith.constant 3 : index
    %c0_19 = arith.constant 0 : index
    %c0_20 = arith.constant 0 : index
    %22 = vector.load %arg2[%c3, %c0_19, %c0_20] : memref<6x512x32xf32, #tpu.memory_space<vmem>>, vector<1x512x32xf32>
    %23 = vector.shape_cast %22 : vector<1x512x32xf32> to vector<512x32xf32>
    %cst_21 = arith.constant dense<0.000000e+00> : vector<16x32xf32>
    %24 = tpu.matmul %0, %23, %cst_21 {dimension_numbers = #tpu.dot_dimension_numbers<[1], [0], [0], [1], [0, 0, 1, 1], [], []>} : vector<16x512xf32>, vector<512x32xf32>, vector<16x32xf32> -> vector<16x32xf32>
    %c3_22 = arith.constant 3 : index
    %c0_23 = arith.constant 0 : index
    %c0_24 = arith.constant 0 : index
    %25 = vector.load %arg3[%c3_22, %c0_23, %c0_24] : memref<6x1x32xf32, #tpu.memory_space<vmem>>, vector<1x1x32xf32>
    %26 = vector.shape_cast %25 : vector<1x1x32xf32> to vector<1x32xf32>
    %27 = vector.broadcast %26 : vector<1x32xf32> to vector<16x32xf32>
    %28 = arith.addf %24, %27 : vector<16x32xf32>
    %c4 = arith.constant 4 : index
    %c0_25 = arith.constant 0 : index
    %c0_26 = arith.constant 0 : index
    %29 = vector.load %arg2[%c4, %c0_25, %c0_26] : memref<6x512x32xf32, #tpu.memory_space<vmem>>, vector<1x512x32xf32>
    %30 = vector.shape_cast %29 : vector<1x512x32xf32> to vector<512x32xf32>
    %cst_27 = arith.constant dense<0.000000e+00> : vector<16x32xf32>
    %31 = tpu.matmul %0, %30, %cst_27 {dimension_numbers = #tpu.dot_dimension_numbers<[1], [0], [0], [1], [0, 0, 1, 1], [], []>} : vector<16x512xf32>, vector<512x32xf32>, vector<16x32xf32> -> vector<16x32xf32>
    %c4_28 = arith.constant 4 : index
    %c0_29 = arith.constant 0 : index
    %c0_30 = arith.constant 0 : index
    %32 = vector.load %arg3[%c4_28, %c0_29, %c0_30] : memref<6x1x32xf32, #tpu.memory_space<vmem>>, vector<1x1x32xf32>
    %33 = vector.shape_cast %32 : vector<1x1x32xf32> to vector<1x32xf32>
    %34 = vector.broadcast %33 : vector<1x32xf32> to vector<16x32xf32>
    %35 = arith.addf %31, %34 : vector<16x32xf32>
    %c5 = arith.constant 5 : index
    %c0_31 = arith.constant 0 : index
    %c0_32 = arith.constant 0 : index
    %36 = vector.load %arg2[%c5, %c0_31, %c0_32] : memref<6x512x32xf32, #tpu.memory_space<vmem>>, vector<1x512x32xf32>
    %37 = vector.shape_cast %36 : vector<1x512x32xf32> to vector<512x32xf32>
    %cst_33 = arith.constant dense<0.000000e+00> : vector<16x32xf32>
    %38 = tpu.matmul %0, %37, %cst_33 {dimension_numbers = #tpu.dot_dimension_numbers<[1], [0], [0], [1], [0, 0, 1, 1], [], []>} : vector<16x512xf32>, vector<512x32xf32>, vector<16x32xf32> -> vector<16x32xf32>
    %c5_34 = arith.constant 5 : index
    %c0_35 = arith.constant 0 : index
    %c0_36 = arith.constant 0 : index
    %39 = vector.load %arg3[%c5_34, %c0_35, %c0_36] : memref<6x1x32xf32, #tpu.memory_space<vmem>>, vector<1x1x32xf32>
    %40 = vector.shape_cast %39 : vector<1x1x32xf32> to vector<1x32xf32>
    %41 = vector.broadcast %40 : vector<1x32xf32> to vector<16x32xf32>
    %42 = arith.addf %38, %41 : vector<16x32xf32>
    %c0_37 = arith.constant 0 : index
    %c0_38 = arith.constant 0 : index
    %c0_39 = arith.constant 0 : index
    %43 = vector.load %arg4[%c0_37, %c0_38, %c0_39] : memref<6x32x32xf32, #tpu.memory_space<vmem>>, vector<1x32x32xf32>
    %44 = vector.shape_cast %43 : vector<1x32x32xf32> to vector<32x32xf32>
    %c1_40 = arith.constant 1 : index
    %c0_41 = arith.constant 0 : index
    %c0_42 = arith.constant 0 : index
    %45 = vector.load %arg4[%c1_40, %c0_41, %c0_42] : memref<6x32x32xf32, #tpu.memory_space<vmem>>, vector<1x32x32xf32>
    %46 = vector.shape_cast %45 : vector<1x32x32xf32> to vector<32x32xf32>
    %c2_43 = arith.constant 2 : index
    %c0_44 = arith.constant 0 : index
    %c0_45 = arith.constant 0 : index
    %47 = vector.load %arg4[%c2_43, %c0_44, %c0_45] : memref<6x32x32xf32, #tpu.memory_space<vmem>>, vector<1x32x32xf32>
    %48 = vector.shape_cast %47 : vector<1x32x32xf32> to vector<32x32xf32>
    %c3_46 = arith.constant 3 : index
    %c0_47 = arith.constant 0 : index
    %c0_48 = arith.constant 0 : index
    %49 = vector.load %arg4[%c3_46, %c0_47, %c0_48] : memref<6x32x32xf32, #tpu.memory_space<vmem>>, vector<1x32x32xf32>
    %50 = vector.shape_cast %49 : vector<1x32x32xf32> to vector<32x32xf32>
    %c4_49 = arith.constant 4 : index
    %c0_50 = arith.constant 0 : index
    %c0_51 = arith.constant 0 : index
    %51 = vector.load %arg4[%c4_49, %c0_50, %c0_51] : memref<6x32x32xf32, #tpu.memory_space<vmem>>, vector<1x32x32xf32>
    %52 = vector.shape_cast %51 : vector<1x32x32xf32> to vector<32x32xf32>
    %c5_52 = arith.constant 5 : index
    %c0_53 = arith.constant 0 : index
    %c0_54 = arith.constant 0 : index
    %53 = vector.load %arg4[%c5_52, %c0_53, %c0_54] : memref<6x32x32xf32, #tpu.memory_space<vmem>>, vector<1x32x32xf32>
    %54 = vector.shape_cast %53 : vector<1x32x32xf32> to vector<32x32xf32>
    %c0_55 = arith.constant 0 : index
    %c0_56 = arith.constant 0 : index
    %c0_57 = arith.constant 0 : index
    %55 = vector.load %arg5[%c0_55, %c0_56, %c0_57] : memref<6x1x32xf32, #tpu.memory_space<vmem>>, vector<1x1x32xf32>
    %56 = vector.shape_cast %55 : vector<1x1x32xf32> to vector<1x32xf32>
    %c1_58 = arith.constant 1 : index
    %c0_59 = arith.constant 0 : index
    %c0_60 = arith.constant 0 : index
    %57 = vector.load %arg5[%c1_58, %c0_59, %c0_60] : memref<6x1x32xf32, #tpu.memory_space<vmem>>, vector<1x1x32xf32>
    %58 = vector.shape_cast %57 : vector<1x1x32xf32> to vector<1x32xf32>
    %c2_61 = arith.constant 2 : index
    %c0_62 = arith.constant 0 : index
    %c0_63 = arith.constant 0 : index
    %59 = vector.load %arg5[%c2_61, %c0_62, %c0_63] : memref<6x1x32xf32, #tpu.memory_space<vmem>>, vector<1x1x32xf32>
    %60 = vector.shape_cast %59 : vector<1x1x32xf32> to vector<1x32xf32>
    %c3_64 = arith.constant 3 : index
    %c0_65 = arith.constant 0 : index
    %c0_66 = arith.constant 0 : index
    %61 = vector.load %arg5[%c3_64, %c0_65, %c0_66] : memref<6x1x32xf32, #tpu.memory_space<vmem>>, vector<1x1x32xf32>
    %62 = vector.shape_cast %61 : vector<1x1x32xf32> to vector<1x32xf32>
    %c4_67 = arith.constant 4 : index
    %c0_68 = arith.constant 0 : index
    %c0_69 = arith.constant 0 : index
    %63 = vector.load %arg5[%c4_67, %c0_68, %c0_69] : memref<6x1x32xf32, #tpu.memory_space<vmem>>, vector<1x1x32xf32>
    %64 = vector.shape_cast %63 : vector<1x1x32xf32> to vector<1x32xf32>
    %c5_70 = arith.constant 5 : index
    %c0_71 = arith.constant 0 : index
    %c0_72 = arith.constant 0 : index
    %65 = vector.load %arg5[%c5_70, %c0_71, %c0_72] : memref<6x1x32xf32, #tpu.memory_space<vmem>>, vector<1x1x32xf32>
    %66 = vector.shape_cast %65 : vector<1x1x32xf32> to vector<1x32xf32>
    %cst_73 = arith.constant 0.000000e+00 : f32
    %67 = vector.broadcast %cst_73 : f32 to vector<2x32xf32>
    %cst_74 = arith.constant 0.000000e+00 : f32
    %68 = vector.broadcast %cst_74 : f32 to vector<2x32xf32>
    %69 = vector.extract_strided_slice %7 {offsets = [0, 0], sizes = [2, 32], strides = [1, 1]} : vector<16x32xf32> to vector<2x32xf32>
    %70 = vector.extract_strided_slice %14 {offsets = [0, 0], sizes = [2, 32], strides = [1, 1]} : vector<16x32xf32> to vector<2x32xf32>
    %71 = vector.extract_strided_slice %21 {offsets = [0, 0], sizes = [2, 32], strides = [1, 1]} : vector<16x32xf32> to vector<2x32xf32>
    %cst_75 = arith.constant dense<0.000000e+00> : vector<2x32xf32>
    %72 = tpu.matmul %67, %44, %cst_75 {dimension_numbers = #tpu.dot_dimension_numbers<[1], [0], [0], [1], [0, 0, 1, 1], [], []>} : vector<2x32xf32>, vector<32x32xf32>, vector<2x32xf32> -> vector<2x32xf32>
    %73 = vector.broadcast %56 : vector<1x32xf32> to vector<2x32xf32>
    %74 = arith.addf %72, %73 : vector<2x32xf32>
    %cst_76 = arith.constant dense<0.000000e+00> : vector<2x32xf32>
    %75 = tpu.matmul %67, %46, %cst_76 {dimension_numbers = #tpu.dot_dimension_numbers<[1], [0], [0], [1], [0, 0, 1, 1], [], []>} : vector<2x32xf32>, vector<32x32xf32>, vector<2x32xf32> -> vector<2x32xf32>
    %76 = vector.broadcast %58 : vector<1x32xf32> to vector<2x32xf32>
    %77 = arith.addf %75, %76 : vector<2x32xf32>
    %cst_77 = arith.constant dense<0.000000e+00> : vector<2x32xf32>
    %78 = tpu.matmul %67, %48, %cst_77 {dimension_numbers = #tpu.dot_dimension_numbers<[1], [0], [0], [1], [0, 0, 1, 1], [], []>} : vector<2x32xf32>, vector<32x32xf32>, vector<2x32xf32> -> vector<2x32xf32>
    %79 = vector.broadcast %60 : vector<1x32xf32> to vector<2x32xf32>
    %80 = arith.addf %78, %79 : vector<2x32xf32>
    %81 = arith.addf %69, %74 : vector<2x32xf32>
    %82 = arith.negf %81 : vector<2x32xf32>
    %83 = math.exp %82 : vector<2x32xf32>
    %cst_78 = arith.constant 1.000000e+00 : f32
    %84 = vector.broadcast %cst_78 : f32 to vector<2x32xf32>
    %85 = arith.addf %84, %83 : vector<2x32xf32>
    %86 = arith.divf %84, %85 : vector<2x32xf32>
    %87 = arith.addf %70, %77 : vector<2x32xf32>
    %88 = arith.negf %87 : vector<2x32xf32>
    %89 = math.exp %88 : vector<2x32xf32>
    %cst_79 = arith.constant 1.000000e+00 : f32
    %90 = vector.broadcast %cst_79 : f32 to vector<2x32xf32>
    %91 = arith.addf %90, %89 : vector<2x32xf32>
    %92 = arith.divf %90, %91 : vector<2x32xf32>
    %93 = arith.mulf %86, %80 : vector<2x32xf32>
    %94 = arith.addf %71, %93 : vector<2x32xf32>
    %95 = math.tanh %94 : vector<2x32xf32>
    %cst_80 = arith.constant 1.000000e+00 : f32
    %96 = vector.broadcast %cst_80 : f32 to vector<2x32xf32>
    %97 = arith.subf %96, %92 : vector<2x32xf32>
    %98 = arith.mulf %97, %95 : vector<2x32xf32>
    %99 = arith.mulf %92, %67 : vector<2x32xf32>
    %100 = arith.addf %98, %99 : vector<2x32xf32>
    %101 = vector.extract_strided_slice %28 {offsets = [14, 0], sizes = [2, 32], strides = [1, 1]} : vector<16x32xf32> to vector<2x32xf32>
    %102 = vector.extract_strided_slice %35 {offsets = [14, 0], sizes = [2, 32], strides = [1, 1]} : vector<16x32xf32> to vector<2x32xf32>
    %103 = vector.extract_strided_slice %42 {offsets = [14, 0], sizes = [2, 32], strides = [1, 1]} : vector<16x32xf32> to vector<2x32xf32>
    %cst_81 = arith.constant dense<0.000000e+00> : vector<2x32xf32>
    %104 = tpu.matmul %68, %50, %cst_81 {dimension_numbers = #tpu.dot_dimension_numbers<[1], [0], [0], [1], [0, 0, 1, 1], [], []>} : vector<2x32xf32>, vector<32x32xf32>, vector<2x32xf32> -> vector<2x32xf32>
    %105 = vector.broadcast %62 : vector<1x32xf32> to vector<2x32xf32>
    %106 = arith.addf %104, %105 : vector<2x32xf32>
    %cst_82 = arith.constant dense<0.000000e+00> : vector<2x32xf32>
    %107 = tpu.matmul %68, %52, %cst_82 {dimension_numbers = #tpu.dot_dimension_numbers<[1], [0], [0], [1], [0, 0, 1, 1], [], []>} : vector<2x32xf32>, vector<32x32xf32>, vector<2x32xf32> -> vector<2x32xf32>
    %108 = vector.broadcast %64 : vector<1x32xf32> to vector<2x32xf32>
    %109 = arith.addf %107, %108 : vector<2x32xf32>
    %cst_83 = arith.constant dense<0.000000e+00> : vector<2x32xf32>
    %110 = tpu.matmul %68, %54, %cst_83 {dimension_numbers = #tpu.dot_dimension_numbers<[1], [0], [0], [1], [0, 0, 1, 1], [], []>} : vector<2x32xf32>, vector<32x32xf32>, vector<2x32xf32> -> vector<2x32xf32>
    %111 = vector.broadcast %66 : vector<1x32xf32> to vector<2x32xf32>
    %112 = arith.addf %110, %111 : vector<2x32xf32>
    %113 = arith.addf %101, %106 : vector<2x32xf32>
    %114 = arith.negf %113 : vector<2x32xf32>
    %115 = math.exp %114 : vector<2x32xf32>
    %cst_84 = arith.constant 1.000000e+00 : f32
    %116 = vector.broadcast %cst_84 : f32 to vector<2x32xf32>
    %117 = arith.addf %116, %115 : vector<2x32xf32>
    %118 = arith.divf %116, %117 : vector<2x32xf32>
    %119 = arith.addf %102, %109 : vector<2x32xf32>
    %120 = arith.negf %119 : vector<2x32xf32>
    %121 = math.exp %120 : vector<2x32xf32>
    %cst_85 = arith.constant 1.000000e+00 : f32
    %122 = vector.broadcast %cst_85 : f32 to vector<2x32xf32>
    %123 = arith.addf %122, %121 : vector<2x32xf32>
    %124 = arith.divf %122, %123 : vector<2x32xf32>
    %125 = arith.mulf %118, %112 : vector<2x32xf32>
    %126 = arith.addf %103, %125 : vector<2x32xf32>
    %127 = math.tanh %126 : vector<2x32xf32>
    %cst_86 = arith.constant 1.000000e+00 : f32
    %128 = vector.broadcast %cst_86 : f32 to vector<2x32xf32>
    %129 = arith.subf %128, %124 : vector<2x32xf32>
    %130 = arith.mulf %129, %127 : vector<2x32xf32>
    %131 = arith.mulf %124, %68 : vector<2x32xf32>
    %132 = arith.addf %130, %131 : vector<2x32xf32>
    %133 = vector.extract_strided_slice %7 {offsets = [2, 0], sizes = [2, 32], strides = [1, 1]} : vector<16x32xf32> to vector<2x32xf32>
    %134 = vector.extract_strided_slice %14 {offsets = [2, 0], sizes = [2, 32], strides = [1, 1]} : vector<16x32xf32> to vector<2x32xf32>
    %135 = vector.extract_strided_slice %21 {offsets = [2, 0], sizes = [2, 32], strides = [1, 1]} : vector<16x32xf32> to vector<2x32xf32>
    %cst_87 = arith.constant dense<0.000000e+00> : vector<2x32xf32>
    %136 = tpu.matmul %100, %44, %cst_87 {dimension_numbers = #tpu.dot_dimension_numbers<[1], [0], [0], [1], [0, 0, 1, 1], [], []>} : vector<2x32xf32>, vector<32x32xf32>, vector<2x32xf32> -> vector<2x32xf32>
    %137 = vector.broadcast %56 : vector<1x32xf32> to vector<2x32xf32>
    %138 = arith.addf %136, %137 : vector<2x32xf32>
    %cst_88 = arith.constant dense<0.000000e+00> : vector<2x32xf32>
    %139 = tpu.matmul %100, %46, %cst_88 {dimension_numbers = #tpu.dot_dimension_numbers<[1], [0], [0], [1], [0, 0, 1, 1], [], []>} : vector<2x32xf32>, vector<32x32xf32>, vector<2x32xf32> -> vector<2x32xf32>
    %140 = vector.broadcast %58 : vector<1x32xf32> to vector<2x32xf32>
    %141 = arith.addf %139, %140 : vector<2x32xf32>
    %cst_89 = arith.constant dense<0.000000e+00> : vector<2x32xf32>
    %142 = tpu.matmul %100, %48, %cst_89 {dimension_numbers = #tpu.dot_dimension_numbers<[1], [0], [0], [1], [0, 0, 1, 1], [], []>} : vector<2x32xf32>, vector<32x32xf32>, vector<2x32xf32> -> vector<2x32xf32>
    %143 = vector.broadcast %60 : vector<1x32xf32> to vector<2x32xf32>
    %144 = arith.addf %142, %143 : vector<2x32xf32>
    %145 = arith.addf %133, %138 : vector<2x32xf32>
    %146 = arith.negf %145 : vector<2x32xf32>
    %147 = math.exp %146 : vector<2x32xf32>
    %cst_90 = arith.constant 1.000000e+00 : f32
    %148 = vector.broadcast %cst_90 : f32 to vector<2x32xf32>
    %149 = arith.addf %148, %147 : vector<2x32xf32>
    %150 = arith.divf %148, %149 : vector<2x32xf32>
    %151 = arith.addf %134, %141 : vector<2x32xf32>
    %152 = arith.negf %151 : vector<2x32xf32>
    %153 = math.exp %152 : vector<2x32xf32>
    %cst_91 = arith.constant 1.000000e+00 : f32
    %154 = vector.broadcast %cst_91 : f32 to vector<2x32xf32>
    %155 = arith.addf %154, %153 : vector<2x32xf32>
    %156 = arith.divf %154, %155 : vector<2x32xf32>
    %157 = arith.mulf %150, %144 : vector<2x32xf32>
    %158 = arith.addf %135, %157 : vector<2x32xf32>
    %159 = math.tanh %158 : vector<2x32xf32>
    %cst_92 = arith.constant 1.000000e+00 : f32
    %160 = vector.broadcast %cst_92 : f32 to vector<2x32xf32>
    %161 = arith.subf %160, %156 : vector<2x32xf32>
    %162 = arith.mulf %161, %159 : vector<2x32xf32>
    %163 = arith.mulf %156, %100 : vector<2x32xf32>
    %164 = arith.addf %162, %163 : vector<2x32xf32>
    %165 = vector.extract_strided_slice %28 {offsets = [12, 0], sizes = [2, 32], strides = [1, 1]} : vector<16x32xf32> to vector<2x32xf32>
    %166 = vector.extract_strided_slice %35 {offsets = [12, 0], sizes = [2, 32], strides = [1, 1]} : vector<16x32xf32> to vector<2x32xf32>
    %167 = vector.extract_strided_slice %42 {offsets = [12, 0], sizes = [2, 32], strides = [1, 1]} : vector<16x32xf32> to vector<2x32xf32>
    %cst_93 = arith.constant dense<0.000000e+00> : vector<2x32xf32>
    %168 = tpu.matmul %132, %50, %cst_93 {dimension_numbers = #tpu.dot_dimension_numbers<[1], [0], [0], [1], [0, 0, 1, 1], [], []>} : vector<2x32xf32>, vector<32x32xf32>, vector<2x32xf32> -> vector<2x32xf32>
    %169 = vector.broadcast %62 : vector<1x32xf32> to vector<2x32xf32>
    %170 = arith.addf %168, %169 : vector<2x32xf32>
    %cst_94 = arith.constant dense<0.000000e+00> : vector<2x32xf32>
    %171 = tpu.matmul %132, %52, %cst_94 {dimension_numbers = #tpu.dot_dimension_numbers<[1], [0], [0], [1], [0, 0, 1, 1], [], []>} : vector<2x32xf32>, vector<32x32xf32>, vector<2x32xf32> -> vector<2x32xf32>
    %172 = vector.broadcast %64 : vector<1x32xf32> to vector<2x32xf32>
    %173 = arith.addf %171, %172 : vector<2x32xf32>
    %cst_95 = arith.constant dense<0.000000e+00> : vector<2x32xf32>
    %174 = tpu.matmul %132, %54, %cst_95 {dimension_numbers = #tpu.dot_dimension_numbers<[1], [0], [0], [1], [0, 0, 1, 1], [], []>} : vector<2x32xf32>, vector<32x32xf32>, vector<2x32xf32> -> vector<2x32xf32>
    %175 = vector.broadcast %66 : vector<1x32xf32> to vector<2x32xf32>
    %176 = arith.addf %174, %175 : vector<2x32xf32>
    %177 = arith.addf %165, %170 : vector<2x32xf32>
    %178 = arith.negf %177 : vector<2x32xf32>
    %179 = math.exp %178 : vector<2x32xf32>
    %cst_96 = arith.constant 1.000000e+00 : f32
    %180 = vector.broadcast %cst_96 : f32 to vector<2x32xf32>
    %181 = arith.addf %180, %179 : vector<2x32xf32>
    %182 = arith.divf %180, %181 : vector<2x32xf32>
    %183 = arith.addf %166, %173 : vector<2x32xf32>
    %184 = arith.negf %183 : vector<2x32xf32>
    %185 = math.exp %184 : vector<2x32xf32>
    %cst_97 = arith.constant 1.000000e+00 : f32
    %186 = vector.broadcast %cst_97 : f32 to vector<2x32xf32>
    %187 = arith.addf %186, %185 : vector<2x32xf32>
    %188 = arith.divf %186, %187 : vector<2x32xf32>
    %189 = arith.mulf %182, %176 : vector<2x32xf32>
    %190 = arith.addf %167, %189 : vector<2x32xf32>
    %191 = math.tanh %190 : vector<2x32xf32>
    %cst_98 = arith.constant 1.000000e+00 : f32
    %192 = vector.broadcast %cst_98 : f32 to vector<2x32xf32>
    %193 = arith.subf %192, %188 : vector<2x32xf32>
    %194 = arith.mulf %193, %191 : vector<2x32xf32>
    %195 = arith.mulf %188, %132 : vector<2x32xf32>
    %196 = arith.addf %194, %195 : vector<2x32xf32>
    %197 = vector.extract_strided_slice %7 {offsets = [4, 0], sizes = [2, 32], strides = [1, 1]} : vector<16x32xf32> to vector<2x32xf32>
    %198 = vector.extract_strided_slice %14 {offsets = [4, 0], sizes = [2, 32], strides = [1, 1]} : vector<16x32xf32> to vector<2x32xf32>
    %199 = vector.extract_strided_slice %21 {offsets = [4, 0], sizes = [2, 32], strides = [1, 1]} : vector<16x32xf32> to vector<2x32xf32>
    %cst_99 = arith.constant dense<0.000000e+00> : vector<2x32xf32>
    %200 = tpu.matmul %164, %44, %cst_99 {dimension_numbers = #tpu.dot_dimension_numbers<[1], [0], [0], [1], [0, 0, 1, 1], [], []>} : vector<2x32xf32>, vector<32x32xf32>, vector<2x32xf32> -> vector<2x32xf32>
    %201 = vector.broadcast %56 : vector<1x32xf32> to vector<2x32xf32>
    %202 = arith.addf %200, %201 : vector<2x32xf32>
    %cst_100 = arith.constant dense<0.000000e+00> : vector<2x32xf32>
    %203 = tpu.matmul %164, %46, %cst_100 {dimension_numbers = #tpu.dot_dimension_numbers<[1], [0], [0], [1], [0, 0, 1, 1], [], []>} : vector<2x32xf32>, vector<32x32xf32>, vector<2x32xf32> -> vector<2x32xf32>
    %204 = vector.broadcast %58 : vector<1x32xf32> to vector<2x32xf32>
    %205 = arith.addf %203, %204 : vector<2x32xf32>
    %cst_101 = arith.constant dense<0.000000e+00> : vector<2x32xf32>
    %206 = tpu.matmul %164, %48, %cst_101 {dimension_numbers = #tpu.dot_dimension_numbers<[1], [0], [0], [1], [0, 0, 1, 1], [], []>} : vector<2x32xf32>, vector<32x32xf32>, vector<2x32xf32> -> vector<2x32xf32>
    %207 = vector.broadcast %60 : vector<1x32xf32> to vector<2x32xf32>
    %208 = arith.addf %206, %207 : vector<2x32xf32>
    %209 = arith.addf %197, %202 : vector<2x32xf32>
    %210 = arith.negf %209 : vector<2x32xf32>
    %211 = math.exp %210 : vector<2x32xf32>
    %cst_102 = arith.constant 1.000000e+00 : f32
    %212 = vector.broadcast %cst_102 : f32 to vector<2x32xf32>
    %213 = arith.addf %212, %211 : vector<2x32xf32>
    %214 = arith.divf %212, %213 : vector<2x32xf32>
    %215 = arith.addf %198, %205 : vector<2x32xf32>
    %216 = arith.negf %215 : vector<2x32xf32>
    %217 = math.exp %216 : vector<2x32xf32>
    %cst_103 = arith.constant 1.000000e+00 : f32
    %218 = vector.broadcast %cst_103 : f32 to vector<2x32xf32>
    %219 = arith.addf %218, %217 : vector<2x32xf32>
    %220 = arith.divf %218, %219 : vector<2x32xf32>
    %221 = arith.mulf %214, %208 : vector<2x32xf32>
    %222 = arith.addf %199, %221 : vector<2x32xf32>
    %223 = math.tanh %222 : vector<2x32xf32>
    %cst_104 = arith.constant 1.000000e+00 : f32
    %224 = vector.broadcast %cst_104 : f32 to vector<2x32xf32>
    %225 = arith.subf %224, %220 : vector<2x32xf32>
    %226 = arith.mulf %225, %223 : vector<2x32xf32>
    %227 = arith.mulf %220, %164 : vector<2x32xf32>
    %228 = arith.addf %226, %227 : vector<2x32xf32>
    %229 = vector.extract_strided_slice %28 {offsets = [10, 0], sizes = [2, 32], strides = [1, 1]} : vector<16x32xf32> to vector<2x32xf32>
    %230 = vector.extract_strided_slice %35 {offsets = [10, 0], sizes = [2, 32], strides = [1, 1]} : vector<16x32xf32> to vector<2x32xf32>
    %231 = vector.extract_strided_slice %42 {offsets = [10, 0], sizes = [2, 32], strides = [1, 1]} : vector<16x32xf32> to vector<2x32xf32>
    %cst_105 = arith.constant dense<0.000000e+00> : vector<2x32xf32>
    %232 = tpu.matmul %196, %50, %cst_105 {dimension_numbers = #tpu.dot_dimension_numbers<[1], [0], [0], [1], [0, 0, 1, 1], [], []>} : vector<2x32xf32>, vector<32x32xf32>, vector<2x32xf32> -> vector<2x32xf32>
    %233 = vector.broadcast %62 : vector<1x32xf32> to vector<2x32xf32>
    %234 = arith.addf %232, %233 : vector<2x32xf32>
    %cst_106 = arith.constant dense<0.000000e+00> : vector<2x32xf32>
    %235 = tpu.matmul %196, %52, %cst_106 {dimension_numbers = #tpu.dot_dimension_numbers<[1], [0], [0], [1], [0, 0, 1, 1], [], []>} : vector<2x32xf32>, vector<32x32xf32>, vector<2x32xf32> -> vector<2x32xf32>
    %236 = vector.broadcast %64 : vector<1x32xf32> to vector<2x32xf32>
    %237 = arith.addf %235, %236 : vector<2x32xf32>
    %cst_107 = arith.constant dense<0.000000e+00> : vector<2x32xf32>
    %238 = tpu.matmul %196, %54, %cst_107 {dimension_numbers = #tpu.dot_dimension_numbers<[1], [0], [0], [1], [0, 0, 1, 1], [], []>} : vector<2x32xf32>, vector<32x32xf32>, vector<2x32xf32> -> vector<2x32xf32>
    %239 = vector.broadcast %66 : vector<1x32xf32> to vector<2x32xf32>
    %240 = arith.addf %238, %239 : vector<2x32xf32>
    %241 = arith.addf %229, %234 : vector<2x32xf32>
    %242 = arith.negf %241 : vector<2x32xf32>
    %243 = math.exp %242 : vector<2x32xf32>
    %cst_108 = arith.constant 1.000000e+00 : f32
    %244 = vector.broadcast %cst_108 : f32 to vector<2x32xf32>
    %245 = arith.addf %244, %243 : vector<2x32xf32>
    %246 = arith.divf %244, %245 : vector<2x32xf32>
    %247 = arith.addf %230, %237 : vector<2x32xf32>
    %248 = arith.negf %247 : vector<2x32xf32>
    %249 = math.exp %248 : vector<2x32xf32>
    %cst_109 = arith.constant 1.000000e+00 : f32
    %250 = vector.broadcast %cst_109 : f32 to vector<2x32xf32>
    %251 = arith.addf %250, %249 : vector<2x32xf32>
    %252 = arith.divf %250, %251 : vector<2x32xf32>
    %253 = arith.mulf %246, %240 : vector<2x32xf32>
    %254 = arith.addf %231, %253 : vector<2x32xf32>
    %255 = math.tanh %254 : vector<2x32xf32>
    %cst_110 = arith.constant 1.000000e+00 : f32
    %256 = vector.broadcast %cst_110 : f32 to vector<2x32xf32>
    %257 = arith.subf %256, %252 : vector<2x32xf32>
    %258 = arith.mulf %257, %255 : vector<2x32xf32>
    %259 = arith.mulf %252, %196 : vector<2x32xf32>
    %260 = arith.addf %258, %259 : vector<2x32xf32>
    %261 = vector.extract_strided_slice %7 {offsets = [6, 0], sizes = [2, 32], strides = [1, 1]} : vector<16x32xf32> to vector<2x32xf32>
    %262 = vector.extract_strided_slice %14 {offsets = [6, 0], sizes = [2, 32], strides = [1, 1]} : vector<16x32xf32> to vector<2x32xf32>
    %263 = vector.extract_strided_slice %21 {offsets = [6, 0], sizes = [2, 32], strides = [1, 1]} : vector<16x32xf32> to vector<2x32xf32>
    %cst_111 = arith.constant dense<0.000000e+00> : vector<2x32xf32>
    %264 = tpu.matmul %228, %44, %cst_111 {dimension_numbers = #tpu.dot_dimension_numbers<[1], [0], [0], [1], [0, 0, 1, 1], [], []>} : vector<2x32xf32>, vector<32x32xf32>, vector<2x32xf32> -> vector<2x32xf32>
    %265 = vector.broadcast %56 : vector<1x32xf32> to vector<2x32xf32>
    %266 = arith.addf %264, %265 : vector<2x32xf32>
    %cst_112 = arith.constant dense<0.000000e+00> : vector<2x32xf32>
    %267 = tpu.matmul %228, %46, %cst_112 {dimension_numbers = #tpu.dot_dimension_numbers<[1], [0], [0], [1], [0, 0, 1, 1], [], []>} : vector<2x32xf32>, vector<32x32xf32>, vector<2x32xf32> -> vector<2x32xf32>
    %268 = vector.broadcast %58 : vector<1x32xf32> to vector<2x32xf32>
    %269 = arith.addf %267, %268 : vector<2x32xf32>
    %cst_113 = arith.constant dense<0.000000e+00> : vector<2x32xf32>
    %270 = tpu.matmul %228, %48, %cst_113 {dimension_numbers = #tpu.dot_dimension_numbers<[1], [0], [0], [1], [0, 0, 1, 1], [], []>} : vector<2x32xf32>, vector<32x32xf32>, vector<2x32xf32> -> vector<2x32xf32>
    %271 = vector.broadcast %60 : vector<1x32xf32> to vector<2x32xf32>
    %272 = arith.addf %270, %271 : vector<2x32xf32>
    %273 = arith.addf %261, %266 : vector<2x32xf32>
    %274 = arith.negf %273 : vector<2x32xf32>
    %275 = math.exp %274 : vector<2x32xf32>
    %cst_114 = arith.constant 1.000000e+00 : f32
    %276 = vector.broadcast %cst_114 : f32 to vector<2x32xf32>
    %277 = arith.addf %276, %275 : vector<2x32xf32>
    %278 = arith.divf %276, %277 : vector<2x32xf32>
    %279 = arith.addf %262, %269 : vector<2x32xf32>
    %280 = arith.negf %279 : vector<2x32xf32>
    %281 = math.exp %280 : vector<2x32xf32>
    %cst_115 = arith.constant 1.000000e+00 : f32
    %282 = vector.broadcast %cst_115 : f32 to vector<2x32xf32>
    %283 = arith.addf %282, %281 : vector<2x32xf32>
    %284 = arith.divf %282, %283 : vector<2x32xf32>
    %285 = arith.mulf %278, %272 : vector<2x32xf32>
    %286 = arith.addf %263, %285 : vector<2x32xf32>
    %287 = math.tanh %286 : vector<2x32xf32>
    %cst_116 = arith.constant 1.000000e+00 : f32
    %288 = vector.broadcast %cst_116 : f32 to vector<2x32xf32>
    %289 = arith.subf %288, %284 : vector<2x32xf32>
    %290 = arith.mulf %289, %287 : vector<2x32xf32>
    %291 = arith.mulf %284, %228 : vector<2x32xf32>
    %292 = arith.addf %290, %291 : vector<2x32xf32>
    %293 = vector.extract_strided_slice %28 {offsets = [8, 0], sizes = [2, 32], strides = [1, 1]} : vector<16x32xf32> to vector<2x32xf32>
    %294 = vector.extract_strided_slice %35 {offsets = [8, 0], sizes = [2, 32], strides = [1, 1]} : vector<16x32xf32> to vector<2x32xf32>
    %295 = vector.extract_strided_slice %42 {offsets = [8, 0], sizes = [2, 32], strides = [1, 1]} : vector<16x32xf32> to vector<2x32xf32>
    %cst_117 = arith.constant dense<0.000000e+00> : vector<2x32xf32>
    %296 = tpu.matmul %260, %50, %cst_117 {dimension_numbers = #tpu.dot_dimension_numbers<[1], [0], [0], [1], [0, 0, 1, 1], [], []>} : vector<2x32xf32>, vector<32x32xf32>, vector<2x32xf32> -> vector<2x32xf32>
    %297 = vector.broadcast %62 : vector<1x32xf32> to vector<2x32xf32>
    %298 = arith.addf %296, %297 : vector<2x32xf32>
    %cst_118 = arith.constant dense<0.000000e+00> : vector<2x32xf32>
    %299 = tpu.matmul %260, %52, %cst_118 {dimension_numbers = #tpu.dot_dimension_numbers<[1], [0], [0], [1], [0, 0, 1, 1], [], []>} : vector<2x32xf32>, vector<32x32xf32>, vector<2x32xf32> -> vector<2x32xf32>
    %300 = vector.broadcast %64 : vector<1x32xf32> to vector<2x32xf32>
    %301 = arith.addf %299, %300 : vector<2x32xf32>
    %cst_119 = arith.constant dense<0.000000e+00> : vector<2x32xf32>
    %302 = tpu.matmul %260, %54, %cst_119 {dimension_numbers = #tpu.dot_dimension_numbers<[1], [0], [0], [1], [0, 0, 1, 1], [], []>} : vector<2x32xf32>, vector<32x32xf32>, vector<2x32xf32> -> vector<2x32xf32>
    %303 = vector.broadcast %66 : vector<1x32xf32> to vector<2x32xf32>
    %304 = arith.addf %302, %303 : vector<2x32xf32>
    %305 = arith.addf %293, %298 : vector<2x32xf32>
    %306 = arith.negf %305 : vector<2x32xf32>
    %307 = math.exp %306 : vector<2x32xf32>
    %cst_120 = arith.constant 1.000000e+00 : f32
    %308 = vector.broadcast %cst_120 : f32 to vector<2x32xf32>
    %309 = arith.addf %308, %307 : vector<2x32xf32>
    %310 = arith.divf %308, %309 : vector<2x32xf32>
    %311 = arith.addf %294, %301 : vector<2x32xf32>
    %312 = arith.negf %311 : vector<2x32xf32>
    %313 = math.exp %312 : vector<2x32xf32>
    %cst_121 = arith.constant 1.000000e+00 : f32
    %314 = vector.broadcast %cst_121 : f32 to vector<2x32xf32>
    %315 = arith.addf %314, %313 : vector<2x32xf32>
    %316 = arith.divf %314, %315 : vector<2x32xf32>
    %317 = arith.mulf %310, %304 : vector<2x32xf32>
    %318 = arith.addf %295, %317 : vector<2x32xf32>
    %319 = math.tanh %318 : vector<2x32xf32>
    %cst_122 = arith.constant 1.000000e+00 : f32
    %320 = vector.broadcast %cst_122 : f32 to vector<2x32xf32>
    %321 = arith.subf %320, %316 : vector<2x32xf32>
    %322 = arith.mulf %321, %319 : vector<2x32xf32>
    %323 = arith.mulf %316, %260 : vector<2x32xf32>
    %324 = arith.addf %322, %323 : vector<2x32xf32>
    %325 = vector.extract_strided_slice %7 {offsets = [8, 0], sizes = [2, 32], strides = [1, 1]} : vector<16x32xf32> to vector<2x32xf32>
    %326 = vector.extract_strided_slice %14 {offsets = [8, 0], sizes = [2, 32], strides = [1, 1]} : vector<16x32xf32> to vector<2x32xf32>
    %327 = vector.extract_strided_slice %21 {offsets = [8, 0], sizes = [2, 32], strides = [1, 1]} : vector<16x32xf32> to vector<2x32xf32>
    %cst_123 = arith.constant dense<0.000000e+00> : vector<2x32xf32>
    %328 = tpu.matmul %292, %44, %cst_123 {dimension_numbers = #tpu.dot_dimension_numbers<[1], [0], [0], [1], [0, 0, 1, 1], [], []>} : vector<2x32xf32>, vector<32x32xf32>, vector<2x32xf32> -> vector<2x32xf32>
    %329 = vector.broadcast %56 : vector<1x32xf32> to vector<2x32xf32>
    %330 = arith.addf %328, %329 : vector<2x32xf32>
    %cst_124 = arith.constant dense<0.000000e+00> : vector<2x32xf32>
    %331 = tpu.matmul %292, %46, %cst_124 {dimension_numbers = #tpu.dot_dimension_numbers<[1], [0], [0], [1], [0, 0, 1, 1], [], []>} : vector<2x32xf32>, vector<32x32xf32>, vector<2x32xf32> -> vector<2x32xf32>
    %332 = vector.broadcast %58 : vector<1x32xf32> to vector<2x32xf32>
    %333 = arith.addf %331, %332 : vector<2x32xf32>
    %cst_125 = arith.constant dense<0.000000e+00> : vector<2x32xf32>
    %334 = tpu.matmul %292, %48, %cst_125 {dimension_numbers = #tpu.dot_dimension_numbers<[1], [0], [0], [1], [0, 0, 1, 1], [], []>} : vector<2x32xf32>, vector<32x32xf32>, vector<2x32xf32> -> vector<2x32xf32>
    %335 = vector.broadcast %60 : vector<1x32xf32> to vector<2x32xf32>
    %336 = arith.addf %334, %335 : vector<2x32xf32>
    %337 = arith.addf %325, %330 : vector<2x32xf32>
    %338 = arith.negf %337 : vector<2x32xf32>
    %339 = math.exp %338 : vector<2x32xf32>
    %cst_126 = arith.constant 1.000000e+00 : f32
    %340 = vector.broadcast %cst_126 : f32 to vector<2x32xf32>
    %341 = arith.addf %340, %339 : vector<2x32xf32>
    %342 = arith.divf %340, %341 : vector<2x32xf32>
    %343 = arith.addf %326, %333 : vector<2x32xf32>
    %344 = arith.negf %343 : vector<2x32xf32>
    %345 = math.exp %344 : vector<2x32xf32>
    %cst_127 = arith.constant 1.000000e+00 : f32
    %346 = vector.broadcast %cst_127 : f32 to vector<2x32xf32>
    %347 = arith.addf %346, %345 : vector<2x32xf32>
    %348 = arith.divf %346, %347 : vector<2x32xf32>
    %349 = arith.mulf %342, %336 : vector<2x32xf32>
    %350 = arith.addf %327, %349 : vector<2x32xf32>
    %351 = math.tanh %350 : vector<2x32xf32>
    %cst_128 = arith.constant 1.000000e+00 : f32
    %352 = vector.broadcast %cst_128 : f32 to vector<2x32xf32>
    %353 = arith.subf %352, %348 : vector<2x32xf32>
    %354 = arith.mulf %353, %351 : vector<2x32xf32>
    %355 = arith.mulf %348, %292 : vector<2x32xf32>
    %356 = arith.addf %354, %355 : vector<2x32xf32>
    %357 = vector.extract_strided_slice %28 {offsets = [6, 0], sizes = [2, 32], strides = [1, 1]} : vector<16x32xf32> to vector<2x32xf32>
    %358 = vector.extract_strided_slice %35 {offsets = [6, 0], sizes = [2, 32], strides = [1, 1]} : vector<16x32xf32> to vector<2x32xf32>
    %359 = vector.extract_strided_slice %42 {offsets = [6, 0], sizes = [2, 32], strides = [1, 1]} : vector<16x32xf32> to vector<2x32xf32>
    %cst_129 = arith.constant dense<0.000000e+00> : vector<2x32xf32>
    %360 = tpu.matmul %324, %50, %cst_129 {dimension_numbers = #tpu.dot_dimension_numbers<[1], [0], [0], [1], [0, 0, 1, 1], [], []>} : vector<2x32xf32>, vector<32x32xf32>, vector<2x32xf32> -> vector<2x32xf32>
    %361 = vector.broadcast %62 : vector<1x32xf32> to vector<2x32xf32>
    %362 = arith.addf %360, %361 : vector<2x32xf32>
    %cst_130 = arith.constant dense<0.000000e+00> : vector<2x32xf32>
    %363 = tpu.matmul %324, %52, %cst_130 {dimension_numbers = #tpu.dot_dimension_numbers<[1], [0], [0], [1], [0, 0, 1, 1], [], []>} : vector<2x32xf32>, vector<32x32xf32>, vector<2x32xf32> -> vector<2x32xf32>
    %364 = vector.broadcast %64 : vector<1x32xf32> to vector<2x32xf32>
    %365 = arith.addf %363, %364 : vector<2x32xf32>
    %cst_131 = arith.constant dense<0.000000e+00> : vector<2x32xf32>
    %366 = tpu.matmul %324, %54, %cst_131 {dimension_numbers = #tpu.dot_dimension_numbers<[1], [0], [0], [1], [0, 0, 1, 1], [], []>} : vector<2x32xf32>, vector<32x32xf32>, vector<2x32xf32> -> vector<2x32xf32>
    %367 = vector.broadcast %66 : vector<1x32xf32> to vector<2x32xf32>
    %368 = arith.addf %366, %367 : vector<2x32xf32>
    %369 = arith.addf %357, %362 : vector<2x32xf32>
    %370 = arith.negf %369 : vector<2x32xf32>
    %371 = math.exp %370 : vector<2x32xf32>
    %cst_132 = arith.constant 1.000000e+00 : f32
    %372 = vector.broadcast %cst_132 : f32 to vector<2x32xf32>
    %373 = arith.addf %372, %371 : vector<2x32xf32>
    %374 = arith.divf %372, %373 : vector<2x32xf32>
    %375 = arith.addf %358, %365 : vector<2x32xf32>
    %376 = arith.negf %375 : vector<2x32xf32>
    %377 = math.exp %376 : vector<2x32xf32>
    %cst_133 = arith.constant 1.000000e+00 : f32
    %378 = vector.broadcast %cst_133 : f32 to vector<2x32xf32>
    %379 = arith.addf %378, %377 : vector<2x32xf32>
    %380 = arith.divf %378, %379 : vector<2x32xf32>
    %381 = arith.mulf %374, %368 : vector<2x32xf32>
    %382 = arith.addf %359, %381 : vector<2x32xf32>
    %383 = math.tanh %382 : vector<2x32xf32>
    %cst_134 = arith.constant 1.000000e+00 : f32
    %384 = vector.broadcast %cst_134 : f32 to vector<2x32xf32>
    %385 = arith.subf %384, %380 : vector<2x32xf32>
    %386 = arith.mulf %385, %383 : vector<2x32xf32>
    %387 = arith.mulf %380, %324 : vector<2x32xf32>
    %388 = arith.addf %386, %387 : vector<2x32xf32>
    %389 = vector.extract_strided_slice %7 {offsets = [10, 0], sizes = [2, 32], strides = [1, 1]} : vector<16x32xf32> to vector<2x32xf32>
    %390 = vector.extract_strided_slice %14 {offsets = [10, 0], sizes = [2, 32], strides = [1, 1]} : vector<16x32xf32> to vector<2x32xf32>
    %391 = vector.extract_strided_slice %21 {offsets = [10, 0], sizes = [2, 32], strides = [1, 1]} : vector<16x32xf32> to vector<2x32xf32>
    %cst_135 = arith.constant dense<0.000000e+00> : vector<2x32xf32>
    %392 = tpu.matmul %356, %44, %cst_135 {dimension_numbers = #tpu.dot_dimension_numbers<[1], [0], [0], [1], [0, 0, 1, 1], [], []>} : vector<2x32xf32>, vector<32x32xf32>, vector<2x32xf32> -> vector<2x32xf32>
    %393 = vector.broadcast %56 : vector<1x32xf32> to vector<2x32xf32>
    %394 = arith.addf %392, %393 : vector<2x32xf32>
    %cst_136 = arith.constant dense<0.000000e+00> : vector<2x32xf32>
    %395 = tpu.matmul %356, %46, %cst_136 {dimension_numbers = #tpu.dot_dimension_numbers<[1], [0], [0], [1], [0, 0, 1, 1], [], []>} : vector<2x32xf32>, vector<32x32xf32>, vector<2x32xf32> -> vector<2x32xf32>
    %396 = vector.broadcast %58 : vector<1x32xf32> to vector<2x32xf32>
    %397 = arith.addf %395, %396 : vector<2x32xf32>
    %cst_137 = arith.constant dense<0.000000e+00> : vector<2x32xf32>
    %398 = tpu.matmul %356, %48, %cst_137 {dimension_numbers = #tpu.dot_dimension_numbers<[1], [0], [0], [1], [0, 0, 1, 1], [], []>} : vector<2x32xf32>, vector<32x32xf32>, vector<2x32xf32> -> vector<2x32xf32>
    %399 = vector.broadcast %60 : vector<1x32xf32> to vector<2x32xf32>
    %400 = arith.addf %398, %399 : vector<2x32xf32>
    %401 = arith.addf %389, %394 : vector<2x32xf32>
    %402 = arith.negf %401 : vector<2x32xf32>
    %403 = math.exp %402 : vector<2x32xf32>
    %cst_138 = arith.constant 1.000000e+00 : f32
    %404 = vector.broadcast %cst_138 : f32 to vector<2x32xf32>
    %405 = arith.addf %404, %403 : vector<2x32xf32>
    %406 = arith.divf %404, %405 : vector<2x32xf32>
    %407 = arith.addf %390, %397 : vector<2x32xf32>
    %408 = arith.negf %407 : vector<2x32xf32>
    %409 = math.exp %408 : vector<2x32xf32>
    %cst_139 = arith.constant 1.000000e+00 : f32
    %410 = vector.broadcast %cst_139 : f32 to vector<2x32xf32>
    %411 = arith.addf %410, %409 : vector<2x32xf32>
    %412 = arith.divf %410, %411 : vector<2x32xf32>
    %413 = arith.mulf %406, %400 : vector<2x32xf32>
    %414 = arith.addf %391, %413 : vector<2x32xf32>
    %415 = math.tanh %414 : vector<2x32xf32>
    %cst_140 = arith.constant 1.000000e+00 : f32
    %416 = vector.broadcast %cst_140 : f32 to vector<2x32xf32>
    %417 = arith.subf %416, %412 : vector<2x32xf32>
    %418 = arith.mulf %417, %415 : vector<2x32xf32>
    %419 = arith.mulf %412, %356 : vector<2x32xf32>
    %420 = arith.addf %418, %419 : vector<2x32xf32>
    %421 = vector.extract_strided_slice %28 {offsets = [4, 0], sizes = [2, 32], strides = [1, 1]} : vector<16x32xf32> to vector<2x32xf32>
    %422 = vector.extract_strided_slice %35 {offsets = [4, 0], sizes = [2, 32], strides = [1, 1]} : vector<16x32xf32> to vector<2x32xf32>
    %423 = vector.extract_strided_slice %42 {offsets = [4, 0], sizes = [2, 32], strides = [1, 1]} : vector<16x32xf32> to vector<2x32xf32>
    %cst_141 = arith.constant dense<0.000000e+00> : vector<2x32xf32>
    %424 = tpu.matmul %388, %50, %cst_141 {dimension_numbers = #tpu.dot_dimension_numbers<[1], [0], [0], [1], [0, 0, 1, 1], [], []>} : vector<2x32xf32>, vector<32x32xf32>, vector<2x32xf32> -> vector<2x32xf32>
    %425 = vector.broadcast %62 : vector<1x32xf32> to vector<2x32xf32>
    %426 = arith.addf %424, %425 : vector<2x32xf32>
    %cst_142 = arith.constant dense<0.000000e+00> : vector<2x32xf32>
    %427 = tpu.matmul %388, %52, %cst_142 {dimension_numbers = #tpu.dot_dimension_numbers<[1], [0], [0], [1], [0, 0, 1, 1], [], []>} : vector<2x32xf32>, vector<32x32xf32>, vector<2x32xf32> -> vector<2x32xf32>
    %428 = vector.broadcast %64 : vector<1x32xf32> to vector<2x32xf32>
    %429 = arith.addf %427, %428 : vector<2x32xf32>
    %cst_143 = arith.constant dense<0.000000e+00> : vector<2x32xf32>
    %430 = tpu.matmul %388, %54, %cst_143 {dimension_numbers = #tpu.dot_dimension_numbers<[1], [0], [0], [1], [0, 0, 1, 1], [], []>} : vector<2x32xf32>, vector<32x32xf32>, vector<2x32xf32> -> vector<2x32xf32>
    %431 = vector.broadcast %66 : vector<1x32xf32> to vector<2x32xf32>
    %432 = arith.addf %430, %431 : vector<2x32xf32>
    %433 = arith.addf %421, %426 : vector<2x32xf32>
    %434 = arith.negf %433 : vector<2x32xf32>
    %435 = math.exp %434 : vector<2x32xf32>
    %cst_144 = arith.constant 1.000000e+00 : f32
    %436 = vector.broadcast %cst_144 : f32 to vector<2x32xf32>
    %437 = arith.addf %436, %435 : vector<2x32xf32>
    %438 = arith.divf %436, %437 : vector<2x32xf32>
    %439 = arith.addf %422, %429 : vector<2x32xf32>
    %440 = arith.negf %439 : vector<2x32xf32>
    %441 = math.exp %440 : vector<2x32xf32>
    %cst_145 = arith.constant 1.000000e+00 : f32
    %442 = vector.broadcast %cst_145 : f32 to vector<2x32xf32>
    %443 = arith.addf %442, %441 : vector<2x32xf32>
    %444 = arith.divf %442, %443 : vector<2x32xf32>
    %445 = arith.mulf %438, %432 : vector<2x32xf32>
    %446 = arith.addf %423, %445 : vector<2x32xf32>
    %447 = math.tanh %446 : vector<2x32xf32>
    %cst_146 = arith.constant 1.000000e+00 : f32
    %448 = vector.broadcast %cst_146 : f32 to vector<2x32xf32>
    %449 = arith.subf %448, %444 : vector<2x32xf32>
    %450 = arith.mulf %449, %447 : vector<2x32xf32>
    %451 = arith.mulf %444, %388 : vector<2x32xf32>
    %452 = arith.addf %450, %451 : vector<2x32xf32>
    %453 = vector.extract_strided_slice %7 {offsets = [12, 0], sizes = [2, 32], strides = [1, 1]} : vector<16x32xf32> to vector<2x32xf32>
    %454 = vector.extract_strided_slice %14 {offsets = [12, 0], sizes = [2, 32], strides = [1, 1]} : vector<16x32xf32> to vector<2x32xf32>
    %455 = vector.extract_strided_slice %21 {offsets = [12, 0], sizes = [2, 32], strides = [1, 1]} : vector<16x32xf32> to vector<2x32xf32>
    %cst_147 = arith.constant dense<0.000000e+00> : vector<2x32xf32>
    %456 = tpu.matmul %420, %44, %cst_147 {dimension_numbers = #tpu.dot_dimension_numbers<[1], [0], [0], [1], [0, 0, 1, 1], [], []>} : vector<2x32xf32>, vector<32x32xf32>, vector<2x32xf32> -> vector<2x32xf32>
    %457 = vector.broadcast %56 : vector<1x32xf32> to vector<2x32xf32>
    %458 = arith.addf %456, %457 : vector<2x32xf32>
    %cst_148 = arith.constant dense<0.000000e+00> : vector<2x32xf32>
    %459 = tpu.matmul %420, %46, %cst_148 {dimension_numbers = #tpu.dot_dimension_numbers<[1], [0], [0], [1], [0, 0, 1, 1], [], []>} : vector<2x32xf32>, vector<32x32xf32>, vector<2x32xf32> -> vector<2x32xf32>
    %460 = vector.broadcast %58 : vector<1x32xf32> to vector<2x32xf32>
    %461 = arith.addf %459, %460 : vector<2x32xf32>
    %cst_149 = arith.constant dense<0.000000e+00> : vector<2x32xf32>
    %462 = tpu.matmul %420, %48, %cst_149 {dimension_numbers = #tpu.dot_dimension_numbers<[1], [0], [0], [1], [0, 0, 1, 1], [], []>} : vector<2x32xf32>, vector<32x32xf32>, vector<2x32xf32> -> vector<2x32xf32>
    %463 = vector.broadcast %60 : vector<1x32xf32> to vector<2x32xf32>
    %464 = arith.addf %462, %463 : vector<2x32xf32>
    %465 = arith.addf %453, %458 : vector<2x32xf32>
    %466 = arith.negf %465 : vector<2x32xf32>
    %467 = math.exp %466 : vector<2x32xf32>
    %cst_150 = arith.constant 1.000000e+00 : f32
    %468 = vector.broadcast %cst_150 : f32 to vector<2x32xf32>
    %469 = arith.addf %468, %467 : vector<2x32xf32>
    %470 = arith.divf %468, %469 : vector<2x32xf32>
    %471 = arith.addf %454, %461 : vector<2x32xf32>
    %472 = arith.negf %471 : vector<2x32xf32>
    %473 = math.exp %472 : vector<2x32xf32>
    %cst_151 = arith.constant 1.000000e+00 : f32
    %474 = vector.broadcast %cst_151 : f32 to vector<2x32xf32>
    %475 = arith.addf %474, %473 : vector<2x32xf32>
    %476 = arith.divf %474, %475 : vector<2x32xf32>
    %477 = arith.mulf %470, %464 : vector<2x32xf32>
    %478 = arith.addf %455, %477 : vector<2x32xf32>
    %479 = math.tanh %478 : vector<2x32xf32>
    %cst_152 = arith.constant 1.000000e+00 : f32
    %480 = vector.broadcast %cst_152 : f32 to vector<2x32xf32>
    %481 = arith.subf %480, %476 : vector<2x32xf32>
    %482 = arith.mulf %481, %479 : vector<2x32xf32>
    %483 = arith.mulf %476, %420 : vector<2x32xf32>
    %484 = arith.addf %482, %483 : vector<2x32xf32>
    %485 = vector.extract_strided_slice %28 {offsets = [2, 0], sizes = [2, 32], strides = [1, 1]} : vector<16x32xf32> to vector<2x32xf32>
    %486 = vector.extract_strided_slice %35 {offsets = [2, 0], sizes = [2, 32], strides = [1, 1]} : vector<16x32xf32> to vector<2x32xf32>
    %487 = vector.extract_strided_slice %42 {offsets = [2, 0], sizes = [2, 32], strides = [1, 1]} : vector<16x32xf32> to vector<2x32xf32>
    %cst_153 = arith.constant dense<0.000000e+00> : vector<2x32xf32>
    %488 = tpu.matmul %452, %50, %cst_153 {dimension_numbers = #tpu.dot_dimension_numbers<[1], [0], [0], [1], [0, 0, 1, 1], [], []>} : vector<2x32xf32>, vector<32x32xf32>, vector<2x32xf32> -> vector<2x32xf32>
    %489 = vector.broadcast %62 : vector<1x32xf32> to vector<2x32xf32>
    %490 = arith.addf %488, %489 : vector<2x32xf32>
    %cst_154 = arith.constant dense<0.000000e+00> : vector<2x32xf32>
    %491 = tpu.matmul %452, %52, %cst_154 {dimension_numbers = #tpu.dot_dimension_numbers<[1], [0], [0], [1], [0, 0, 1, 1], [], []>} : vector<2x32xf32>, vector<32x32xf32>, vector<2x32xf32> -> vector<2x32xf32>
    %492 = vector.broadcast %64 : vector<1x32xf32> to vector<2x32xf32>
    %493 = arith.addf %491, %492 : vector<2x32xf32>
    %cst_155 = arith.constant dense<0.000000e+00> : vector<2x32xf32>
    %494 = tpu.matmul %452, %54, %cst_155 {dimension_numbers = #tpu.dot_dimension_numbers<[1], [0], [0], [1], [0, 0, 1, 1], [], []>} : vector<2x32xf32>, vector<32x32xf32>, vector<2x32xf32> -> vector<2x32xf32>
    %495 = vector.broadcast %66 : vector<1x32xf32> to vector<2x32xf32>
    %496 = arith.addf %494, %495 : vector<2x32xf32>
    %497 = arith.addf %485, %490 : vector<2x32xf32>
    %498 = arith.negf %497 : vector<2x32xf32>
    %499 = math.exp %498 : vector<2x32xf32>
    %cst_156 = arith.constant 1.000000e+00 : f32
    %500 = vector.broadcast %cst_156 : f32 to vector<2x32xf32>
    %501 = arith.addf %500, %499 : vector<2x32xf32>
    %502 = arith.divf %500, %501 : vector<2x32xf32>
    %503 = arith.addf %486, %493 : vector<2x32xf32>
    %504 = arith.negf %503 : vector<2x32xf32>
    %505 = math.exp %504 : vector<2x32xf32>
    %cst_157 = arith.constant 1.000000e+00 : f32
    %506 = vector.broadcast %cst_157 : f32 to vector<2x32xf32>
    %507 = arith.addf %506, %505 : vector<2x32xf32>
    %508 = arith.divf %506, %507 : vector<2x32xf32>
    %509 = arith.mulf %502, %496 : vector<2x32xf32>
    %510 = arith.addf %487, %509 : vector<2x32xf32>
    %511 = math.tanh %510 : vector<2x32xf32>
    %cst_158 = arith.constant 1.000000e+00 : f32
    %512 = vector.broadcast %cst_158 : f32 to vector<2x32xf32>
    %513 = arith.subf %512, %508 : vector<2x32xf32>
    %514 = arith.mulf %513, %511 : vector<2x32xf32>
    %515 = arith.mulf %508, %452 : vector<2x32xf32>
    %516 = arith.addf %514, %515 : vector<2x32xf32>
    %517 = vector.extract_strided_slice %7 {offsets = [14, 0], sizes = [2, 32], strides = [1, 1]} : vector<16x32xf32> to vector<2x32xf32>
    %518 = vector.extract_strided_slice %14 {offsets = [14, 0], sizes = [2, 32], strides = [1, 1]} : vector<16x32xf32> to vector<2x32xf32>
    %519 = vector.extract_strided_slice %21 {offsets = [14, 0], sizes = [2, 32], strides = [1, 1]} : vector<16x32xf32> to vector<2x32xf32>
    %cst_159 = arith.constant dense<0.000000e+00> : vector<2x32xf32>
    %520 = tpu.matmul %484, %44, %cst_159 {dimension_numbers = #tpu.dot_dimension_numbers<[1], [0], [0], [1], [0, 0, 1, 1], [], []>} : vector<2x32xf32>, vector<32x32xf32>, vector<2x32xf32> -> vector<2x32xf32>
    %521 = vector.broadcast %56 : vector<1x32xf32> to vector<2x32xf32>
    %522 = arith.addf %520, %521 : vector<2x32xf32>
    %cst_160 = arith.constant dense<0.000000e+00> : vector<2x32xf32>
    %523 = tpu.matmul %484, %46, %cst_160 {dimension_numbers = #tpu.dot_dimension_numbers<[1], [0], [0], [1], [0, 0, 1, 1], [], []>} : vector<2x32xf32>, vector<32x32xf32>, vector<2x32xf32> -> vector<2x32xf32>
    %524 = vector.broadcast %58 : vector<1x32xf32> to vector<2x32xf32>
    %525 = arith.addf %523, %524 : vector<2x32xf32>
    %cst_161 = arith.constant dense<0.000000e+00> : vector<2x32xf32>
    %526 = tpu.matmul %484, %48, %cst_161 {dimension_numbers = #tpu.dot_dimension_numbers<[1], [0], [0], [1], [0, 0, 1, 1], [], []>} : vector<2x32xf32>, vector<32x32xf32>, vector<2x32xf32> -> vector<2x32xf32>
    %527 = vector.broadcast %60 : vector<1x32xf32> to vector<2x32xf32>
    %528 = arith.addf %526, %527 : vector<2x32xf32>
    %529 = arith.addf %517, %522 : vector<2x32xf32>
    %530 = arith.negf %529 : vector<2x32xf32>
    %531 = math.exp %530 : vector<2x32xf32>
    %cst_162 = arith.constant 1.000000e+00 : f32
    %532 = vector.broadcast %cst_162 : f32 to vector<2x32xf32>
    %533 = arith.addf %532, %531 : vector<2x32xf32>
    %534 = arith.divf %532, %533 : vector<2x32xf32>
    %535 = arith.addf %518, %525 : vector<2x32xf32>
    %536 = arith.negf %535 : vector<2x32xf32>
    %537 = math.exp %536 : vector<2x32xf32>
    %cst_163 = arith.constant 1.000000e+00 : f32
    %538 = vector.broadcast %cst_163 : f32 to vector<2x32xf32>
    %539 = arith.addf %538, %537 : vector<2x32xf32>
    %540 = arith.divf %538, %539 : vector<2x32xf32>
    %541 = arith.mulf %534, %528 : vector<2x32xf32>
    %542 = arith.addf %519, %541 : vector<2x32xf32>
    %543 = math.tanh %542 : vector<2x32xf32>
    %cst_164 = arith.constant 1.000000e+00 : f32
    %544 = vector.broadcast %cst_164 : f32 to vector<2x32xf32>
    %545 = arith.subf %544, %540 : vector<2x32xf32>
    %546 = arith.mulf %545, %543 : vector<2x32xf32>
    %547 = arith.mulf %540, %484 : vector<2x32xf32>
    %548 = arith.addf %546, %547 : vector<2x32xf32>
    %549 = vector.extract_strided_slice %28 {offsets = [0, 0], sizes = [2, 32], strides = [1, 1]} : vector<16x32xf32> to vector<2x32xf32>
    %550 = vector.extract_strided_slice %35 {offsets = [0, 0], sizes = [2, 32], strides = [1, 1]} : vector<16x32xf32> to vector<2x32xf32>
    %551 = vector.extract_strided_slice %42 {offsets = [0, 0], sizes = [2, 32], strides = [1, 1]} : vector<16x32xf32> to vector<2x32xf32>
    %cst_165 = arith.constant dense<0.000000e+00> : vector<2x32xf32>
    %552 = tpu.matmul %516, %50, %cst_165 {dimension_numbers = #tpu.dot_dimension_numbers<[1], [0], [0], [1], [0, 0, 1, 1], [], []>} : vector<2x32xf32>, vector<32x32xf32>, vector<2x32xf32> -> vector<2x32xf32>
    %553 = vector.broadcast %62 : vector<1x32xf32> to vector<2x32xf32>
    %554 = arith.addf %552, %553 : vector<2x32xf32>
    %cst_166 = arith.constant dense<0.000000e+00> : vector<2x32xf32>
    %555 = tpu.matmul %516, %52, %cst_166 {dimension_numbers = #tpu.dot_dimension_numbers<[1], [0], [0], [1], [0, 0, 1, 1], [], []>} : vector<2x32xf32>, vector<32x32xf32>, vector<2x32xf32> -> vector<2x32xf32>
    %556 = vector.broadcast %64 : vector<1x32xf32> to vector<2x32xf32>
    %557 = arith.addf %555, %556 : vector<2x32xf32>
    %cst_167 = arith.constant dense<0.000000e+00> : vector<2x32xf32>
    %558 = tpu.matmul %516, %54, %cst_167 {dimension_numbers = #tpu.dot_dimension_numbers<[1], [0], [0], [1], [0, 0, 1, 1], [], []>} : vector<2x32xf32>, vector<32x32xf32>, vector<2x32xf32> -> vector<2x32xf32>
    %559 = vector.broadcast %66 : vector<1x32xf32> to vector<2x32xf32>
    %560 = arith.addf %558, %559 : vector<2x32xf32>
    %561 = arith.addf %549, %554 : vector<2x32xf32>
    %562 = arith.negf %561 : vector<2x32xf32>
    %563 = math.exp %562 : vector<2x32xf32>
    %cst_168 = arith.constant 1.000000e+00 : f32
    %564 = vector.broadcast %cst_168 : f32 to vector<2x32xf32>
    %565 = arith.addf %564, %563 : vector<2x32xf32>
    %566 = arith.divf %564, %565 : vector<2x32xf32>
    %567 = arith.addf %550, %557 : vector<2x32xf32>
    %568 = arith.negf %567 : vector<2x32xf32>
    %569 = math.exp %568 : vector<2x32xf32>
    %cst_169 = arith.constant 1.000000e+00 : f32
    %570 = vector.broadcast %cst_169 : f32 to vector<2x32xf32>
    %571 = arith.addf %570, %569 : vector<2x32xf32>
    %572 = arith.divf %570, %571 : vector<2x32xf32>
    %573 = arith.mulf %566, %560 : vector<2x32xf32>
    %574 = arith.addf %551, %573 : vector<2x32xf32>
    %575 = math.tanh %574 : vector<2x32xf32>
    %cst_170 = arith.constant 1.000000e+00 : f32
    %576 = vector.broadcast %cst_170 : f32 to vector<2x32xf32>
    %577 = arith.subf %576, %572 : vector<2x32xf32>
    %578 = arith.mulf %577, %575 : vector<2x32xf32>
    %579 = arith.mulf %572, %516 : vector<2x32xf32>
    %580 = arith.addf %578, %579 : vector<2x32xf32>
    %581 = tpu.concatenate %100, %164, %228, %292, %356, %420, %484, %548 in 0 : vector<2x32xf32>, vector<2x32xf32>, vector<2x32xf32>, vector<2x32xf32>, vector<2x32xf32>, vector<2x32xf32>, vector<2x32xf32>, vector<2x32xf32> -> vector<16x32xf32>
    %582 = tpu.concatenate %580, %516, %452, %388, %324, %260, %196, %132 in 0 : vector<2x32xf32>, vector<2x32xf32>, vector<2x32xf32>, vector<2x32xf32>, vector<2x32xf32>, vector<2x32xf32>, vector<2x32xf32>, vector<2x32xf32> -> vector<16x32xf32>
    %583 = tpu.concatenate %581, %582 in 1 : vector<16x32xf32>, vector<16x32xf32> -> vector<16x64xf32>
    %c0_171 = arith.constant 0 : index
    %c0_172 = arith.constant 0 : index
    %c0_173 = arith.constant 0 : index
    %584 = vector.load %arg6[%c0_171, %c0_172, %c0_173] : memref<6x64x32xf32, #tpu.memory_space<vmem>>, vector<1x64x32xf32>
    %585 = vector.shape_cast %584 : vector<1x64x32xf32> to vector<64x32xf32>
    %cst_174 = arith.constant dense<0.000000e+00> : vector<16x32xf32>
    %586 = tpu.matmul %583, %585, %cst_174 {dimension_numbers = #tpu.dot_dimension_numbers<[1], [0], [0], [1], [0, 0, 1, 1], [], []>} : vector<16x64xf32>, vector<64x32xf32>, vector<16x32xf32> -> vector<16x32xf32>
    %c0_175 = arith.constant 0 : index
    %c0_176 = arith.constant 0 : index
    %c0_177 = arith.constant 0 : index
    %587 = vector.load %arg7[%c0_175, %c0_176, %c0_177] : memref<6x1x32xf32, #tpu.memory_space<vmem>>, vector<1x1x32xf32>
    %588 = vector.shape_cast %587 : vector<1x1x32xf32> to vector<1x32xf32>
    %589 = vector.broadcast %588 : vector<1x32xf32> to vector<16x32xf32>
    %590 = arith.addf %586, %589 : vector<16x32xf32>
    %c1_178 = arith.constant 1 : index
    %c0_179 = arith.constant 0 : index
    %c0_180 = arith.constant 0 : index
    %591 = vector.load %arg6[%c1_178, %c0_179, %c0_180] : memref<6x64x32xf32, #tpu.memory_space<vmem>>, vector<1x64x32xf32>
    %592 = vector.shape_cast %591 : vector<1x64x32xf32> to vector<64x32xf32>
    %cst_181 = arith.constant dense<0.000000e+00> : vector<16x32xf32>
    %593 = tpu.matmul %583, %592, %cst_181 {dimension_numbers = #tpu.dot_dimension_numbers<[1], [0], [0], [1], [0, 0, 1, 1], [], []>} : vector<16x64xf32>, vector<64x32xf32>, vector<16x32xf32> -> vector<16x32xf32>
    %c1_182 = arith.constant 1 : index
    %c0_183 = arith.constant 0 : index
    %c0_184 = arith.constant 0 : index
    %594 = vector.load %arg7[%c1_182, %c0_183, %c0_184] : memref<6x1x32xf32, #tpu.memory_space<vmem>>, vector<1x1x32xf32>
    %595 = vector.shape_cast %594 : vector<1x1x32xf32> to vector<1x32xf32>
    %596 = vector.broadcast %595 : vector<1x32xf32> to vector<16x32xf32>
    %597 = arith.addf %593, %596 : vector<16x32xf32>
    %c2_185 = arith.constant 2 : index
    %c0_186 = arith.constant 0 : index
    %c0_187 = arith.constant 0 : index
    %598 = vector.load %arg6[%c2_185, %c0_186, %c0_187] : memref<6x64x32xf32, #tpu.memory_space<vmem>>, vector<1x64x32xf32>
    %599 = vector.shape_cast %598 : vector<1x64x32xf32> to vector<64x32xf32>
    %cst_188 = arith.constant dense<0.000000e+00> : vector<16x32xf32>
    %600 = tpu.matmul %583, %599, %cst_188 {dimension_numbers = #tpu.dot_dimension_numbers<[1], [0], [0], [1], [0, 0, 1, 1], [], []>} : vector<16x64xf32>, vector<64x32xf32>, vector<16x32xf32> -> vector<16x32xf32>
    %c2_189 = arith.constant 2 : index
    %c0_190 = arith.constant 0 : index
    %c0_191 = arith.constant 0 : index
    %601 = vector.load %arg7[%c2_189, %c0_190, %c0_191] : memref<6x1x32xf32, #tpu.memory_space<vmem>>, vector<1x1x32xf32>
    %602 = vector.shape_cast %601 : vector<1x1x32xf32> to vector<1x32xf32>
    %603 = vector.broadcast %602 : vector<1x32xf32> to vector<16x32xf32>
    %604 = arith.addf %600, %603 : vector<16x32xf32>
    %c3_192 = arith.constant 3 : index
    %c0_193 = arith.constant 0 : index
    %c0_194 = arith.constant 0 : index
    %605 = vector.load %arg6[%c3_192, %c0_193, %c0_194] : memref<6x64x32xf32, #tpu.memory_space<vmem>>, vector<1x64x32xf32>
    %606 = vector.shape_cast %605 : vector<1x64x32xf32> to vector<64x32xf32>
    %cst_195 = arith.constant dense<0.000000e+00> : vector<16x32xf32>
    %607 = tpu.matmul %583, %606, %cst_195 {dimension_numbers = #tpu.dot_dimension_numbers<[1], [0], [0], [1], [0, 0, 1, 1], [], []>} : vector<16x64xf32>, vector<64x32xf32>, vector<16x32xf32> -> vector<16x32xf32>
    %c3_196 = arith.constant 3 : index
    %c0_197 = arith.constant 0 : index
    %c0_198 = arith.constant 0 : index
    %608 = vector.load %arg7[%c3_196, %c0_197, %c0_198] : memref<6x1x32xf32, #tpu.memory_space<vmem>>, vector<1x1x32xf32>
    %609 = vector.shape_cast %608 : vector<1x1x32xf32> to vector<1x32xf32>
    %610 = vector.broadcast %609 : vector<1x32xf32> to vector<16x32xf32>
    %611 = arith.addf %607, %610 : vector<16x32xf32>
    %c4_199 = arith.constant 4 : index
    %c0_200 = arith.constant 0 : index
    %c0_201 = arith.constant 0 : index
    %612 = vector.load %arg6[%c4_199, %c0_200, %c0_201] : memref<6x64x32xf32, #tpu.memory_space<vmem>>, vector<1x64x32xf32>
    %613 = vector.shape_cast %612 : vector<1x64x32xf32> to vector<64x32xf32>
    %cst_202 = arith.constant dense<0.000000e+00> : vector<16x32xf32>
    %614 = tpu.matmul %583, %613, %cst_202 {dimension_numbers = #tpu.dot_dimension_numbers<[1], [0], [0], [1], [0, 0, 1, 1], [], []>} : vector<16x64xf32>, vector<64x32xf32>, vector<16x32xf32> -> vector<16x32xf32>
    %c4_203 = arith.constant 4 : index
    %c0_204 = arith.constant 0 : index
    %c0_205 = arith.constant 0 : index
    %615 = vector.load %arg7[%c4_203, %c0_204, %c0_205] : memref<6x1x32xf32, #tpu.memory_space<vmem>>, vector<1x1x32xf32>
    %616 = vector.shape_cast %615 : vector<1x1x32xf32> to vector<1x32xf32>
    %617 = vector.broadcast %616 : vector<1x32xf32> to vector<16x32xf32>
    %618 = arith.addf %614, %617 : vector<16x32xf32>
    %c5_206 = arith.constant 5 : index
    %c0_207 = arith.constant 0 : index
    %c0_208 = arith.constant 0 : index
    %619 = vector.load %arg6[%c5_206, %c0_207, %c0_208] : memref<6x64x32xf32, #tpu.memory_space<vmem>>, vector<1x64x32xf32>
    %620 = vector.shape_cast %619 : vector<1x64x32xf32> to vector<64x32xf32>
    %cst_209 = arith.constant dense<0.000000e+00> : vector<16x32xf32>
    %621 = tpu.matmul %583, %620, %cst_209 {dimension_numbers = #tpu.dot_dimension_numbers<[1], [0], [0], [1], [0, 0, 1, 1], [], []>} : vector<16x64xf32>, vector<64x32xf32>, vector<16x32xf32> -> vector<16x32xf32>
    %c5_210 = arith.constant 5 : index
    %c0_211 = arith.constant 0 : index
    %c0_212 = arith.constant 0 : index
    %622 = vector.load %arg7[%c5_210, %c0_211, %c0_212] : memref<6x1x32xf32, #tpu.memory_space<vmem>>, vector<1x1x32xf32>
    %623 = vector.shape_cast %622 : vector<1x1x32xf32> to vector<1x32xf32>
    %624 = vector.broadcast %623 : vector<1x32xf32> to vector<16x32xf32>
    %625 = arith.addf %621, %624 : vector<16x32xf32>
    %c0_213 = arith.constant 0 : index
    %c0_214 = arith.constant 0 : index
    %c0_215 = arith.constant 0 : index
    %626 = vector.load %arg8[%c0_213, %c0_214, %c0_215] : memref<6x32x32xf32, #tpu.memory_space<vmem>>, vector<1x32x32xf32>
    %627 = vector.shape_cast %626 : vector<1x32x32xf32> to vector<32x32xf32>
    %c1_216 = arith.constant 1 : index
    %c0_217 = arith.constant 0 : index
    %c0_218 = arith.constant 0 : index
    %628 = vector.load %arg8[%c1_216, %c0_217, %c0_218] : memref<6x32x32xf32, #tpu.memory_space<vmem>>, vector<1x32x32xf32>
    %629 = vector.shape_cast %628 : vector<1x32x32xf32> to vector<32x32xf32>
    %c2_219 = arith.constant 2 : index
    %c0_220 = arith.constant 0 : index
    %c0_221 = arith.constant 0 : index
    %630 = vector.load %arg8[%c2_219, %c0_220, %c0_221] : memref<6x32x32xf32, #tpu.memory_space<vmem>>, vector<1x32x32xf32>
    %631 = vector.shape_cast %630 : vector<1x32x32xf32> to vector<32x32xf32>
    %c3_222 = arith.constant 3 : index
    %c0_223 = arith.constant 0 : index
    %c0_224 = arith.constant 0 : index
    %632 = vector.load %arg8[%c3_222, %c0_223, %c0_224] : memref<6x32x32xf32, #tpu.memory_space<vmem>>, vector<1x32x32xf32>
    %633 = vector.shape_cast %632 : vector<1x32x32xf32> to vector<32x32xf32>
    %c4_225 = arith.constant 4 : index
    %c0_226 = arith.constant 0 : index
    %c0_227 = arith.constant 0 : index
    %634 = vector.load %arg8[%c4_225, %c0_226, %c0_227] : memref<6x32x32xf32, #tpu.memory_space<vmem>>, vector<1x32x32xf32>
    %635 = vector.shape_cast %634 : vector<1x32x32xf32> to vector<32x32xf32>
    %c5_228 = arith.constant 5 : index
    %c0_229 = arith.constant 0 : index
    %c0_230 = arith.constant 0 : index
    %636 = vector.load %arg8[%c5_228, %c0_229, %c0_230] : memref<6x32x32xf32, #tpu.memory_space<vmem>>, vector<1x32x32xf32>
    %637 = vector.shape_cast %636 : vector<1x32x32xf32> to vector<32x32xf32>
    %c0_231 = arith.constant 0 : index
    %c0_232 = arith.constant 0 : index
    %c0_233 = arith.constant 0 : index
    %638 = vector.load %arg9[%c0_231, %c0_232, %c0_233] : memref<6x1x32xf32, #tpu.memory_space<vmem>>, vector<1x1x32xf32>
    %639 = vector.shape_cast %638 : vector<1x1x32xf32> to vector<1x32xf32>
    %c1_234 = arith.constant 1 : index
    %c0_235 = arith.constant 0 : index
    %c0_236 = arith.constant 0 : index
    %640 = vector.load %arg9[%c1_234, %c0_235, %c0_236] : memref<6x1x32xf32, #tpu.memory_space<vmem>>, vector<1x1x32xf32>
    %641 = vector.shape_cast %640 : vector<1x1x32xf32> to vector<1x32xf32>
    %c2_237 = arith.constant 2 : index
    %c0_238 = arith.constant 0 : index
    %c0_239 = arith.constant 0 : index
    %642 = vector.load %arg9[%c2_237, %c0_238, %c0_239] : memref<6x1x32xf32, #tpu.memory_space<vmem>>, vector<1x1x32xf32>
    %643 = vector.shape_cast %642 : vector<1x1x32xf32> to vector<1x32xf32>
    %c3_240 = arith.constant 3 : index
    %c0_241 = arith.constant 0 : index
    %c0_242 = arith.constant 0 : index
    %644 = vector.load %arg9[%c3_240, %c0_241, %c0_242] : memref<6x1x32xf32, #tpu.memory_space<vmem>>, vector<1x1x32xf32>
    %645 = vector.shape_cast %644 : vector<1x1x32xf32> to vector<1x32xf32>
    %c4_243 = arith.constant 4 : index
    %c0_244 = arith.constant 0 : index
    %c0_245 = arith.constant 0 : index
    %646 = vector.load %arg9[%c4_243, %c0_244, %c0_245] : memref<6x1x32xf32, #tpu.memory_space<vmem>>, vector<1x1x32xf32>
    %647 = vector.shape_cast %646 : vector<1x1x32xf32> to vector<1x32xf32>
    %c5_246 = arith.constant 5 : index
    %c0_247 = arith.constant 0 : index
    %c0_248 = arith.constant 0 : index
    %648 = vector.load %arg9[%c5_246, %c0_247, %c0_248] : memref<6x1x32xf32, #tpu.memory_space<vmem>>, vector<1x1x32xf32>
    %649 = vector.shape_cast %648 : vector<1x1x32xf32> to vector<1x32xf32>
    %cst_249 = arith.constant 0.000000e+00 : f32
    %650 = vector.broadcast %cst_249 : f32 to vector<2x32xf32>
    %cst_250 = arith.constant 0.000000e+00 : f32
    %651 = vector.broadcast %cst_250 : f32 to vector<2x32xf32>
    %652 = vector.extract_strided_slice %590 {offsets = [0, 0], sizes = [2, 32], strides = [1, 1]} : vector<16x32xf32> to vector<2x32xf32>
    %653 = vector.extract_strided_slice %597 {offsets = [0, 0], sizes = [2, 32], strides = [1, 1]} : vector<16x32xf32> to vector<2x32xf32>
    %654 = vector.extract_strided_slice %604 {offsets = [0, 0], sizes = [2, 32], strides = [1, 1]} : vector<16x32xf32> to vector<2x32xf32>
    %cst_251 = arith.constant dense<0.000000e+00> : vector<2x32xf32>
    %655 = tpu.matmul %650, %627, %cst_251 {dimension_numbers = #tpu.dot_dimension_numbers<[1], [0], [0], [1], [0, 0, 1, 1], [], []>} : vector<2x32xf32>, vector<32x32xf32>, vector<2x32xf32> -> vector<2x32xf32>
    %656 = vector.broadcast %639 : vector<1x32xf32> to vector<2x32xf32>
    %657 = arith.addf %655, %656 : vector<2x32xf32>
    %cst_252 = arith.constant dense<0.000000e+00> : vector<2x32xf32>
    %658 = tpu.matmul %650, %629, %cst_252 {dimension_numbers = #tpu.dot_dimension_numbers<[1], [0], [0], [1], [0, 0, 1, 1], [], []>} : vector<2x32xf32>, vector<32x32xf32>, vector<2x32xf32> -> vector<2x32xf32>
    %659 = vector.broadcast %641 : vector<1x32xf32> to vector<2x32xf32>
    %660 = arith.addf %658, %659 : vector<2x32xf32>
    %cst_253 = arith.constant dense<0.000000e+00> : vector<2x32xf32>
    %661 = tpu.matmul %650, %631, %cst_253 {dimension_numbers = #tpu.dot_dimension_numbers<[1], [0], [0], [1], [0, 0, 1, 1], [], []>} : vector<2x32xf32>, vector<32x32xf32>, vector<2x32xf32> -> vector<2x32xf32>
    %662 = vector.broadcast %643 : vector<1x32xf32> to vector<2x32xf32>
    %663 = arith.addf %661, %662 : vector<2x32xf32>
    %664 = arith.addf %652, %657 : vector<2x32xf32>
    %665 = arith.negf %664 : vector<2x32xf32>
    %666 = math.exp %665 : vector<2x32xf32>
    %cst_254 = arith.constant 1.000000e+00 : f32
    %667 = vector.broadcast %cst_254 : f32 to vector<2x32xf32>
    %668 = arith.addf %667, %666 : vector<2x32xf32>
    %669 = arith.divf %667, %668 : vector<2x32xf32>
    %670 = arith.addf %653, %660 : vector<2x32xf32>
    %671 = arith.negf %670 : vector<2x32xf32>
    %672 = math.exp %671 : vector<2x32xf32>
    %cst_255 = arith.constant 1.000000e+00 : f32
    %673 = vector.broadcast %cst_255 : f32 to vector<2x32xf32>
    %674 = arith.addf %673, %672 : vector<2x32xf32>
    %675 = arith.divf %673, %674 : vector<2x32xf32>
    %676 = arith.mulf %669, %663 : vector<2x32xf32>
    %677 = arith.addf %654, %676 : vector<2x32xf32>
    %678 = math.tanh %677 : vector<2x32xf32>
    %cst_256 = arith.constant 1.000000e+00 : f32
    %679 = vector.broadcast %cst_256 : f32 to vector<2x32xf32>
    %680 = arith.subf %679, %675 : vector<2x32xf32>
    %681 = arith.mulf %680, %678 : vector<2x32xf32>
    %682 = arith.mulf %675, %650 : vector<2x32xf32>
    %683 = arith.addf %681, %682 : vector<2x32xf32>
    %684 = vector.extract_strided_slice %611 {offsets = [14, 0], sizes = [2, 32], strides = [1, 1]} : vector<16x32xf32> to vector<2x32xf32>
    %685 = vector.extract_strided_slice %618 {offsets = [14, 0], sizes = [2, 32], strides = [1, 1]} : vector<16x32xf32> to vector<2x32xf32>
    %686 = vector.extract_strided_slice %625 {offsets = [14, 0], sizes = [2, 32], strides = [1, 1]} : vector<16x32xf32> to vector<2x32xf32>
    %cst_257 = arith.constant dense<0.000000e+00> : vector<2x32xf32>
    %687 = tpu.matmul %651, %633, %cst_257 {dimension_numbers = #tpu.dot_dimension_numbers<[1], [0], [0], [1], [0, 0, 1, 1], [], []>} : vector<2x32xf32>, vector<32x32xf32>, vector<2x32xf32> -> vector<2x32xf32>
    %688 = vector.broadcast %645 : vector<1x32xf32> to vector<2x32xf32>
    %689 = arith.addf %687, %688 : vector<2x32xf32>
    %cst_258 = arith.constant dense<0.000000e+00> : vector<2x32xf32>
    %690 = tpu.matmul %651, %635, %cst_258 {dimension_numbers = #tpu.dot_dimension_numbers<[1], [0], [0], [1], [0, 0, 1, 1], [], []>} : vector<2x32xf32>, vector<32x32xf32>, vector<2x32xf32> -> vector<2x32xf32>
    %691 = vector.broadcast %647 : vector<1x32xf32> to vector<2x32xf32>
    %692 = arith.addf %690, %691 : vector<2x32xf32>
    %cst_259 = arith.constant dense<0.000000e+00> : vector<2x32xf32>
    %693 = tpu.matmul %651, %637, %cst_259 {dimension_numbers = #tpu.dot_dimension_numbers<[1], [0], [0], [1], [0, 0, 1, 1], [], []>} : vector<2x32xf32>, vector<32x32xf32>, vector<2x32xf32> -> vector<2x32xf32>
    %694 = vector.broadcast %649 : vector<1x32xf32> to vector<2x32xf32>
    %695 = arith.addf %693, %694 : vector<2x32xf32>
    %696 = arith.addf %684, %689 : vector<2x32xf32>
    %697 = arith.negf %696 : vector<2x32xf32>
    %698 = math.exp %697 : vector<2x32xf32>
    %cst_260 = arith.constant 1.000000e+00 : f32
    %699 = vector.broadcast %cst_260 : f32 to vector<2x32xf32>
    %700 = arith.addf %699, %698 : vector<2x32xf32>
    %701 = arith.divf %699, %700 : vector<2x32xf32>
    %702 = arith.addf %685, %692 : vector<2x32xf32>
    %703 = arith.negf %702 : vector<2x32xf32>
    %704 = math.exp %703 : vector<2x32xf32>
    %cst_261 = arith.constant 1.000000e+00 : f32
    %705 = vector.broadcast %cst_261 : f32 to vector<2x32xf32>
    %706 = arith.addf %705, %704 : vector<2x32xf32>
    %707 = arith.divf %705, %706 : vector<2x32xf32>
    %708 = arith.mulf %701, %695 : vector<2x32xf32>
    %709 = arith.addf %686, %708 : vector<2x32xf32>
    %710 = math.tanh %709 : vector<2x32xf32>
    %cst_262 = arith.constant 1.000000e+00 : f32
    %711 = vector.broadcast %cst_262 : f32 to vector<2x32xf32>
    %712 = arith.subf %711, %707 : vector<2x32xf32>
    %713 = arith.mulf %712, %710 : vector<2x32xf32>
    %714 = arith.mulf %707, %651 : vector<2x32xf32>
    %715 = arith.addf %713, %714 : vector<2x32xf32>
    %716 = vector.extract_strided_slice %590 {offsets = [2, 0], sizes = [2, 32], strides = [1, 1]} : vector<16x32xf32> to vector<2x32xf32>
    %717 = vector.extract_strided_slice %597 {offsets = [2, 0], sizes = [2, 32], strides = [1, 1]} : vector<16x32xf32> to vector<2x32xf32>
    %718 = vector.extract_strided_slice %604 {offsets = [2, 0], sizes = [2, 32], strides = [1, 1]} : vector<16x32xf32> to vector<2x32xf32>
    %cst_263 = arith.constant dense<0.000000e+00> : vector<2x32xf32>
    %719 = tpu.matmul %683, %627, %cst_263 {dimension_numbers = #tpu.dot_dimension_numbers<[1], [0], [0], [1], [0, 0, 1, 1], [], []>} : vector<2x32xf32>, vector<32x32xf32>, vector<2x32xf32> -> vector<2x32xf32>
    %720 = vector.broadcast %639 : vector<1x32xf32> to vector<2x32xf32>
    %721 = arith.addf %719, %720 : vector<2x32xf32>
    %cst_264 = arith.constant dense<0.000000e+00> : vector<2x32xf32>
    %722 = tpu.matmul %683, %629, %cst_264 {dimension_numbers = #tpu.dot_dimension_numbers<[1], [0], [0], [1], [0, 0, 1, 1], [], []>} : vector<2x32xf32>, vector<32x32xf32>, vector<2x32xf32> -> vector<2x32xf32>
    %723 = vector.broadcast %641 : vector<1x32xf32> to vector<2x32xf32>
    %724 = arith.addf %722, %723 : vector<2x32xf32>
    %cst_265 = arith.constant dense<0.000000e+00> : vector<2x32xf32>
    %725 = tpu.matmul %683, %631, %cst_265 {dimension_numbers = #tpu.dot_dimension_numbers<[1], [0], [0], [1], [0, 0, 1, 1], [], []>} : vector<2x32xf32>, vector<32x32xf32>, vector<2x32xf32> -> vector<2x32xf32>
    %726 = vector.broadcast %643 : vector<1x32xf32> to vector<2x32xf32>
    %727 = arith.addf %725, %726 : vector<2x32xf32>
    %728 = arith.addf %716, %721 : vector<2x32xf32>
    %729 = arith.negf %728 : vector<2x32xf32>
    %730 = math.exp %729 : vector<2x32xf32>
    %cst_266 = arith.constant 1.000000e+00 : f32
    %731 = vector.broadcast %cst_266 : f32 to vector<2x32xf32>
    %732 = arith.addf %731, %730 : vector<2x32xf32>
    %733 = arith.divf %731, %732 : vector<2x32xf32>
    %734 = arith.addf %717, %724 : vector<2x32xf32>
    %735 = arith.negf %734 : vector<2x32xf32>
    %736 = math.exp %735 : vector<2x32xf32>
    %cst_267 = arith.constant 1.000000e+00 : f32
    %737 = vector.broadcast %cst_267 : f32 to vector<2x32xf32>
    %738 = arith.addf %737, %736 : vector<2x32xf32>
    %739 = arith.divf %737, %738 : vector<2x32xf32>
    %740 = arith.mulf %733, %727 : vector<2x32xf32>
    %741 = arith.addf %718, %740 : vector<2x32xf32>
    %742 = math.tanh %741 : vector<2x32xf32>
    %cst_268 = arith.constant 1.000000e+00 : f32
    %743 = vector.broadcast %cst_268 : f32 to vector<2x32xf32>
    %744 = arith.subf %743, %739 : vector<2x32xf32>
    %745 = arith.mulf %744, %742 : vector<2x32xf32>
    %746 = arith.mulf %739, %683 : vector<2x32xf32>
    %747 = arith.addf %745, %746 : vector<2x32xf32>
    %748 = vector.extract_strided_slice %611 {offsets = [12, 0], sizes = [2, 32], strides = [1, 1]} : vector<16x32xf32> to vector<2x32xf32>
    %749 = vector.extract_strided_slice %618 {offsets = [12, 0], sizes = [2, 32], strides = [1, 1]} : vector<16x32xf32> to vector<2x32xf32>
    %750 = vector.extract_strided_slice %625 {offsets = [12, 0], sizes = [2, 32], strides = [1, 1]} : vector<16x32xf32> to vector<2x32xf32>
    %cst_269 = arith.constant dense<0.000000e+00> : vector<2x32xf32>
    %751 = tpu.matmul %715, %633, %cst_269 {dimension_numbers = #tpu.dot_dimension_numbers<[1], [0], [0], [1], [0, 0, 1, 1], [], []>} : vector<2x32xf32>, vector<32x32xf32>, vector<2x32xf32> -> vector<2x32xf32>
    %752 = vector.broadcast %645 : vector<1x32xf32> to vector<2x32xf32>
    %753 = arith.addf %751, %752 : vector<2x32xf32>
    %cst_270 = arith.constant dense<0.000000e+00> : vector<2x32xf32>
    %754 = tpu.matmul %715, %635, %cst_270 {dimension_numbers = #tpu.dot_dimension_numbers<[1], [0], [0], [1], [0, 0, 1, 1], [], []>} : vector<2x32xf32>, vector<32x32xf32>, vector<2x32xf32> -> vector<2x32xf32>
    %755 = vector.broadcast %647 : vector<1x32xf32> to vector<2x32xf32>
    %756 = arith.addf %754, %755 : vector<2x32xf32>
    %cst_271 = arith.constant dense<0.000000e+00> : vector<2x32xf32>
    %757 = tpu.matmul %715, %637, %cst_271 {dimension_numbers = #tpu.dot_dimension_numbers<[1], [0], [0], [1], [0, 0, 1, 1], [], []>} : vector<2x32xf32>, vector<32x32xf32>, vector<2x32xf32> -> vector<2x32xf32>
    %758 = vector.broadcast %649 : vector<1x32xf32> to vector<2x32xf32>
    %759 = arith.addf %757, %758 : vector<2x32xf32>
    %760 = arith.addf %748, %753 : vector<2x32xf32>
    %761 = arith.negf %760 : vector<2x32xf32>
    %762 = math.exp %761 : vector<2x32xf32>
    %cst_272 = arith.constant 1.000000e+00 : f32
    %763 = vector.broadcast %cst_272 : f32 to vector<2x32xf32>
    %764 = arith.addf %763, %762 : vector<2x32xf32>
    %765 = arith.divf %763, %764 : vector<2x32xf32>
    %766 = arith.addf %749, %756 : vector<2x32xf32>
    %767 = arith.negf %766 : vector<2x32xf32>
    %768 = math.exp %767 : vector<2x32xf32>
    %cst_273 = arith.constant 1.000000e+00 : f32
    %769 = vector.broadcast %cst_273 : f32 to vector<2x32xf32>
    %770 = arith.addf %769, %768 : vector<2x32xf32>
    %771 = arith.divf %769, %770 : vector<2x32xf32>
    %772 = arith.mulf %765, %759 : vector<2x32xf32>
    %773 = arith.addf %750, %772 : vector<2x32xf32>
    %774 = math.tanh %773 : vector<2x32xf32>
    %cst_274 = arith.constant 1.000000e+00 : f32
    %775 = vector.broadcast %cst_274 : f32 to vector<2x32xf32>
    %776 = arith.subf %775, %771 : vector<2x32xf32>
    %777 = arith.mulf %776, %774 : vector<2x32xf32>
    %778 = arith.mulf %771, %715 : vector<2x32xf32>
    %779 = arith.addf %777, %778 : vector<2x32xf32>
    %780 = vector.extract_strided_slice %590 {offsets = [4, 0], sizes = [2, 32], strides = [1, 1]} : vector<16x32xf32> to vector<2x32xf32>
    %781 = vector.extract_strided_slice %597 {offsets = [4, 0], sizes = [2, 32], strides = [1, 1]} : vector<16x32xf32> to vector<2x32xf32>
    %782 = vector.extract_strided_slice %604 {offsets = [4, 0], sizes = [2, 32], strides = [1, 1]} : vector<16x32xf32> to vector<2x32xf32>
    %cst_275 = arith.constant dense<0.000000e+00> : vector<2x32xf32>
    %783 = tpu.matmul %747, %627, %cst_275 {dimension_numbers = #tpu.dot_dimension_numbers<[1], [0], [0], [1], [0, 0, 1, 1], [], []>} : vector<2x32xf32>, vector<32x32xf32>, vector<2x32xf32> -> vector<2x32xf32>
    %784 = vector.broadcast %639 : vector<1x32xf32> to vector<2x32xf32>
    %785 = arith.addf %783, %784 : vector<2x32xf32>
    %cst_276 = arith.constant dense<0.000000e+00> : vector<2x32xf32>
    %786 = tpu.matmul %747, %629, %cst_276 {dimension_numbers = #tpu.dot_dimension_numbers<[1], [0], [0], [1], [0, 0, 1, 1], [], []>} : vector<2x32xf32>, vector<32x32xf32>, vector<2x32xf32> -> vector<2x32xf32>
    %787 = vector.broadcast %641 : vector<1x32xf32> to vector<2x32xf32>
    %788 = arith.addf %786, %787 : vector<2x32xf32>
    %cst_277 = arith.constant dense<0.000000e+00> : vector<2x32xf32>
    %789 = tpu.matmul %747, %631, %cst_277 {dimension_numbers = #tpu.dot_dimension_numbers<[1], [0], [0], [1], [0, 0, 1, 1], [], []>} : vector<2x32xf32>, vector<32x32xf32>, vector<2x32xf32> -> vector<2x32xf32>
    %790 = vector.broadcast %643 : vector<1x32xf32> to vector<2x32xf32>
    %791 = arith.addf %789, %790 : vector<2x32xf32>
    %792 = arith.addf %780, %785 : vector<2x32xf32>
    %793 = arith.negf %792 : vector<2x32xf32>
    %794 = math.exp %793 : vector<2x32xf32>
    %cst_278 = arith.constant 1.000000e+00 : f32
    %795 = vector.broadcast %cst_278 : f32 to vector<2x32xf32>
    %796 = arith.addf %795, %794 : vector<2x32xf32>
    %797 = arith.divf %795, %796 : vector<2x32xf32>
    %798 = arith.addf %781, %788 : vector<2x32xf32>
    %799 = arith.negf %798 : vector<2x32xf32>
    %800 = math.exp %799 : vector<2x32xf32>
    %cst_279 = arith.constant 1.000000e+00 : f32
    %801 = vector.broadcast %cst_279 : f32 to vector<2x32xf32>
    %802 = arith.addf %801, %800 : vector<2x32xf32>
    %803 = arith.divf %801, %802 : vector<2x32xf32>
    %804 = arith.mulf %797, %791 : vector<2x32xf32>
    %805 = arith.addf %782, %804 : vector<2x32xf32>
    %806 = math.tanh %805 : vector<2x32xf32>
    %cst_280 = arith.constant 1.000000e+00 : f32
    %807 = vector.broadcast %cst_280 : f32 to vector<2x32xf32>
    %808 = arith.subf %807, %803 : vector<2x32xf32>
    %809 = arith.mulf %808, %806 : vector<2x32xf32>
    %810 = arith.mulf %803, %747 : vector<2x32xf32>
    %811 = arith.addf %809, %810 : vector<2x32xf32>
    %812 = vector.extract_strided_slice %611 {offsets = [10, 0], sizes = [2, 32], strides = [1, 1]} : vector<16x32xf32> to vector<2x32xf32>
    %813 = vector.extract_strided_slice %618 {offsets = [10, 0], sizes = [2, 32], strides = [1, 1]} : vector<16x32xf32> to vector<2x32xf32>
    %814 = vector.extract_strided_slice %625 {offsets = [10, 0], sizes = [2, 32], strides = [1, 1]} : vector<16x32xf32> to vector<2x32xf32>
    %cst_281 = arith.constant dense<0.000000e+00> : vector<2x32xf32>
    %815 = tpu.matmul %779, %633, %cst_281 {dimension_numbers = #tpu.dot_dimension_numbers<[1], [0], [0], [1], [0, 0, 1, 1], [], []>} : vector<2x32xf32>, vector<32x32xf32>, vector<2x32xf32> -> vector<2x32xf32>
    %816 = vector.broadcast %645 : vector<1x32xf32> to vector<2x32xf32>
    %817 = arith.addf %815, %816 : vector<2x32xf32>
    %cst_282 = arith.constant dense<0.000000e+00> : vector<2x32xf32>
    %818 = tpu.matmul %779, %635, %cst_282 {dimension_numbers = #tpu.dot_dimension_numbers<[1], [0], [0], [1], [0, 0, 1, 1], [], []>} : vector<2x32xf32>, vector<32x32xf32>, vector<2x32xf32> -> vector<2x32xf32>
    %819 = vector.broadcast %647 : vector<1x32xf32> to vector<2x32xf32>
    %820 = arith.addf %818, %819 : vector<2x32xf32>
    %cst_283 = arith.constant dense<0.000000e+00> : vector<2x32xf32>
    %821 = tpu.matmul %779, %637, %cst_283 {dimension_numbers = #tpu.dot_dimension_numbers<[1], [0], [0], [1], [0, 0, 1, 1], [], []>} : vector<2x32xf32>, vector<32x32xf32>, vector<2x32xf32> -> vector<2x32xf32>
    %822 = vector.broadcast %649 : vector<1x32xf32> to vector<2x32xf32>
    %823 = arith.addf %821, %822 : vector<2x32xf32>
    %824 = arith.addf %812, %817 : vector<2x32xf32>
    %825 = arith.negf %824 : vector<2x32xf32>
    %826 = math.exp %825 : vector<2x32xf32>
    %cst_284 = arith.constant 1.000000e+00 : f32
    %827 = vector.broadcast %cst_284 : f32 to vector<2x32xf32>
    %828 = arith.addf %827, %826 : vector<2x32xf32>
    %829 = arith.divf %827, %828 : vector<2x32xf32>
    %830 = arith.addf %813, %820 : vector<2x32xf32>
    %831 = arith.negf %830 : vector<2x32xf32>
    %832 = math.exp %831 : vector<2x32xf32>
    %cst_285 = arith.constant 1.000000e+00 : f32
    %833 = vector.broadcast %cst_285 : f32 to vector<2x32xf32>
    %834 = arith.addf %833, %832 : vector<2x32xf32>
    %835 = arith.divf %833, %834 : vector<2x32xf32>
    %836 = arith.mulf %829, %823 : vector<2x32xf32>
    %837 = arith.addf %814, %836 : vector<2x32xf32>
    %838 = math.tanh %837 : vector<2x32xf32>
    %cst_286 = arith.constant 1.000000e+00 : f32
    %839 = vector.broadcast %cst_286 : f32 to vector<2x32xf32>
    %840 = arith.subf %839, %835 : vector<2x32xf32>
    %841 = arith.mulf %840, %838 : vector<2x32xf32>
    %842 = arith.mulf %835, %779 : vector<2x32xf32>
    %843 = arith.addf %841, %842 : vector<2x32xf32>
    %844 = vector.extract_strided_slice %590 {offsets = [6, 0], sizes = [2, 32], strides = [1, 1]} : vector<16x32xf32> to vector<2x32xf32>
    %845 = vector.extract_strided_slice %597 {offsets = [6, 0], sizes = [2, 32], strides = [1, 1]} : vector<16x32xf32> to vector<2x32xf32>
    %846 = vector.extract_strided_slice %604 {offsets = [6, 0], sizes = [2, 32], strides = [1, 1]} : vector<16x32xf32> to vector<2x32xf32>
    %cst_287 = arith.constant dense<0.000000e+00> : vector<2x32xf32>
    %847 = tpu.matmul %811, %627, %cst_287 {dimension_numbers = #tpu.dot_dimension_numbers<[1], [0], [0], [1], [0, 0, 1, 1], [], []>} : vector<2x32xf32>, vector<32x32xf32>, vector<2x32xf32> -> vector<2x32xf32>
    %848 = vector.broadcast %639 : vector<1x32xf32> to vector<2x32xf32>
    %849 = arith.addf %847, %848 : vector<2x32xf32>
    %cst_288 = arith.constant dense<0.000000e+00> : vector<2x32xf32>
    %850 = tpu.matmul %811, %629, %cst_288 {dimension_numbers = #tpu.dot_dimension_numbers<[1], [0], [0], [1], [0, 0, 1, 1], [], []>} : vector<2x32xf32>, vector<32x32xf32>, vector<2x32xf32> -> vector<2x32xf32>
    %851 = vector.broadcast %641 : vector<1x32xf32> to vector<2x32xf32>
    %852 = arith.addf %850, %851 : vector<2x32xf32>
    %cst_289 = arith.constant dense<0.000000e+00> : vector<2x32xf32>
    %853 = tpu.matmul %811, %631, %cst_289 {dimension_numbers = #tpu.dot_dimension_numbers<[1], [0], [0], [1], [0, 0, 1, 1], [], []>} : vector<2x32xf32>, vector<32x32xf32>, vector<2x32xf32> -> vector<2x32xf32>
    %854 = vector.broadcast %643 : vector<1x32xf32> to vector<2x32xf32>
    %855 = arith.addf %853, %854 : vector<2x32xf32>
    %856 = arith.addf %844, %849 : vector<2x32xf32>
    %857 = arith.negf %856 : vector<2x32xf32>
    %858 = math.exp %857 : vector<2x32xf32>
    %cst_290 = arith.constant 1.000000e+00 : f32
    %859 = vector.broadcast %cst_290 : f32 to vector<2x32xf32>
    %860 = arith.addf %859, %858 : vector<2x32xf32>
    %861 = arith.divf %859, %860 : vector<2x32xf32>
    %862 = arith.addf %845, %852 : vector<2x32xf32>
    %863 = arith.negf %862 : vector<2x32xf32>
    %864 = math.exp %863 : vector<2x32xf32>
    %cst_291 = arith.constant 1.000000e+00 : f32
    %865 = vector.broadcast %cst_291 : f32 to vector<2x32xf32>
    %866 = arith.addf %865, %864 : vector<2x32xf32>
    %867 = arith.divf %865, %866 : vector<2x32xf32>
    %868 = arith.mulf %861, %855 : vector<2x32xf32>
    %869 = arith.addf %846, %868 : vector<2x32xf32>
    %870 = math.tanh %869 : vector<2x32xf32>
    %cst_292 = arith.constant 1.000000e+00 : f32
    %871 = vector.broadcast %cst_292 : f32 to vector<2x32xf32>
    %872 = arith.subf %871, %867 : vector<2x32xf32>
    %873 = arith.mulf %872, %870 : vector<2x32xf32>
    %874 = arith.mulf %867, %811 : vector<2x32xf32>
    %875 = arith.addf %873, %874 : vector<2x32xf32>
    %876 = vector.extract_strided_slice %611 {offsets = [8, 0], sizes = [2, 32], strides = [1, 1]} : vector<16x32xf32> to vector<2x32xf32>
    %877 = vector.extract_strided_slice %618 {offsets = [8, 0], sizes = [2, 32], strides = [1, 1]} : vector<16x32xf32> to vector<2x32xf32>
    %878 = vector.extract_strided_slice %625 {offsets = [8, 0], sizes = [2, 32], strides = [1, 1]} : vector<16x32xf32> to vector<2x32xf32>
    %cst_293 = arith.constant dense<0.000000e+00> : vector<2x32xf32>
    %879 = tpu.matmul %843, %633, %cst_293 {dimension_numbers = #tpu.dot_dimension_numbers<[1], [0], [0], [1], [0, 0, 1, 1], [], []>} : vector<2x32xf32>, vector<32x32xf32>, vector<2x32xf32> -> vector<2x32xf32>
    %880 = vector.broadcast %645 : vector<1x32xf32> to vector<2x32xf32>
    %881 = arith.addf %879, %880 : vector<2x32xf32>
    %cst_294 = arith.constant dense<0.000000e+00> : vector<2x32xf32>
    %882 = tpu.matmul %843, %635, %cst_294 {dimension_numbers = #tpu.dot_dimension_numbers<[1], [0], [0], [1], [0, 0, 1, 1], [], []>} : vector<2x32xf32>, vector<32x32xf32>, vector<2x32xf32> -> vector<2x32xf32>
    %883 = vector.broadcast %647 : vector<1x32xf32> to vector<2x32xf32>
    %884 = arith.addf %882, %883 : vector<2x32xf32>
    %cst_295 = arith.constant dense<0.000000e+00> : vector<2x32xf32>
    %885 = tpu.matmul %843, %637, %cst_295 {dimension_numbers = #tpu.dot_dimension_numbers<[1], [0], [0], [1], [0, 0, 1, 1], [], []>} : vector<2x32xf32>, vector<32x32xf32>, vector<2x32xf32> -> vector<2x32xf32>
    %886 = vector.broadcast %649 : vector<1x32xf32> to vector<2x32xf32>
    %887 = arith.addf %885, %886 : vector<2x32xf32>
    %888 = arith.addf %876, %881 : vector<2x32xf32>
    %889 = arith.negf %888 : vector<2x32xf32>
    %890 = math.exp %889 : vector<2x32xf32>
    %cst_296 = arith.constant 1.000000e+00 : f32
    %891 = vector.broadcast %cst_296 : f32 to vector<2x32xf32>
    %892 = arith.addf %891, %890 : vector<2x32xf32>
    %893 = arith.divf %891, %892 : vector<2x32xf32>
    %894 = arith.addf %877, %884 : vector<2x32xf32>
    %895 = arith.negf %894 : vector<2x32xf32>
    %896 = math.exp %895 : vector<2x32xf32>
    %cst_297 = arith.constant 1.000000e+00 : f32
    %897 = vector.broadcast %cst_297 : f32 to vector<2x32xf32>
    %898 = arith.addf %897, %896 : vector<2x32xf32>
    %899 = arith.divf %897, %898 : vector<2x32xf32>
    %900 = arith.mulf %893, %887 : vector<2x32xf32>
    %901 = arith.addf %878, %900 : vector<2x32xf32>
    %902 = math.tanh %901 : vector<2x32xf32>
    %cst_298 = arith.constant 1.000000e+00 : f32
    %903 = vector.broadcast %cst_298 : f32 to vector<2x32xf32>
    %904 = arith.subf %903, %899 : vector<2x32xf32>
    %905 = arith.mulf %904, %902 : vector<2x32xf32>
    %906 = arith.mulf %899, %843 : vector<2x32xf32>
    %907 = arith.addf %905, %906 : vector<2x32xf32>
    %908 = vector.extract_strided_slice %590 {offsets = [8, 0], sizes = [2, 32], strides = [1, 1]} : vector<16x32xf32> to vector<2x32xf32>
    %909 = vector.extract_strided_slice %597 {offsets = [8, 0], sizes = [2, 32], strides = [1, 1]} : vector<16x32xf32> to vector<2x32xf32>
    %910 = vector.extract_strided_slice %604 {offsets = [8, 0], sizes = [2, 32], strides = [1, 1]} : vector<16x32xf32> to vector<2x32xf32>
    %cst_299 = arith.constant dense<0.000000e+00> : vector<2x32xf32>
    %911 = tpu.matmul %875, %627, %cst_299 {dimension_numbers = #tpu.dot_dimension_numbers<[1], [0], [0], [1], [0, 0, 1, 1], [], []>} : vector<2x32xf32>, vector<32x32xf32>, vector<2x32xf32> -> vector<2x32xf32>
    %912 = vector.broadcast %639 : vector<1x32xf32> to vector<2x32xf32>
    %913 = arith.addf %911, %912 : vector<2x32xf32>
    %cst_300 = arith.constant dense<0.000000e+00> : vector<2x32xf32>
    %914 = tpu.matmul %875, %629, %cst_300 {dimension_numbers = #tpu.dot_dimension_numbers<[1], [0], [0], [1], [0, 0, 1, 1], [], []>} : vector<2x32xf32>, vector<32x32xf32>, vector<2x32xf32> -> vector<2x32xf32>
    %915 = vector.broadcast %641 : vector<1x32xf32> to vector<2x32xf32>
    %916 = arith.addf %914, %915 : vector<2x32xf32>
    %cst_301 = arith.constant dense<0.000000e+00> : vector<2x32xf32>
    %917 = tpu.matmul %875, %631, %cst_301 {dimension_numbers = #tpu.dot_dimension_numbers<[1], [0], [0], [1], [0, 0, 1, 1], [], []>} : vector<2x32xf32>, vector<32x32xf32>, vector<2x32xf32> -> vector<2x32xf32>
    %918 = vector.broadcast %643 : vector<1x32xf32> to vector<2x32xf32>
    %919 = arith.addf %917, %918 : vector<2x32xf32>
    %920 = arith.addf %908, %913 : vector<2x32xf32>
    %921 = arith.negf %920 : vector<2x32xf32>
    %922 = math.exp %921 : vector<2x32xf32>
    %cst_302 = arith.constant 1.000000e+00 : f32
    %923 = vector.broadcast %cst_302 : f32 to vector<2x32xf32>
    %924 = arith.addf %923, %922 : vector<2x32xf32>
    %925 = arith.divf %923, %924 : vector<2x32xf32>
    %926 = arith.addf %909, %916 : vector<2x32xf32>
    %927 = arith.negf %926 : vector<2x32xf32>
    %928 = math.exp %927 : vector<2x32xf32>
    %cst_303 = arith.constant 1.000000e+00 : f32
    %929 = vector.broadcast %cst_303 : f32 to vector<2x32xf32>
    %930 = arith.addf %929, %928 : vector<2x32xf32>
    %931 = arith.divf %929, %930 : vector<2x32xf32>
    %932 = arith.mulf %925, %919 : vector<2x32xf32>
    %933 = arith.addf %910, %932 : vector<2x32xf32>
    %934 = math.tanh %933 : vector<2x32xf32>
    %cst_304 = arith.constant 1.000000e+00 : f32
    %935 = vector.broadcast %cst_304 : f32 to vector<2x32xf32>
    %936 = arith.subf %935, %931 : vector<2x32xf32>
    %937 = arith.mulf %936, %934 : vector<2x32xf32>
    %938 = arith.mulf %931, %875 : vector<2x32xf32>
    %939 = arith.addf %937, %938 : vector<2x32xf32>
    %940 = vector.extract_strided_slice %611 {offsets = [6, 0], sizes = [2, 32], strides = [1, 1]} : vector<16x32xf32> to vector<2x32xf32>
    %941 = vector.extract_strided_slice %618 {offsets = [6, 0], sizes = [2, 32], strides = [1, 1]} : vector<16x32xf32> to vector<2x32xf32>
    %942 = vector.extract_strided_slice %625 {offsets = [6, 0], sizes = [2, 32], strides = [1, 1]} : vector<16x32xf32> to vector<2x32xf32>
    %cst_305 = arith.constant dense<0.000000e+00> : vector<2x32xf32>
    %943 = tpu.matmul %907, %633, %cst_305 {dimension_numbers = #tpu.dot_dimension_numbers<[1], [0], [0], [1], [0, 0, 1, 1], [], []>} : vector<2x32xf32>, vector<32x32xf32>, vector<2x32xf32> -> vector<2x32xf32>
    %944 = vector.broadcast %645 : vector<1x32xf32> to vector<2x32xf32>
    %945 = arith.addf %943, %944 : vector<2x32xf32>
    %cst_306 = arith.constant dense<0.000000e+00> : vector<2x32xf32>
    %946 = tpu.matmul %907, %635, %cst_306 {dimension_numbers = #tpu.dot_dimension_numbers<[1], [0], [0], [1], [0, 0, 1, 1], [], []>} : vector<2x32xf32>, vector<32x32xf32>, vector<2x32xf32> -> vector<2x32xf32>
    %947 = vector.broadcast %647 : vector<1x32xf32> to vector<2x32xf32>
    %948 = arith.addf %946, %947 : vector<2x32xf32>
    %cst_307 = arith.constant dense<0.000000e+00> : vector<2x32xf32>
    %949 = tpu.matmul %907, %637, %cst_307 {dimension_numbers = #tpu.dot_dimension_numbers<[1], [0], [0], [1], [0, 0, 1, 1], [], []>} : vector<2x32xf32>, vector<32x32xf32>, vector<2x32xf32> -> vector<2x32xf32>
    %950 = vector.broadcast %649 : vector<1x32xf32> to vector<2x32xf32>
    %951 = arith.addf %949, %950 : vector<2x32xf32>
    %952 = arith.addf %940, %945 : vector<2x32xf32>
    %953 = arith.negf %952 : vector<2x32xf32>
    %954 = math.exp %953 : vector<2x32xf32>
    %cst_308 = arith.constant 1.000000e+00 : f32
    %955 = vector.broadcast %cst_308 : f32 to vector<2x32xf32>
    %956 = arith.addf %955, %954 : vector<2x32xf32>
    %957 = arith.divf %955, %956 : vector<2x32xf32>
    %958 = arith.addf %941, %948 : vector<2x32xf32>
    %959 = arith.negf %958 : vector<2x32xf32>
    %960 = math.exp %959 : vector<2x32xf32>
    %cst_309 = arith.constant 1.000000e+00 : f32
    %961 = vector.broadcast %cst_309 : f32 to vector<2x32xf32>
    %962 = arith.addf %961, %960 : vector<2x32xf32>
    %963 = arith.divf %961, %962 : vector<2x32xf32>
    %964 = arith.mulf %957, %951 : vector<2x32xf32>
    %965 = arith.addf %942, %964 : vector<2x32xf32>
    %966 = math.tanh %965 : vector<2x32xf32>
    %cst_310 = arith.constant 1.000000e+00 : f32
    %967 = vector.broadcast %cst_310 : f32 to vector<2x32xf32>
    %968 = arith.subf %967, %963 : vector<2x32xf32>
    %969 = arith.mulf %968, %966 : vector<2x32xf32>
    %970 = arith.mulf %963, %907 : vector<2x32xf32>
    %971 = arith.addf %969, %970 : vector<2x32xf32>
    %972 = vector.extract_strided_slice %590 {offsets = [10, 0], sizes = [2, 32], strides = [1, 1]} : vector<16x32xf32> to vector<2x32xf32>
    %973 = vector.extract_strided_slice %597 {offsets = [10, 0], sizes = [2, 32], strides = [1, 1]} : vector<16x32xf32> to vector<2x32xf32>
    %974 = vector.extract_strided_slice %604 {offsets = [10, 0], sizes = [2, 32], strides = [1, 1]} : vector<16x32xf32> to vector<2x32xf32>
    %cst_311 = arith.constant dense<0.000000e+00> : vector<2x32xf32>
    %975 = tpu.matmul %939, %627, %cst_311 {dimension_numbers = #tpu.dot_dimension_numbers<[1], [0], [0], [1], [0, 0, 1, 1], [], []>} : vector<2x32xf32>, vector<32x32xf32>, vector<2x32xf32> -> vector<2x32xf32>
    %976 = vector.broadcast %639 : vector<1x32xf32> to vector<2x32xf32>
    %977 = arith.addf %975, %976 : vector<2x32xf32>
    %cst_312 = arith.constant dense<0.000000e+00> : vector<2x32xf32>
    %978 = tpu.matmul %939, %629, %cst_312 {dimension_numbers = #tpu.dot_dimension_numbers<[1], [0], [0], [1], [0, 0, 1, 1], [], []>} : vector<2x32xf32>, vector<32x32xf32>, vector<2x32xf32> -> vector<2x32xf32>
    %979 = vector.broadcast %641 : vector<1x32xf32> to vector<2x32xf32>
    %980 = arith.addf %978, %979 : vector<2x32xf32>
    %cst_313 = arith.constant dense<0.000000e+00> : vector<2x32xf32>
    %981 = tpu.matmul %939, %631, %cst_313 {dimension_numbers = #tpu.dot_dimension_numbers<[1], [0], [0], [1], [0, 0, 1, 1], [], []>} : vector<2x32xf32>, vector<32x32xf32>, vector<2x32xf32> -> vector<2x32xf32>
    %982 = vector.broadcast %643 : vector<1x32xf32> to vector<2x32xf32>
    %983 = arith.addf %981, %982 : vector<2x32xf32>
    %984 = arith.addf %972, %977 : vector<2x32xf32>
    %985 = arith.negf %984 : vector<2x32xf32>
    %986 = math.exp %985 : vector<2x32xf32>
    %cst_314 = arith.constant 1.000000e+00 : f32
    %987 = vector.broadcast %cst_314 : f32 to vector<2x32xf32>
    %988 = arith.addf %987, %986 : vector<2x32xf32>
    %989 = arith.divf %987, %988 : vector<2x32xf32>
    %990 = arith.addf %973, %980 : vector<2x32xf32>
    %991 = arith.negf %990 : vector<2x32xf32>
    %992 = math.exp %991 : vector<2x32xf32>
    %cst_315 = arith.constant 1.000000e+00 : f32
    %993 = vector.broadcast %cst_315 : f32 to vector<2x32xf32>
    %994 = arith.addf %993, %992 : vector<2x32xf32>
    %995 = arith.divf %993, %994 : vector<2x32xf32>
    %996 = arith.mulf %989, %983 : vector<2x32xf32>
    %997 = arith.addf %974, %996 : vector<2x32xf32>
    %998 = math.tanh %997 : vector<2x32xf32>
    %cst_316 = arith.constant 1.000000e+00 : f32
    %999 = vector.broadcast %cst_316 : f32 to vector<2x32xf32>
    %1000 = arith.subf %999, %995 : vector<2x32xf32>
    %1001 = arith.mulf %1000, %998 : vector<2x32xf32>
    %1002 = arith.mulf %995, %939 : vector<2x32xf32>
    %1003 = arith.addf %1001, %1002 : vector<2x32xf32>
    %1004 = vector.extract_strided_slice %611 {offsets = [4, 0], sizes = [2, 32], strides = [1, 1]} : vector<16x32xf32> to vector<2x32xf32>
    %1005 = vector.extract_strided_slice %618 {offsets = [4, 0], sizes = [2, 32], strides = [1, 1]} : vector<16x32xf32> to vector<2x32xf32>
    %1006 = vector.extract_strided_slice %625 {offsets = [4, 0], sizes = [2, 32], strides = [1, 1]} : vector<16x32xf32> to vector<2x32xf32>
    %cst_317 = arith.constant dense<0.000000e+00> : vector<2x32xf32>
    %1007 = tpu.matmul %971, %633, %cst_317 {dimension_numbers = #tpu.dot_dimension_numbers<[1], [0], [0], [1], [0, 0, 1, 1], [], []>} : vector<2x32xf32>, vector<32x32xf32>, vector<2x32xf32> -> vector<2x32xf32>
    %1008 = vector.broadcast %645 : vector<1x32xf32> to vector<2x32xf32>
    %1009 = arith.addf %1007, %1008 : vector<2x32xf32>
    %cst_318 = arith.constant dense<0.000000e+00> : vector<2x32xf32>
    %1010 = tpu.matmul %971, %635, %cst_318 {dimension_numbers = #tpu.dot_dimension_numbers<[1], [0], [0], [1], [0, 0, 1, 1], [], []>} : vector<2x32xf32>, vector<32x32xf32>, vector<2x32xf32> -> vector<2x32xf32>
    %1011 = vector.broadcast %647 : vector<1x32xf32> to vector<2x32xf32>
    %1012 = arith.addf %1010, %1011 : vector<2x32xf32>
    %cst_319 = arith.constant dense<0.000000e+00> : vector<2x32xf32>
    %1013 = tpu.matmul %971, %637, %cst_319 {dimension_numbers = #tpu.dot_dimension_numbers<[1], [0], [0], [1], [0, 0, 1, 1], [], []>} : vector<2x32xf32>, vector<32x32xf32>, vector<2x32xf32> -> vector<2x32xf32>
    %1014 = vector.broadcast %649 : vector<1x32xf32> to vector<2x32xf32>
    %1015 = arith.addf %1013, %1014 : vector<2x32xf32>
    %1016 = arith.addf %1004, %1009 : vector<2x32xf32>
    %1017 = arith.negf %1016 : vector<2x32xf32>
    %1018 = math.exp %1017 : vector<2x32xf32>
    %cst_320 = arith.constant 1.000000e+00 : f32
    %1019 = vector.broadcast %cst_320 : f32 to vector<2x32xf32>
    %1020 = arith.addf %1019, %1018 : vector<2x32xf32>
    %1021 = arith.divf %1019, %1020 : vector<2x32xf32>
    %1022 = arith.addf %1005, %1012 : vector<2x32xf32>
    %1023 = arith.negf %1022 : vector<2x32xf32>
    %1024 = math.exp %1023 : vector<2x32xf32>
    %cst_321 = arith.constant 1.000000e+00 : f32
    %1025 = vector.broadcast %cst_321 : f32 to vector<2x32xf32>
    %1026 = arith.addf %1025, %1024 : vector<2x32xf32>
    %1027 = arith.divf %1025, %1026 : vector<2x32xf32>
    %1028 = arith.mulf %1021, %1015 : vector<2x32xf32>
    %1029 = arith.addf %1006, %1028 : vector<2x32xf32>
    %1030 = math.tanh %1029 : vector<2x32xf32>
    %cst_322 = arith.constant 1.000000e+00 : f32
    %1031 = vector.broadcast %cst_322 : f32 to vector<2x32xf32>
    %1032 = arith.subf %1031, %1027 : vector<2x32xf32>
    %1033 = arith.mulf %1032, %1030 : vector<2x32xf32>
    %1034 = arith.mulf %1027, %971 : vector<2x32xf32>
    %1035 = arith.addf %1033, %1034 : vector<2x32xf32>
    %1036 = vector.extract_strided_slice %590 {offsets = [12, 0], sizes = [2, 32], strides = [1, 1]} : vector<16x32xf32> to vector<2x32xf32>
    %1037 = vector.extract_strided_slice %597 {offsets = [12, 0], sizes = [2, 32], strides = [1, 1]} : vector<16x32xf32> to vector<2x32xf32>
    %1038 = vector.extract_strided_slice %604 {offsets = [12, 0], sizes = [2, 32], strides = [1, 1]} : vector<16x32xf32> to vector<2x32xf32>
    %cst_323 = arith.constant dense<0.000000e+00> : vector<2x32xf32>
    %1039 = tpu.matmul %1003, %627, %cst_323 {dimension_numbers = #tpu.dot_dimension_numbers<[1], [0], [0], [1], [0, 0, 1, 1], [], []>} : vector<2x32xf32>, vector<32x32xf32>, vector<2x32xf32> -> vector<2x32xf32>
    %1040 = vector.broadcast %639 : vector<1x32xf32> to vector<2x32xf32>
    %1041 = arith.addf %1039, %1040 : vector<2x32xf32>
    %cst_324 = arith.constant dense<0.000000e+00> : vector<2x32xf32>
    %1042 = tpu.matmul %1003, %629, %cst_324 {dimension_numbers = #tpu.dot_dimension_numbers<[1], [0], [0], [1], [0, 0, 1, 1], [], []>} : vector<2x32xf32>, vector<32x32xf32>, vector<2x32xf32> -> vector<2x32xf32>
    %1043 = vector.broadcast %641 : vector<1x32xf32> to vector<2x32xf32>
    %1044 = arith.addf %1042, %1043 : vector<2x32xf32>
    %cst_325 = arith.constant dense<0.000000e+00> : vector<2x32xf32>
    %1045 = tpu.matmul %1003, %631, %cst_325 {dimension_numbers = #tpu.dot_dimension_numbers<[1], [0], [0], [1], [0, 0, 1, 1], [], []>} : vector<2x32xf32>, vector<32x32xf32>, vector<2x32xf32> -> vector<2x32xf32>
    %1046 = vector.broadcast %643 : vector<1x32xf32> to vector<2x32xf32>
    %1047 = arith.addf %1045, %1046 : vector<2x32xf32>
    %1048 = arith.addf %1036, %1041 : vector<2x32xf32>
    %1049 = arith.negf %1048 : vector<2x32xf32>
    %1050 = math.exp %1049 : vector<2x32xf32>
    %cst_326 = arith.constant 1.000000e+00 : f32
    %1051 = vector.broadcast %cst_326 : f32 to vector<2x32xf32>
    %1052 = arith.addf %1051, %1050 : vector<2x32xf32>
    %1053 = arith.divf %1051, %1052 : vector<2x32xf32>
    %1054 = arith.addf %1037, %1044 : vector<2x32xf32>
    %1055 = arith.negf %1054 : vector<2x32xf32>
    %1056 = math.exp %1055 : vector<2x32xf32>
    %cst_327 = arith.constant 1.000000e+00 : f32
    %1057 = vector.broadcast %cst_327 : f32 to vector<2x32xf32>
    %1058 = arith.addf %1057, %1056 : vector<2x32xf32>
    %1059 = arith.divf %1057, %1058 : vector<2x32xf32>
    %1060 = arith.mulf %1053, %1047 : vector<2x32xf32>
    %1061 = arith.addf %1038, %1060 : vector<2x32xf32>
    %1062 = math.tanh %1061 : vector<2x32xf32>
    %cst_328 = arith.constant 1.000000e+00 : f32
    %1063 = vector.broadcast %cst_328 : f32 to vector<2x32xf32>
    %1064 = arith.subf %1063, %1059 : vector<2x32xf32>
    %1065 = arith.mulf %1064, %1062 : vector<2x32xf32>
    %1066 = arith.mulf %1059, %1003 : vector<2x32xf32>
    %1067 = arith.addf %1065, %1066 : vector<2x32xf32>
    %1068 = vector.extract_strided_slice %611 {offsets = [2, 0], sizes = [2, 32], strides = [1, 1]} : vector<16x32xf32> to vector<2x32xf32>
    %1069 = vector.extract_strided_slice %618 {offsets = [2, 0], sizes = [2, 32], strides = [1, 1]} : vector<16x32xf32> to vector<2x32xf32>
    %1070 = vector.extract_strided_slice %625 {offsets = [2, 0], sizes = [2, 32], strides = [1, 1]} : vector<16x32xf32> to vector<2x32xf32>
    %cst_329 = arith.constant dense<0.000000e+00> : vector<2x32xf32>
    %1071 = tpu.matmul %1035, %633, %cst_329 {dimension_numbers = #tpu.dot_dimension_numbers<[1], [0], [0], [1], [0, 0, 1, 1], [], []>} : vector<2x32xf32>, vector<32x32xf32>, vector<2x32xf32> -> vector<2x32xf32>
    %1072 = vector.broadcast %645 : vector<1x32xf32> to vector<2x32xf32>
    %1073 = arith.addf %1071, %1072 : vector<2x32xf32>
    %cst_330 = arith.constant dense<0.000000e+00> : vector<2x32xf32>
    %1074 = tpu.matmul %1035, %635, %cst_330 {dimension_numbers = #tpu.dot_dimension_numbers<[1], [0], [0], [1], [0, 0, 1, 1], [], []>} : vector<2x32xf32>, vector<32x32xf32>, vector<2x32xf32> -> vector<2x32xf32>
    %1075 = vector.broadcast %647 : vector<1x32xf32> to vector<2x32xf32>
    %1076 = arith.addf %1074, %1075 : vector<2x32xf32>
    %cst_331 = arith.constant dense<0.000000e+00> : vector<2x32xf32>
    %1077 = tpu.matmul %1035, %637, %cst_331 {dimension_numbers = #tpu.dot_dimension_numbers<[1], [0], [0], [1], [0, 0, 1, 1], [], []>} : vector<2x32xf32>, vector<32x32xf32>, vector<2x32xf32> -> vector<2x32xf32>
    %1078 = vector.broadcast %649 : vector<1x32xf32> to vector<2x32xf32>
    %1079 = arith.addf %1077, %1078 : vector<2x32xf32>
    %1080 = arith.addf %1068, %1073 : vector<2x32xf32>
    %1081 = arith.negf %1080 : vector<2x32xf32>
    %1082 = math.exp %1081 : vector<2x32xf32>
    %cst_332 = arith.constant 1.000000e+00 : f32
    %1083 = vector.broadcast %cst_332 : f32 to vector<2x32xf32>
    %1084 = arith.addf %1083, %1082 : vector<2x32xf32>
    %1085 = arith.divf %1083, %1084 : vector<2x32xf32>
    %1086 = arith.addf %1069, %1076 : vector<2x32xf32>
    %1087 = arith.negf %1086 : vector<2x32xf32>
    %1088 = math.exp %1087 : vector<2x32xf32>
    %cst_333 = arith.constant 1.000000e+00 : f32
    %1089 = vector.broadcast %cst_333 : f32 to vector<2x32xf32>
    %1090 = arith.addf %1089, %1088 : vector<2x32xf32>
    %1091 = arith.divf %1089, %1090 : vector<2x32xf32>
    %1092 = arith.mulf %1085, %1079 : vector<2x32xf32>
    %1093 = arith.addf %1070, %1092 : vector<2x32xf32>
    %1094 = math.tanh %1093 : vector<2x32xf32>
    %cst_334 = arith.constant 1.000000e+00 : f32
    %1095 = vector.broadcast %cst_334 : f32 to vector<2x32xf32>
    %1096 = arith.subf %1095, %1091 : vector<2x32xf32>
    %1097 = arith.mulf %1096, %1094 : vector<2x32xf32>
    %1098 = arith.mulf %1091, %1035 : vector<2x32xf32>
    %1099 = arith.addf %1097, %1098 : vector<2x32xf32>
    %1100 = vector.extract_strided_slice %590 {offsets = [14, 0], sizes = [2, 32], strides = [1, 1]} : vector<16x32xf32> to vector<2x32xf32>
    %1101 = vector.extract_strided_slice %597 {offsets = [14, 0], sizes = [2, 32], strides = [1, 1]} : vector<16x32xf32> to vector<2x32xf32>
    %1102 = vector.extract_strided_slice %604 {offsets = [14, 0], sizes = [2, 32], strides = [1, 1]} : vector<16x32xf32> to vector<2x32xf32>
    %cst_335 = arith.constant dense<0.000000e+00> : vector<2x32xf32>
    %1103 = tpu.matmul %1067, %627, %cst_335 {dimension_numbers = #tpu.dot_dimension_numbers<[1], [0], [0], [1], [0, 0, 1, 1], [], []>} : vector<2x32xf32>, vector<32x32xf32>, vector<2x32xf32> -> vector<2x32xf32>
    %1104 = vector.broadcast %639 : vector<1x32xf32> to vector<2x32xf32>
    %1105 = arith.addf %1103, %1104 : vector<2x32xf32>
    %cst_336 = arith.constant dense<0.000000e+00> : vector<2x32xf32>
    %1106 = tpu.matmul %1067, %629, %cst_336 {dimension_numbers = #tpu.dot_dimension_numbers<[1], [0], [0], [1], [0, 0, 1, 1], [], []>} : vector<2x32xf32>, vector<32x32xf32>, vector<2x32xf32> -> vector<2x32xf32>
    %1107 = vector.broadcast %641 : vector<1x32xf32> to vector<2x32xf32>
    %1108 = arith.addf %1106, %1107 : vector<2x32xf32>
    %cst_337 = arith.constant dense<0.000000e+00> : vector<2x32xf32>
    %1109 = tpu.matmul %1067, %631, %cst_337 {dimension_numbers = #tpu.dot_dimension_numbers<[1], [0], [0], [1], [0, 0, 1, 1], [], []>} : vector<2x32xf32>, vector<32x32xf32>, vector<2x32xf32> -> vector<2x32xf32>
    %1110 = vector.broadcast %643 : vector<1x32xf32> to vector<2x32xf32>
    %1111 = arith.addf %1109, %1110 : vector<2x32xf32>
    %1112 = arith.addf %1100, %1105 : vector<2x32xf32>
    %1113 = arith.negf %1112 : vector<2x32xf32>
    %1114 = math.exp %1113 : vector<2x32xf32>
    %cst_338 = arith.constant 1.000000e+00 : f32
    %1115 = vector.broadcast %cst_338 : f32 to vector<2x32xf32>
    %1116 = arith.addf %1115, %1114 : vector<2x32xf32>
    %1117 = arith.divf %1115, %1116 : vector<2x32xf32>
    %1118 = arith.addf %1101, %1108 : vector<2x32xf32>
    %1119 = arith.negf %1118 : vector<2x32xf32>
    %1120 = math.exp %1119 : vector<2x32xf32>
    %cst_339 = arith.constant 1.000000e+00 : f32
    %1121 = vector.broadcast %cst_339 : f32 to vector<2x32xf32>
    %1122 = arith.addf %1121, %1120 : vector<2x32xf32>
    %1123 = arith.divf %1121, %1122 : vector<2x32xf32>
    %1124 = arith.mulf %1117, %1111 : vector<2x32xf32>
    %1125 = arith.addf %1102, %1124 : vector<2x32xf32>
    %1126 = math.tanh %1125 : vector<2x32xf32>
    %cst_340 = arith.constant 1.000000e+00 : f32
    %1127 = vector.broadcast %cst_340 : f32 to vector<2x32xf32>
    %1128 = arith.subf %1127, %1123 : vector<2x32xf32>
    %1129 = arith.mulf %1128, %1126 : vector<2x32xf32>
    %1130 = arith.mulf %1123, %1067 : vector<2x32xf32>
    %1131 = arith.addf %1129, %1130 : vector<2x32xf32>
    %1132 = vector.extract_strided_slice %611 {offsets = [0, 0], sizes = [2, 32], strides = [1, 1]} : vector<16x32xf32> to vector<2x32xf32>
    %1133 = vector.extract_strided_slice %618 {offsets = [0, 0], sizes = [2, 32], strides = [1, 1]} : vector<16x32xf32> to vector<2x32xf32>
    %1134 = vector.extract_strided_slice %625 {offsets = [0, 0], sizes = [2, 32], strides = [1, 1]} : vector<16x32xf32> to vector<2x32xf32>
    %cst_341 = arith.constant dense<0.000000e+00> : vector<2x32xf32>
    %1135 = tpu.matmul %1099, %633, %cst_341 {dimension_numbers = #tpu.dot_dimension_numbers<[1], [0], [0], [1], [0, 0, 1, 1], [], []>} : vector<2x32xf32>, vector<32x32xf32>, vector<2x32xf32> -> vector<2x32xf32>
    %1136 = vector.broadcast %645 : vector<1x32xf32> to vector<2x32xf32>
    %1137 = arith.addf %1135, %1136 : vector<2x32xf32>
    %cst_342 = arith.constant dense<0.000000e+00> : vector<2x32xf32>
    %1138 = tpu.matmul %1099, %635, %cst_342 {dimension_numbers = #tpu.dot_dimension_numbers<[1], [0], [0], [1], [0, 0, 1, 1], [], []>} : vector<2x32xf32>, vector<32x32xf32>, vector<2x32xf32> -> vector<2x32xf32>
    %1139 = vector.broadcast %647 : vector<1x32xf32> to vector<2x32xf32>
    %1140 = arith.addf %1138, %1139 : vector<2x32xf32>
    %cst_343 = arith.constant dense<0.000000e+00> : vector<2x32xf32>
    %1141 = tpu.matmul %1099, %637, %cst_343 {dimension_numbers = #tpu.dot_dimension_numbers<[1], [0], [0], [1], [0, 0, 1, 1], [], []>} : vector<2x32xf32>, vector<32x32xf32>, vector<2x32xf32> -> vector<2x32xf32>
    %1142 = vector.broadcast %649 : vector<1x32xf32> to vector<2x32xf32>
    %1143 = arith.addf %1141, %1142 : vector<2x32xf32>
    %1144 = arith.addf %1132, %1137 : vector<2x32xf32>
    %1145 = arith.negf %1144 : vector<2x32xf32>
    %1146 = math.exp %1145 : vector<2x32xf32>
    %cst_344 = arith.constant 1.000000e+00 : f32
    %1147 = vector.broadcast %cst_344 : f32 to vector<2x32xf32>
    %1148 = arith.addf %1147, %1146 : vector<2x32xf32>
    %1149 = arith.divf %1147, %1148 : vector<2x32xf32>
    %1150 = arith.addf %1133, %1140 : vector<2x32xf32>
    %1151 = arith.negf %1150 : vector<2x32xf32>
    %1152 = math.exp %1151 : vector<2x32xf32>
    %cst_345 = arith.constant 1.000000e+00 : f32
    %1153 = vector.broadcast %cst_345 : f32 to vector<2x32xf32>
    %1154 = arith.addf %1153, %1152 : vector<2x32xf32>
    %1155 = arith.divf %1153, %1154 : vector<2x32xf32>
    %1156 = arith.mulf %1149, %1143 : vector<2x32xf32>
    %1157 = arith.addf %1134, %1156 : vector<2x32xf32>
    %1158 = math.tanh %1157 : vector<2x32xf32>
    %cst_346 = arith.constant 1.000000e+00 : f32
    %1159 = vector.broadcast %cst_346 : f32 to vector<2x32xf32>
    %1160 = arith.subf %1159, %1155 : vector<2x32xf32>
    %1161 = arith.mulf %1160, %1158 : vector<2x32xf32>
    %1162 = arith.mulf %1155, %1099 : vector<2x32xf32>
    %1163 = arith.addf %1161, %1162 : vector<2x32xf32>
    %1164 = tpu.concatenate %548, %580, %1131, %1163 in 1 : vector<2x32xf32>, vector<2x32xf32>, vector<2x32xf32>, vector<2x32xf32> -> vector<2x128xf32>
    %c0_347 = arith.constant 0 : index
    %c0_348 = arith.constant 0 : index
    %1165 = vector.load %arg10[%c0_347, %c0_348] : memref<128x64xf32, #tpu.memory_space<vmem>>, vector<128x64xf32>
    %cst_349 = arith.constant dense<0.000000e+00> : vector<2x64xf32>
    %1166 = tpu.matmul %1164, %1165, %cst_349 {dimension_numbers = #tpu.dot_dimension_numbers<[1], [0], [0], [1], [0, 0, 1, 1], [], []>} : vector<2x128xf32>, vector<128x64xf32>, vector<2x64xf32> -> vector<2x64xf32>
    %c0_350 = arith.constant 0 : index
    %c0_351 = arith.constant 0 : index
    %1167 = vector.load %arg11[%c0_350, %c0_351] : memref<1x64xf32, #tpu.memory_space<vmem>>, vector<1x64xf32>
    %1168 = vector.broadcast %1167 : vector<1x64xf32> to vector<2x64xf32>
    %1169 = arith.addf %1166, %1168 : vector<2x64xf32>
    %cst_352 = arith.constant dense<0.000000e+00> : vector<2xf32>
    %1170 = vector.multi_reduction <add>, %1169, %cst_352 [1] : vector<2x64xf32> to vector<2xf32>
    %1171 = vector.shape_cast %1170 : vector<2xf32> to vector<2x1xf32>
    %cst_353 = arith.constant 6.400000e+01 : f32
    %1172 = vector.broadcast %cst_353 : f32 to vector<2x1xf32>
    %1173 = arith.divf %1171, %1172 : vector<2x1xf32>
    %1174 = vector.broadcast %1173 : vector<2x1xf32> to vector<2x64xf32>
    %1175 = arith.subf %1169, %1174 : vector<2x64xf32>
    %1176 = arith.mulf %1175, %1175 : vector<2x64xf32>
    %cst_354 = arith.constant dense<0.000000e+00> : vector<2xf32>
    %1177 = vector.multi_reduction <add>, %1176, %cst_354 [1] : vector<2x64xf32> to vector<2xf32>
    %1178 = vector.shape_cast %1177 : vector<2xf32> to vector<2x1xf32>
    %cst_355 = arith.constant 6.400000e+01 : f32
    %1179 = vector.broadcast %cst_355 : f32 to vector<2x1xf32>
    %1180 = arith.divf %1178, %1179 : vector<2x1xf32>
    %1181 = vector.broadcast %1173 : vector<2x1xf32> to vector<2x64xf32>
    %1182 = arith.subf %1169, %1181 : vector<2x64xf32>
    %cst_356 = arith.constant 9.99999974E-6 : f32
    %1183 = vector.broadcast %cst_356 : f32 to vector<2x1xf32>
    %1184 = arith.addf %1180, %1183 : vector<2x1xf32>
    %1185 = math.rsqrt %1184 : vector<2x1xf32>
    %1186 = vector.broadcast %1185 : vector<2x1xf32> to vector<2x64xf32>
    %1187 = arith.mulf %1182, %1186 : vector<2x64xf32>
    %c0_357 = arith.constant 0 : index
    %c0_358 = arith.constant 0 : index
    %1188 = vector.load %arg12[%c0_357, %c0_358] : memref<2x64xf32, #tpu.memory_space<vmem>>, vector<2x64xf32>
    tpu.vector_store %arg12[%c0_357, %c0_358], %1187 {strides = array<i32>} : memref<2x64xf32, #tpu.memory_space<vmem>>, vector<2x64xf32>,
    return
  }
  func.func @transform_0(%arg0: i32) -> (i32, i32) {
    %c0_i32 = arith.constant 0 : i32
    %c0_i32_0 = arith.constant 0 : i32
    %c0_i32_1 = arith.constant 0 : i32
    return %c0_i32, %c0_i32_0 : i32, i32
  }
  func.func @transform_1(%arg0: i32) -> (i32, i32, i32) {
    %c0_i32 = arith.constant 0 : i32
    %c0_i32_0 = arith.constant 0 : i32
    %c0_i32_1 = arith.constant 0 : i32
    %c0_i32_2 = arith.constant 0 : i32
    return %c0_i32, %c0_i32_0, %c0_i32_1 : i32, i32, i32
  }
  func.func @transform_2(%arg0: i32) -> (i32, i32, i32) {
    %c0_i32 = arith.constant 0 : i32
    %c0_i32_0 = arith.constant 0 : i32
    %c0_i32_1 = arith.constant 0 : i32
    %c0_i32_2 = arith.constant 0 : i32
    return %c0_i32, %c0_i32_0, %c0_i32_1 : i32, i32, i32
  }
  func.func @transform_3(%arg0: i32) -> (i32, i32, i32) {
    %c0_i32 = arith.constant 0 : i32
    %c0_i32_0 = arith.constant 0 : i32
    %c0_i32_1 = arith.constant 0 : i32
    %c0_i32_2 = arith.constant 0 : i32
    return %c0_i32, %c0_i32_0, %c0_i32_1 : i32, i32, i32
  }
  func.func @transform_4(%arg0: i32) -> (i32, i32, i32) {
    %c0_i32 = arith.constant 0 : i32
    %c0_i32_0 = arith.constant 0 : i32
    %c0_i32_1 = arith.constant 0 : i32
    %c0_i32_2 = arith.constant 0 : i32
    return %c0_i32, %c0_i32_0, %c0_i32_1 : i32, i32, i32
  }
  func.func @transform_5(%arg0: i32) -> (i32, i32, i32) {
    %c0_i32 = arith.constant 0 : i32
    %c0_i32_0 = arith.constant 0 : i32
    %c0_i32_1 = arith.constant 0 : i32
    %c0_i32_2 = arith.constant 0 : i32
    return %c0_i32, %c0_i32_0, %c0_i32_1 : i32, i32, i32
  }
  func.func @transform_6(%arg0: i32) -> (i32, i32, i32) {
    %c0_i32 = arith.constant 0 : i32
    %c0_i32_0 = arith.constant 0 : i32
    %c0_i32_1 = arith.constant 0 : i32
    %c0_i32_2 = arith.constant 0 : i32
    return %c0_i32, %c0_i32_0, %c0_i32_1 : i32, i32, i32
  }
  func.func @transform_7(%arg0: i32) -> (i32, i32, i32) {
    %c0_i32 = arith.constant 0 : i32
    %c0_i32_0 = arith.constant 0 : i32
    %c0_i32_1 = arith.constant 0 : i32
    %c0_i32_2 = arith.constant 0 : i32
    return %c0_i32, %c0_i32_0, %c0_i32_1 : i32, i32, i32
  }
  func.func @transform_8(%arg0: i32) -> (i32, i32, i32) {
    %c0_i32 = arith.constant 0 : i32
    %c0_i32_0 = arith.constant 0 : i32
    %c0_i32_1 = arith.constant 0 : i32
    %c0_i32_2 = arith.constant 0 : i32
    return %c0_i32, %c0_i32_0, %c0_i32_1 : i32, i32, i32
  }
  func.func @transform_9(%arg0: i32) -> (i32, i32) {
    %c0_i32 = arith.constant 0 : i32
    %c0_i32_0 = arith.constant 0 : i32
    %c0_i32_1 = arith.constant 0 : i32
    return %c0_i32, %c0_i32_0 : i32, i32
  }
  func.func @transform_10(%arg0: i32) -> (i32, i32) {
    %c0_i32 = arith.constant 0 : i32
    %c0_i32_0 = arith.constant 0 : i32
    %c0_i32_1 = arith.constant 0 : i32
    return %c0_i32, %c0_i32_0 : i32, i32
  }
  func.func @transform_11(%arg0: i32) -> (i32, i32) {
    %c0_i32 = arith.constant 0 : i32
    %c0_i32_0 = arith.constant 0 : i32
    %c0_i32_1 = arith.constant 0 : i32
    return %c0_i32, %c0_i32_0 : i32, i32
  }
}

</mosaic_0001>

<bundles_post_ra>
// kernel: tpu_custom_call.1
= control target key start
LH: loop header
LB: loop body
LE: loop exit
PB: predicated region body
PF: predicated region fallthrough
CT: control target
= control target key end

     0   :  { %s9724_s0 = inlined_call_operand.vmem [shape: f32[16,512], index: 0, kind: input, shape index: {}]   ;;  %s9725_s1 = inlined_call_operand.vmem [shape: f32[6,512,32], index: 1, kind: input, shape index: {}]   ;;  %s9726_s2 = inlined_call_operand.vmem [shape: f32[6,1,32], index: 2, kind: input, shape index: {}]   ;;  %s9727_s3 = inlined_call_operand.vmem [shape: f32[6,32,32], index: 3, kind: input, shape index: {}]   ;;  %s9728_s4 = inlined_call_operand.vmem [shape: f32[6,1,32], index: 4, kind: input, shape index: {}]   ;;  %s9729_s5 = inlined_call_operand.vmem [shape: f32[6,64,32], index: 5, kind: input, shape index: {}]   ;;  %s9730_s6 = inlined_call_operand.vmem [shape: f32[6,1,32], index: 6, kind: input, shape index: {}]   ;;  %s9731_s7 = inlined_call_operand.vmem [shape: f32[6,32,32], index: 7, kind: input, shape index: {}]   ;;  %s9732_s8 = inlined_call_operand.vmem [shape: f32[6,1,32], index: 8, kind: input, shape index: {}]   ;;  %s9733_s9 = inlined_call_operand.vmem [shape: f32[128,64], index: 9, kind: input, shape index: {}]   ;;  %s9734_s10 = inlined_call_operand.vmem [shape: f32[1,64], index: 10, kind: input, shape index: {}]   ;;  %s9735_s11 = inlined_call_operand.hbm [shape: f32[2,64], index: 11, kind: output, shape index: {}]  }
   0x1   :  { %v62_v0 = vld [vmem:[%s9725_s1 + $0x78] sm:$0xff]  ;;  %v61_v3 = vld [vmem:[%s9725_s1 + $0x70] sm:$0xff]  ;;  %v60_v6 = vld [vmem:[%s9725_s1 + $0x68] sm:$0xff] }
   0x2   :  { %v94_v1 = vld [vmem:[%s9725_s1 + $0x178] sm:$0xff]  ;;  %115 = vmatpush.msra.mxu0 %v62_v0  ;;  %v93_v4 = vld [vmem:[%s9725_s1 + $0x170] sm:$0xff]  ;;  %v92_v8 = vld [vmem:[%s9725_s1 + $0x168] sm:$0xff] }
   0x3   :  { %v110_v2 = vld [vmem:[%s9725_s1 + $0x1f8] sm:$0xff]  ;;  %161 = vmatpush.msra.mxu2 %v94_v1  ;;  %v109_v5 = vld [vmem:[%s9725_s1 + $0x1f0] sm:$0xff]  ;;  %v108_v9 = vld [vmem:[%s9725_s1 + $0x1e8] sm:$0xff] }
   0x4   :  { %184 = vmatpush.msra.mxu3 %v110_v2  ;;  %v78_v7 = vld [vmem:[%s9725_s1 + $0xf8] sm:$0xff]  ;;  %116 = vmatpush.msra.mxu0 %v61_v3  ;;  %v77_v10 = vld [vmem:[%s9725_s1 + $0xf0] sm:$0xff]  ;;  %v59_v11 = vld [vmem:[%s9725_s1 + $0x60] sm:$0xff] }
   0x5   :  { %162 = vmatpush.msra.mxu2 %v93_v4  ;;  %138 = vmatpush.msra.mxu1 %v78_v7  ;;  %v91_v12 = vld [vmem:[%s9725_s1 + $0x160] sm:$0xff]  ;;  %v76_v14 = vld [vmem:[%s9725_s1 + $0xe8] sm:$0xff]  ;;  %v58_v15 = vld [vmem:[%s9725_s1 + $0x58] sm:$0xff] }
   0x6   :  { %185 = vmatpush.msra.mxu3 %v109_v5  ;;  %117 = vmatpush.msra.mxu0 %v60_v6  ;;  %v107_v13 = vld [vmem:[%s9725_s1 + $0x1e0] sm:$0xff]  ;;  %v90_v16 = vld [vmem:[%s9725_s1 + $0x158] sm:$0xff]  ;;  %v57_v19 = vld [vmem:[%s9725_s1 + $0x50] sm:$0xff] }
   0x7   :  { %163 = vmatpush.msra.mxu2 %v92_v8  ;;  %139 = vmatpush.msra.mxu1 %v77_v10  ;;  %v106_v17 = vld [vmem:[%s9725_s1 + $0x1d8] sm:$0xff]  ;;  %v75_v18 = vld [vmem:[%s9725_s1 + $0xe0] sm:$0xff]  ;;  %v89_v20 = vld [vmem:[%s9725_s1 + $0x150] sm:$0xff] }
   0x8   :  { %186 = vmatpush.msra.mxu3 %v108_v9  ;;  %118 = vmatpush.msra.mxu0 %v59_v11  ;;  %v105_v21 = vld [vmem:[%s9725_s1 + $0x1d0] sm:$0xff]  ;;  %v74_v22 = vld [vmem:[%s9725_s1 + $0xd8] sm:$0xff]  ;;  %v56_v23 = vld [vmem:[%s9725_s1 + $0x48] sm:$0xff] }
   0x9   :  { %164 = vmatpush.msra.mxu2 %v91_v12  ;;  %140 = vmatpush.msra.mxu1 %v76_v14  ;;  %v88_v24 = vld [vmem:[%s9725_s1 + $0x148] sm:$0xff]  ;;  %v73_v26 = vld [vmem:[%s9725_s1 + $0xd0] sm:$0xff]  ;;  %v55_v27 = vld [vmem:[%s9725_s1 + $0x40] sm:$0xff] }
   0xa   :  { %187 = vmatpush.msra.mxu3 %v107_v13  ;;  %119 = vmatpush.msra.mxu0 %v58_v15  ;;  %v104_v25 = vld [vmem:[%s9725_s1 + $0x1c8] sm:$0xff]  ;;  %v87_v28 = vld [vmem:[%s9725_s1 + $0x140] sm:$0xff]  ;;  %v54_v31 = vld [vmem:[%s9725_s1 + $0x38] sm:$0xff] }
   0xb   :  { %165 = vmatpush.msra.mxu2 %v90_v16  ;;  %141 = vmatpush.msra.mxu1 %v75_v18  ;;  %v103_v29 = vld [vmem:[%s9725_s1 + $0x1c0] sm:$0xff]  ;;  %v72_v30 = vld [vmem:[%s9725_s1 + $0xc8] sm:$0xff]  ;;  %v86_v32 = vld [vmem:[%s9725_s1 + $0x138] sm:$0xff] }
   0xc   :  { %188 = vmatpush.msra.mxu3 %v106_v17  ;;  %120 = vmatpush.msra.mxu0 %v57_v19  ;;  %v102_v33 = vld [vmem:[%s9725_s1 + $0x1b8] sm:$0xff]  ;;  %v71_v34 = vld [vmem:[%s9725_s1 + $0xc0] sm:$0xff]  ;;  %v53_v35 = vld [vmem:[%s9725_s1 + $0x30] sm:$0xff] }
   0xd   :  { %166 = vmatpush.msra.mxu2 %v89_v20  ;;  %142 = vmatpush.msra.mxu1 %v74_v22  ;;  %v85_v36 = vld [vmem:[%s9725_s1 + $0x130] sm:$0xff]  ;;  %v70_v38 = vld [vmem:[%s9725_s1 + $0xb8] sm:$0xff]  ;;  %v52_v39 = vld [vmem:[%s9725_s1 + $0x28] sm:$0xff] }
   0xe   :  { %189 = vmatpush.msra.mxu3 %v105_v21  ;;  %121 = vmatpush.msra.mxu0 %v56_v23  ;;  %v101_v37 = vld [vmem:[%s9725_s1 + $0x1b0] sm:$0xff]  ;;  %v84_v40 = vld [vmem:[%s9725_s1 + $0x128] sm:$0xff]  ;;  %v51_v43 = vld [vmem:[%s9725_s1 + $0x20] sm:$0xff] }
   0xf   :  { %167 = vmatpush.msra.mxu2 %v88_v24  ;;  %143 = vmatpush.msra.mxu1 %v73_v26  ;;  %v100_v41 = vld [vmem:[%s9725_s1 + $0x1a8] sm:$0xff]  ;;  %v69_v42 = vld [vmem:[%s9725_s1 + $0xb0] sm:$0xff]  ;;  %v83_v44 = vld [vmem:[%s9725_s1 + $0x120] sm:$0xff] }
  0x10   :  { %190 = vmatpush.msra.mxu3 %v104_v25  ;;  %122 = vmatpush.msra.mxu0 %v55_v27  ;;  %v99_v45 = vld [vmem:[%s9725_s1 + $0x1a0] sm:$0xff]  ;;  %v68_v46 = vld [vmem:[%s9725_s1 + $0xa8] sm:$0xff]  ;;  %v50_v47 = vld [vmem:[%s9725_s1 + $0x18] sm:$0xff] }
  0x11   :  { %168 = vmatpush.msra.mxu2 %v87_v28  ;;  %144 = vmatpush.msra.mxu1 %v72_v30  ;;  %v82_v48 = vld [vmem:[%s9725_s1 + $0x118] sm:$0xff]  ;;  %v67_v50 = vld [vmem:[%s9725_s1 + $0xa0] sm:$0xff]  ;;  %v49_v51 = vld [vmem:[%s9725_s1 + $0x10] sm:$0xff] }
  0x12   :  { %191 = vmatpush.msra.mxu3 %v103_v29  ;;  %123 = vmatpush.msra.mxu0 %v54_v31  ;;  %v98_v49 = vld [vmem:[%s9725_s1 + $0x198] sm:$0xff]  ;;  %v81_v52 = vld [vmem:[%s9725_s1 + $0x110] sm:$0xff]  ;;  %v48_v55 = vld [vmem:[%s9725_s1 + $0x8] sm:$0xff] }
  0x13   :  { %169 = vmatpush.msra.mxu2 %v86_v32  ;;  %145 = vmatpush.msra.mxu1 %v71_v34  ;;  %v97_v53 = vld [vmem:[%s9725_s1 + $0x190] sm:$0xff]  ;;  %v66_v54 = vld [vmem:[%s9725_s1 + $0x98] sm:$0xff]  ;;  %v80_v56 = vld [vmem:[%s9725_s1 + $0x108] sm:$0xff] }
  0x14   :  { %192 = vmatpush.msra.mxu3 %v102_v33  ;;  %124 = vmatpush.msra.mxu0 %v53_v35  ;;  %v96_v57 = vld [vmem:[%s9725_s1 + $0x188] sm:$0xff]  ;;  %v65_v58 = vld [vmem:[%s9725_s1 + $0x90] sm:$0xff]  ;;  %v47_v59 = vld [vmem:[%s9725_s1] sm:$0xff] }
  0x15   :  { %170 = vmatpush.msra.mxu2 %v85_v36  ;;  %146 = vmatpush.msra.mxu1 %v70_v38  ;;  %v79_v60 = vld [vmem:[%s9725_s1 + $0x100] sm:$0xff]  ;;  %v5308_v62 = vld [vmem:[%s9725_s1 + $0x278] sm:$0xff]  ;;  %v64_v1 = vld [vmem:[%s9725_s1 + $0x88] sm:$0xff] }
  0x16   :  { %193 = vmatpush.msra.mxu3 %v101_v37  ;;  %125 = vmatpush.msra.mxu0 %v52_v39  ;;  %v95_v61 = vld [vmem:[%s9725_s1 + $0x180] sm:$0xff]  ;;  %v5340_v63 = vld [vmem:[%s9725_s1 + $0x378] sm:$0xff]  ;;  %v5307_v2 = vld [vmem:[%s9725_s1 + $0x270] sm:$0xff] }
  0x17   :  { %171 = vmatpush.msra.mxu2 %v84_v40  ;;  %147 = vmatpush.msra.mxu1 %v69_v42  ;;  %v5356_v0 = vld [vmem:[%s9725_s1 + $0x3f8] sm:$0xff]  ;;  %v5339_v3 = vld [vmem:[%s9725_s1 + $0x370] sm:$0xff]  ;;  %v63_v5 = vld [vmem:[%s9725_s1 + $0x80] sm:$0xff] }
  0x18   :  { %194 = vmatpush.msra.mxu3 %v100_v41  ;;  %126 = vmatpush.msra.mxu0 %v51_v43  ;;  %v5355_v4 = vld [vmem:[%s9725_s1 + $0x3f0] sm:$0xff]  ;;  %v5306_v6 = vld [vmem:[%s9725_s1 + $0x268] sm:$0xff]  ;;  %v5324_v7 = vld [vmem:[%s9725_s1 + $0x2f8] sm:$0xff] }
  0x19   :  { %172 = vmatpush.msra.mxu2 %v83_v44  ;;  %148 = vmatpush.msra.mxu1 %v68_v46  ;;  %v5338_v8 = vld [vmem:[%s9725_s1 + $0x368] sm:$0xff]  ;;  %v5305_v10 = vld [vmem:[%s9725_s1 + $0x260] sm:$0xff]  ;;  %v5323_v11 = vld [vmem:[%s9725_s1 + $0x2f0] sm:$0xff] }
  0x1a   :  { %195 = vmatpush.msra.mxu3 %v99_v45  ;;  %127 = vmatpush.msra.mxu0 %v50_v47  ;;  %v5354_v9 = vld [vmem:[%s9725_s1 + $0x3e8] sm:$0xff]  ;;  %v5337_v12 = vld [vmem:[%s9725_s1 + $0x360] sm:$0xff]  ;;  %v5304_v14 = vld [vmem:[%s9725_s1 + $0x258] sm:$0xff] }
  0x1b   :  { %173 = vmatpush.msra.mxu2 %v82_v48  ;;  %149 = vmatpush.msra.mxu1 %v67_v50  ;;  %v5353_v13 = vld [vmem:[%s9725_s1 + $0x3e0] sm:$0xff]  ;;  %v5322_v15 = vld [vmem:[%s9725_s1 + $0x2e8] sm:$0xff]  ;;  %v5336_v16 = vld [vmem:[%s9725_s1 + $0x358] sm:$0xff] }
  0x1c   :  { %196 = vmatpush.msra.mxu3 %v98_v49  ;;  %128 = vmatpush.msra.mxu0 %v49_v51  ;;  %v5352_v17 = vld [vmem:[%s9725_s1 + $0x3d8] sm:$0xff]  ;;  %v5303_v18 = vld [vmem:[%s9725_s1 + $0x250] sm:$0xff]  ;;  %v5321_v19 = vld [vmem:[%s9725_s1 + $0x2e0] sm:$0xff] }
  0x1d   :  { %174 = vmatpush.msra.mxu2 %v81_v52  ;;  %150 = vmatpush.msra.mxu1 %v66_v54  ;;  %v5335_v20 = vld [vmem:[%s9725_s1 + $0x350] sm:$0xff]  ;;  %v5302_v22 = vld [vmem:[%s9725_s1 + $0x248] sm:$0xff]  ;;  %v5320_v23 = vld [vmem:[%s9725_s1 + $0x2d8] sm:$0xff] }
  0x1e   :  { %197 = vmatpush.msra.mxu3 %v97_v53  ;;  %129 = vmatpush.msra.mxu0 %v48_v55  ;;  %v5351_v21 = vld [vmem:[%s9725_s1 + $0x3d0] sm:$0xff]  ;;  %v5334_v24 = vld [vmem:[%s9725_s1 + $0x348] sm:$0xff]  ;;  %v5301_v26 = vld [vmem:[%s9725_s1 + $0x240] sm:$0xff] }
  0x1f   :  { %175 = vmatpush.msra.mxu2 %v80_v56  ;;  %151 = vmatpush.msra.mxu1 %v65_v58  ;;  %v5350_v25 = vld [vmem:[%s9725_s1 + $0x3c8] sm:$0xff]  ;;  %v5319_v27 = vld [vmem:[%s9725_s1 + $0x2d0] sm:$0xff]  ;;  %v5333_v28 = vld [vmem:[%s9725_s1 + $0x340] sm:$0xff] }
  0x20   :  { %198 = vmatpush.msra.mxu3 %v96_v57  ;;  %130 = vmatpush.msra.mxu0 %v47_v59  ;;  %v5349_v29 = vld [vmem:[%s9725_s1 + $0x3c0] sm:$0xff]  ;;  %v5300_v30 = vld [vmem:[%s9725_s1 + $0x238] sm:$0xff]  ;;  %v5318_v31 = vld [vmem:[%s9725_s1 + $0x2c8] sm:$0xff] }
  0x21   :  { %176 = vmatpush.msra.mxu2 %v79_v60  ;;  %152 = vmatpush.msra.mxu1 %v64_v1  ;;  %v5332_v32 = vld [vmem:[%s9725_s1 + $0x338] sm:$0xff]  ;;  %v5299_v34 = vld [vmem:[%s9725_s1 + $0x230] sm:$0xff]  ;;  %v5317_v35 = vld [vmem:[%s9725_s1 + $0x2c0] sm:$0xff] }
  0x22   :  { %199 = vmatpush.msra.mxu3 %v95_v61  ;;  %277 = vmatpush.msrb.mxu0 %v5308_v62  ;;  %v5348_v33 = vld [vmem:[%s9725_s1 + $0x3b8] sm:$0xff]  ;;  %v5331_v36 = vld [vmem:[%s9725_s1 + $0x330] sm:$0xff]  ;;  %v5298_v38 = vld [vmem:[%s9725_s1 + $0x228] sm:$0xff] }
  0x23   :  { %323 = vmatpush.msrb.mxu2 %v5340_v63  ;;  %153 = vmatpush.msra.mxu1 %v63_v5  ;;  %v5347_v37 = vld [vmem:[%s9725_s1 + $0x3b0] sm:$0xff]  ;;  %v5316_v39 = vld [vmem:[%s9725_s1 + $0x2b8] sm:$0xff]  ;;  %v5330_v40 = vld [vmem:[%s9725_s1 + $0x328] sm:$0xff] }
  0x24   :  { %346 = vmatpush.msrb.mxu3 %v5356_v0  ;;  %278 = vmatpush.msrb.mxu0 %v5307_v2  ;;  %v5346_v41 = vld [vmem:[%s9725_s1 + $0x3a8] sm:$0xff]  ;;  %v5297_v42 = vld [vmem:[%s9725_s1 + $0x220] sm:$0xff]  ;;  %v5315_v43 = vld [vmem:[%s9725_s1 + $0x2b0] sm:$0xff] }
  0x25   :  { %324 = vmatpush.msrb.mxu2 %v5339_v3  ;;  %300 = vmatpush.msrb.mxu1 %v5324_v7  ;;  %v5329_v44 = vld [vmem:[%s9725_s1 + $0x320] sm:$0xff]  ;;  %v5296_v46 = vld [vmem:[%s9725_s1 + $0x218] sm:$0xff]  ;;  %v5314_v47 = vld [vmem:[%s9725_s1 + $0x2a8] sm:$0xff] }
  0x26   :  { %347 = vmatpush.msrb.mxu3 %v5355_v4  ;;  %279 = vmatpush.msrb.mxu0 %v5306_v6  ;;  %v5345_v45 = vld [vmem:[%s9725_s1 + $0x3a0] sm:$0xff]  ;;  %v5328_v48 = vld [vmem:[%s9725_s1 + $0x318] sm:$0xff]  ;;  %v5295_v50 = vld [vmem:[%s9725_s1 + $0x210] sm:$0xff] }
  0x27   :  { %325 = vmatpush.msrb.mxu2 %v5338_v8  ;;  %301 = vmatpush.msrb.mxu1 %v5323_v11  ;;  %v5344_v49 = vld [vmem:[%s9725_s1 + $0x398] sm:$0xff]  ;;  %v5313_v51 = vld [vmem:[%s9725_s1 + $0x2a0] sm:$0xff]  ;;  %v5327_v52 = vld [vmem:[%s9725_s1 + $0x310] sm:$0xff] }
  0x28   :  { %348 = vmatpush.msrb.mxu3 %v5354_v9  ;;  %280 = vmatpush.msrb.mxu0 %v5305_v10  ;;  %v5343_v53 = vld [vmem:[%s9725_s1 + $0x390] sm:$0xff]  ;;  %v5294_v54 = vld [vmem:[%s9725_s1 + $0x208] sm:$0xff]  ;;  %v5312_v55 = vld [vmem:[%s9725_s1 + $0x298] sm:$0xff] }
  0x29   :  { %326 = vmatpush.msrb.mxu2 %v5337_v12  ;;  %302 = vmatpush.msrb.mxu1 %v5322_v15  ;;  %v5326_v56 = vld [vmem:[%s9725_s1 + $0x308] sm:$0xff]  ;;  %v6759_v58 = vld [vmem:[%s9724_s0 + $0x10] sm:$0xff]  ;;  %v5293_v59 = vld [vmem:[%s9725_s1 + $0x200] sm:$0xff] }
  0x2a   :  { %349 = vmatpush.msrb.mxu3 %v5353_v13  ;;  %281 = vmatpush.msrb.mxu0 %v5304_v14  ;;  %v5342_v57 = vld [vmem:[%s9725_s1 + $0x388] sm:$0xff]  ;;  %v5311_v60 = vld [vmem:[%s9725_s1 + $0x290] sm:$0xff]  ;;  %v5325_v61 = vld [vmem:[%s9725_s1 + $0x300] sm:$0xff] }
  0x2b   :  { %327 = vmatpush.msrb.mxu2 %v5336_v16  ;;  %303 = vmatpush.msrb.mxu1 %v5321_v19  ;;  %v5341_v62 = vld [vmem:[%s9725_s1 + $0x380] sm:$0xff]  ;;  %v6781_v0 = vld [vmem:[%s9724_s0 + $0x18] sm:$0xff]  ;;  %v5310_v4 = vld [vmem:[%s9725_s1 + $0x288] sm:$0xff] }
  0x2c   :  { %350 = vmatpush.msrb.mxu3 %v5352_v17  ;;  %282 = vmatpush.msrb.mxu0 %v5303_v18  ;;  %v6776_v63 = vld [vmem:[%s9724_s0] sm:$0xff]  ;;  %v5373_v1 = vld [vmem:[%s9725_s1 + $0x478] sm:$0xff]  ;;  %v6799_v5 = vld [vmem:[%s9724_s0 + $0x8] sm:$0xff] }
  0x2d   :  { %328 = vmatpush.msrb.mxu2 %v5335_v20  ;;  %304 = vmatpush.msrb.mxu1 %v5320_v23  ;;  %v5405_v2 = vld [vmem:[%s9725_s1 + $0x578] sm:$0xff]  ;;  %v5372_v6 = vld [vmem:[%s9725_s1 + $0x470] sm:$0xff]  ;;  %v5309_v9 = vld [vmem:[%s9725_s1 + $0x280] sm:$0xff] }
  0x2e   :  { %351 = vmatpush.msrb.mxu3 %v5351_v21  ;;  %283 = vmatpush.msrb.mxu0 %v5302_v22  ;;  %v5421_v3 = vld [vmem:[%s9725_s1 + $0x5f8] sm:$0xff]  ;;  %v5404_v7 = vld [vmem:[%s9725_s1 + $0x570] sm:$0xff]  ;;  %v5371_v10 = vld [vmem:[%s9725_s1 + $0x468] sm:$0xff] }
  0x2f   :  { %329 = vmatpush.msrb.mxu2 %v5334_v24  ;;  %305 = vmatpush.msrb.mxu1 %v5319_v27  ;;  %v5420_v8 = vld [vmem:[%s9725_s1 + $0x5f0] sm:$0xff]  ;;  %v5389_v11 = vld [vmem:[%s9725_s1 + $0x4f8] sm:$0xff]  ;;  %v5403_v12 = vld [vmem:[%s9725_s1 + $0x568] sm:$0xff] }
  0x30   :  { %352 = vmatpush.msrb.mxu3 %v5350_v25  ;;  %284 = vmatpush.msrb.mxu0 %v5301_v26  ;;  %v5419_v13 = vld [vmem:[%s9725_s1 + $0x5e8] sm:$0xff]  ;;  %v5370_v14 = vld [vmem:[%s9725_s1 + $0x460] sm:$0xff]  ;;  %v5388_v15 = vld [vmem:[%s9725_s1 + $0x4f0] sm:$0xff] }
  0x31   :  { %330 = vmatpush.msrb.mxu2 %v5333_v28  ;;  %306 = vmatpush.msrb.mxu1 %v5318_v31  ;;  %v5402_v16 = vld [vmem:[%s9725_s1 + $0x560] sm:$0xff]  ;;  %v5369_v18 = vld [vmem:[%s9725_s1 + $0x458] sm:$0xff]  ;;  %v5387_v19 = vld [vmem:[%s9725_s1 + $0x4e8] sm:$0xff] }
  0x32   :  { %353 = vmatpush.msrb.mxu3 %v5349_v29  ;;  %285 = vmatpush.msrb.mxu0 %v5300_v30  ;;  %v5418_v17 = vld [vmem:[%s9725_s1 + $0x5e0] sm:$0xff]  ;;  %v5401_v20 = vld [vmem:[%s9725_s1 + $0x558] sm:$0xff]  ;;  %v5368_v22 = vld [vmem:[%s9725_s1 + $0x450] sm:$0xff] }
  0x33   :  { %331 = vmatpush.msrb.mxu2 %v5332_v32  ;;  %307 = vmatpush.msrb.mxu1 %v5317_v35  ;;  %v5417_v21 = vld [vmem:[%s9725_s1 + $0x5d8] sm:$0xff]  ;;  %v5386_v23 = vld [vmem:[%s9725_s1 + $0x4e0] sm:$0xff]  ;;  %v5400_v24 = vld [vmem:[%s9725_s1 + $0x550] sm:$0xff] }
  0x34   :  { %354 = vmatpush.msrb.mxu3 %v5348_v33  ;;  %286 = vmatpush.msrb.mxu0 %v5299_v34  ;;  %v5416_v25 = vld [vmem:[%s9725_s1 + $0x5d0] sm:$0xff]  ;;  %v5367_v26 = vld [vmem:[%s9725_s1 + $0x448] sm:$0xff]  ;;  %v5385_v27 = vld [vmem:[%s9725_s1 + $0x4d8] sm:$0xff] }
  0x35   :  { %332 = vmatpush.msrb.mxu2 %v5331_v36  ;;  %308 = vmatpush.msrb.mxu1 %v5316_v39  ;;  %v5399_v28 = vld [vmem:[%s9725_s1 + $0x548] sm:$0xff]  ;;  %v5366_v30 = vld [vmem:[%s9725_s1 + $0x440] sm:$0xff]  ;;  %v5384_v31 = vld [vmem:[%s9725_s1 + $0x4d0] sm:$0xff] }
  0x36   :  { %355 = vmatpush.msrb.mxu3 %v5347_v37  ;;  %287 = vmatpush.msrb.mxu0 %v5298_v38  ;;  %v5415_v29 = vld [vmem:[%s9725_s1 + $0x5c8] sm:$0xff]  ;;  %v5398_v32 = vld [vmem:[%s9725_s1 + $0x540] sm:$0xff]  ;;  %v5365_v34 = vld [vmem:[%s9725_s1 + $0x438] sm:$0xff] }
  0x37   :  { %333 = vmatpush.msrb.mxu2 %v5330_v40  ;;  %309 = vmatpush.msrb.mxu1 %v5315_v43  ;;  %v5414_v33 = vld [vmem:[%s9725_s1 + $0x5c0] sm:$0xff]  ;;  %v5383_v35 = vld [vmem:[%s9725_s1 + $0x4c8] sm:$0xff]  ;;  %v5397_v36 = vld [vmem:[%s9725_s1 + $0x538] sm:$0xff] }
  0x38   :  { %356 = vmatpush.msrb.mxu3 %v5346_v41  ;;  %288 = vmatpush.msrb.mxu0 %v5297_v42  ;;  %v5413_v37 = vld [vmem:[%s9725_s1 + $0x5b8] sm:$0xff]  ;;  %v5364_v38 = vld [vmem:[%s9725_s1 + $0x430] sm:$0xff]  ;;  %v5382_v39 = vld [vmem:[%s9725_s1 + $0x4c0] sm:$0xff] }
  0x39   :  { %334 = vmatpush.msrb.mxu2 %v5329_v44  ;;  %310 = vmatpush.msrb.mxu1 %v5314_v47  ;;  %v5396_v40 = vld [vmem:[%s9725_s1 + $0x530] sm:$0xff]  ;;  %v5363_v42 = vld [vmem:[%s9725_s1 + $0x428] sm:$0xff] }
  0x3a   :  { %357 = vmatpush.msrb.mxu3 %v5345_v45  ;;  %289 = vmatpush.msrb.mxu0 %v5296_v46  ;;  %v5412_v41 = vld [vmem:[%s9725_s1 + $0x5b0] sm:$0xff] }
  0x3b   :  { %335 = vmatpush.msrb.mxu2 %v5328_v48  ;;  %311 = vmatpush.msrb.mxu1 %v5313_v51 }
  0x3c   :  { %358 = vmatpush.msrb.mxu3 %v5344_v49  ;;  %290 = vmatpush.msrb.mxu0 %v5295_v50 }
  0x3d   :  { %336 = vmatpush.msrb.mxu2 %v5327_v52  ;;  %312 = vmatpush.msrb.mxu1 %v5312_v55 }
  0x3e   :  { %359 = vmatpush.msrb.mxu3 %v5343_v53  ;;  %291 = vmatpush.msrb.mxu0 %v5294_v54 }
  0x3f   :  { %337 = vmatpush.msrb.mxu2 %v5326_v56  ;;  %313 = vmatpush.msrb.mxu1 %v5311_v60 }
  0x40   :  { %360 = vmatpush.msrb.mxu3 %v5342_v57  ;;  %177 = vmatmul.f32.vlgmr.msra.gmra.mxu2 %v6759_v58 }
  0x41   :  { %292 = vmatpush.msrb.mxu0 %v5293_v59  ;;  %338 = vmatpush.msrb.mxu2 %v5325_v61 }
  0x42   :  { %361 = vmatpush.msrb.mxu3 %v5341_v62  ;;  %131 = vmatmul.f32.vlgmr.msra.gmra.mxu0 %v6776_v63 }
  0x43   :  { %200 = vmatmul.f32.vlgmr.msra.gmra.mxu3 %v6781_v0  ;;  %439 = vmatpush.msra.mxu0 %v5373_v1 }
  0x44   :  { %485 = vmatpush.msra.mxu2 %v5405_v2  ;;  %508 = vmatpush.msra.mxu3 %v5421_v3 }
  0x45   :  { %314 = vmatpush.msrb.mxu1 %v5310_v4  ;;  %440 = vmatpush.msra.mxu0 %v5372_v6 }
  0x46   :  { %154 = vmatmul.f32.vlgmr.msra.gmra.mxu1 %v6799_v5  ;;  %486 = vmatpush.msra.mxu2 %v5404_v7 }
  0x47   :  { %509 = vmatpush.msra.mxu3 %v5420_v8  ;;  %315 = vmatpush.msrb.mxu1 %v5309_v9 }
  0x48   :  { %441 = vmatpush.msra.mxu0 %v5371_v10  ;;  %487 = vmatpush.msra.mxu2 %v5403_v12 }
  0x49   :  { %462 = vmatpush.msra.mxu1 %v5389_v11  ;;  %510 = vmatpush.msra.mxu3 %v5419_v13 }
  0x4a   :  { %442 = vmatpush.msra.mxu0 %v5370_v14  ;;  %488 = vmatpush.msra.mxu2 %v5402_v16 }
  0x4b   :  { %463 = vmatpush.msra.mxu1 %v5388_v15  ;;  %511 = vmatpush.msra.mxu3 %v5418_v17 }
  0x4c   :  { %443 = vmatpush.msra.mxu0 %v5369_v18  ;;  %489 = vmatpush.msra.mxu2 %v5401_v20 }
  0x4d   :  { %464 = vmatpush.msra.mxu1 %v5387_v19  ;;  %512 = vmatpush.msra.mxu3 %v5417_v21 }
  0x4e   :  { %444 = vmatpush.msra.mxu0 %v5368_v22  ;;  %490 = vmatpush.msra.mxu2 %v5400_v24 }
  0x4f   :  { %465 = vmatpush.msra.mxu1 %v5386_v23  ;;  %513 = vmatpush.msra.mxu3 %v5416_v25 }
  0x50   :  { %445 = vmatpush.msra.mxu0 %v5367_v26  ;;  %491 = vmatpush.msra.mxu2 %v5399_v28 }
  0x51   :  { %466 = vmatpush.msra.mxu1 %v5385_v27  ;;  %514 = vmatpush.msra.mxu3 %v5415_v29 }
  0x52   :  { %446 = vmatpush.msra.mxu0 %v5366_v30  ;;  %492 = vmatpush.msra.mxu2 %v5398_v32 }
  0x53   :  { %467 = vmatpush.msra.mxu1 %v5384_v31  ;;  %515 = vmatpush.msra.mxu3 %v5414_v33 }
  0x54   :  { %447 = vmatpush.msra.mxu0 %v5365_v34  ;;  %493 = vmatpush.msra.mxu2 %v5397_v36 }
  0x55   :  { %468 = vmatpush.msra.mxu1 %v5383_v35 }
  0x56   :  { %16 = vsyncpa [#allocation3], 0  ;;  %516 = vmatpush.msra.mxu3 %v5413_v37  ;;  %448 = vmatpush.msra.mxu0 %v5364_v38  ;;  %v5381_v43 = vld [vmem:[%s9725_s1 + $0x4b8] sm:$0xff]  ;;  %v5395_v44 = vld [vmem:[%s9725_s1 + $0x528] sm:$0xff]  ;;  %vm1060_vm14 = vcmask 261120   ;;  %s6325_s28 = smov 32  }
  0x57   :  { %469 = vmatpush.msra.mxu1 %v5382_v39  ;;  %494 = vmatpush.msra.mxu2 %v5396_v40  ;;  %v5411_v45 = vld [vmem:[%s9725_s1 + $0x5a8] sm:$0xff]  ;;  %v6927_v46 = vld [vmem:[%s9724_s0 + $0x30] sm:$0xff]  ;;  %v5362_v47 = vld [vmem:[%s9725_s1 + $0x420] sm:$0xff]  ;;  %s6326_s15 = smov 64   ;;  %s6327_s16 = smov 96  }
  0x58   :  { %517 = vmatpush.msra.mxu3 %v5412_v41  ;;  %449 = vmatpush.msra.mxu0 %v5363_v42  ;;  %v5380_v48 = vld [vmem:[%s9725_s1 + $0x4b0] sm:$0xff]  ;;  %v5394_v49 = vld [vmem:[%s9725_s1 + $0x520] sm:$0xff]  ;;  %v6950_v52 = vld [vmem:[%s9724_s0 + $0x38] sm:$0xff] }
  0x59   :  { %470 = vmatpush.msra.mxu1 %v5381_v43  ;;  %495 = vmatpush.msra.mxu2 %v5395_v44  ;;  %v5410_v50 = vld [vmem:[%s9725_s1 + $0x5a0] sm:$0xff]  ;;  %v5361_v53 = vld [vmem:[%s9725_s1 + $0x418] sm:$0xff]  ;;  %v5379_v54 = vld [vmem:[%s9725_s1 + $0x4a8] sm:$0xff] }
  0x5a   :  { %518 = vmatpush.msra.mxu3 %v5411_v45  ;;  %180 = vmatmul.f32.gmra.mxu2 %v6927_v46  ;;  %v6945_v51 = vld [vmem:[%s9724_s0 + $0x20] sm:$0xff]  ;;  %v5393_v55 = vld [vmem:[%s9725_s1 + $0x518] sm:$0xff]  ;;  %v6969_v57 = vld [vmem:[%s9724_s0 + $0x28] sm:$0xff] }
  0x5b   :  { %450 = vmatpush.msra.mxu0 %v5362_v47  ;;  %471 = vmatpush.msra.mxu1 %v5380_v48  ;;  %v5409_v56 = vld [vmem:[%s9725_s1 + $0x598] sm:$0xff]  ;;  %v5360_v59 = vld [vmem:[%s9725_s1 + $0x410] sm:$0xff]  ;;  %v5378_v60 = vld [vmem:[%s9725_s1 + $0x4a0] sm:$0xff] }
  0x5c   :  { %496 = vmatpush.msra.mxu2 %v5394_v49  ;;  %519 = vmatpush.msra.mxu3 %v5410_v50  ;;  %v5392_v61 = vld [vmem:[%s9725_s1 + $0x510] sm:$0xff]  ;;  %v5359_v1 = vld [vmem:[%s9725_s1 + $0x408] sm:$0xff]  ;;  %v5377_v2 = vld [vmem:[%s9725_s1 + $0x498] sm:$0xff] }
  0x5d   :  { %134 = vmatmul.f32.gmra.mxu0 %v6945_v51  ;;  %203 = vmatmul.f32.gmra.mxu3 %v6950_v52  ;;  %v5408_v62 = vld [vmem:[%s9725_s1 + $0x590] sm:$0xff]  ;;  %v5391_v3 = vld [vmem:[%s9725_s1 + $0x508] sm:$0xff]  ;;  %v5358_v6 = vld [vmem:[%s9725_s1 + $0x400] sm:$0xff] }
  0x5e   :  { %451 = vmatpush.msra.mxu0 %v5361_v53  ;;  %472 = vmatpush.msra.mxu1 %v5379_v54  ;;  %v5407_v4 = vld [vmem:[%s9725_s1 + $0x588] sm:$0xff]  ;;  %v5376_v7 = vld [vmem:[%s9725_s1 + $0x490] sm:$0xff]  ;;  %v5390_v8 = vld [vmem:[%s9725_s1 + $0x500] sm:$0xff] }
  0x5f   :  { %497 = vmatpush.msra.mxu2 %v5393_v55  ;;  %520 = vmatpush.msra.mxu3 %v5409_v56  ;;  %v5406_v9 = vld [vmem:[%s9725_s1 + $0x580] sm:$0xff]  ;;  %v5438_v10 = vld [vmem:[%s9725_s1 + $0x678] sm:$0xff]  ;;  %v5375_v13 = vld [vmem:[%s9725_s1 + $0x488] sm:$0xff] }
  0x60   :  { %157 = vmatmul.f32.gmra.mxu1 %v6969_v57  ;;  %452 = vmatpush.msra.mxu0 %v5360_v59  ;;  %v5470_v11 = vld [vmem:[%s9725_s1 + $0x778] sm:$0xff]  ;;  %v5437_v14 = vld [vmem:[%s9725_s1 + $0x670] sm:$0xff]  ;;  %v5374_v17 = vld [vmem:[%s9725_s1 + $0x480] sm:$0xff] }
  0x61   :  { %473 = vmatpush.msra.mxu1 %v5378_v60  ;;  %498 = vmatpush.msra.mxu2 %v5392_v61  ;;  %v5486_v12 = vld [vmem:[%s9725_s1 + $0x7f8] sm:$0xff]  ;;  %v5469_v15 = vld [vmem:[%s9725_s1 + $0x770] sm:$0xff]  ;;  %v5436_v18 = vld [vmem:[%s9725_s1 + $0x668] sm:$0xff] }
  0x62   :  { %521 = vmatpush.msra.mxu3 %v5408_v62  ;;  %453 = vmatpush.msra.mxu0 %v5359_v1  ;;  %v5485_v16 = vld [vmem:[%s9725_s1 + $0x7f0] sm:$0xff]  ;;  %v5454_v19 = vld [vmem:[%s9725_s1 + $0x6f8] sm:$0xff]  ;;  %v5468_v20 = vld [vmem:[%s9725_s1 + $0x768] sm:$0xff] }
  0x63   :  { %474 = vmatpush.msra.mxu1 %v5377_v2  ;;  %499 = vmatpush.msra.mxu2 %v5391_v3  ;;  %v5484_v21 = vld [vmem:[%s9725_s1 + $0x7e8] sm:$0xff]  ;;  %v5435_v22 = vld [vmem:[%s9725_s1 + $0x660] sm:$0xff]  ;;  %v5453_v23 = vld [vmem:[%s9725_s1 + $0x6f0] sm:$0xff] }
  0x64   :  { %522 = vmatpush.msra.mxu3 %v5407_v4  ;;  %339 = vmatmul.f32.vlgmr.msrb.gmra.mxu2 %v6759_v58  ;;  %v5467_v24 = vld [vmem:[%s9725_s1 + $0x760] sm:$0xff]  ;;  %v5434_v26 = vld [vmem:[%s9725_s1 + $0x658] sm:$0xff]  ;;  %v5452_v27 = vld [vmem:[%s9725_s1 + $0x6e8] sm:$0xff] }
  0x65   :  { %454 = vmatpush.msra.mxu0 %v5358_v6  ;;  %475 = vmatpush.msra.mxu1 %v5376_v7  ;;  %v5483_v25 = vld [vmem:[%s9725_s1 + $0x7e0] sm:$0xff]  ;;  %v5466_v28 = vld [vmem:[%s9725_s1 + $0x758] sm:$0xff]  ;;  %v5433_v30 = vld [vmem:[%s9725_s1 + $0x650] sm:$0xff] }
  0x66   :  { %500 = vmatpush.msra.mxu2 %v5390_v8  ;;  %523 = vmatpush.msra.mxu3 %v5406_v9  ;;  %v5482_v29 = vld [vmem:[%s9725_s1 + $0x7d8] sm:$0xff]  ;;  %v5451_v31 = vld [vmem:[%s9725_s1 + $0x6e0] sm:$0xff]  ;;  %v5465_v32 = vld [vmem:[%s9725_s1 + $0x750] sm:$0xff] }
  0x67   :  { %293 = vmatmul.f32.vlgmr.msrb.gmra.mxu0 %v6776_v63  ;;  %362 = vmatmul.f32.vlgmr.msrb.gmra.mxu3 %v6781_v0  ;;  %v5481_v33 = vld [vmem:[%s9725_s1 + $0x7d0] sm:$0xff]  ;;  %v5432_v34 = vld [vmem:[%s9725_s1 + $0x648] sm:$0xff]  ;;  %v5450_v35 = vld [vmem:[%s9725_s1 + $0x6d8] sm:$0xff] }
  0x68   :  { %601 = vmatpush.msrb.mxu0 %v5438_v10  ;;  %647 = vmatpush.msrb.mxu2 %v5470_v11  ;;  %v5464_v36 = vld [vmem:[%s9725_s1 + $0x748] sm:$0xff]  ;;  %v5431_v38 = vld [vmem:[%s9725_s1 + $0x640] sm:$0xff]  ;;  %v5449_v39 = vld [vmem:[%s9725_s1 + $0x6d0] sm:$0xff] }
  0x69   :  { %670 = vmatpush.msrb.mxu3 %v5486_v12  ;;  %476 = vmatpush.msra.mxu1 %v5375_v13  ;;  %v5480_v37 = vld [vmem:[%s9725_s1 + $0x7c8] sm:$0xff]  ;;  %v5463_v40 = vld [vmem:[%s9725_s1 + $0x740] sm:$0xff]  ;;  %v5430_v42 = vld [vmem:[%s9725_s1 + $0x638] sm:$0xff] }
  0x6a   :  { %316 = vmatmul.f32.vlgmr.msrb.gmra.mxu1 %v6799_v5  ;;  %602 = vmatpush.msrb.mxu0 %v5437_v14  ;;  %v5479_v41 = vld [vmem:[%s9725_s1 + $0x7c0] sm:$0xff]  ;;  %v5448_v43 = vld [vmem:[%s9725_s1 + $0x6c8] sm:$0xff]  ;;  %v5462_v44 = vld [vmem:[%s9725_s1 + $0x738] sm:$0xff] }
  0x6b   :  { %648 = vmatpush.msrb.mxu2 %v5469_v15  ;;  %671 = vmatpush.msrb.mxu3 %v5485_v16  ;;  %v5478_v45 = vld [vmem:[%s9725_s1 + $0x7b8] sm:$0xff]  ;;  %v5429_v47 = vld [vmem:[%s9725_s1 + $0x630] sm:$0xff]  ;;  %v5447_v48 = vld [vmem:[%s9725_s1 + $0x6c0] sm:$0xff] }
  0x6c   :  { %477 = vmatpush.msra.mxu1 %v5374_v17  ;;  %603 = vmatpush.msrb.mxu0 %v5436_v18  ;;  %v5461_v49 = vld [vmem:[%s9725_s1 + $0x730] sm:$0xff]  ;;  %v5428_v53 = vld [vmem:[%s9725_s1 + $0x628] sm:$0xff]  ;;  %v5446_v54 = vld [vmem:[%s9725_s1 + $0x6b8] sm:$0xff] }
  0x6d   :  { %649 = vmatpush.msrb.mxu2 %v5468_v20  ;;  %672 = vmatpush.msrb.mxu3 %v5484_v21  ;;  %v5477_v50 = vld [vmem:[%s9725_s1 + $0x7b0] sm:$0xff]  ;;  %v5460_v55 = vld [vmem:[%s9725_s1 + $0x728] sm:$0xff]  ;;  %v5427_v59 = vld [vmem:[%s9725_s1 + $0x620] sm:$0xff] }
  0x6e   :  { %624 = vmatpush.msrb.mxu1 %v5454_v19  ;;  %604 = vmatpush.msrb.mxu0 %v5435_v22  ;;  %v5476_v56 = vld [vmem:[%s9725_s1 + $0x7a8] sm:$0xff]  ;;  %v5445_v60 = vld [vmem:[%s9725_s1 + $0x6b0] sm:$0xff]  ;;  %v5459_v61 = vld [vmem:[%s9725_s1 + $0x720] sm:$0xff] }
  0x6f   :  { %650 = vmatpush.msrb.mxu2 %v5467_v24  ;;  %673 = vmatpush.msrb.mxu3 %v5483_v25  ;;  %v5475_v62 = vld [vmem:[%s9725_s1 + $0x7a0] sm:$0xff]  ;;  %v5426_v1 = vld [vmem:[%s9725_s1 + $0x618] sm:$0xff]  ;;  %v5444_v2 = vld [vmem:[%s9725_s1 + $0x6a8] sm:$0xff] }
  0x70   :  { %625 = vmatpush.msrb.mxu1 %v5453_v23  ;;  %605 = vmatpush.msrb.mxu0 %v5434_v26  ;;  %v5458_v3 = vld [vmem:[%s9725_s1 + $0x718] sm:$0xff]  ;;  %v5425_v6 = vld [vmem:[%s9725_s1 + $0x610] sm:$0xff]  ;;  %v5443_v7 = vld [vmem:[%s9725_s1 + $0x6a0] sm:$0xff] }
  0x71   :  { %651 = vmatpush.msrb.mxu2 %v5466_v28  ;;  %674 = vmatpush.msrb.mxu3 %v5482_v29  ;;  %v5474_v4 = vld [vmem:[%s9725_s1 + $0x798] sm:$0xff]  ;;  %v5457_v8 = vld [vmem:[%s9725_s1 + $0x710] sm:$0xff]  ;;  %v5424_v10 = vld [vmem:[%s9725_s1 + $0x608] sm:$0xff] }
  0x72   :  { %626 = vmatpush.msrb.mxu1 %v5452_v27  ;;  %606 = vmatpush.msrb.mxu0 %v5433_v30  ;;  %v5473_v9 = vld [vmem:[%s9725_s1 + $0x790] sm:$0xff]  ;;  %v5442_v11 = vld [vmem:[%s9725_s1 + $0x698] sm:$0xff]  ;;  %v5456_v12 = vld [vmem:[%s9725_s1 + $0x708] sm:$0xff] }
  0x73   :  { %652 = vmatpush.msrb.mxu2 %v5465_v32  ;;  %675 = vmatpush.msrb.mxu3 %v5481_v33  ;;  %v5472_v13 = vld [vmem:[%s9725_s1 + $0x788] sm:$0xff]  ;;  %v5423_v14 = vld [vmem:[%s9725_s1 + $0x600] sm:$0xff]  ;;  %v5441_v15 = vld [vmem:[%s9725_s1 + $0x690] sm:$0xff] }
  0x74   :  { %627 = vmatpush.msrb.mxu1 %v5451_v31  ;;  %607 = vmatpush.msrb.mxu0 %v5432_v34  ;;  %v5455_v16 = vld [vmem:[%s9725_s1 + $0x700] sm:$0xff]  ;;  %v5503_v18 = vld [vmem:[%s9725_s1 + $0x878] sm:$0xff]  ;;  %v5440_v21 = vld [vmem:[%s9725_s1 + $0x688] sm:$0xff] }
  0x75   :  { %653 = vmatpush.msrb.mxu2 %v5464_v36  ;;  %676 = vmatpush.msrb.mxu3 %v5480_v37  ;;  %v5471_v17 = vld [vmem:[%s9725_s1 + $0x780] sm:$0xff]  ;;  %v5535_v19 = vld [vmem:[%s9725_s1 + $0x978] sm:$0xff]  ;;  %v5502_v22 = vld [vmem:[%s9725_s1 + $0x870] sm:$0xff] }
  0x76   :  { %628 = vmatpush.msrb.mxu1 %v5450_v35  ;;  %608 = vmatpush.msrb.mxu0 %v5431_v38  ;;  %v5551_v20 = vld [vmem:[%s9725_s1 + $0x9f8] sm:$0xff]  ;;  %v5534_v23 = vld [vmem:[%s9725_s1 + $0x970] sm:$0xff]  ;;  %v5439_v25 = vld [vmem:[%s9725_s1 + $0x680] sm:$0xff] }
  0x77   :  { %654 = vmatpush.msrb.mxu2 %v5463_v40  ;;  %677 = vmatpush.msrb.mxu3 %v5479_v41  ;;  %v5550_v24 = vld [vmem:[%s9725_s1 + $0x9f0] sm:$0xff]  ;;  %v5501_v26 = vld [vmem:[%s9725_s1 + $0x868] sm:$0xff]  ;;  %v5519_v27 = vld [vmem:[%s9725_s1 + $0x8f8] sm:$0xff] }
  0x78   :  { %629 = vmatpush.msrb.mxu1 %v5449_v39  ;;  %609 = vmatpush.msrb.mxu0 %v5430_v42  ;;  %v5533_v28 = vld [vmem:[%s9725_s1 + $0x968] sm:$0xff]  ;;  %v5500_v30 = vld [vmem:[%s9725_s1 + $0x860] sm:$0xff]  ;;  %v5518_v31 = vld [vmem:[%s9725_s1 + $0x8f0] sm:$0xff] }
  0x79   :  { %655 = vmatpush.msrb.mxu2 %v5462_v44  ;;  %678 = vmatpush.msrb.mxu3 %v5478_v45  ;;  %v5549_v29 = vld [vmem:[%s9725_s1 + $0x9e8] sm:$0xff]  ;;  %v5532_v32 = vld [vmem:[%s9725_s1 + $0x960] sm:$0xff]  ;;  %v5499_v34 = vld [vmem:[%s9725_s1 + $0x858] sm:$0xff] }
  0x7a   :  { %630 = vmatpush.msrb.mxu1 %v5448_v43  ;;  %610 = vmatpush.msrb.mxu0 %v5429_v47  ;;  %v5548_v33 = vld [vmem:[%s9725_s1 + $0x9e0] sm:$0xff]  ;;  %v5517_v35 = vld [vmem:[%s9725_s1 + $0x8e8] sm:$0xff]  ;;  %v5531_v36 = vld [vmem:[%s9725_s1 + $0x958] sm:$0xff] }
  0x7b   :  { %656 = vmatpush.msrb.mxu2 %v5461_v49  ;;  %679 = vmatpush.msrb.mxu3 %v5477_v50  ;;  %v5547_v37 = vld [vmem:[%s9725_s1 + $0x9d8] sm:$0xff]  ;;  %v5498_v38 = vld [vmem:[%s9725_s1 + $0x850] sm:$0xff]  ;;  %v5516_v39 = vld [vmem:[%s9725_s1 + $0x8e0] sm:$0xff] }
  0x7c   :  { %631 = vmatpush.msrb.mxu1 %v5447_v48  ;;  %611 = vmatpush.msrb.mxu0 %v5428_v53  ;;  %v5530_v40 = vld [vmem:[%s9725_s1 + $0x950] sm:$0xff]  ;;  %v5497_v42 = vld [vmem:[%s9725_s1 + $0x848] sm:$0xff]  ;;  %v5515_v43 = vld [vmem:[%s9725_s1 + $0x8d8] sm:$0xff] }
  0x7d   :  { %657 = vmatpush.msrb.mxu2 %v5460_v55  ;;  %680 = vmatpush.msrb.mxu3 %v5476_v56  ;;  %v5546_v41 = vld [vmem:[%s9725_s1 + $0x9d0] sm:$0xff]  ;;  %v5529_v44 = vld [vmem:[%s9725_s1 + $0x948] sm:$0xff]  ;;  %v5496_v47 = vld [vmem:[%s9725_s1 + $0x840] sm:$0xff] }
  0x7e   :  { %632 = vmatpush.msrb.mxu1 %v5446_v54  ;;  %342 = vmatmul.f32.gmra.mxu2 %v6927_v46  ;;  %v5545_v45 = vld [vmem:[%s9725_s1 + $0x9c8] sm:$0xff]  ;;  %v5514_v48 = vld [vmem:[%s9725_s1 + $0x8d0] sm:$0xff]  ;;  %v5528_v49 = vld [vmem:[%s9725_s1 + $0x940] sm:$0xff] }
  0x7f   :  { %612 = vmatpush.msrb.mxu0 %v5427_v59  ;;  %658 = vmatpush.msrb.mxu2 %v5459_v61  ;;  %v5544_v50 = vld [vmem:[%s9725_s1 + $0x9c0] sm:$0xff]  ;;  %v5495_v53 = vld [vmem:[%s9725_s1 + $0x838] sm:$0xff]  ;;  %v5513_v54 = vld [vmem:[%s9725_s1 + $0x8c8] sm:$0xff] }
  0x80   :  { %633 = vmatpush.msrb.mxu1 %v5445_v60  ;;  %681 = vmatpush.msrb.mxu3 %v5475_v62  ;;  %v5527_v55 = vld [vmem:[%s9725_s1 + $0x938] sm:$0xff]  ;;  %v5494_v59 = vld [vmem:[%s9725_s1 + $0x830] sm:$0xff]  ;;  %v5512_v60 = vld [vmem:[%s9725_s1 + $0x8c0] sm:$0xff] }
  0x81   :  { %296 = vmatmul.f32.gmra.mxu0 %v6945_v51  ;;  %365 = vmatmul.f32.gmra.mxu3 %v6950_v52  ;;  %v5543_v56 = vld [vmem:[%s9725_s1 + $0x9b8] sm:$0xff]  ;;  %v5526_v61 = vld [vmem:[%s9725_s1 + $0x930] sm:$0xff] }
  0x82   :  { %613 = vmatpush.msrb.mxu0 %v5426_v1  ;;  %634 = vmatpush.msrb.mxu1 %v5444_v2  ;;  %v5542_v62 = vld [vmem:[%s9725_s1 + $0x9b0] sm:$0xff]  ;;  %v5493_v1 = vld [vmem:[%s9725_s1 + $0x828] sm:$0xff]  ;;  %v5511_v2 = vld [vmem:[%s9725_s1 + $0x8b8] sm:$0xff] }
  0x83   :  { %659 = vmatpush.msrb.mxu2 %v5458_v3  ;;  %682 = vmatpush.msrb.mxu3 %v5474_v4  ;;  %v5525_v3 = vld [vmem:[%s9725_s1 + $0x928] sm:$0xff] }
  0x84   :  { %319 = vmatmul.f32.gmra.mxu1 %v6969_v57  ;;  %614 = vmatpush.msrb.mxu0 %v5425_v6  ;;  %v5541_v4 = vld [vmem:[%s9725_s1 + $0x9a8] sm:$0xff]  ;;  %v5492_v6 = vld [vmem:[%s9725_s1 + $0x820] sm:$0xff] }
  0x85   :  { %635 = vmatpush.msrb.mxu1 %v5443_v7  ;;  %660 = vmatpush.msrb.mxu2 %v5457_v8  ;;  %v5510_v7 = vld [vmem:[%s9725_s1 + $0x8b0] sm:$0xff]  ;;  %v5524_v8 = vld [vmem:[%s9725_s1 + $0x920] sm:$0xff] }
  0x86   :  { %683 = vmatpush.msrb.mxu3 %v5473_v9  ;;  %615 = vmatpush.msrb.mxu0 %v5424_v10  ;;  %v5540_v9 = vld [vmem:[%s9725_s1 + $0x9a0] sm:$0xff]  ;;  %v5491_v10 = vld [vmem:[%s9725_s1 + $0x818] sm:$0xff] }
  0x87   :  { %636 = vmatpush.msrb.mxu1 %v5442_v11  ;;  %661 = vmatpush.msrb.mxu2 %v5456_v12  ;;  %v5509_v11 = vld [vmem:[%s9725_s1 + $0x8a8] sm:$0xff]  ;;  %v5523_v12 = vld [vmem:[%s9725_s1 + $0x918] sm:$0xff] }
  0x88   :  { %684 = vmatpush.msrb.mxu3 %v5472_v13  ;;  %501 = vmatmul.f32.vlgmr.msra.gmra.mxu2 %v6759_v58  ;;  %v5539_v13 = vld [vmem:[%s9725_s1 + $0x998] sm:$0xff] }
  0x89   :  { %616 = vmatpush.msrb.mxu0 %v5423_v14  ;;  %637 = vmatpush.msrb.mxu1 %v5441_v15  ;;  %v5490_v14 = vld [vmem:[%s9725_s1 + $0x810] sm:$0xff]  ;;  %v5508_v15 = vld [vmem:[%s9725_s1 + $0x8a0] sm:$0xff] }
  0x8a   :  { %662 = vmatpush.msrb.mxu2 %v5455_v16  ;;  %685 = vmatpush.msrb.mxu3 %v5471_v17  ;;  %v5522_v16 = vld [vmem:[%s9725_s1 + $0x910] sm:$0xff] }
  0x8b   :  { %455 = vmatmul.f32.vlgmr.msra.gmra.mxu0 %v6776_v63  ;;  %524 = vmatmul.f32.vlgmr.msra.gmra.mxu3 %v6781_v0  ;;  %v5538_v17 = vld [vmem:[%s9725_s1 + $0x990] sm:$0xff] }
  0x8c   :  { %763 = vmatpush.msra.mxu0 %v5503_v18  ;;  %809 = vmatpush.msra.mxu2 %v5535_v19  ;;  %v5489_v18 = vld [vmem:[%s9725_s1 + $0x808] sm:$0xff]  ;;  %v5507_v19 = vld [vmem:[%s9725_s1 + $0x898] sm:$0xff] }
  0x8d   :  { %832 = vmatpush.msra.mxu3 %v5551_v20  ;;  %638 = vmatpush.msrb.mxu1 %v5440_v21  ;;  %v5521_v20 = vld [vmem:[%s9725_s1 + $0x908] sm:$0xff] }
  0x8e   :  { %478 = vmatmul.f32.vlgmr.msra.gmra.mxu1 %v6799_v5  ;;  %764 = vmatpush.msra.mxu0 %v5502_v22  ;;  %v5537_v21 = vld [vmem:[%s9725_s1 + $0x988] sm:$0xff]  ;;  %v5488_v22 = vld [vmem:[%s9725_s1 + $0x800] sm:$0xff] }
  0x8f   :  { %810 = vmatpush.msra.mxu2 %v5534_v23  ;;  %833 = vmatpush.msra.mxu3 %v5550_v24  ;;  %v5506_v23 = vld [vmem:[%s9725_s1 + $0x890] sm:$0xff]  ;;  %v5520_v24 = vld [vmem:[%s9725_s1 + $0x900] sm:$0xff] }
  0x90   :  { %639 = vmatpush.msrb.mxu1 %v5439_v25  ;;  %765 = vmatpush.msra.mxu0 %v5501_v26  ;;  %v5568_v25 = vld [vmem:[%s9725_s1 + $0xa78] sm:$0xff] }
  0x91   :  { %811 = vmatpush.msra.mxu2 %v5533_v28  ;;  %834 = vmatpush.msra.mxu3 %v5549_v29  ;;  %v5600_v26 = vld [vmem:[%s9725_s1 + $0xb78] sm:$0xff]  ;;  %v5599_v28 = vld [vmem:[%s9725_s1 + $0xb70] sm:$0xff] }
  0x92   :  { %786 = vmatpush.msra.mxu1 %v5519_v27  ;;  %766 = vmatpush.msra.mxu0 %v5500_v30  ;;  %v5616_v27 = vld [vmem:[%s9725_s1 + $0xbf8] sm:$0xff]  ;;  %v5615_v29 = vld [vmem:[%s9725_s1 + $0xbf0] sm:$0xff]  ;;  %v5504_v30 = vld [vmem:[%s9725_s1 + $0x880] sm:$0xff] }
  0x93   :  { %812 = vmatpush.msra.mxu2 %v5532_v32  ;;  %835 = vmatpush.msra.mxu3 %v5548_v33  ;;  %v5584_v32 = vld [vmem:[%s9725_s1 + $0xaf8] sm:$0xff]  ;;  %v5598_v33 = vld [vmem:[%s9725_s1 + $0xb68] sm:$0xff] }
  0x94   :  { %787 = vmatpush.msra.mxu1 %v5518_v31  ;;  %767 = vmatpush.msra.mxu0 %v5499_v34  ;;  %v5566_v31 = vld [vmem:[%s9725_s1 + $0xa68] sm:$0xff]  ;;  %v5565_v34 = vld [vmem:[%s9725_s1 + $0xa60] sm:$0xff] }
  0x95   :  { %813 = vmatpush.msra.mxu2 %v5531_v36  ;;  %836 = vmatpush.msra.mxu3 %v5547_v37  ;;  %v5597_v36 = vld [vmem:[%s9725_s1 + $0xb60] sm:$0xff] }
  0x96   :  { %788 = vmatpush.msra.mxu1 %v5517_v35  ;;  %768 = vmatpush.msra.mxu0 %v5498_v38  ;;  %v5583_v35 = vld [vmem:[%s9725_s1 + $0xaf0] sm:$0xff]  ;;  %v5613_v37 = vld [vmem:[%s9725_s1 + $0xbe0] sm:$0xff]  ;;  %v5564_v38 = vld [vmem:[%s9725_s1 + $0xa58] sm:$0xff] }
  0x97   :  { %814 = vmatpush.msra.mxu2 %v5530_v40  ;;  %837 = vmatpush.msra.mxu3 %v5546_v41  ;;  %v5596_v40 = vld [vmem:[%s9725_s1 + $0xb58] sm:$0xff] }
  0x98   :  { %789 = vmatpush.msra.mxu1 %v5516_v39  ;;  %769 = vmatpush.msra.mxu0 %v5497_v42  ;;  %v5582_v39 = vld [vmem:[%s9725_s1 + $0xae8] sm:$0xff]  ;;  %v5612_v41 = vld [vmem:[%s9725_s1 + $0xbd8] sm:$0xff]  ;;  %v5563_v42 = vld [vmem:[%s9725_s1 + $0xa50] sm:$0xff] }
  0x99   :  { %815 = vmatpush.msra.mxu2 %v5529_v44  ;;  %838 = vmatpush.msra.mxu3 %v5545_v45  ;;  %v5595_v44 = vld [vmem:[%s9725_s1 + $0xb50] sm:$0xff] }
  0x9a   :  { %790 = vmatpush.msra.mxu1 %v5515_v43  ;;  %770 = vmatpush.msra.mxu0 %v5496_v47  ;;  %v5581_v43 = vld [vmem:[%s9725_s1 + $0xae0] sm:$0xff]  ;;  %v5611_v45 = vld [vmem:[%s9725_s1 + $0xbd0] sm:$0xff]  ;;  %v5562_v47 = vld [vmem:[%s9725_s1 + $0xa48] sm:$0xff] }
  0x9b   :  { %816 = vmatpush.msra.mxu2 %v5528_v49  ;;  %839 = vmatpush.msra.mxu3 %v5544_v50  ;;  %v5594_v49 = vld [vmem:[%s9725_s1 + $0xb48] sm:$0xff] }
  0x9c   :  { %791 = vmatpush.msra.mxu1 %v5514_v48  ;;  %771 = vmatpush.msra.mxu0 %v5495_v53  ;;  %v5580_v48 = vld [vmem:[%s9725_s1 + $0xad8] sm:$0xff]  ;;  %v5610_v50 = vld [vmem:[%s9725_s1 + $0xbc8] sm:$0xff]  ;;  %v5561_v53 = vld [vmem:[%s9725_s1 + $0xa40] sm:$0xff] }
  0x9d   :  { %817 = vmatpush.msra.mxu2 %v5527_v55  ;;  %840 = vmatpush.msra.mxu3 %v5543_v56  ;;  %v5593_v55 = vld [vmem:[%s9725_s1 + $0xb40] sm:$0xff] }
  0x9e   :  { %792 = vmatpush.msra.mxu1 %v5513_v54  ;;  %772 = vmatpush.msra.mxu0 %v5494_v59  ;;  %v5579_v54 = vld [vmem:[%s9725_s1 + $0xad0] sm:$0xff]  ;;  %v5609_v56 = vld [vmem:[%s9725_s1 + $0xbc0] sm:$0xff] }
  0x9f   :  { %818 = vmatpush.msra.mxu2 %v5526_v61  ;;  %841 = vmatpush.msra.mxu3 %v5542_v62  ;;  %v7515_v59 = vld [vmem:[%s9724_s0 + $0x10] sm:$0xff]  ;;  %v5578_v61 = vld [vmem:[%s9725_s1 + $0xac8] sm:$0xff]  ;;  %v5592_v62 = vld [vmem:[%s9725_s1 + $0xb38] sm:$0xff] }
  0xa0   :  { %793 = vmatpush.msra.mxu1 %v5512_v60  ;;  %504 = vmatmul.f32.gmra.mxu2 %v6927_v46  ;;  %v5560_v60 = vld [vmem:[%s9725_s1 + $0xa38] sm:$0xff] }
  0xa1   :  { %773 = vmatpush.msra.mxu0 %v5493_v1  ;;  %819 = vmatpush.msra.mxu2 %v5525_v3  ;;  %v5608_v1 = vld [vmem:[%s9725_s1 + $0xbb8] sm:$0xff] }
  0xa2   :  { %794 = vmatpush.msra.mxu1 %v5511_v2  ;;  %842 = vmatpush.msra.mxu3 %v5541_v4  ;;  %v7533_v2 = vld [vmem:[%s9724_s0] sm:$0xff]  ;;  %v7539_v3 = vld [vmem:[%s9724_s0 + $0x18] sm:$0xff]  ;;  %v5559_v4 = vld [vmem:[%s9725_s1 + $0xa30] sm:$0xff] }
  0xa3   :  { %458 = vmatmul.f32.gmra.mxu0 %v6945_v51  ;;  %527 = vmatmul.f32.gmra.mxu3 %v6950_v52 }
  0xa4   :  { %774 = vmatpush.msra.mxu0 %v5492_v6  ;;  %795 = vmatpush.msra.mxu1 %v5510_v7  ;;  %v5577_v6 = vld [vmem:[%s9725_s1 + $0xac0] sm:$0xff]  ;;  %v5591_v7 = vld [vmem:[%s9725_s1 + $0xb30] sm:$0xff] }
  0xa5   :  { %820 = vmatpush.msra.mxu2 %v5524_v8  ;;  %843 = vmatpush.msra.mxu3 %v5540_v9  ;;  %v5607_v8 = vld [vmem:[%s9725_s1 + $0xbb0] sm:$0xff]  ;;  %v5558_v9 = vld [vmem:[%s9725_s1 + $0xa28] sm:$0xff] }
  0xa6   :  { %481 = vmatmul.f32.gmra.mxu1 %v6969_v57  ;;  %775 = vmatpush.msra.mxu0 %v5491_v10  ;;  %v7560_v10 = vld [vmem:[%s9724_s0 + $0x8] sm:$0xff] }
  0xa7   :  { %796 = vmatpush.msra.mxu1 %v5509_v11  ;;  %821 = vmatpush.msra.mxu2 %v5523_v12  ;;  %v5576_v11 = vld [vmem:[%s9725_s1 + $0xab8] sm:$0xff]  ;;  %v5590_v12 = vld [vmem:[%s9725_s1 + $0xb28] sm:$0xff] }
  0xa8   :  { %844 = vmatpush.msra.mxu3 %v5539_v13  ;;  %776 = vmatpush.msra.mxu0 %v5490_v14  ;;  %v5606_v13 = vld [vmem:[%s9725_s1 + $0xba8] sm:$0xff]  ;;  %v5557_v14 = vld [vmem:[%s9725_s1 + $0xa20] sm:$0xff] }
  0xa9   :  { %797 = vmatpush.msra.mxu1 %v5508_v15  ;;  %822 = vmatpush.msra.mxu2 %v5522_v16  ;;  %v5575_v15 = vld [vmem:[%s9725_s1 + $0xab0] sm:$0xff]  ;;  %v5589_v16 = vld [vmem:[%s9725_s1 + $0xb20] sm:$0xff] }
  0xaa   :  { %845 = vmatpush.msra.mxu3 %v5538_v17  ;;  %663 = vmatmul.f32.vlgmr.msrb.gmra.mxu2 %v6759_v58  ;;  %v5536_v58 = vld [vmem:[%s9725_s1 + $0x980] sm:$0xff] }
  0xab   :  { %777 = vmatpush.msra.mxu0 %v5489_v18  ;;  %798 = vmatpush.msra.mxu1 %v5507_v19  ;;  %v5605_v17 = vld [vmem:[%s9725_s1 + $0xba0] sm:$0xff]  ;;  %v5556_v18 = vld [vmem:[%s9725_s1 + $0xa18] sm:$0xff]  ;;  %v5574_v19 = vld [vmem:[%s9725_s1 + $0xaa8] sm:$0xff] }
  0xac   :  { %823 = vmatpush.msra.mxu2 %v5521_v20  ;;  %846 = vmatpush.msra.mxu3 %v5537_v21  ;;  %v5588_v20 = vld [vmem:[%s9725_s1 + $0xb18] sm:$0xff] }
  0xad   :  { %617 = vmatmul.f32.vlgmr.msrb.gmra.mxu0 %v6776_v63  ;;  %686 = vmatmul.f32.vlgmr.msrb.gmra.mxu3 %v6781_v0  ;;  %v5505_v63 = vld [vmem:[%s9725_s1 + $0x888] sm:$0xff]  ;;  %v5567_v0 = vld [vmem:[%s9725_s1 + $0xa70] sm:$0xff]  ;;  %v5604_v21 = vld [vmem:[%s9725_s1 + $0xb98] sm:$0xff] }
  0xae   :  { %778 = vmatpush.msra.mxu0 %v5488_v22  ;;  %799 = vmatpush.msra.mxu1 %v5506_v23  ;;  %v5555_v22 = vld [vmem:[%s9725_s1 + $0xa10] sm:$0xff]  ;;  %v5573_v23 = vld [vmem:[%s9725_s1 + $0xaa0] sm:$0xff] }
  0xaf   :  { %824 = vmatpush.msra.mxu2 %v5520_v24  ;;  %847 = vmatpush.msra.mxu3 %v5536_v58  ;;  %v5587_v24 = vld [vmem:[%s9725_s1 + $0xb10] sm:$0xff] }
  0xb0   :  { %925 = vmatpush.msrb.mxu0 %v5568_v25  ;;  %640 = vmatmul.f32.vlgmr.msrb.gmra.mxu1 %v6799_v5  ;;  %v5614_v5 = vld [vmem:[%s9725_s1 + $0xbe8] sm:$0xff]  ;;  %v5603_v58 = vld [vmem:[%s9725_s1 + $0xb90] sm:$0xff] }
  0xb1   :  { %971 = vmatpush.msrb.mxu2 %v5600_v26  ;;  %994 = vmatpush.msrb.mxu3 %v5616_v27  ;;  %v5554_v25 = vld [vmem:[%s9725_s1 + $0xa08] sm:$0xff]  ;;  %v5572_v26 = vld [vmem:[%s9725_s1 + $0xa98] sm:$0xff] }
  0xb2   :  { %800 = vmatpush.msra.mxu1 %v5505_v63  ;;  %926 = vmatpush.msrb.mxu0 %v5567_v0  ;;  %v5586_v27 = vld [vmem:[%s9725_s1 + $0xb08] sm:$0xff]  ;;  %v5553_v0 = vld [vmem:[%s9725_s1 + $0xa00] sm:$0xff] }
  0xb3   :  { %972 = vmatpush.msrb.mxu2 %v5599_v28  ;;  %995 = vmatpush.msrb.mxu3 %v5615_v29  ;;  %v5602_v63 = vld [vmem:[%s9725_s1 + $0xb88] sm:$0xff]  ;;  %v5571_v28 = vld [vmem:[%s9725_s1 + $0xa90] sm:$0xff]  ;;  %v5585_v29 = vld [vmem:[%s9725_s1 + $0xb00] sm:$0xff] }
  0xb4   :  { %801 = vmatpush.msra.mxu1 %v5504_v30  ;;  %927 = vmatpush.msrb.mxu0 %v5566_v31  ;;  %v5601_v30 = vld [vmem:[%s9725_s1 + $0xb80] sm:$0xff]  ;;  %v7639_v31 = vld [vmem:[%s9727_s3 + $0x38] sm:$0xff] }
  0xb5   :  { %973 = vmatpush.msrb.mxu2 %v5598_v33  ;;  %996 = vmatpush.msrb.mxu3 %v5614_v5  ;;  %v7648_v33 = vld [vmem:[%s9727_s3 + $0x18] sm:$0xff] }
  0xb6   :  { %948 = vmatpush.msrb.mxu1 %v5584_v32  ;;  %666 = vmatmul.f32.gmra.mxu2 %v6927_v46  ;;  %v5570_v32 = vld [vmem:[%s9725_s1 + $0xa88] sm:$0xff]  ;;  %v7653_v5 = vld [vmem:[%s9727_s3 + $0x98] sm:$0xff] }
  0xb7   :  { %928 = vmatpush.msrb.mxu0 %v5565_v34  ;;  %974 = vmatpush.msrb.mxu2 %v5597_v36  ;;  %v5569_v34 = vld [vmem:[%s9725_s1 + $0xa80] sm:$0xff]  ;;  %v7669_v36 = vld [vmem:[%s9727_s3 + $0x10] sm:$0xff] }
  0xb8   :  { %949 = vmatpush.msrb.mxu1 %v5583_v35  ;;  %997 = vmatpush.msrb.mxu3 %v5613_v37  ;;  %v7663_v35 = vld [vmem:[%s9727_s3 + $0x30] sm:$0xff]  ;;  %v7675_v37 = vld [vmem:[%s9727_s3 + $0x28] sm:$0xff] }
  0xb9   :  { %620 = vmatmul.f32.gmra.mxu0 %v6945_v51  ;;  %689 = vmatmul.f32.gmra.mxu3 %v6950_v52 }
  0xba   :  { %929 = vmatpush.msrb.mxu0 %v5564_v38  ;;  %950 = vmatpush.msrb.mxu1 %v5582_v39  ;;  %v7681_v38 = vld [vmem:[%s9727_s3 + $0x90] sm:$0xff]  ;;  %v7687_v39 = vld [vmem:[%s9727_s3 + $0x8] sm:$0xff] }
  0xbb   :  { %975 = vmatpush.msrb.mxu2 %v5596_v40  ;;  %998 = vmatpush.msrb.mxu3 %v5612_v41  ;;  %v7692_v40 = vld [vmem:[%s9727_s3 + $0xb8] sm:$0xff]  ;;  %v7699_v41 = vld [vmem:[%s9727_s3 + $0x20] sm:$0xff] }
  0xbc   :  { %643 = vmatmul.f32.gmra.mxu1 %v6969_v57  ;;  %930 = vmatpush.msrb.mxu0 %v5563_v42  ;;  %v7707_v42 = vld [vmem:[%s9727_s3 + $0x88] sm:$0xff] }
  0xbd   :  { %951 = vmatpush.msrb.mxu1 %v5581_v43  ;;  %976 = vmatpush.msrb.mxu2 %v5595_v44  ;;  %v7712_v43 = vld [vmem:[%s9727_s3] sm:$0xff]  ;;  %v7720_v44 = vld [vmem:[%s9727_s3 + $0x78] sm:$0xff] }
  0xbe   :  { %999 = vmatpush.msrb.mxu3 %v5611_v45  ;;  %931 = vmatpush.msrb.mxu0 %v5562_v47  ;;  %v7725_v45 = vld [vmem:[%s9727_s3 + $0x58] sm:$0xff]  ;;  %v7737_v47 = vld [vmem:[%s9727_s3 + $0xb0] sm:$0xff] }
  0xbf   :  { %952 = vmatpush.msrb.mxu1 %v5580_v48  ;;  %977 = vmatpush.msrb.mxu2 %v5594_v49  ;;  %v7756_v48 = vld [vmem:[%s9727_s3 + $0xa8] sm:$0xff] }
  0xc0   :  { %1000 = vmatpush.msrb.mxu3 %v5610_v50  ;;  %825 = vmatmul.f32.vlgmr.msra.gmra.mxu2 %v7515_v59  ;;  %v7762_v49 = vld [vmem:[%s9727_s3 + $0x68] sm:$0xff] }
  0xc1   :  { %932 = vmatpush.msrb.mxu0 %v5561_v53  ;;  %953 = vmatpush.msrb.mxu1 %v5579_v54  ;;  %v7770_v50 = vld [vmem:[%s9727_s3 + $0x48] sm:$0xff]  ;;  %v7778_v53 = vld [vmem:[%s9727_s3 + $0x60] sm:$0xff]  ;;  %v9736_v54 = vmov 0.0  }
  0xc2   :  { %978 = vmatpush.msrb.mxu2 %v5593_v55  ;;  %1001 = vmatpush.msrb.mxu3 %v5609_v56  ;;  %v7791_v55 = vld [vmem:[%s9727_s3 + $0xa0] sm:$0xff]  ;;  %v132_v56 = vpop.f32.mrf.mxu0 }
  0xc3   :  { %779 = vmatmul.f32.vlgmr.msra.gmra.mxu0 %v7533_v2  ;;  %848 = vmatmul.f32.vlgmr.msra.gmra.mxu3 %v7539_v3 }
  0xc4   :  { %933 = vmatpush.msrb.mxu0 %v5560_v60  ;;  %954 = vmatpush.msrb.mxu1 %v5578_v61  ;;  %v178_v60 = vpop.f32.mrf.mxu2 }
  0xc5   :  { %979 = vmatpush.msrb.mxu2 %v5592_v62  ;;  %1002 = vmatpush.msrb.mxu3 %v5608_v1 }
  0xc6   :  { %802 = vmatmul.f32.vlgmr.msra.gmra.mxu1 %v7560_v10  ;;  %934 = vmatpush.msrb.mxu0 %v5559_v4 }
  0xc7   :  { %955 = vmatpush.msrb.mxu1 %v5577_v6  ;;  %980 = vmatpush.msrb.mxu2 %v5591_v7 }
  0xc8   :  { %1003 = vmatpush.msrb.mxu3 %v5607_v8  ;;  %935 = vmatpush.msrb.mxu0 %v5558_v9 }
  0xc9   :  { %956 = vmatpush.msrb.mxu1 %v5576_v11  ;;  %981 = vmatpush.msrb.mxu2 %v5590_v12 }
  0xca   :  { %1004 = vmatpush.msrb.mxu3 %v5606_v13  ;;  %828 = vmatmul.f32.gmra.mxu2 %v6927_v46 }
  0xcb   :  { %936 = vmatpush.msrb.mxu0 %v5557_v14  ;;  %957 = vmatpush.msrb.mxu1 %v5575_v15 }
  0xcc   :  { %982 = vmatpush.msrb.mxu2 %v5589_v16  ;;  %1005 = vmatpush.msrb.mxu3 %v5605_v17 }
  0xcd   :  { %782 = vmatmul.f32.gmra.mxu0 %v6945_v51  ;;  %851 = vmatmul.f32.gmra.mxu3 %v6950_v52 }
  0xce   :  { %937 = vmatpush.msrb.mxu0 %v5556_v18  ;;  %958 = vmatpush.msrb.mxu1 %v5574_v19 }
  0xcf   :  { %983 = vmatpush.msrb.mxu2 %v5588_v20  ;;  %1006 = vmatpush.msrb.mxu3 %v5604_v21 }
  0xd0   :  { %805 = vmatmul.f32.gmra.mxu1 %v6969_v57  ;;  %938 = vmatpush.msrb.mxu0 %v5555_v22 }
  0xd1   :  { %959 = vmatpush.msrb.mxu1 %v5573_v23  ;;  %984 = vmatpush.msrb.mxu2 %v5587_v24 }
  0xd2   :  { %1007 = vmatpush.msrb.mxu3 %v5603_v58  ;;  %939 = vmatpush.msrb.mxu0 %v5554_v25 }
  0xd3   :  { %960 = vmatpush.msrb.mxu1 %v5572_v26  ;;  %985 = vmatpush.msrb.mxu2 %v5586_v27 }
  0xd4   :  { %1008 = vmatpush.msrb.mxu3 %v5602_v63  ;;  %940 = vmatpush.msrb.mxu0 %v5553_v0 }
  0xd5   :  { %961 = vmatpush.msrb.mxu1 %v5571_v28  ;;  %986 = vmatpush.msrb.mxu2 %v5585_v29 }
  0xd6   :  { %1009 = vmatpush.msrb.mxu3 %v5601_v30  ;;  %941 = vmatmul.f32.vlgmr.msrb.gmra.mxu0 %v7533_v2 }
  0xd7   :  { %987 = vmatmul.f32.vlgmr.msrb.gmra.mxu2 %v7515_v59  ;;  %1010 = vmatmul.f32.vlgmr.msrb.gmra.mxu3 %v7539_v3  ;;  %v7830_v59 = vpop.f32.mrf.mxu3  ;;  %v155_v3 = vpop.f32.mrf.mxu1 }
  0xd8   :  { %1099 = vmatpush.msra.mxu3 %v7639_v31  ;;  %962 = vmatpush.msrb.mxu1 %v5570_v32 }
  0xd9   :  { %1076 = vmatpush.msra.mxu2 %v7648_v33  ;;  %1215 = vmatpush.msra.mxu0 %v7653_v5 }
  0xda   :  { %963 = vmatpush.msrb.mxu1 %v5569_v34  ;;  %1100 = vmatpush.msra.mxu3 %v7663_v35  ;;  %v7833_v61 = vpop.f32.mrf.mxu0 }
  0xdb   :  { %964 = vmatmul.f32.vlgmr.msrb.gmra.mxu1 %v7560_v10  ;;  %1077 = vmatpush.msra.mxu2 %v7669_v36  ;;  %9746 = vst [vmem:[#allocation5_spill] sm:$0xff] %v7833_v61 }
  0xdc   :  { %1101 = vmatpush.msra.mxu3 %v7675_v37  ;;  %1216 = vmatpush.msra.mxu0 %v7681_v38 }
  0xdd   :  { %1078 = vmatpush.msra.mxu2 %v7687_v39  ;;  %1238 = vmatpush.msra.mxu1 %v7692_v40  ;;  %v7838_v1 = vpop.f32.mrf.mxu2 }
  0xde   :  { %944 = vmatmul.f32.gmra.mxu0 %v6945_v51  ;;  %1102 = vmatpush.msra.mxu3 %v7699_v41  ;;  %v7732_v51 = vld [vmem:[%s9727_s3 + $0x80] sm:$0xff]  ;;  %9748 = vst [vmem:[#allocation7_spill] sm:$0xff] %v7838_v1 }
  0xdf   :  { %990 = vmatmul.f32.gmra.mxu2 %v6927_v46  ;;  %1013 = vmatmul.f32.gmra.mxu3 %v6950_v52  ;;  %v7744_v46 = vld [vmem:[%s9727_s3 + $0x70] sm:$0xff]  ;;  %v7842_v8 = vpop.f32.mrf.mxu1 }
  0xe0   :  { %1217 = vmatpush.msra.mxu0 %v7707_v42  ;;  %1079 = vmatpush.msra.mxu2 %v7712_v43  ;;  %v7751_v52 = vld [vmem:[%s9727_s3 + $0x50] sm:$0xff]  ;;  %v7836_v62 = vpop.f32.mrf.mxu3  ;;  %9750 = vst [vmem:[#allocation9_spill] sm:$0xff] %v7842_v8 }
  0xe1   :  { %1192 = vmatpush.msrb.mxu3 %v7720_v44  ;;  %1239 = vmatpush.msra.mxu1 %v7737_v47  ;;  %9747 = vst [vmem:[#allocation6_spill] sm:$0xff] %v7836_v62 }
  0xe2   :  { %1122 = vmatpush.msrb.mxu2 %v7725_v45  ;;  %1218 = vmatpush.msra.mxu0 %v7732_v51 }
  0xe3   :  { %967 = vmatmul.f32.gmra.mxu1 %v6969_v57  ;;  %1193 = vmatpush.msrb.mxu3 %v7744_v46  ;;  %v7783_v57 = vld [vmem:[%s9727_s3 + $0x40] sm:$0xff] }
  0xe4   :  { %1123 = vmatpush.msrb.mxu2 %v7751_v52  ;;  %1240 = vmatpush.msra.mxu1 %v7756_v48  ;;  %v294_v2 = vpop.f32.mrf.mxu0 }
  0xe5   :  { %1194 = vmatpush.msrb.mxu3 %v7762_v49  ;;  %1357 = vmatpush.msrb.mxu0 %v7725_v45 }
  0xe6   :  { %1219 = vmatmul.f32.vlgmr.msra.gmra.mxu0 %v9736_v54  ;;  %1124 = vmatpush.msrb.mxu2 %v7770_v50 }
  0xe7   :  { %1080 = vmatmul.f32.vlgmr.msra.gmra.mxu2 %v9736_v54  ;;  %1103 = vmatmul.f32.vlgmr.msra.gmra.mxu3 %v9736_v54  ;;  %v340_v6 = vpop.f32.mrf.mxu2  ;;  %v317_v12 = vpop.f32.mrf.mxu1 }
  0xe8   :  { %1195 = vmatpush.msrb.mxu3 %v7778_v53  ;;  %1125 = vmatpush.msrb.mxu2 %v7783_v57 }
  0xe9   :  { %1241 = vmatpush.msra.mxu1 %v7791_v55  ;;  %1358 = vmatpush.msrb.mxu0 %v7751_v52 }
  0xea   :  { %1317 = vmatpush.msra.mxu2 %v7648_v33  ;;  %1337 = vmatpush.msra.mxu3 %v7639_v31  ;;  %v363_v4 = vpop.f32.mrf.mxu3 }
  0xeb   :  { %1242 = vmatmul.f32.vlgmr.msra.gmra.mxu1 %v9736_v54  ;;  %1359 = vmatpush.msrb.mxu0 %v7770_v50 }
  0xec   :  { %1318 = vmatpush.msra.mxu2 %v7669_v36  ;;  %1338 = vmatpush.msra.mxu3 %v7663_v35 }
  0xed   :  { %1439 = vmatpush.msrb.mxu1 %v7720_v44  ;;  %1360 = vmatpush.msrb.mxu0 %v7783_v57 }
  0xee   :  { %1319 = vmatpush.msra.mxu2 %v7687_v39  ;;  %1339 = vmatpush.msra.mxu3 %v7675_v37 }
  0xef   :  { %1196 = vmatmul.f32.vlgmr.msrb.gmra.mxu3 %v9736_v54  ;;  %1126 = vmatmul.f32.vlgmr.msrb.gmra.mxu2 %v9736_v54 }
  0xf0   :  { %1320 = vmatpush.msra.mxu2 %v7712_v43  ;;  %1340 = vmatpush.msra.mxu3 %v7699_v41 }
  0xf1   :  { %1440 = vmatpush.msrb.mxu1 %v7744_v46  ;;  %1561 = vmatpush.msra.mxu0 %v7648_v33 }
  0xf2   :  { %1459 = vmatpush.msrb.mxu2 %v7653_v5  ;;  %1479 = vmatpush.msrb.mxu3 %v7692_v40 }
  0xf3   :  { %1441 = vmatpush.msrb.mxu1 %v7762_v49  ;;  %1562 = vmatpush.msra.mxu0 %v7669_v36 }
  0xf4   :  { %1460 = vmatpush.msrb.mxu2 %v7681_v38  ;;  %1480 = vmatpush.msrb.mxu3 %v7737_v47 }
  0xf5   :  { %1442 = vmatpush.msrb.mxu1 %v7778_v53  ;;  %1563 = vmatpush.msra.mxu0 %v7687_v39 }
  0xf6   :  { %1461 = vmatpush.msrb.mxu2 %v7707_v42  ;;  %1481 = vmatpush.msrb.mxu3 %v7756_v48 }
  0xf7   :  { %1581 = vmatpush.msra.mxu1 %v7639_v31  ;;  %1564 = vmatpush.msra.mxu0 %v7712_v43 }
  0xf8   :  { %1462 = vmatpush.msrb.mxu2 %v7732_v51  ;;  %1482 = vmatpush.msrb.mxu3 %v7791_v55 }
  0xf9   :  { %1582 = vmatpush.msra.mxu1 %v7663_v35 }
  0xfb   :  { %1583 = vmatpush.msra.mxu1 %v7675_v37 }
  0xfd   :  { %1584 = vmatpush.msra.mxu1 %v7699_v41 }
  0xfe   :  { %v7840_v7 = vpop.f32.mrf.mxu0 }
  0xff   :  { %9749 = vst [vmem:[#allocation8_spill] sm:$0xff] %v7840_v7 }
 0x101   :  { %v7846_v10 = vpop.f32.mrf.mxu2  ;;  %v7856_v16 = vpop.f32.mrf.mxu1 }
 0x102   :  { %9752 = vst [vmem:[#allocation11_spill] sm:$0xff] %v7846_v10 }
 0x103   :  { %9754 = vst [vmem:[#allocation13_spill] sm:$0xff] %v7856_v16 }
 0x104   :  { %v7844_v9 = vpop.f32.mrf.mxu3 }
 0x105   :  { %9751 = vst [vmem:[#allocation10_spill] sm:$0xff] %v7844_v9 }
 0x108   :  { %v7848_v11 = vpop.f32.mrf.mxu0 }
 0x10b   :  { %v7852_v14 = vpop.f32.mrf.mxu2  ;;  %v7864_v20 = vpop.f32.mrf.mxu1 }
 0x10e   :  { %v7850_v13 = vpop.f32.mrf.mxu3 }
 0x120   :  { %v7854_v15 = vpop.f32.mrf.mxu0 }
 0x121   :  { %9753 = vst [vmem:[#allocation12_spill] sm:$0xff] %v7854_v15  ;;  %v5880_v15 = vld [vmem:[%s9726_s2 + $0x1] ss:$0 sm:$0xff] }
 0x123   :  { %v7860_v18 = vpop.f32.mrf.mxu2  ;;  %v7870_v23 = vpop.f32.mrf.mxu1 }
 0x124   :  { %9756 = vst [vmem:[#allocation15_spill] sm:$0xff] %v7860_v18 }
 0x125   :  { %9760 = vst [vmem:[#allocation19_spill] sm:$0xff] %v7870_v23 }
 0x126   :  { %v7858_v17 = vpop.f32.mrf.mxu3 }
 0x127   :  { %9755 = vst [vmem:[#allocation14_spill] sm:$0xff] %v7858_v17  ;;  %v5879_v17 = vld [vmem:[%s9726_s2] ss:$0 sm:$0xff] }
 0x12a   :  { %v7862_v19 = vpop.f32.mrf.mxu0 }
 0x12b   :  { %9757 = vst [vmem:[#allocation16_spill] sm:$0xff] %v7862_v19 }
 0x12d   :  { %v7868_v22 = vpop.f32.mrf.mxu2  ;;  %v7872_v26 = vpop.f32.mrf.mxu1 }
 0x12e   :  { %9759 = vst [vmem:[#allocation18_spill] sm:$0xff] %v7868_v22 }
 0x12f   :  { %9761 = vst [vmem:[#allocation20_spill] sm:$0xff] %v7872_v26 }
 0x130   :  { %v7866_v21 = vpop.f32.mrf.mxu3 }
 0x131   :  { %9758 = vst [vmem:[#allocation17_spill] sm:$0xff] %v7866_v21  ;;  %v5883_v21 = vld [vmem:[%s9726_s2 + $0x4] ss:$0 sm:$0xff] }
 0x136   :  { %v621_v24 = vpop.f32.mrf.mxu0 }
 0x139   :  { %v667_v25 = vpop.f32.mrf.mxu2  ;;  %v644_v28 = vpop.f32.mrf.mxu1 }
 0x13c   :  { %v690_v58 = vpop.f32.mrf.mxu3 }
 0x140   :  { %v7874_v27 = vpop.f32.mrf.mxu0 }
 0x141   :  { %9762 = vst [vmem:[#allocation21_spill] sm:$0xff] %v7874_v27 }
 0x143   :  { %v7878_v0 = vpop.f32.mrf.mxu2  ;;  %v7882_v54 = vpop.f32.mrf.mxu1 }
 0x144   :  { %9764 = vst [vmem:[#allocation23_spill] sm:$0xff] %v7878_v0  ;;  %v295_v0 = vadd.f32 %v5880_v15, %v294_v2 }
 0x145   :  { %9766 = vst [vmem:[#allocation25_spill] sm:$0xff] %v7882_v54 }
 0x146   :  { %v7876_v63 = vpop.f32.mrf.mxu3  ;;  %v318_v62 = vadd.f32 %v317_v12, %v295_v0  ;;  %v7920_v12 = vld [vmem:[%s9728_s4 + $0x1] ss:$0 sm:$0xff] }
 0x147   :  { %9763 = vst [vmem:[#allocation22_spill] sm:$0xff] %v7876_v63  ;;  %v133_v63 = vadd.f32 %v5879_v17, %v132_v56  ;;  %v5882_v56 = vld [vmem:[%s9726_s2 + $0x3] ss:$0 sm:$0xff] }
 0x148   :  { %v341_v2 = vadd.f32 %v340_v6, %v318_v62  ;;  %v622_v17 = vadd.f32 %v5882_v56, %v621_v24 }
 0x149   :  { %v156_v19 = vadd.f32 %v155_v3, %v133_v63  ;;  %v7915_v3 = vld [vmem:[%s9728_s4] ss:$0 sm:$0xff] }
 0x14a   :  { %v783_v29 = vpop.f32.mrf.mxu0  ;;  %v7927_v62 = vadd.f32 %v363_v4, %v341_v2  ;;  %v645_v63 = vadd.f32 %v644_v28, %v622_v17 }
 0x14d   :  { %v829_v32 = vpop.f32.mrf.mxu2  ;;  %v806_v26 = vpop.f32.mrf.mxu1 }
 0x150   :  { %v852_v30 = vpop.f32.mrf.mxu3 }
 0x153   :  { %v7880_v34 = vpop.f32.mrf.mxu0 }
 0x154   :  { %9765 = vst [vmem:[#allocation24_spill] sm:$0xff] %v7880_v34  ;;  %v784_v34 = vadd.f32 %v5883_v21, %v783_v29  ;;  %v179_v21 = vadd.f32 %v178_v60, %v156_v19 }
 0x156   :  { %v7925_v60 = vadd.f32 %v7830_v59, %v179_v21  ;;  %v7937_v59 = vld [vmem:[%s9728_s4 + $0x3] ss:$0 sm:$0xff] }
 0x15a   :  { %v7887_v18 = vpop.f32.mrf.mxu2  ;;  %v7889_v23 = vpop.f32.mrf.mxu3 }
 0x15b   :  { %9767 = vst [vmem:[#allocation26_spill] sm:$0xff] %v7887_v18  ;;  %v7897_v22 = vpop.f32.mrf.mxu0  ;;  %v7902_v18 = vld [vmem:[%s9728_s4 + $0x4] ss:$0 sm:$0xff] }
 0x15c   :  { %9768 = vst [vmem:[#allocation27_spill] sm:$0xff] %v7889_v23  ;;  %v807_v23 = vadd.f32 %v806_v26, %v784_v34 }
 0x15e   :  { %v830_v1 = vadd.f32 %v829_v32, %v807_v23 }
 0x160   :  { %v7922_v26 = vadd.f32 %v852_v30, %v830_v1  ;;  %v668_v30 = vadd.f32 %v667_v25, %v645_v63  ;;  %v5881_v25 = vld [vmem:[%s9726_s2 + $0x2] ss:$0 sm:$0xff] }
 0x162   :  { %v7904_v54 = vpop.f32.mrf.mxu2  ;;  %v7906_v9 = vpop.f32.mrf.mxu3  ;;  %v7940_v28 = vadd.f32 %v690_v58, %v668_v30  ;;  %v457_v58 = vadd.f32 %v5881_v25, %v7848_v11 }
 0x163   :  { %v1220_v27 = vpop.f32.mrf.mxu0 }
 0x164   :  { %v1221_v10 = vadd.f32 %v7902_v18, %v1220_v27 }
 0x166   :  { %v1270_v15 = vrot.slane %v1221_v10, 2 }
 0x168   :  { %v1272_v6 = vadd.f32 %v1270_v15, %v7922_v26 }
 0x16a   :  { %v1081_v19 = vpop.f32.mrf.mxu2  ;;  %v1104_v23 = vpop.f32.mrf.mxu3  ;;  %v5646_v1 = vmul.f32 -1.442695, %v1272_v6 }
 0x16b   :  { %v1082_v10 = vadd.f32 %v7915_v3, %v1081_v19  ;;  %v1105_v27 = vadd.f32 %v7920_v12, %v1104_v23  ;;  %v7943_v23 = vpop.f32.mrf.mxu1 }
 0x16c   :  { %9769 = vst [vmem:[#allocation28_spill] sm:$0xff] %v7943_v23 }
 0x16d   :  { %v1130_v0 = vadd.f32 %v1082_v10, %v7925_v60  ;;  %v1150_v24 = vadd.f32 %v1105_v27, %v7927_v62 }
 0x16f   :  { %v5643_v29 = vmul.f32 -1.442695, %v1130_v0  ;;  %v5644_v4 = vmul.f32 -1.442695, %v1150_v24 }
 0x171   :  { %5904 = vpow2.f32 %v5643_v29 }
 0x172   :  { %5906 = vpow2.f32 %v5644_v4  ;;  %v1197_v32 = vpop.f32.mrf.mxu3  ;;  %v480_v4 = vadd.f32 %v7864_v20, %v457_v58  ;;  %v5884_v58 = vld [vmem:[%s9726_s2 + $0x5] ss:$0 sm:$0xff] }
 0x173   :  { %5908 = vpow2.f32 %v5646_v1  ;;  %v1198_v34 = vadd.f32 %v7937_v59, %v1197_v32  ;;  %v968_v30 = vpop.f32.mrf.mxu1 }
 0x174   :  { %v503_v20 = vadd.f32 %v7852_v14, %v480_v4  ;;  %v7971_v4 = vld [vmem:[%s9728_s4 + $0x5] ss:$0 sm:$0xff] }
 0x175   :  { %v1247_v21 = vrot.slane %v1198_v34, 2  ;;  %v7956_v34 = vld [vmem:[%s9728_s4 + $0x2] ss:$0 sm:$0xff] }
 0x177   :  { %v5905_v56 = vpop.eup %5904  ;;  %v1249_v2 = vadd.f32 %v1247_v21, %v7940_v28 }
 0x178   :  { %v5907_v15 = vpop.eup %5906  ;;  %v1134_v17 = vadd.f32 1.0, %v5905_v56 }
 0x179   :  { %v5909_v19 = vpop.eup %5908  ;;  %v1154_v6 = vadd.f32 1.0, %v5907_v15  ;;  %v5645_v10 = vmul.f32 -1.442695, %v1249_v2  ;;  %v1127_v2 = vpop.f32.mrf.mxu2 }
 0x17a   :  { %5910 = vrcp.f32 %v1134_v17  ;;  %v7948_v27 = vadd.f32 1.0, %v5909_v19  ;;  %v1146_v11 = vand.u32 2147483648, %v1134_v17  ;;  %v1144_v19 = vand.u32 2147483647, %v1134_v17 }
 0x17b   :  { %5912 = vrcp.f32 %v1154_v6  ;;  %vm1140_vm1 = vweird.f32 %v1134_v17  ;;  %vm1160_vm5 = vweird.f32 %v1154_v6 }
 0x17c   :  { %5914 = vpow2.f32 %v5645_v10  ;;  %vm1145_vm3 = vcmp.eq.f32.partialorder %v1144_v19, 8.507059e+37  ;;  %vm1282_vm13 = vweird.f32 %v7948_v27 }
 0x17d   :  { %5916 = vrcp.f32 %v7948_v27 }
 0x180   :  { %v5911_v63 = vpop.eup %5910 }
 0x181   :  { %v5913_v0 = vpop.eup %5912  ;;  %v1136_v24 = vmul.f32 %v5911_v63, %v1134_v17  ;;  %vm1141_vm0 = vweird.f32 %v5911_v63  ;;  %v7974_v17 = vadd.f32 %v7850_v13, %v503_v20 }
 0x182   :  { %v5915_v1 = vpop.eup %5914  ;;  %v1156_v29 = vmul.f32 %v5913_v0, %v1154_v6  ;;  %vm1142_vm2 = vmor %vm1140_vm1, %vm1141_vm0  ;;  %vm1161_vm4 = vweird.f32 %v5913_v0 }
 0x183   :  { %v1253_v32 = vadd.f32 1.0, %v5915_v1  ;;  %v1137_v21 = vsub.f32 1.0, %v1136_v24  ;;  %v7958_v10 = vpop.eup %5916  ;;  %v1128_v1 = vadd.f32 %v7956_v34, %v1127_v2  ;;  %v1147_v24 = vor.u32 1.1754944e-38, %v1146_v11  ;;  %vm1162_vm6 = vmor %vm1160_vm5, %vm1161_vm4 }
 0x184   :  { %v1157_v56 = vsub.f32 1.0, %v1156_v29  ;;  %v946_v29 = vadd.f32 %v5884_v58, %v7897_v22  ;;  %v1166_v11 = vand.u32 2147483648, %v1154_v6  ;;  %v1243_v22 = vpop.f32.mrf.mxu1  ;;  %v1164_v58 = vand.u32 2147483647, %v1154_v6 }
 0x185   :  { %5918 = vrcp.f32 %v1253_v32  ;;  %v1138_v15 = vmul.f32 %v5911_v63, %v1137_v21  ;;  %v1278_v21 = vmul.f32 %v7958_v10, %v7948_v27  ;;  %v1265_v61 = vand.u32 2147483648, %v1253_v32 }
 0x186   :  { %v1158_v25 = vmul.f32 %v5913_v0, %v1157_v56  ;;  %v1167_v7 = vor.u32 1.1754944e-38, %v1166_v11  ;;  %vm1165_vm7 = vcmp.eq.f32.partialorder %v1164_v58, 8.507059e+37  ;;  %v1263_v20 = vand.u32 2147483647, %v1253_v32 }
 0x187   :  { %v1139_v23 = vadd.f32 %v5911_v63, %v1138_v15  ;;  %vm1259_vm9 = vweird.f32 %v1253_v32  ;;  %vm1283_vm12 = vweird.f32 %v7958_v10 }
 0x188   :  { %v1159_v14 = vadd.f32 %v5913_v0, %v1158_v25  ;;  %v1244_v25 = vadd.f32 %v7971_v4, %v1243_v22  ;;  %vm1264_vm11 = vcmp.eq.f32.partialorder %v1263_v20, 8.507059e+37  ;;  %v1288_v22 = vand.u32 2147483648, %v7948_v27  ;;  %vm1284_vm15 = vmor %vm1282_vm13, %vm1283_vm12 }
 0x189   :  { %v1143_v16 = vsel %vm1142_vm2, %v5911_v63, %v1139_v23  ;;  %v969_v23 = vadd.f32 %v968_v30, %v946_v29  ;;  %v1279_v63 = vsub.f32 1.0, %v1278_v21 }
 0x18a   :  { %v1148_v56 = vsel %vm1145_vm3, %v1147_v24, %v1143_v16  ;;  %v1163_v19 = vsel %vm1162_vm6, %v5913_v0, %v1159_v14  ;;  %v1293_v21 = vrot.slane %v1244_v25, 2  ;;  %v1266_v0 = vor.u32 1.1754944e-38, %v1265_v61 }
 0x18b   :  { %v5919_v2 = vpop.eup %5918  ;;  %v1170_v15 = vmul.f32 %v1148_v56, %v1128_v1  ;;  %v992_v1 = vadd.f32 %v7904_v54, %v969_v23  ;;  %v1280_v6 = vmul.f32 %v7958_v10, %v1279_v63  ;;  %v1168_v30 = vsel %vm1165_vm7, %v1167_v7, %v1163_v19 }
 0x18c   :  { %v1255_v8 = vmul.f32 %v5919_v2, %v1253_v32  ;;  %vm1260_vm8 = vweird.f32 %v5919_v2  ;;  %v1173_v56 = vsub.f32 1.0, %v1168_v30  ;;  %v1175_v32 = vmul.f32 0.0, %v1168_v30 }
 0x18d   :  { %v1171_v16 = vadd.f32 %v1170_v15, %v7974_v17  ;;  %vm1261_vm10 = vmor %vm1259_vm9, %vm1260_vm8  ;;  %v7981_v11 = vadd.f32 %v7906_v9, %v992_v1  ;;  %v1281_v54 = vadd.f32 %v7958_v10, %v1280_v6  ;;  %v1286_v61 = vand.u32 2147483647, %v7948_v27 }
 0x18e   :  { %v1256_v24 = vsub.f32 1.0, %v1255_v8  ;;  %v1289_v63 = vor.u32 1.1754944e-38, %v1288_v22 }
 0x18f   :  { %5920 = vtanh.f32 %v1171_v16  ;;  %v1285_v23 = vsel %vm1284_vm15, %v7958_v10, %v1281_v54  ;;  %vm1287_vm0 = vcmp.eq.f32.partialorder %v1286_v61, 8.507059e+37 }
 0x190   :  { %v1257_v13 = vmul.f32 %v5919_v2, %v1256_v24  ;;  %v1290_v27 = vsel %vm1287_vm0, %v1289_v63, %v1285_v23 }
 0x191   :  { %v1298_v10 = vsub.f32 1.0, %v1290_v27  ;;  %v1300_v25 = vmul.f32 0.0, %v1290_v27 }
 0x192   :  { %v1258_v29 = vadd.f32 %v5919_v2, %v1257_v13 }
 0x194   :  { %v1262_v14 = vsel %vm1261_vm10, %v5919_v2, %v1258_v29 }
 0x195   :  { %v5921_v8 = vpop.eup %5920  ;;  %v1267_v15 = vsel %vm1264_vm11, %v1266_v0, %v1262_v14 }
 0x196   :  { %v1174_v7 = vmul.f32 %v5921_v8, %v1173_v56  ;;  %v1295_v58 = vmul.f32 %v1293_v21, %v1267_v15 }
 0x198   :  { %v1296_v2 = vadd.f32 %v1295_v58, %v7981_v11  ;;  %v7989_v9 = vadd.f32 %v1175_v32, %v1174_v7 }
 0x19a   :  { %5922 = vtanh.f32 %v1296_v2  ;;  %5647 = vmatmul.msk.f32.vlgmr.msra.gmra.mxu2 %vm1060_vm14, %v7989_v9  ;;  %5648 = vmatmul.msk.f32.vlgmr.msra.gmra.mxu3 %vm1060_vm14, %v7989_v9 }
 0x19b   :  { %5649 = vmatmul.msk.f32.vlgmr.msrb.gmra.mxu0 %vm1060_vm14, %v7989_v9  ;;  %1601 = vmatpush.msra.mxu2 %v7725_v45 }
 0x19c   :  { %1683 = vmatpush.msra.mxu3 %v7720_v44  ;;  %1703 = vmatpush.msrb.mxu0 %v7653_v5 }
 0x19d   :  { %1602 = vmatpush.msra.mxu2 %v7751_v52 }
 0x19e   :  { %1684 = vmatpush.msra.mxu3 %v7744_v46  ;;  %1704 = vmatpush.msrb.mxu0 %v7681_v38 }
 0x19f   :  { %1603 = vmatpush.msra.mxu2 %v7770_v50 }
 0x1a0   :  { %v5923_v16 = vpop.eup %5922  ;;  %1685 = vmatpush.msra.mxu3 %v7762_v49  ;;  %1705 = vmatpush.msrb.mxu0 %v7707_v42 }
 0x1a1   :  { %v1299_v19 = vmul.f32 %v5923_v16, %v1298_v10  ;;  %1604 = vmatpush.msra.mxu2 %v7783_v57 }
 0x1a2   :  { %1686 = vmatpush.msra.mxu3 %v7778_v53  ;;  %1706 = vmatpush.msrb.mxu0 %v7732_v51 }
 0x1a3   :  { %v8010_v24 = vadd.f32 %v1300_v25, %v1299_v19 }
 0x1a5   :  { %9770 = vst [vmem:[#allocation29_spill] sm:$0xff] %v8010_v24  ;;  %v1424_v13 = vrot.slane %v8010_v24, 6 }
 0x1a7   :  { %5652 = vmatmul.msk.f32.vlgmr.msrb.gmra.mxu1 %vm1060_vm14, %v1424_v13  ;;  %5653 = vmatmul.msk.f32.vlgmr.msrb.gmra.mxu2 %vm1060_vm14, %v1424_v13 }
 0x1a8   :  { %5654 = vmatmul.msk.f32.vlgmr.msrb.gmra.mxu3 %vm1060_vm14, %v1424_v13  ;;  %1723 = vmatpush.msrb.mxu1 %v7692_v40 }
 0x1a9   :  { %1805 = vmatpush.msrb.mxu2 %v7648_v33  ;;  %1825 = vmatpush.msrb.mxu3 %v7639_v31 }
 0x1aa   :  { %1724 = vmatpush.msrb.mxu1 %v7737_v47 }
 0x1ab   :  { %1806 = vmatpush.msrb.mxu2 %v7669_v36  ;;  %1826 = vmatpush.msrb.mxu3 %v7663_v35 }
 0x1ac   :  { %1725 = vmatpush.msrb.mxu1 %v7756_v48 }
 0x1ad   :  { %1807 = vmatpush.msrb.mxu2 %v7687_v39  ;;  %1827 = vmatpush.msrb.mxu3 %v7675_v37 }
 0x1ae   :  { %1726 = vmatpush.msrb.mxu1 %v7791_v55 }
 0x1af   :  { %1808 = vmatpush.msrb.mxu2 %v7712_v43  ;;  %1828 = vmatpush.msrb.mxu3 %v7699_v41 }
 0x21d   :  { %v1322_v20 = vpop.f32.mrf.mxu2  ;;  %v1342_v1 = vpop.f32.mrf.mxu3 }
 0x21e   :  { %v1323_v6 = vadd.f32 %v7915_v3, %v1322_v20  ;;  %v1343_v30 = vadd.f32 %v7920_v12, %v1342_v1 }
 0x220   :  { %v1366_v29 = vrot.slane %v1323_v6, 6  ;;  %v1389_v21 = vrot.slane %v1343_v30, 6  ;;  %v1362_v6 = vpop.f32.mrf.mxu0 }
 0x222   :  { %v1368_v0 = vadd.f32 %v1366_v29, %v7925_v60  ;;  %v1391_v56 = vadd.f32 %v1389_v21, %v7927_v62 }
 0x224   :  { %v5650_v14 = vmul.f32 -1.442695, %v1368_v0  ;;  %v5651_v8 = vmul.f32 -1.442695, %v1391_v56  ;;  %v1444_v15 = vpop.f32.mrf.mxu1  ;;  %v1363_v0 = vadd.f32 %v7956_v34, %v1362_v6 }
 0x225   :  { %v1445_v54 = vadd.f32 %v7937_v59, %v1444_v15 }
 0x226   :  { %5924 = vpow2.f32 %v5650_v14 }
 0x227   :  { %5926 = vpow2.f32 %v5651_v8  ;;  %v1488_v22 = vrot.slane %v1445_v54, 4 }
 0x229   :  { %v1490_v7 = vadd.f32 %v1488_v22, %v7940_v28 }
 0x22a   :  { %v1464_v58 = vpop.f32.mrf.mxu2 }
 0x22b   :  { %v5655_v32 = vmul.f32 -1.442695, %v1490_v7  ;;  %v1465_v61 = vadd.f32 %v7902_v18, %v1464_v58  ;;  %v1484_v7 = vpop.f32.mrf.mxu3 }
 0x22c   :  { %v5925_v2 = vpop.eup %5924 }
 0x22d   :  { %v5927_v23 = vpop.eup %5926  ;;  %v1372_v63 = vadd.f32 1.0, %v5925_v2  ;;  %5928 = vpow2.f32 %v5655_v32  ;;  %v1511_v27 = vrot.slane %v1465_v61, 4  ;;  %v1412_v2 = vrot.slane %v1363_v0, 6 }
 0x22e   :  { %v1395_v10 = vadd.f32 1.0, %v5927_v23 }
 0x22f   :  { %5930 = vrcp.f32 %v1372_v63  ;;  %v1513_v16 = vadd.f32 %v1511_v27, %v7922_v26  ;;  %v1384_v56 = vand.u32 2147483648, %v1372_v63  ;;  %v1382_v15 = vand.u32 2147483647, %v1372_v63 }
 0x230   :  { %5932 = vrcp.f32 %v1395_v10  ;;  %vm1378_vm2 = vweird.f32 %v1372_v63  ;;  %vm1401_vm6 = vweird.f32 %v1395_v10 }
 0x231   :  { %v5656_v25 = vmul.f32 -1.442695, %v1513_v16  ;;  %v1385_v23 = vor.u32 1.1754944e-38, %v1384_v56  ;;  %vm1383_vm4 = vcmp.eq.f32.partialorder %v1382_v15, 8.507059e+37 }
 0x233   :  { %v5929_v19 = vpop.eup %5928  ;;  %5934 = vpow2.f32 %v5656_v25 }
 0x234   :  { %v1494_v13 = vadd.f32 1.0, %v5929_v19  ;;  %v1485_v19 = vadd.f32 %v7971_v4, %v1484_v7 }
 0x235   :  { %v5931_v20 = vpop.eup %5930 }
 0x236   :  { %v5933_v1 = vpop.eup %5932  ;;  %v1374_v30 = vmul.f32 %v5931_v20, %v1372_v63  ;;  %5936 = vrcp.f32 %v1494_v13  ;;  %vm1379_vm1 = vweird.f32 %v5931_v20  ;;  %v1504_v0 = vand.u32 2147483647, %v1494_v13 }
 0x237   :  { %v1397_v29 = vmul.f32 %v5933_v1, %v1395_v10  ;;  %vm1380_vm3 = vmor %vm1378_vm2, %vm1379_vm1  ;;  %vm1402_vm5 = vweird.f32 %v5933_v1  ;;  %vm1500_vm9 = vweird.f32 %v1494_v13 }
 0x238   :  { %v1375_v21 = vsub.f32 1.0, %v1374_v30  ;;  %vm8039_vm8 = vmor %vm1401_vm6, %vm1402_vm5  ;;  %vm1505_vm12 = vcmp.eq.f32.partialorder %v1504_v0, 8.507059e+37 }
 0x239   :  { %v1398_v14 = vsub.f32 1.0, %v1397_v29  ;;  %v5935_v54 = vpop.eup %5934 }
 0x23a   :  { %v1376_v8 = vmul.f32 %v5931_v20, %v1375_v21  ;;  %v1517_v61 = vadd.f32 1.0, %v5935_v54  ;;  %v1407_v21 = vand.u32 2147483648, %v1395_v10 }
 0x23b   :  { %v1399_v22 = vmul.f32 %v5933_v1, %v1398_v14  ;;  %v1506_v14 = vand.u32 2147483648, %v1494_v13 }
 0x23c   :  { %v5937_v58 = vpop.eup %5936  ;;  %v1377_v32 = vadd.f32 %v5931_v20, %v1376_v8  ;;  %5938 = vrcp.f32 %v1517_v61  ;;  %v1405_v8 = vand.u32 2147483647, %v1395_v10  ;;  %v1408_v7 = vor.u32 1.1754944e-38, %v1407_v21 }
 0x23d   :  { %v1496_v27 = vmul.f32 %v5937_v58, %v1494_v13  ;;  %v1400_v6 = vadd.f32 %v5933_v1, %v1399_v22  ;;  %vm1501_vm7 = vweird.f32 %v5937_v58  ;;  %v1419_v13 = vrot.slane %v7989_v9, 6 }
 0x23e   :  { %v1381_v16 = vsel %vm1380_vm3, %v5931_v20, %v1377_v32  ;;  %vm1502_vm10 = vmor %vm1500_vm9, %vm1501_vm7  ;;  %v1507_v32 = vor.u32 1.1754944e-38, %v1506_v14  ;;  %vm1406_vm11 = vcmp.eq.f32.partialorder %v1405_v8, 8.507059e+37  ;;  %vm1523_vm15 = vweird.f32 %v1517_v61 }
 0x23f   :  { %v1386_v25 = vsel %vm1383_vm4, %v1385_v23, %v1381_v16  ;;  %v1497_v30 = vsub.f32 1.0, %v1496_v27  ;;  %v1404_v54 = vsel %vm8039_vm8, %v5933_v1, %v1400_v6 }
 0x240   :  { %v1414_v29 = vmul.f32 %v1412_v2, %v1386_v25  ;;  %v1534_v2 = vrot.slane %v1485_v19, 4  ;;  %v1409_v16 = vsel %vm1406_vm11, %v1408_v7, %v1404_v54  ;;  %vm2977_vm11 = vcmask 1041408  }
 0x241   :  { %v1498_v63 = vmul.f32 %v5937_v58, %v1497_v30  ;;  %v1417_v6 = vsub.f32 1.0, %v1409_v16 }
 0x242   :  { %v1415_v56 = vadd.f32 %v1414_v29, %v7974_v17  ;;  %v5939_v22 = vpop.eup %5938  ;;  %v1529_v29 = vand.u32 2147483648, %v1517_v61 }
 0x243   :  { %v1499_v15 = vadd.f32 %v5937_v58, %v1498_v63  ;;  %v1519_v10 = vmul.f32 %v5939_v22, %v1517_v61  ;;  %v1527_v63 = vand.u32 2147483647, %v1517_v61  ;;  %vm1524_vm13 = vweird.f32 %v5939_v22 }
 0x244   :  { %5940 = vtanh.f32 %v1415_v56  ;;  %vm1525_vm0 = vmor %vm1523_vm15, %vm1524_vm13  ;;  %v1530_v8 = vor.u32 1.1754944e-38, %v1529_v29  ;;  %vm2979_vm15 = vcmask 1043456  }
 0x245   :  { %v1503_v23 = vsel %vm1502_vm10, %v5937_v58, %v1499_v15  ;;  %v1520_v25 = vsub.f32 1.0, %v1519_v10  ;;  %v1421_v58 = vmul.f32 %v1419_v13, %v1409_v16  ;;  %vm1528_vm1 = vcmp.eq.f32.partialorder %v1527_v63, 8.507059e+37 }
 0x246   :  { %v1508_v27 = vsel %vm1505_vm12, %v1507_v32, %v1503_v23  ;;  %v1541_v32 = vrot.slane %v8010_v24, 2 }
 0x247   :  { %v1536_v30 = vmul.f32 %v1534_v2, %v1508_v27  ;;  %v1521_v20 = vmul.f32 %v5939_v22, %v1520_v25 }
 0x249   :  { %v1537_v1 = vadd.f32 %v1536_v30, %v7981_v11  ;;  %v1522_v19 = vadd.f32 %v5939_v22, %v1521_v20 }
 0x24a   :  { %v5941_v21 = vpop.eup %5940 }
 0x24b   :  { %5942 = vtanh.f32 %v1537_v1  ;;  %v1418_v14 = vmul.f32 %v5941_v21, %v1417_v6  ;;  %v1526_v0 = vsel %vm1525_vm0, %v5939_v22, %v1522_v19 }
 0x24c   :  { %v1531_v15 = vsel %vm1528_vm1, %v1530_v8, %v1526_v0 }
 0x24d   :  { %v8047_v56 = vadd.f32 %v1421_v58, %v1418_v14  ;;  %v1539_v7 = vsub.f32 1.0, %v1531_v15  ;;  %v1543_v10 = vmul.f32 %v1541_v32, %v1531_v15 }
 0x24f   :  { %v1546_v54 = vrot.slane %v8047_v56, 2 }
 0x251   :  { %v5943_v2 = vpop.eup %5942  ;;  %5657 = vmatmul.msk.f32.vlgmr.msra.gmra.mxu0 %vm1060_vm14, %v1546_v54  ;;  %5658 = vmatmul.msk.f32.vlgmr.msra.gmra.mxu1 %vm1060_vm14, %v1546_v54 }
 0x252   :  { %v1540_v61 = vmul.f32 %v5943_v2, %v1539_v7  ;;  %5659 = vmatmul.msk.f32.vlgmr.msra.gmra.mxu2 %vm1060_vm14, %v1546_v54  ;;  %1845 = vmatpush.msra.mxu0 %v7725_v45 }
 0x253   :  { %1927 = vmatpush.msra.mxu1 %v7720_v44  ;;  %1947 = vmatpush.msra.mxu2 %v7653_v5 }
 0x254   :  { %v8057_v22 = vadd.f32 %v1543_v10, %v1540_v61  ;;  %1846 = vmatpush.msra.mxu0 %v7751_v52 }
 0x255   :  { %1928 = vmatpush.msra.mxu1 %v7744_v46  ;;  %1948 = vmatpush.msra.mxu2 %v7681_v38 }
 0x256   :  { %v1668_v23 = vrot.slane %v8057_v22, 4  ;;  %1847 = vmatpush.msra.mxu0 %v7770_v50 }
 0x257   :  { %1929 = vmatpush.msra.mxu1 %v7762_v49  ;;  %1949 = vmatpush.msra.mxu2 %v7707_v42 }
 0x258   :  { %5662 = vmatmul.msk.f32.vlgmr.msra.gmra.mxu3 %vm1060_vm14, %v1668_v23  ;;  %1848 = vmatpush.msra.mxu0 %v7783_v57 }
 0x259   :  { %5663 = vmatmul.msk.f32.vlgmr.msrb.gmra.mxu0 %vm1060_vm14, %v1668_v23  ;;  %5664 = vmatmul.msk.f32.vlgmr.msrb.gmra.mxu1 %vm1060_vm14, %v1668_v23 }
 0x25a   :  { %1967 = vmatpush.msra.mxu3 %v7692_v40  ;;  %1930 = vmatpush.msra.mxu1 %v7778_v53 }
 0x25b   :  { %1950 = vmatpush.msra.mxu2 %v7732_v51  ;;  %2039 = vmatpush.msrb.mxu0 %v7648_v33 }
 0x25c   :  { %1968 = vmatpush.msra.mxu3 %v7737_v47  ;;  %2059 = vmatpush.msrb.mxu1 %v7639_v31 }
 0x25d   :  { %2040 = vmatpush.msrb.mxu0 %v7669_v36 }
 0x25e   :  { %1969 = vmatpush.msra.mxu3 %v7756_v48  ;;  %2060 = vmatpush.msrb.mxu1 %v7663_v35 }
 0x25f   :  { %2041 = vmatpush.msrb.mxu0 %v7687_v39 }
 0x260   :  { %1970 = vmatpush.msra.mxu3 %v7791_v55  ;;  %2061 = vmatpush.msrb.mxu1 %v7675_v37 }
 0x261   :  { %2042 = vmatpush.msrb.mxu0 %v7712_v43 }
 0x262   :  { %2062 = vmatpush.msrb.mxu1 %v7699_v41 }
 0x2ce   :  { %v1566_v33 = vpop.f32.mrf.mxu0  ;;  %v1586_v5 = vpop.f32.mrf.mxu1 }
 0x2cf   :  { %v1567_v31 = vadd.f32 %v7915_v3, %v1566_v33  ;;  %v1587_v36 = vadd.f32 %v7920_v12, %v1586_v5 }
 0x2d1   :  { %v1610_v38 = vrot.slane %v1567_v31, 4  ;;  %v1633_v40 = vrot.slane %v1587_v36, 4 }
 0x2d3   :  { %v1612_v35 = vadd.f32 %v1610_v38, %v7925_v60  ;;  %v1635_v39 = vadd.f32 %v1633_v40, %v7927_v62 }
 0x2d5   :  { %v5660_v42 = vmul.f32 -1.442695, %v1612_v35  ;;  %v5661_v44 = vmul.f32 -1.442695, %v1635_v39  ;;  %v1606_v13 = vpop.f32.mrf.mxu2 }
 0x2d6   :  { %v1708_v45 = vpop.f32.mrf.mxu0  ;;  %v1607_v21 = vadd.f32 %v7956_v34, %v1606_v13  ;;  %v1728_v39 = vpop.f32.mrf.mxu1  ;;  %v2978_v13 = vsel %vm2977_vm11, %v7989_v9, %v8047_v56 }
 0x2d7   :  { %5944 = vpow2.f32 %v5660_v42  ;;  %v1709_v37 = vadd.f32 %v7902_v18, %v1708_v45 }
 0x2d8   :  { %5946 = vpow2.f32 %v5661_v44  ;;  %v1656_v32 = vrot.slane %v1607_v21, 4 }
 0x2d9   :  { %v1755_v41 = vrot.slane %v1709_v37, 6 }
 0x2db   :  { %v1757_v43 = vadd.f32 %v1755_v41, %v7922_v26  ;;  %v1688_v51 = vpop.f32.mrf.mxu3  ;;  %v1663_v41 = vrot.slane %v8047_v56, 6 }
 0x2dc   :  { %v1689_v47 = vadd.f32 %v7937_v59, %v1688_v51 }
 0x2dd   :  { %v5945_v46 = vpop.eup %5944  ;;  %v5666_v52 = vmul.f32 -1.442695, %v1757_v43  ;;  %v1729_v43 = vadd.f32 %v7971_v4, %v1728_v39 }
 0x2de   :  { %v5947_v48 = vpop.eup %5946  ;;  %v1616_v49 = vadd.f32 1.0, %v5945_v46  ;;  %v1732_v50 = vrot.slane %v1689_v47, 6 }
 0x2df   :  { %v1639_v53 = vadd.f32 1.0, %v5947_v48  ;;  %5948 = vpow2.f32 %v5666_v52 }
 0x2e0   :  { %5950 = vrcp.f32 %v1616_v49  ;;  %v1734_v57 = vadd.f32 %v1732_v50, %v7940_v28  ;;  %v1628_v6 = vand.u32 2147483648, %v1616_v49  ;;  %v1626_v14 = vand.u32 2147483647, %v1616_v49 }
 0x2e1   :  { %5952 = vrcp.f32 %v1639_v53  ;;  %vm1622_vm3 = vweird.f32 %v1616_v49  ;;  %v1651_v23 = vand.u32 2147483648, %v1639_v53  ;;  %vm1645_vm7 = vweird.f32 %v1639_v53 }
 0x2e2   :  { %v5665_v55 = vmul.f32 -1.442695, %v1734_v57  ;;  %v1629_v54 = vor.u32 1.1754944e-38, %v1628_v6  ;;  %vm1627_vm5 = vcmp.eq.f32.partialorder %v1626_v14, 8.507059e+37  ;;  %v1649_v5 = vand.u32 2147483647, %v1639_v53 }
 0x2e3   :  { %v1652_v35 = vor.u32 1.1754944e-38, %v1651_v23 }
 0x2e4   :  { %5954 = vpow2.f32 %v5665_v55  ;;  %vm1650_vm9 = vcmp.eq.f32.partialorder %v1649_v5, 8.507059e+37  ;;  %v8188_v5 = vld [vmem:[%s9727_s3 + $0x40] sm:$0xff] }
 0x2e5   :  { %v5949_v27 = vpop.eup %5948 }
 0x2e6   :  { %v5951_v16 = vpop.eup %5950  ;;  %v8092_v25 = vadd.f32 1.0, %v5949_v27 }
 0x2e7   :  { %v5953_v30 = vpop.eup %5952  ;;  %v1618_v29 = vmul.f32 %v5951_v16, %v1616_v49  ;;  %vm1623_vm2 = vweird.f32 %v5951_v16 }
 0x2e8   :  { %v1641_v63 = vmul.f32 %v5953_v30, %v1639_v53  ;;  %5956 = vrcp.f32 %v8092_v25  ;;  %vm1624_vm4 = vmor %vm1622_vm3, %vm1623_vm2  ;;  %vm1646_vm6 = vweird.f32 %v5953_v30  ;;  %vm1767_vm2 = vweird.f32 %v8092_v25 }
 0x2e9   :  { %v1619_v20 = vsub.f32 1.0, %v1618_v29  ;;  %vm1647_vm8 = vmor %vm1645_vm7, %vm1646_vm6 }
 0x2ea   :  { %v1642_v1 = vsub.f32 1.0, %v1641_v63  ;;  %v5955_v58 = vpop.eup %5954 }
 0x2eb   :  { %v1620_v19 = vmul.f32 %v5951_v16, %v1619_v20  ;;  %v1738_v15 = vadd.f32 1.0, %v5955_v58  ;;  %v1773_v20 = vand.u32 2147483648, %v8092_v25 }
 0x2ec   :  { %v1643_v8 = vmul.f32 %v5953_v30, %v1642_v1 }
 0x2ed   :  { %v1621_v0 = vadd.f32 %v5951_v16, %v1620_v19  ;;  %5958 = vrcp.f32 %v1738_v15  ;;  %v1750_v51 = vand.u32 2147483648, %v1738_v15  ;;  %v1748_v52 = vand.u32 2147483647, %v1738_v15 }
 0x2ee   :  { %v8096_v2 = vpop.eup %5956  ;;  %v1644_v10 = vadd.f32 %v5953_v30, %v1643_v8  ;;  %vm1744_vm12 = vweird.f32 %v1738_v15  ;;  %v1771_v19 = vand.u32 2147483647, %v8092_v25  ;;  %v1774_v58 = vor.u32 1.1754944e-38, %v1773_v20  ;;  %v8139_v8 = vld [vmem:[%s9727_s3 + $0x78] sm:$0xff] }
 0x2ef   :  { %v1625_v7 = vsel %vm1624_vm4, %v5951_v16, %v1621_v0  ;;  %v1763_v36 = vmul.f32 %v8096_v2, %v8092_v25  ;;  %v1751_v55 = vor.u32 1.1754944e-38, %v1750_v51  ;;  %v1778_v16 = vrot.slane %v1729_v43, 6  ;;  %v8133_v25 = vld [vmem:[%s9727_s3 + $0x58] sm:$0xff]  ;;  %v8241_v43 = vld [vmem:[%s9727_s3 + $0x10] sm:$0xff] }
 0x2f0   :  { %v1630_v61 = vsel %vm1627_vm5, %v1629_v54, %v1625_v7  ;;  %v1648_v38 = vsel %vm1647_vm8, %v5953_v30, %v1644_v10  ;;  %vm1749_vm0 = vcmp.eq.f32.partialorder %v1748_v52, 8.507059e+37  ;;  %vm1768_vm1 = vweird.f32 %v8096_v2  ;;  %v8145_v0 = vld [vmem:[%s9727_s3 + $0x98] sm:$0xff]  ;;  %v8157_v7 = vld [vmem:[%s9727_s3 + $0x70] sm:$0xff]  ;;  %v8181_v10 = vld [vmem:[%s9727_s3 + $0x88] sm:$0xff] }
 0x2f1   :  { %v1658_v33 = vmul.f32 %v1656_v32, %v1630_v61  ;;  %v1653_v44 = vsel %vm1650_vm9, %v1652_v35, %v1648_v38  ;;  %v1764_v45 = vsub.f32 1.0, %v1763_v36  ;;  %vm8119_vm3 = vmor %vm1767_vm2, %vm1768_vm1  ;;  %vm1772_vm4 = vcmp.eq.f32.partialorder %v1771_v19, 8.507059e+37  ;;  %v8163_v32 = vld [vmem:[%s9727_s3 + $0x90] sm:$0xff]  ;;  %v8175_v61 = vld [vmem:[%s9727_s3 + $0x68] sm:$0xff] }
 0x2f2   :  { %v1661_v47 = vsub.f32 1.0, %v1653_v44  ;;  %v1665_v53 = vmul.f32 %v1663_v41, %v1653_v44  ;;  %v8194_v36 = vld [vmem:[%s9727_s3 + $0x60] sm:$0xff]  ;;  %v8217_v44 = vld [vmem:[%s9727_s3 + $0xb8] sm:$0xff]  ;;  %v8235_v41 = vld [vmem:[%s9727_s3 + $0xb0] sm:$0xff] }
 0x2f3   :  { %v1659_v31 = vadd.f32 %v1658_v33, %v7974_v17  ;;  %v5959_v40 = vpop.eup %5958  ;;  %v1765_v49 = vmul.f32 %v8096_v2, %v1764_v45  ;;  %v1785_v33 = vrot.slane %v8057_v22, 2  ;;  %v8200_v38 = vld [vmem:[%s9727_s3 + $0x80] sm:$0xff]  ;;  %v8223_v45 = vld [vmem:[%s9727_s3 + $0x18] sm:$0xff]  ;;  %v8247_v51 = vld [vmem:[%s9727_s3 + $0x30] sm:$0xff] }
 0x2f4   :  { %v1740_v42 = vmul.f32 %v5959_v40, %v1738_v15  ;;  %vm1745_vm10 = vweird.f32 %v5959_v40  ;;  %v8151_v15 = vld [vmem:[%s9727_s3 + $0x50] sm:$0xff]  ;;  %v8265_v52 = vld [vmem:[%s9727_s3 + $0x28] sm:$0xff] }
 0x2f5   :  { %5960 = vtanh.f32 %v1659_v31  ;;  %vm1746_vm13 = vmor %vm1744_vm12, %vm1745_vm10  ;;  %v1766_v29 = vadd.f32 %v8096_v2, %v1765_v49  ;;  %v8277_v49 = vld [vmem:[%s9727_s3] sm:$0xff] }
 0x2f6   :  { %v1741_v37 = vsub.f32 1.0, %v1740_v42 }
 0x2f7   :  { %v1770_v56 = vsel %vm8119_vm3, %v8096_v2, %v1766_v29  ;;  %v8169_v2 = vld [vmem:[%s9727_s3 + $0x48] sm:$0xff] }
 0x2f8   :  { %v1742_v46 = vmul.f32 %v5959_v40, %v1741_v37  ;;  %v1775_v54 = vsel %vm1772_vm4, %v1774_v58, %v1770_v56  ;;  %v8229_v37 = vld [vmem:[%s9727_s3 + $0x38] sm:$0xff] }
 0x2f9   :  { %v1783_v23 = vsub.f32 1.0, %v1775_v54  ;;  %v1787_v35 = vmul.f32 %v1785_v33, %v1775_v54 }
 0x2fa   :  { %v1743_v57 = vadd.f32 %v5959_v40, %v1742_v46  ;;  %v8259_v46 = vld [vmem:[%s9727_s3 + $0x8] sm:$0xff] }
 0x2fb   :  { %v5961_v48 = vpop.eup %5960 }
 0x2fc   :  { %v1662_v50 = vmul.f32 %v5961_v48, %v1661_v47  ;;  %v1747_v30 = vsel %vm1746_vm13, %v5959_v40, %v1743_v57  ;;  %v8253_v47 = vld [vmem:[%s9727_s3 + $0xa8] sm:$0xff]  ;;  %v8271_v48 = vld [vmem:[%s9727_s3 + $0xa0] sm:$0xff] }
 0x2fd   :  { %v1752_v63 = vsel %vm1749_vm0, %v1751_v55, %v1747_v30 }
 0x2fe   :  { %v8104_v27 = vadd.f32 %v1665_v53, %v1662_v50  ;;  %v1780_v1 = vmul.f32 %v1778_v16, %v1752_v63  ;;  %v8283_v50 = vld [vmem:[%s9727_s3 + $0x20] sm:$0xff] }
 0x300   :  { %v1790_v6 = vrot.slane %v8104_v27, 4  ;;  %v8115_v21 = vsel %vm2979_vm15, %v2978_v13, %v8104_v27  ;;  %v1781_v9 = vadd.f32 %v1780_v1, %v7981_v11 }
 0x302   :  { %5667 = vmatmul.msk.f32.vlgmr.msrb.gmra.mxu2 %vm1060_vm14, %v1790_v6  ;;  %5668 = vmatmul.msk.f32.vlgmr.msrb.gmra.mxu3 %vm1060_vm14, %v1790_v6  ;;  %5962 = vtanh.f32 %v1781_v9 }
 0x303   :  { %5669 = vmatmul.msk.f32.vlgmr.msra.gmra.mxu0 %vm1060_vm14, %v1790_v6  ;;  %2079 = vmatpush.msrb.mxu2 %v8133_v25 }
 0x304   :  { %2150 = vmatpush.msrb.mxu3 %v8139_v8  ;;  %2170 = vmatpush.msra.mxu0 %v8145_v0 }
 0x305   :  { %2080 = vmatpush.msrb.mxu2 %v8151_v15 }
 0x306   :  { %2151 = vmatpush.msrb.mxu3 %v8157_v7  ;;  %2171 = vmatpush.msra.mxu0 %v8163_v32 }
 0x307   :  { %2081 = vmatpush.msrb.mxu2 %v8169_v2 }
 0x308   :  { %2152 = vmatpush.msrb.mxu3 %v8175_v61  ;;  %2172 = vmatpush.msra.mxu0 %v8181_v10  ;;  %v5963_v31 = vpop.eup %5962 }
 0x309   :  { %2082 = vmatpush.msrb.mxu2 %v8188_v5  ;;  %v1784_v40 = vmul.f32 %v5963_v31, %v1783_v23 }
 0x30a   :  { %2153 = vmatpush.msrb.mxu3 %v8194_v36  ;;  %2173 = vmatpush.msra.mxu0 %v8200_v38 }
 0x30b   :  { %v8203_v39 = vadd.f32 %v1787_v35, %v1784_v40 }
 0x30d   :  { %v8206_v42 = vrot.slane %v8203_v39, 2 }
 0x30f   :  { %5672 = vmatmul.msk.f32.vlgmr.msra.gmra.mxu1 %vm1060_vm14, %v8206_v42  ;;  %5673 = vmatmul.msk.f32.vlgmr.msra.gmra.mxu2 %vm1060_vm14, %v8206_v42 }
 0x310   :  { %5674 = vmatmul.msk.f32.vlgmr.msra.gmra.mxu3 %vm1060_vm14, %v8206_v42  ;;  %2190 = vmatpush.msra.mxu1 %v8217_v44 }
 0x311   :  { %2271 = vmatpush.msra.mxu2 %v8223_v45  ;;  %2291 = vmatpush.msra.mxu3 %v8229_v37 }
 0x312   :  { %2191 = vmatpush.msra.mxu1 %v8235_v41 }
 0x313   :  { %2272 = vmatpush.msra.mxu2 %v8241_v43  ;;  %2292 = vmatpush.msra.mxu3 %v8247_v51 }
 0x314   :  { %2192 = vmatpush.msra.mxu1 %v8253_v47 }
 0x315   :  { %2273 = vmatpush.msra.mxu2 %v8259_v46  ;;  %2293 = vmatpush.msra.mxu3 %v8265_v52 }
 0x316   :  { %2193 = vmatpush.msra.mxu1 %v8271_v48 }
 0x317   :  { %2274 = vmatpush.msra.mxu2 %v8277_v49  ;;  %2294 = vmatpush.msra.mxu3 %v8283_v50 }
 0x380   :  { %v1850_v35 = vpop.f32.mrf.mxu0 }
 0x385   :  { %v1810_v53 = vpop.f32.mrf.mxu2  ;;  %v1830_v57 = vpop.f32.mrf.mxu3 }
 0x386   :  { %v1811_v55 = vadd.f32 %v7915_v3, %v1810_v53  ;;  %v1831_v16 = vadd.f32 %v7920_v12, %v1830_v57 }
 0x388   :  { %v1854_v30 = vrot.slane %v1811_v55, 2  ;;  %v1877_v29 = vrot.slane %v1831_v16, 2 }
 0x38a   :  { %v1856_v63 = vadd.f32 %v1854_v30, %v7925_v60  ;;  %v1879_v13 = vadd.f32 %v1877_v29, %v7927_v62 }
 0x38c   :  { %v5670_v20 = vmul.f32 -1.442695, %v1856_v63  ;;  %v5671_v1 = vmul.f32 -1.442695, %v1879_v13  ;;  %v1932_v6 = vpop.f32.mrf.mxu1 }
 0x38d   :  { %v1933_v19 = vadd.f32 %v7937_v59, %v1932_v6 }
 0x38e   :  { %5964 = vpow2.f32 %v5670_v20 }
 0x38f   :  { %5966 = vpow2.f32 %v5671_v1  ;;  %v1975_v14 = vadd.f32 %v1933_v19, %v7940_v28 }
 0x391   :  { %v5675_v9 = vmul.f32 -1.442695, %v1975_v14 }
 0x392   :  { %v1952_v3 = vpop.f32.mrf.mxu2 }
 0x393   :  { %5968 = vpow2.f32 %v5675_v9  ;;  %v1953_v54 = vadd.f32 %v7902_v18, %v1952_v3  ;;  %v1851_v18 = vadd.f32 %v7956_v34, %v1850_v35 }
 0x394   :  { %v5965_v56 = vpop.eup %5964 }
 0x395   :  { %v5967_v58 = vpop.eup %5966  ;;  %v1860_v12 = vadd.f32 1.0, %v5965_v56  ;;  %v1995_v62 = vadd.f32 %v1953_v54, %v7922_v26  ;;  %v1900_v14 = vrot.slane %v1851_v18, 2 }
 0x396   :  { %v1883_v60 = vadd.f32 1.0, %v5967_v58 }
 0x397   :  { %5970 = vrcp.f32 %v1860_v12  ;;  %v5676_v33 = vmul.f32 -1.442695, %v1995_v62  ;;  %v1872_v55 = vand.u32 2147483648, %v1860_v12  ;;  %v1870_v29 = vand.u32 2147483647, %v1860_v12 }
 0x398   :  { %5972 = vrcp.f32 %v1883_v60  ;;  %vm1866_vm6 = vweird.f32 %v1860_v12  ;;  %vm1889_vm10 = vweird.f32 %v1883_v60  ;;  %v1895_v54 = vand.u32 2147483648, %v1883_v60 }
 0x399   :  { %v5969_v23 = vpop.eup %5968  ;;  %5974 = vpow2.f32 %v5676_v33  ;;  %v1873_v6 = vor.u32 1.1754944e-38, %v1872_v55  ;;  %vm1871_vm8 = vcmp.eq.f32.partialorder %v1870_v29, 8.507059e+37  ;;  %v1972_v33 = vpop.f32.mrf.mxu3 }
 0x39a   :  { %v1979_v31 = vadd.f32 1.0, %v5969_v23  ;;  %v1893_v23 = vand.u32 2147483647, %v1883_v60  ;;  %v1973_v18 = vadd.f32 %v7971_v4, %v1972_v33 }
 0x39c   :  { %5976 = vrcp.f32 %v1979_v31  ;;  %v1991_v62 = vand.u32 2147483648, %v1979_v31  ;;  %vm1985_vm0 = vweird.f32 %v1979_v31  ;;  %vm1894_vm2 = vcmp.eq.f32.partialorder %v1893_v23, 8.507059e+37 }
 0x39d   :  { %v5971_v40 = vpop.eup %5970 }
 0x39e   :  { %v5973_v59 = vpop.eup %5972  ;;  %v1862_v28 = vmul.f32 %v5971_v40, %v1860_v12  ;;  %vm1867_vm5 = vweird.f32 %v5971_v40  ;;  %v1989_v12 = vand.u32 2147483647, %v1979_v31 }
 0x39f   :  { %v1885_v53 = vmul.f32 %v5973_v59, %v1883_v60  ;;  %v5975_v63 = vpop.eup %5974  ;;  %vm1868_vm7 = vmor %vm1866_vm6, %vm1867_vm5  ;;  %vm1890_vm9 = vweird.f32 %v5973_v59  ;;  %v1992_v60 = vor.u32 1.1754944e-38, %v1991_v62 }
 0x3a0   :  { %v1863_v57 = vsub.f32 1.0, %v1862_v28  ;;  %v1999_v1 = vadd.f32 1.0, %v5975_v63  ;;  %vm8295_vm13 = vmor %vm1889_vm10, %vm1890_vm9  ;;  %vm1990_vm3 = vcmp.eq.f32.partialorder %v1989_v12, 8.507059e+37  ;;  %v9778_v12 = vld [vmem:[#allocation5_spill] sm:$0xff] }
 0x3a1   :  { %v1886_v16 = vsub.f32 1.0, %v1885_v53 }
 0x3a2   :  { %v1864_v30 = vmul.f32 %v5971_v40, %v1863_v57  ;;  %v5977_v13 = vpop.eup %5976  ;;  %5978 = vrcp.f32 %v1999_v1  ;;  %vm2005_vm5 = vweird.f32 %v1999_v1 }
 0x3a3   :  { %v1887_v26 = vmul.f32 %v5973_v59, %v1886_v16  ;;  %v1981_v19 = vmul.f32 %v5977_v13, %v1979_v31  ;;  %vm1986_vm12 = vweird.f32 %v5977_v13  ;;  %v1896_v16 = vor.u32 1.1754944e-38, %v1895_v54 }
 0x3a4   :  { %v1865_v20 = vadd.f32 %v5971_v40, %v1864_v30  ;;  %vm1987_vm1 = vmor %vm1985_vm0, %vm1986_vm12  ;;  %v2009_v31 = vand.u32 2147483647, %v1999_v1 }
 0x3a5   :  { %v1888_v3 = vadd.f32 %v5973_v59, %v1887_v26  ;;  %v1982_v34 = vsub.f32 1.0, %v1981_v19  ;;  %v1907_v19 = vrot.slane %v8104_v27, 6 }
 0x3a6   :  { %v1869_v9 = vsel %vm1868_vm7, %v5971_v40, %v1865_v20  ;;  %vm2981_vm7 = vcmask 1045504  }
 0x3a7   :  { %v1874_v56 = vsel %vm1871_vm8, %v1873_v6, %v1869_v9  ;;  %v1983_v28 = vmul.f32 %v5977_v13, %v1982_v34  ;;  %v1892_v57 = vsel %vm8295_vm13, %v5973_v59, %v1888_v3  ;;  %v2011_v6 = vand.u32 2147483648, %v1999_v1 }
 0x3a8   :  { %v1902_v58 = vmul.f32 %v1900_v14, %v1874_v56  ;;  %v5979_v55 = vpop.eup %5978  ;;  %v1897_v26 = vsel %vm1894_vm2, %v1896_v16, %v1892_v57  ;;  %vm2010_vm8 = vcmp.eq.f32.partialorder %v2009_v31, 8.507059e+37 }
 0x3a9   :  { %v1984_v53 = vadd.f32 %v5977_v13, %v1983_v28  ;;  %v2001_v30 = vmul.f32 %v5979_v55, %v1999_v1  ;;  %vm2006_vm4 = vweird.f32 %v5979_v55  ;;  %v1905_v4 = vsub.f32 1.0, %v1897_v26 }
 0x3aa   :  { %v1903_v40 = vadd.f32 %v1902_v58, %v7974_v17  ;;  %vm2007_vm6 = vmor %vm2005_vm5, %vm2006_vm4  ;;  %v2012_v34 = vor.u32 1.1754944e-38, %v2011_v6 }
 0x3ab   :  { %v1988_v29 = vsel %vm1987_vm1, %v5977_v13, %v1984_v53  ;;  %v2002_v20 = vsub.f32 1.0, %v2001_v30  ;;  %v1909_v13 = vmul.f32 %v1907_v19, %v1897_v26  ;;  %v9779_v53 = vld [vmem:[#allocation8_spill] sm:$0xff]  ;;  %v9782_v30 = vld [vmem:[#allocation7_spill] sm:$0xff] }
 0x3ac   :  { %5980 = vtanh.f32 %v1903_v40  ;;  %v1993_v63 = vsel %vm1990_vm3, %v1992_v60, %v1988_v29  ;;  %v6257_v40 = vld [vmem:[%s9726_s2 + $0x1] ss:$0 sm:$0xff] }
 0x3ad   :  { %v2015_v17 = vmul.f32 %v1993_v63, %v1973_v18  ;;  %v2003_v59 = vmul.f32 %v5979_v55, %v2002_v20  ;;  %v298_v57 = vadd.f32 %v6257_v40, %v9779_v53  ;;  %v9781_v18 = vld [vmem:[#allocation13_spill] sm:$0xff]  ;;  %v9783_v63 = vld [vmem:[#allocation11_spill] sm:$0xff]  ;;  %v9790_v53 = vld [vmem:[#allocation20_spill] sm:$0xff] }
 0x3ae   :  { %v6258_v20 = vld [vmem:[%s9726_s2 + $0x4] ss:$0 sm:$0xff] }
 0x3af   :  { %v2016_v14 = vadd.f32 %v2015_v17, %v7981_v11  ;;  %v2004_v56 = vadd.f32 %v5979_v55, %v2003_v59  ;;  %v321_v60 = vadd.f32 %v9781_v18, %v298_v57  ;;  %v9784_v17 = vld [vmem:[#allocation21_spill] sm:$0xff]  ;;  %v9785_v59 = vld [vmem:[#allocation6_spill] sm:$0xff] }
 0x3b0   :  { %v781_v6 = vadd.f32 %v6258_v20, %v9784_v17  ;;  %v8406_v17 = vld [vmem:[%s9728_s4 + $0x3] ss:$0 sm:$0xff] }
 0x3b1   :  { %5982 = vtanh.f32 %v2016_v14  ;;  %v2008_v58 = vsel %vm2007_vm6, %v5979_v55, %v2004_v56  ;;  %v9780_v55 = vld [vmem:[#allocation9_spill] sm:$0xff]  ;;  %v344_v26 = vadd.f32 %v9783_v63, %v321_v60  ;;  %v8375_v56 = vld [vmem:[%s9728_s4] ss:$0 sm:$0xff]  ;;  %v9791_v60 = vld [vmem:[#allocation22_spill] sm:$0xff] }
 0x3b2   :  { %v5981_v9 = vpop.eup %5980  ;;  %v2013_v62 = vsel %vm2010_vm8, %v2012_v34, %v2008_v58  ;;  %v9787_v58 = vld [vmem:[#allocation25_spill] sm:$0xff] }
 0x3b3   :  { %v1906_v3 = vmul.f32 %v5981_v9, %v1905_v4  ;;  %v2018_v11 = vsub.f32 1.0, %v2013_v62  ;;  %v2021_v28 = vmul.f32 %v2013_v62, %v8206_v42  ;;  %v6256_v42 = vld [vmem:[%s9726_s2] ss:$0 sm:$0xff]  ;;  %v9786_v4 = vld [vmem:[#allocation10_spill] sm:$0xff] }
 0x3b4   :  { %v136_v35 = vadd.f32 %v6256_v42, %v9778_v12  ;;  %v8370_v9 = vadd.f32 %v9786_v4, %v344_v26  ;;  %v9792_v26 = vld [vmem:[#allocation18_spill] sm:$0xff] }
 0x3b5   :  { %v1910_v54 = vadd.f32 %v1909_v13, %v1906_v3  ;;  %v8381_v13 = vld [vmem:[%s9728_s4 + $0x1] ss:$0 sm:$0xff] }
 0x3b6   :  { %v159_v16 = vadd.f32 %v9780_v55, %v136_v35  ;;  %v9789_v35 = vld [vmem:[#allocation23_spill] sm:$0xff] }
 0x3b7   :  { %v8305_v23 = vrot.slane %v1910_v54, 6  ;;  %v8309_v27 = vsel %vm2981_vm7, %v8115_v21, %v1910_v54  ;;  %v5983_v33 = vpop.eup %5982  ;;  %v804_v54 = vadd.f32 %v9787_v58, %v781_v6 }
 0x3b8   :  { %9777 = vst [vmem:[#allocation30_spill] sm:$0xff] %v8309_v27  ;;  %v2019_v1 = vmul.f32 %v5983_v33, %v2018_v11  ;;  %v182_v29 = vadd.f32 %v9782_v30, %v159_v16  ;;  %v6261_v33 = vld [vmem:[%s9726_s2 + $0x3] ss:$0 sm:$0xff]  ;;  %v8396_v16 = vld [vmem:[%s9728_s4 + $0x4] ss:$0 sm:$0xff] }
 0x3b9   :  { %5677 = vmatmul.msk.f32.vlgmr.msrb.gmra.mxu0 %vm1060_vm14, %v8305_v23  ;;  %5678 = vmatmul.msk.f32.vlgmr.msrb.gmra.mxu1 %vm1060_vm14, %v8305_v23  ;;  %v827_v40 = vadd.f32 %v9789_v35, %v804_v54  ;;  %v9793_v54 = vld [vmem:[#allocation17_spill] sm:$0xff] }
 0x3ba   :  { %5679 = vmatmul.msk.f32.vlgmr.msrb.gmra.mxu2 %vm1060_vm14, %v8305_v23  ;;  %2311 = vmatpush.msrb.mxu0 %v8133_v25  ;;  %v8321_v21 = vadd.f32 %v2021_v28, %v2019_v1  ;;  %v8367_v14 = vadd.f32 %v9785_v59, %v182_v29  ;;  %v9788_v1 = vld [vmem:[#allocation16_spill] sm:$0xff] }
 0x3bb   :  { %2393 = vmatpush.msrb.mxu1 %v8139_v8  ;;  %2413 = vmatpush.msrb.mxu2 %v8145_v0  ;;  %v619_v28 = vadd.f32 %v6261_v33, %v9788_v1  ;;  %v8400_v30 = vadd.f32 %v9791_v60, %v827_v40  ;;  %v6264_v1 = vld [vmem:[%s9726_s2 + $0x2] ss:$0 sm:$0xff] }
 0x3bc   :  { %2312 = vmatpush.msrb.mxu0 %v8151_v15  ;;  %5682 = vmatmul.msk.f32.vlgmr.msrb.gmra.mxu3 %vm1060_vm14, %v8321_v21 }
 0x3bd   :  { %2394 = vmatpush.msrb.mxu1 %v8157_v7  ;;  %2414 = vmatpush.msrb.mxu2 %v8163_v32  ;;  %v642_v57 = vadd.f32 %v9790_v53, %v619_v28  ;;  %v9794_v28 = vld [vmem:[#allocation12_spill] sm:$0xff] }
 0x3be   :  { %2313 = vmatpush.msrb.mxu0 %v8169_v2  ;;  %2433 = vmatpush.msrb.mxu3 %v8217_v44 }
 0x3bf   :  { %2395 = vmatpush.msrb.mxu1 %v8175_v61  ;;  %2415 = vmatpush.msrb.mxu2 %v8181_v10  ;;  %v665_v20 = vadd.f32 %v9792_v26, %v642_v57 }
 0x3c0   :  { %2314 = vmatpush.msrb.mxu0 %v8188_v5  ;;  %2434 = vmatpush.msrb.mxu3 %v8235_v41 }
 0x3c1   :  { %5683 = vmatmul.msk.f32.vlgmr.msra.gmra.mxu0 %vm1060_vm14, %v8321_v21  ;;  %5684 = vmatmul.msk.f32.vlgmr.msra.gmra.mxu1 %vm1060_vm14, %v8321_v21 }
 0x3c2   :  { %2396 = vmatpush.msrb.mxu1 %v8194_v36  ;;  %2416 = vmatpush.msrb.mxu2 %v8200_v38 }
 0x3c3   :  { %2515 = vmatpush.msra.mxu0 %v8223_v45  ;;  %2435 = vmatpush.msrb.mxu3 %v8253_v47 }
 0x3c4   :  { %2535 = vmatpush.msra.mxu1 %v8229_v37 }
 0x3c5   :  { %2516 = vmatpush.msra.mxu0 %v8241_v43  ;;  %2436 = vmatpush.msrb.mxu3 %v8271_v48 }
 0x3c6   :  { %2536 = vmatpush.msra.mxu1 %v8247_v51 }
 0x3c7   :  { %2517 = vmatpush.msra.mxu0 %v8259_v46 }
 0x3c8   :  { %2537 = vmatpush.msra.mxu1 %v8265_v52 }
 0x3c9   :  { %2518 = vmatpush.msra.mxu0 %v8277_v49 }
 0x3ca   :  { %2538 = vmatpush.msra.mxu1 %v8283_v50 }
 0x436   :  { %v2044_v31 = vpop.f32.mrf.mxu0  ;;  %v2064_v19 = vpop.f32.mrf.mxu1 }
 0x437   :  { %v2045_v3 = vadd.f32 %v8375_v56, %v2044_v31  ;;  %v2065_v34 = vadd.f32 %v8381_v13, %v2064_v19 }
 0x439   :  { %v2087_v62 = vadd.f32 %v2045_v3, %v8367_v14  ;;  %v2107_v11 = vadd.f32 %v2065_v34, %v8370_v9 }
 0x43b   :  { %v5680_v42 = vmul.f32 -1.442695, %v2087_v62  ;;  %v5681_v12 = vmul.f32 -1.442695, %v2107_v11  ;;  %v8411_v62 = vadd.f32 %v9793_v54, %v665_v20 }
 0x43d   :  { %5984 = vpow2.f32 %v5680_v42  ;;  %v460_v42 = vadd.f32 %v6264_v1, %v9794_v28  ;;  %v8426_v1 = vld [vmem:[%s9728_s4 + $0x2] ss:$0 sm:$0xff] }
 0x43e   :  { %5986 = vpow2.f32 %v5681_v12  ;;  %v2175_v55 = vpop.f32.mrf.mxu0 }
 0x43f   :  { %v2176_v18 = vadd.f32 %v8396_v16, %v2175_v55  ;;  %v2155_v29 = vpop.f32.mrf.mxu3  ;;  %v9795_v55 = vld [vmem:[#allocation19_spill] sm:$0xff] }
 0x440   :  { %v2156_v6 = vadd.f32 %v8406_v17, %v2155_v29 }
 0x441   :  { %v2222_v63 = vrot.slane %v2176_v18, 2  ;;  %v483_v18 = vadd.f32 %v9795_v55, %v460_v42  ;;  %v9797_v55 = vld [vmem:[#allocation14_spill] sm:$0xff] }
 0x442   :  { %v2199_v3 = vrot.slane %v2156_v6, 2 }
 0x443   :  { %v5985_v31 = vpop.eup %5984  ;;  %v2224_v19 = vadd.f32 %v2222_v63, %v8400_v30 }
 0x444   :  { %v5987_v59 = vpop.eup %5986  ;;  %v2091_v4 = vadd.f32 1.0, %v5985_v31  ;;  %v2201_v11 = vadd.f32 %v2199_v3, %v8411_v62  ;;  %v9796_v3 = vld [vmem:[#allocation15_spill] sm:$0xff] }
 0x445   :  { %v2111_v34 = vadd.f32 1.0, %v5987_v59  ;;  %v5686_v58 = vmul.f32 -1.442695, %v2224_v19  ;;  %v2084_v59 = vpop.f32.mrf.mxu2 }
 0x446   :  { %5988 = vrcp.f32 %v2091_v4  ;;  %v5685_v33 = vmul.f32 -1.442695, %v2201_v11  ;;  %v2103_v26 = vand.u32 2147483648, %v2091_v4  ;;  %v2101_v6 = vand.u32 2147483647, %v2091_v4 }
 0x447   :  { %5990 = vrcp.f32 %v2111_v34  ;;  %vm2097_vm10 = vweird.f32 %v2091_v4  ;;  %v2085_v28 = vadd.f32 %v8426_v1, %v2084_v59  ;;  %vm2117_vm1 = vweird.f32 %v2111_v34 }
 0x448   :  { %5992 = vpow2.f32 %v5686_v58  ;;  %v506_v58 = vadd.f32 %v9796_v3, %v483_v18  ;;  %vm2102_vm13 = vcmp.eq.f32.partialorder %v2101_v6, 8.507059e+37  ;;  %v2123_v18 = vand.u32 2147483648, %v2111_v34 }
 0x449   :  { %5994 = vpow2.f32 %v5685_v33  ;;  %v2104_v33 = vor.u32 1.1754944e-38, %v2103_v26  ;;  %v6266_v26 = vld [vmem:[%s9726_s2 + $0x5] ss:$0 sm:$0xff] }
 0x44a   :  { %v2124_v3 = vor.u32 1.1754944e-38, %v2123_v18 }
 0x44c   :  { %v5989_v12 = vpop.eup %5988 }
 0x44d   :  { %v5991_v35 = vpop.eup %5990  ;;  %v2093_v40 = vmul.f32 %v5989_v12, %v2091_v4  ;;  %vm2098_vm9 = vweird.f32 %v5989_v12  ;;  %v8432_v4 = vadd.f32 %v9797_v55, %v506_v58  ;;  %v2195_v58 = vpop.f32.mrf.mxu1  ;;  %v8445_v55 = vld [vmem:[%s9728_s4 + $0x5] ss:$0 sm:$0xff] }
 0x44e   :  { %v5993_v53 = vpop.eup %5992  ;;  %v2113_v57 = vmul.f32 %v5991_v35, %v2111_v34  ;;  %vm2099_vm12 = vmor %vm2097_vm10, %vm2098_vm9  ;;  %vm2118_vm0 = vweird.f32 %v5991_v35 }
 0x44f   :  { %v2094_v60 = vsub.f32 1.0, %v2093_v40  ;;  %v8419_v29 = vadd.f32 1.0, %v5993_v53  ;;  %v5995_v31 = vpop.eup %5994  ;;  %vm2119_vm2 = vmor %vm2117_vm1, %vm2118_vm0 }
 0x450   :  { %v2114_v63 = vsub.f32 1.0, %v2113_v57  ;;  %v2205_v11 = vadd.f32 1.0, %v5995_v31 }
 0x451   :  { %v2095_v20 = vmul.f32 %v5989_v12, %v2094_v60  ;;  %5996 = vrcp.f32 %v8419_v29  ;;  %vm2234_vm10 = vweird.f32 %v8419_v29 }
 0x452   :  { %v2115_v19 = vmul.f32 %v5991_v35, %v2114_v63  ;;  %5998 = vrcp.f32 %v2205_v11  ;;  %v2121_v63 = vand.u32 2147483647, %v2111_v34  ;;  %v9799_v34 = vld [vmem:[#allocation28_spill] sm:$0xff]  ;;  %v2215_v18 = vand.u32 2147483647, %v2205_v11 }
 0x453   :  { %v2096_v54 = vadd.f32 %v5989_v12, %v2095_v20  ;;  %v9798_v20 = vld [vmem:[#allocation24_spill] sm:$0xff]  ;;  %vm2211_vm5 = vweird.f32 %v2205_v11 }
 0x454   :  { %v2116_v53 = vadd.f32 %v5991_v35, %v2115_v19  ;;  %vm2122_vm3 = vcmp.eq.f32.partialorder %v2121_v63, 8.507059e+37  ;;  %vm2216_vm8 = vcmp.eq.f32.partialorder %v2215_v18, 8.507059e+37 }
 0x455   :  { %v2100_v42 = vsel %vm2099_vm12, %v5989_v12, %v2096_v54  ;;  %v943_v12 = vadd.f32 %v6266_v26, %v9798_v20  ;;  %v2217_v26 = vand.u32 2147483648, %v2205_v11  ;;  %v9800_v20 = vld [vmem:[#allocation26_spill] sm:$0xff] }
 0x456   :  { %v2105_v40 = vsel %vm2102_vm13, %v2104_v33, %v2100_v42  ;;  %v2120_v19 = vsel %vm2119_vm2, %v5991_v35, %v2116_v53 }
 0x457   :  { %v8429_v57 = vpop.eup %5996  ;;  %v2127_v60 = vmul.f32 %v2105_v40, %v2085_v28  ;;  %v966_v33 = vadd.f32 %v9799_v34, %v943_v12  ;;  %v2125_v28 = vsel %vm2122_vm3, %v2124_v3, %v2120_v19 }
 0x458   :  { %v2230_v31 = vmul.f32 %v8429_v57, %v8419_v29  ;;  %v5999_v59 = vpop.eup %5998  ;;  %v2130_v35 = vsub.f32 1.0, %v2125_v28  ;;  %v2133_v3 = vmul.f32 %v2125_v28, %v8305_v23  ;;  %vm2235_vm9 = vweird.f32 %v8429_v57 }
 0x459   :  { %v2128_v6 = vadd.f32 %v2127_v60, %v8432_v4  ;;  %v2207_v54 = vmul.f32 %v5999_v59, %v2205_v11  ;;  %v2196_v60 = vadd.f32 %v8445_v55, %v2195_v58  ;;  %vm2212_vm4 = vweird.f32 %v5999_v59  ;;  %vm2236_vm12 = vmor %vm2234_vm10, %vm2235_vm9 }
 0x45a   :  { %v2231_v42 = vsub.f32 1.0, %v2230_v31  ;;  %vm2213_vm6 = vmor %vm2211_vm5, %vm2212_vm4  ;;  %v2238_v23 = vand.u32 2147483647, %v8419_v29 }
 0x45b   :  { %6000 = vtanh.f32 %v2128_v6  ;;  %v2208_v40 = vsub.f32 1.0, %v2207_v54  ;;  %v989_v6 = vadd.f32 %v9800_v20, %v966_v33  ;;  %v2218_v54 = vor.u32 1.1754944e-38, %v2217_v26  ;;  %v9801_v33 = vld [vmem:[#allocation27_spill] sm:$0xff] }
 0x45c   :  { %v2232_v12 = vmul.f32 %v8429_v57, %v2231_v42  ;;  %v2245_v58 = vrot.slane %v2196_v60, 2  ;;  %v2240_v42 = vand.u32 2147483648, %v8419_v29  ;;  %vm2239_vm13 = vcmp.eq.f32.partialorder %v2238_v23, 8.507059e+37 }
 0x45d   :  { %v2209_v53 = vmul.f32 %v5999_v59, %v2208_v40  ;;  %v8456_v20 = vadd.f32 %v9801_v33, %v989_v6 }
 0x45e   :  { %v2233_v24 = vadd.f32 %v8429_v57, %v2232_v12  ;;  %v2241_v60 = vor.u32 1.1754944e-38, %v2240_v42 }
 0x45f   :  { %v2210_v31 = vadd.f32 %v5999_v59, %v2209_v53 }
 0x460   :  { %v2237_v28 = vsel %vm2236_vm12, %v8429_v57, %v2233_v24  ;;  %v2252_v57 = vrot.slane %v8321_v21, 2 }
 0x461   :  { %v6001_v63 = vpop.eup %6000  ;;  %v2214_v34 = vsel %vm2213_vm6, %v5999_v59, %v2210_v31  ;;  %v2242_v29 = vsel %vm2239_vm13, %v2241_v60, %v2237_v28 }
 0x462   :  { %v2131_v19 = vmul.f32 %v6001_v63, %v2130_v35  ;;  %v2219_v40 = vsel %vm2216_vm8, %v2218_v54, %v2214_v34  ;;  %v2250_v24 = vsub.f32 1.0, %v2242_v29  ;;  %v2254_v53 = vmul.f32 %v2252_v57, %v2242_v29 }
 0x463   :  { %v2247_v11 = vmul.f32 %v2245_v58, %v2219_v40 }
 0x464   :  { %v8451_v27 = vadd.f32 %v2133_v3, %v2131_v19 }
 0x465   :  { %v2248_v59 = vadd.f32 %v2247_v11, %v8456_v20 }
 0x466   :  { %5687 = vmatmul.msk.f32.vlgmr.msra.gmra.mxu2 %vm1060_vm14, %v8451_v27  ;;  %5688 = vmatmul.msk.f32.vlgmr.msra.gmra.mxu3 %vm1060_vm14, %v8451_v27 }
 0x467   :  { %5689 = vmatmul.msk.f32.vlgmr.msrb.gmra.mxu0 %vm1060_vm14, %v8451_v27  ;;  %2555 = vmatpush.msra.mxu2 %v8133_v25  ;;  %6002 = vtanh.f32 %v2248_v59 }
 0x468   :  { %2637 = vmatpush.msra.mxu3 %v8139_v8  ;;  %2657 = vmatpush.msrb.mxu0 %v8145_v0 }
 0x469   :  { %2556 = vmatpush.msra.mxu2 %v8151_v15 }
 0x46a   :  { %2638 = vmatpush.msra.mxu3 %v8157_v7  ;;  %2658 = vmatpush.msrb.mxu0 %v8163_v32 }
 0x46b   :  { %2557 = vmatpush.msra.mxu2 %v8169_v2 }
 0x46c   :  { %2639 = vmatpush.msra.mxu3 %v8175_v61  ;;  %2659 = vmatpush.msrb.mxu0 %v8181_v10 }
 0x46d   :  { %2558 = vmatpush.msra.mxu2 %v8188_v5  ;;  %v6003_v26 = vpop.eup %6002 }
 0x46e   :  { %2640 = vmatpush.msra.mxu3 %v8194_v36  ;;  %2660 = vmatpush.msrb.mxu0 %v8200_v38  ;;  %v2251_v35 = vmul.f32 %v6003_v26, %v2250_v24 }
 0x470   :  { %v8482_v18 = vadd.f32 %v2254_v53, %v2251_v35 }
 0x472   :  { %v2378_v63 = vrot.slane %v8482_v18, 6 }
 0x474   :  { %5692 = vmatmul.msk.f32.vlgmr.msrb.gmra.mxu1 %vm1060_vm14, %v2378_v63  ;;  %5693 = vmatmul.msk.f32.vlgmr.msrb.gmra.mxu2 %vm1060_vm14, %v2378_v63 }
 0x475   :  { %5694 = vmatmul.msk.f32.vlgmr.msrb.gmra.mxu3 %vm1060_vm14, %v2378_v63  ;;  %2677 = vmatpush.msrb.mxu1 %v8217_v44 }
 0x476   :  { %2759 = vmatpush.msrb.mxu2 %v8223_v45  ;;  %2779 = vmatpush.msrb.mxu3 %v8229_v37 }
 0x477   :  { %2678 = vmatpush.msrb.mxu1 %v8235_v41 }
 0x478   :  { %2760 = vmatpush.msrb.mxu2 %v8241_v43  ;;  %2780 = vmatpush.msrb.mxu3 %v8247_v51 }
 0x479   :  { %2679 = vmatpush.msrb.mxu1 %v8253_v47 }
 0x47a   :  { %2761 = vmatpush.msrb.mxu2 %v8259_v46  ;;  %2781 = vmatpush.msrb.mxu3 %v8265_v52 }
 0x47b   :  { %2680 = vmatpush.msrb.mxu1 %v8271_v48 }
 0x47c   :  { %2762 = vmatpush.msrb.mxu2 %v8277_v49  ;;  %2782 = vmatpush.msrb.mxu3 %v8283_v50 }
 0x4e4   :  { %v2316_v24 = vpop.f32.mrf.mxu0 }
 0x4e9   :  { %v2276_v45 = vpop.f32.mrf.mxu2  ;;  %v2296_v37 = vpop.f32.mrf.mxu3 }
 0x4ea   :  { %v2277_v6 = vadd.f32 %v8375_v56, %v2276_v45  ;;  %v2297_v43 = vadd.f32 %v8381_v13, %v2296_v37  ;;  %v2317_v45 = vadd.f32 %v8426_v1, %v2316_v24 }
 0x4ec   :  { %v2320_v12 = vrot.slane %v2277_v6, 6  ;;  %v2343_v51 = vrot.slane %v2297_v43, 6 }
 0x4ee   :  { %v2322_v19 = vadd.f32 %v2320_v12, %v8367_v14  ;;  %v2345_v46 = vadd.f32 %v2343_v51, %v8370_v9 }
 0x4f0   :  { %v5690_v31 = vmul.f32 -1.442695, %v2322_v19  ;;  %v5691_v52 = vmul.f32 -1.442695, %v2345_v46 }
 0x4f1   :  { %v2398_v3 = vpop.f32.mrf.mxu1 }
 0x4f2   :  { %6004 = vpow2.f32 %v5690_v31  ;;  %v2399_v49 = vadd.f32 %v8406_v17, %v2398_v3 }
 0x4f3   :  { %6006 = vpow2.f32 %v5691_v52  ;;  %v2366_v52 = vrot.slane %v2317_v45, 6 }
 0x4f4   :  { %v2442_v50 = vrot.slane %v2399_v49, 4 }
 0x4f6   :  { %v2444_v40 = vadd.f32 %v2442_v50, %v8411_v62 }
 0x4f7   :  { %v2418_v42 = vpop.f32.mrf.mxu2 }
 0x4f8   :  { %v6005_v54 = vpop.eup %6004  ;;  %v5695_v11 = vmul.f32 -1.442695, %v2444_v40  ;;  %v2419_v23 = vadd.f32 %v8396_v16, %v2418_v42 }
 0x4f9   :  { %v6007_v34 = vpop.eup %6006  ;;  %v2326_v58 = vadd.f32 1.0, %v6005_v54 }
 0x4fa   :  { %v2349_v33 = vadd.f32 1.0, %v6007_v34  ;;  %v2465_v59 = vrot.slane %v2419_v23, 4 }
 0x4fb   :  { %6008 = vrcp.f32 %v2326_v58  ;;  %v2338_v37 = vand.u32 2147483648, %v2326_v58  ;;  %v2336_v12 = vand.u32 2147483647, %v2326_v58  ;;  %vm2332_vm1 = vweird.f32 %v2326_v58 }
 0x4fc   :  { %6010 = vrcp.f32 %v2349_v33  ;;  %v2467_v60 = vadd.f32 %v2465_v59, %v8400_v30  ;;  %v2361_v40 = vand.u32 2147483648, %v2349_v33  ;;  %vm2355_vm5 = vweird.f32 %v2349_v33 }
 0x4fd   :  { %6012 = vpow2.f32 %v5695_v11  ;;  %v2339_v31 = vor.u32 1.1754944e-38, %v2338_v37  ;;  %vm2337_vm3 = vcmp.eq.f32.partialorder %v2336_v12, 8.507059e+37  ;;  %v2359_v11 = vand.u32 2147483647, %v2349_v33 }
 0x4fe   :  { %v5696_v35 = vmul.f32 -1.442695, %v2467_v60  ;;  %v2438_v60 = vpop.f32.mrf.mxu3  ;;  %v2373_v37 = vrot.slane %v8451_v27, 6 }
 0x4ff   :  { %vm2360_vm8 = vcmp.eq.f32.partialorder %v2359_v11, 8.507059e+37 }
 0x500   :  { %6014 = vpow2.f32 %v5696_v35 }
 0x501   :  { %v6009_v28 = vpop.eup %6008 }
 0x502   :  { %v6011_v29 = vpop.eup %6010  ;;  %v2328_v57 = vmul.f32 %v6009_v28, %v2326_v58  ;;  %vm2333_vm0 = vweird.f32 %v6009_v28 }
 0x503   :  { %v2351_v26 = vmul.f32 %v6011_v29, %v2349_v33  ;;  %v6013_v63 = vpop.eup %6012  ;;  %vm2334_vm2 = vmor %vm2332_vm1, %vm2333_vm0  ;;  %vm2356_vm4 = vweird.f32 %v6011_v29 }
 0x504   :  { %v2329_v53 = vsub.f32 1.0, %v2328_v57  ;;  %v2448_v51 = vadd.f32 1.0, %v6013_v63  ;;  %vm2357_vm6 = vmor %vm2355_vm5, %vm2356_vm4 }
 0x505   :  { %v2352_v6 = vsub.f32 1.0, %v2351_v26  ;;  %v2439_v26 = vadd.f32 %v8445_v55, %v2438_v60 }
 0x506   :  { %v2330_v43 = vmul.f32 %v6009_v28, %v2329_v53  ;;  %6016 = vrcp.f32 %v2448_v51  ;;  %v6015_v49 = vpop.eup %6014  ;;  %v2458_v35 = vand.u32 2147483647, %v2448_v51  ;;  %v2460_v53 = vand.u32 2147483648, %v2448_v51 }
 0x507   :  { %v2353_v19 = vmul.f32 %v6011_v29, %v2352_v6  ;;  %v2471_v42 = vadd.f32 1.0, %v6015_v49  ;;  %vm2454_vm10 = vweird.f32 %v2448_v51 }
 0x508   :  { %v2331_v46 = vadd.f32 %v6009_v28, %v2330_v43  ;;  %vm2459_vm13 = vcmp.eq.f32.partialorder %v2458_v35, 8.507059e+37 }
 0x509   :  { %v2354_v54 = vadd.f32 %v6011_v29, %v2353_v19  ;;  %6018 = vrcp.f32 %v2471_v42  ;;  %v2461_v19 = vor.u32 1.1754944e-38, %v2460_v53  ;;  %vm2477_vm1 = vweird.f32 %v2471_v42 }
 0x50a   :  { %v2335_v3 = vsel %vm2334_vm2, %v6009_v28, %v2331_v46  ;;  %v2362_v28 = vor.u32 1.1754944e-38, %v2361_v40  ;;  %v2488_v46 = vrot.slane %v2439_v26, 4 }
 0x50b   :  { %v2340_v50 = vsel %vm2337_vm3, %v2339_v31, %v2335_v3  ;;  %v2358_v58 = vsel %vm2357_vm6, %v6011_v29, %v2354_v54 }
 0x50c   :  { %v2368_v34 = vmul.f32 %v2366_v52, %v2340_v50  ;;  %v6017_v23 = vpop.eup %6016  ;;  %v2363_v63 = vsel %vm2360_vm8, %v2362_v28, %v2358_v58  ;;  %v2483_v50 = vand.u32 2147483648, %v2471_v42 }
 0x50d   :  { %v2450_v24 = vmul.f32 %v6017_v23, %v2448_v51  ;;  %vm2455_vm9 = vweird.f32 %v6017_v23  ;;  %v2371_v29 = vsub.f32 1.0, %v2363_v63  ;;  %v2375_v49 = vmul.f32 %v2373_v37, %v2363_v63 }
 0x50e   :  { %v2369_v59 = vadd.f32 %v2368_v34, %v8432_v4  ;;  %vm2456_vm12 = vmor %vm2454_vm10, %vm2455_vm9 }
 0x50f   :  { %v2451_v57 = vsub.f32 1.0, %v2450_v24  ;;  %v6019_v33 = vpop.eup %6018  ;;  %v2484_v24 = vor.u32 1.1754944e-38, %v2483_v50 }
 0x510   :  { %6020 = vtanh.f32 %v2369_v59  ;;  %v2473_v6 = vmul.f32 %v6019_v33, %v2471_v42  ;;  %vm2478_vm0 = vweird.f32 %v6019_v33  ;;  %v2481_v59 = vand.u32 2147483647, %v2471_v42 }
 0x511   :  { %v2452_v45 = vmul.f32 %v6017_v23, %v2451_v57  ;;  %vm2479_vm2 = vmor %vm2477_vm1, %vm2478_vm0  ;;  %v2495_v57 = vrot.slane %v8482_v18, 2 }
 0x512   :  { %v2474_v31 = vsub.f32 1.0, %v2473_v6  ;;  %vm2482_vm3 = vcmp.eq.f32.partialorder %v2481_v59, 8.507059e+37 }
 0x513   :  { %v2453_v43 = vadd.f32 %v6017_v23, %v2452_v45 }
 0x514   :  { %v2475_v34 = vmul.f32 %v6019_v33, %v2474_v31 }
 0x515   :  { %v2457_v52 = vsel %vm2456_vm12, %v6017_v23, %v2453_v43 }
 0x516   :  { %v6021_v12 = vpop.eup %6020  ;;  %v2462_v54 = vsel %vm2459_vm13, %v2461_v19, %v2457_v52  ;;  %v2476_v51 = vadd.f32 %v6019_v33, %v2475_v34 }
 0x517   :  { %v2372_v3 = vmul.f32 %v6021_v12, %v2371_v29  ;;  %v2490_v40 = vmul.f32 %v2488_v46, %v2462_v54 }
 0x518   :  { %v2480_v28 = vsel %vm2479_vm2, %v6019_v33, %v2476_v51 }
 0x519   :  { %v8512_v11 = vadd.f32 %v2375_v49, %v2372_v3  ;;  %v2491_v58 = vadd.f32 %v2490_v40, %v8456_v20  ;;  %v2485_v23 = vsel %vm2482_vm3, %v2484_v24, %v2480_v28 }
 0x51a   :  { %v2493_v42 = vsub.f32 1.0, %v2485_v23 }
 0x51b   :  { %v2500_v60 = vrot.slane %v8512_v11, 2  ;;  %6022 = vtanh.f32 %v2491_v58 }
 0x51d   :  { %5697 = vmatmul.msk.f32.vlgmr.msra.gmra.mxu0 %vm1060_vm14, %v2500_v60  ;;  %5698 = vmatmul.msk.f32.vlgmr.msra.gmra.mxu1 %vm1060_vm14, %v2500_v60 }
 0x51e   :  { %5699 = vmatmul.msk.f32.vlgmr.msra.gmra.mxu2 %vm1060_vm14, %v2500_v60  ;;  %2799 = vmatpush.msra.mxu0 %v8133_v25 }
 0x51f   :  { %2881 = vmatpush.msra.mxu1 %v8139_v8  ;;  %2901 = vmatpush.msra.mxu2 %v8145_v0  ;;  %v2497_v8 = vmul.f32 %v2495_v57, %v2485_v23 }
 0x520   :  { %2800 = vmatpush.msra.mxu0 %v8151_v15 }
 0x521   :  { %2882 = vmatpush.msra.mxu1 %v8157_v7  ;;  %2902 = vmatpush.msra.mxu2 %v8163_v32  ;;  %v6023_v26 = vpop.eup %6022 }
 0x522   :  { %2801 = vmatpush.msra.mxu0 %v8169_v2  ;;  %v2494_v25 = vmul.f32 %v6023_v26, %v2493_v42 }
 0x523   :  { %2883 = vmatpush.msra.mxu1 %v8175_v61  ;;  %2903 = vmatpush.msra.mxu2 %v8181_v10 }
 0x524   :  { %2802 = vmatpush.msra.mxu0 %v8188_v5  ;;  %v8532_v0 = vadd.f32 %v2497_v8, %v2494_v25 }
 0x525   :  { %2884 = vmatpush.msra.mxu1 %v8194_v36  ;;  %2904 = vmatpush.msra.mxu2 %v8200_v38 }
 0x526   :  { %v2622_v15 = vrot.slane %v8532_v0, 4 }
 0x528   :  { %5702 = vmatmul.msk.f32.vlgmr.msra.gmra.mxu3 %vm1060_vm14, %v2622_v15  ;;  %5703 = vmatmul.msk.f32.vlgmr.msrb.gmra.mxu0 %vm1060_vm14, %v2622_v15 }
 0x529   :  { %5704 = vmatmul.msk.f32.vlgmr.msrb.gmra.mxu1 %vm1060_vm14, %v2622_v15  ;;  %2921 = vmatpush.msra.mxu3 %v8217_v44 }
 0x52b   :  { %2922 = vmatpush.msra.mxu3 %v8235_v41 }
 0x52d   :  { %2923 = vmatpush.msra.mxu3 %v8253_v47 }
 0x52f   :  { %2924 = vmatpush.msra.mxu3 %v8271_v48 }
 0x59a   :  { %v2520_v7 = vpop.f32.mrf.mxu0  ;;  %v2540_v32 = vpop.f32.mrf.mxu1 }
 0x59b   :  { %v2521_v2 = vadd.f32 %v8375_v56, %v2520_v7  ;;  %v2541_v61 = vadd.f32 %v8381_v13, %v2540_v32 }
 0x59d   :  { %v2564_v10 = vrot.slane %v2521_v2, 4  ;;  %v2587_v5 = vrot.slane %v2541_v61, 4 }
 0x59f   :  { %v2566_v36 = vadd.f32 %v2564_v10, %v8367_v14  ;;  %v2589_v38 = vadd.f32 %v2587_v5, %v8370_v9 }
 0x5a1   :  { %v5700_v35 = vmul.f32 -1.442695, %v2566_v36  ;;  %v5701_v44 = vmul.f32 -1.442695, %v2589_v38  ;;  %v2560_v49 = vpop.f32.mrf.mxu2 }
 0x5a2   :  { %v2561_v59 = vadd.f32 %v8426_v1, %v2560_v49 }
 0x5a3   :  { %6024 = vpow2.f32 %v5700_v35 }
 0x5a4   :  { %6026 = vpow2.f32 %v5701_v44  ;;  %v2610_v26 = vrot.slane %v2561_v59, 4 }
 0x5a5   :  { %v2662_v41 = vpop.f32.mrf.mxu0 }
 0x5a6   :  { %v2663_v47 = vadd.f32 %v8396_v16, %v2662_v41 }
 0x5a8   :  { %v2709_v45 = vrot.slane %v2663_v47, 6 }
 0x5a9   :  { %v6025_v48 = vpop.eup %6024 }
 0x5aa   :  { %v6027_v53 = vpop.eup %6026  ;;  %v2570_v63 = vadd.f32 1.0, %v6025_v48  ;;  %v2711_v6 = vadd.f32 %v2709_v45, %v8400_v30  ;;  %v2617_v48 = vrot.slane %v8512_v11, 6 }
 0x5ab   :  { %v2593_v33 = vadd.f32 1.0, %v6027_v53  ;;  %v2642_v37 = vpop.f32.mrf.mxu3  ;;  %v2682_v53 = vpop.f32.mrf.mxu1 }
 0x5ac   :  { %6028 = vrcp.f32 %v2570_v63  ;;  %v2643_v43 = vadd.f32 %v8406_v17, %v2642_v37  ;;  %v5706_v29 = vmul.f32 -1.442695, %v2711_v6  ;;  %v2582_v40 = vand.u32 2147483648, %v2570_v63 }
 0x5ad   :  { %6030 = vrcp.f32 %v2593_v33  ;;  %v2580_v58 = vand.u32 2147483647, %v2570_v63  ;;  %vm2576_vm5 = vweird.f32 %v2570_v63  ;;  %v2605_v7 = vand.u32 2147483648, %v2593_v33 }
 0x5ae   :  { %v2686_v12 = vrot.slane %v2643_v43, 6  ;;  %6032 = vpow2.f32 %v5706_v29  ;;  %v2583_v42 = vor.u32 1.1754944e-38, %v2582_v40  ;;  %vm2599_vm10 = vweird.f32 %v2593_v33 }
 0x5af   :  { %vm2581_vm8 = vcmp.eq.f32.partialorder %v2580_v58, 8.507059e+37  ;;  %v2603_v61 = vand.u32 2147483647, %v2593_v33  ;;  %v2606_v38 = vor.u32 1.1754944e-38, %v2605_v7  ;;  %v2683_v29 = vadd.f32 %v8445_v55, %v2682_v53 }
 0x5b0   :  { %v2688_v46 = vadd.f32 %v2686_v12, %v8411_v62 }
 0x5b1   :  { %vm2604_vm13 = vcmp.eq.f32.partialorder %v2603_v61, 8.507059e+37  ;;  %v2732_v40 = vrot.slane %v2683_v29, 6 }
 0x5b2   :  { %v6029_v19 = vpop.eup %6028  ;;  %v5705_v50 = vmul.f32 -1.442695, %v2688_v46 }
 0x5b3   :  { %v6031_v31 = vpop.eup %6030  ;;  %v2572_v52 = vmul.f32 %v6029_v19, %v2570_v63  ;;  %vm2577_vm4 = vweird.f32 %v6029_v19 }
 0x5b4   :  { %v2595_v3 = vmul.f32 %v6031_v31, %v2593_v33  ;;  %6034 = vpow2.f32 %v5705_v50  ;;  %v6033_v60 = vpop.eup %6032  ;;  %vm2578_vm6 = vmor %vm2576_vm5, %vm2577_vm4  ;;  %vm2600_vm9 = vweird.f32 %v6031_v31  ;;  %v2983_v50 = vsel %vm2977_vm11, %v8451_v27, %v8512_v11 }
 0x5b5   :  { %v2573_v54 = vsub.f32 1.0, %v2572_v52  ;;  %v8551_v23 = vadd.f32 1.0, %v6033_v60  ;;  %vm2601_vm12 = vmor %vm2599_vm10, %vm2600_vm9 }
 0x5b6   :  { %v2596_v34 = vsub.f32 1.0, %v2595_v3 }
 0x5b7   :  { %v2574_v51 = vmul.f32 %v6029_v19, %v2573_v54  ;;  %6036 = vrcp.f32 %v8551_v23  ;;  %v2727_v27 = vand.u32 2147483648, %v8551_v23  ;;  %vm2721_vm5 = vweird.f32 %v8551_v23 }
 0x5b8   :  { %v2597_v24 = vmul.f32 %v6031_v31, %v2596_v34  ;;  %v2725_v60 = vand.u32 2147483647, %v8551_v23 }
 0x5b9   :  { %v2575_v28 = vadd.f32 %v6029_v19, %v2574_v51 }
 0x5ba   :  { %v6035_v25 = vpop.eup %6034  ;;  %v2598_v15 = vadd.f32 %v6031_v31, %v2597_v24 }
 0x5bb   :  { %v2579_v57 = vsel %vm2578_vm6, %v6029_v19, %v2575_v28  ;;  %v2692_v2 = vadd.f32 1.0, %v6035_v25  ;;  %v2739_v25 = vrot.slane %v8532_v0, 2 }
 0x5bc   :  { %v2584_v8 = vsel %vm2581_vm8, %v2583_v42, %v2579_v57  ;;  %v2602_v5 = vsel %vm2601_vm12, %v6031_v31, %v2598_v15  ;;  %v2728_v42 = vor.u32 1.1754944e-38, %v2727_v27  ;;  %vm2726_vm8 = vcmp.eq.f32.partialorder %v2725_v60, 8.507059e+37 }
 0x5bd   :  { %v2612_v32 = vmul.f32 %v2610_v26, %v2584_v8  ;;  %6038 = vrcp.f32 %v2692_v2  ;;  %v6037_v36 = vpop.eup %6036  ;;  %v2607_v35 = vsel %vm2604_vm13, %v2606_v38, %v2602_v5  ;;  %v2704_v12 = vand.u32 2147483648, %v2692_v2 }
 0x5be   :  { %v2717_v44 = vmul.f32 %v6037_v36, %v8551_v23  ;;  %v2615_v47 = vsub.f32 1.0, %v2607_v35  ;;  %v2619_v6 = vmul.f32 %v2617_v48, %v2607_v35  ;;  %v2702_v31 = vand.u32 2147483647, %v2692_v2 }
 0x5bf   :  { %v2613_v10 = vadd.f32 %v2612_v32, %v8432_v4  ;;  %vm2698_vm1 = vweird.f32 %v2692_v2  ;;  %v2705_v54 = vor.u32 1.1754944e-38, %v2704_v12  ;;  %vm2722_vm4 = vweird.f32 %v6037_v36 }
 0x5c0   :  { %v2718_v33 = vsub.f32 1.0, %v2717_v44  ;;  %vm2703_vm3 = vcmp.eq.f32.partialorder %v2702_v31, 8.507059e+37  ;;  %vm2723_vm6 = vmor %vm2721_vm5, %vm2722_vm4 }
 0x5c1   :  { %6040 = vtanh.f32 %v2613_v10 }
 0x5c2   :  { %v2719_v52 = vmul.f32 %v6037_v36, %v2718_v33 }
 0x5c3   :  { %v6039_v41 = vpop.eup %6038 }
 0x5c4   :  { %v2694_v63 = vmul.f32 %v6039_v41, %v2692_v2  ;;  %vm2699_vm0 = vweird.f32 %v6039_v41  ;;  %v2720_v51 = vadd.f32 %v6037_v36, %v2719_v52 }
 0x5c5   :  { %vm2700_vm2 = vmor %vm2698_vm1, %vm2699_vm0 }
 0x5c6   :  { %v2695_v43 = vsub.f32 1.0, %v2694_v63  ;;  %v2724_v28 = vsel %vm2723_vm6, %v6037_v36, %v2720_v51 }
 0x5c7   :  { %v6041_v45 = vpop.eup %6040  ;;  %v2729_v57 = vsel %vm2726_vm8, %v2728_v42, %v2724_v28 }
 0x5c8   :  { %v2616_v37 = vmul.f32 %v6041_v45, %v2615_v47  ;;  %v2696_v46 = vmul.f32 %v6039_v41, %v2695_v43  ;;  %v2737_v26 = vsub.f32 1.0, %v2729_v57  ;;  %v2741_v7 = vmul.f32 %v2739_v25, %v2729_v57 }
 0x5ca   :  { %v8558_v19 = vadd.f32 %v2619_v6, %v2616_v37  ;;  %v2697_v3 = vadd.f32 %v6039_v41, %v2696_v46 }
 0x5cc   :  { %v2744_v49 = vrot.slane %v8558_v19, 4  ;;  %v8566_v34 = vsel %vm2979_vm15, %v2983_v50, %v8558_v19  ;;  %v2701_v59 = vsel %vm2700_vm2, %v6039_v41, %v2697_v3 }
 0x5cd   :  { %v2706_v58 = vsel %vm2703_vm3, %v2705_v54, %v2701_v59 }
 0x5ce   :  { %5707 = vmatmul.msk.f32.vlgmr.msrb.gmra.mxu2 %vm1060_vm14, %v2744_v49  ;;  %5708 = vmatmul.msk.f32.vlgmr.msrb.gmra.mxu3 %vm1060_vm14, %v2744_v49  ;;  %v2734_v11 = vmul.f32 %v2732_v40, %v2706_v58 }
 0x5cf   :  { %5709 = vmatmul.msk.f32.vlgmr.msra.gmra.mxu0 %vm1060_vm14, %v2744_v49 }
 0x5d0   :  { %v2735_v24 = vadd.f32 %v2734_v11, %v8456_v20 }
 0x5d2   :  { %6042 = vtanh.f32 %v2735_v24 }
 0x5d8   :  { %v6043_v8 = vpop.eup %6042 }
 0x5d9   :  { %v2738_v15 = vmul.f32 %v6043_v8, %v2737_v26 }
 0x5db   :  { %v8576_v32 = vadd.f32 %v2741_v7, %v2738_v15  ;;  %v2861_v7 = vrot.slane %v8558_v19, 6  ;;  %v5748_v19 = vld [vmem:[%s9729_s5 + $0xf8] sm:$0xff] }
 0x5dc   :  { %3140 = vmatpush.msrb.mxu3 %v5748_v19 }
 0x5dd   :  { %v8579_v2 = vrot.slane %v8576_v32, 2 }
 0x5df   :  { %5712 = vmatmul.msk.f32.vlgmr.msra.gmra.mxu1 %vm1060_vm14, %v8579_v2  ;;  %5713 = vmatmul.msk.f32.vlgmr.msra.gmra.mxu2 %vm1060_vm14, %v8579_v2 }
 0x5e0   :  { %5714 = vmatmul.msk.f32.vlgmr.msra.gmra.mxu3 %vm1060_vm14, %v8579_v2 }
 0x64c   :  { %v2804_v52 = vpop.f32.mrf.mxu0 }
 0x651   :  { %v2764_v23 = vpop.f32.mrf.mxu2  ;;  %v2784_v61 = vpop.f32.mrf.mxu3 }
 0x652   :  { %v2765_v10 = vadd.f32 %v8375_v56, %v2764_v23  ;;  %v2785_v5 = vadd.f32 %v8381_v13, %v2784_v61 }
 0x654   :  { %v2808_v36 = vrot.slane %v2765_v10, 2  ;;  %v2831_v38 = vrot.slane %v2785_v5, 2 }
 0x656   :  { %v2810_v35 = vadd.f32 %v2808_v36, %v8367_v14  ;;  %v2833_v44 = vadd.f32 %v2831_v38, %v8370_v9 }
 0x658   :  { %v5710_v41 = vmul.f32 -1.442695, %v2810_v35  ;;  %v5711_v47 = vmul.f32 -1.442695, %v2833_v44 }
 0x65a   :  { %6044 = vpow2.f32 %v5710_v41  ;;  %v3009_v41 = vld [vmem:[%s9729_s5 + $0x38] sm:$0xff] }
 0x65b   :  { %6046 = vpow2.f32 %v5711_v47  ;;  %3029 = vmatpush.msrb.mxu1 %v3009_v41 }
 0x65c   :  { %v2886_v48 = vpop.f32.mrf.mxu1 }
 0x65d   :  { %v2887_v53 = vadd.f32 %v8406_v17, %v2886_v48 }
 0x65f   :  { %v2929_v56 = vadd.f32 %v2887_v53, %v8411_v62  ;;  %v5759_v53 = vld [vmem:[%s9729_s5 + $0x138] sm:$0xff] }
 0x660   :  { %v6045_v63 = vpop.eup %6044  ;;  %3177 = vmatpush.msrb.mxu0 %v5759_v53  ;;  %v9807_v53 = vld [vmem:[#allocation29_spill] sm:$0xff] }
 0x661   :  { %v6047_v45 = vpop.eup %6046  ;;  %v2814_v33 = vadd.f32 1.0, %v6045_v63  ;;  %v5715_v13 = vmul.f32 -1.442695, %v2929_v56  ;;  %v3008_v63 = vld [vmem:[%s9729_s5 + $0x30] sm:$0xff]  ;;  %v5724_v56 = vld [vmem:[%s9729_s5 + $0x68] sm:$0xff] }
 0x662   :  { %v2837_v37 = vadd.f32 1.0, %v6047_v45  ;;  %v2906_v6 = vpop.f32.mrf.mxu2  ;;  %v5736_v45 = vld [vmem:[%s9729_s5 + $0xb0] sm:$0xff]  ;;  %3030 = vmatpush.msrb.mxu1 %v3008_v63 }
 0x663   :  { %6048 = vrcp.f32 %v2814_v33  ;;  %v2907_v14 = vadd.f32 %v8396_v16, %v2906_v6  ;;  %v2826_v62 = vand.u32 2147483648, %v2814_v33  ;;  %v2824_v40 = vand.u32 2147483647, %v2814_v33  ;;  %v2926_v47 = vpop.f32.mrf.mxu3 }
 0x664   :  { %6050 = vrcp.f32 %v2837_v37  ;;  %v2805_v16 = vadd.f32 %v8426_v1, %v2804_v52  ;;  %vm2820_vm10 = vweird.f32 %v2814_v33  ;;  %v2847_v27 = vand.u32 2147483647, %v2837_v37  ;;  %v5734_v52 = vld [vmem:[%s9729_s5 + $0xa0] sm:$0xff] }
 0x665   :  { %6052 = vpow2.f32 %v5715_v13  ;;  %v2949_v9 = vadd.f32 %v2907_v14, %v8400_v30  ;;  %v2827_v58 = vor.u32 1.1754944e-38, %v2826_v62  ;;  %v2849_v11 = vand.u32 2147483648, %v2837_v37  ;;  %v5758_v13 = vld [vmem:[%s9729_s5 + $0x130] sm:$0xff] }
 0x666   :  { %vm2825_vm0 = vcmp.eq.f32.partialorder %v2824_v40, 8.507059e+37  ;;  %v2854_v42 = vrot.slane %v2805_v16, 2  ;;  %vm2843_vm1 = vweird.f32 %v2837_v37  ;;  %vm2848_vm3 = vcmp.eq.f32.partialorder %v2847_v27, 8.507059e+37  ;;  %3178 = vmatpush.msrb.mxu0 %v5758_v13  ;;  %v8778_v13 = vld [vmem:[%s9731_s7 + $0x8] sm:$0xff] }
 0x667   :  { %v5716_v29 = vmul.f32 -1.442695, %v2949_v9  ;;  %v2850_v25 = vor.u32 1.1754944e-38, %v2849_v11  ;;  %v3007_v9 = vld [vmem:[%s9729_s5 + $0x28] sm:$0xff]  ;;  %v5744_v11 = vld [vmem:[%s9729_s5 + $0xd8] sm:$0xff] }
 0x668   :  { %3031 = vmatpush.msrb.mxu1 %v3007_v9  ;;  %v8792_v9 = vld [vmem:[%s9731_s7 + $0x98] sm:$0xff] }
 0x669   :  { %v6049_v43 = vpop.eup %6048  ;;  %6054 = vpow2.f32 %v5716_v29  ;;  %v5746_v29 = vld [vmem:[%s9729_s5 + $0xe8] sm:$0xff] }
 0x66a   :  { %v6051_v12 = vpop.eup %6050  ;;  %v2816_v46 = vmul.f32 %v6049_v43, %v2814_v33  ;;  %vm2821_vm9 = vweird.f32 %v6049_v43 }
 0x66b   :  { %v2839_v17 = vmul.f32 %v6051_v12, %v2837_v37  ;;  %v6053_v31 = vpop.eup %6052  ;;  %vm2822_vm12 = vmor %vm2820_vm10, %vm2821_vm9  ;;  %vm2844_vm13 = vweird.f32 %v6051_v12  ;;  %v5747_v37 = vld [vmem:[%s9729_s5 + $0xf0] sm:$0xff] }
 0x66c   :  { %v2817_v3 = vsub.f32 1.0, %v2816_v46  ;;  %v8595_v50 = vadd.f32 1.0, %v6053_v31  ;;  %vm2845_vm2 = vmor %vm2843_vm1, %vm2844_vm13  ;;  %3141 = vmatpush.msrb.mxu3 %v5747_v37  ;;  %v3006_v31 = vld [vmem:[%s9729_s5 + $0x20] sm:$0xff] }
 0x66d   :  { %v2840_v49 = vsub.f32 1.0, %v2839_v17  ;;  %v5757_v17 = vld [vmem:[%s9729_s5 + $0x128] sm:$0xff]  ;;  %3032 = vmatpush.msrb.mxu1 %v3006_v31  ;;  %v5723_v37 = vld [vmem:[%s9729_s5 + $0x60] sm:$0xff] }
 0x66e   :  { %v2818_v54 = vmul.f32 %v6049_v43, %v2817_v3  ;;  %6056 = vrcp.f32 %v8595_v50  ;;  %v2945_v36 = vand.u32 2147483648, %v8595_v50  ;;  %v2943_v44 = vand.u32 2147483647, %v8595_v50  ;;  %3142 = vmatpush.msrb.mxu3 %v5746_v29  ;;  %3179 = vmatpush.msrb.mxu0 %v5757_v17  ;;  %v8800_v29 = vld [vmem:[%s9731_s7 + $0x30] sm:$0xff]  ;;  %v5720_v17 = vld [vmem:[%s9729_s5 + $0x48] sm:$0xff] }
 0x66f   :  { %v2841_v59 = vmul.f32 %v6051_v12, %v2840_v49  ;;  %v6055_v51 = vpop.eup %6054  ;;  %vm2939_vm5 = vweird.f32 %v8595_v50  ;;  %v8821_v31 = vld [vmem:[%s9731_s7 + $0x28] sm:$0xff] }
 0x670   :  { %v2819_v30 = vadd.f32 %v6049_v43, %v2818_v54  ;;  %v8599_v60 = vadd.f32 1.0, %v6055_v51  ;;  %v2946_v6 = vor.u32 1.1754944e-38, %v2945_v36  ;;  %vm2944_vm8 = vcmp.eq.f32.partialorder %v2943_v44, 8.507059e+37  ;;  %v5756_v54 = vld [vmem:[%s9729_s5 + $0x120] sm:$0xff] }
 0x671   :  { %v2842_v24 = vadd.f32 %v6051_v12, %v2841_v59  ;;  %v5733_v59 = vld [vmem:[%s9729_s5 + $0x98] sm:$0xff]  ;;  %3180 = vmatpush.msrb.mxu0 %v5756_v54 }
 0x672   :  { %v2823_v28 = vsel %vm2822_vm12, %v6049_v43, %v2819_v30  ;;  %6058 = vrcp.f32 %v8599_v60  ;;  %v5735_v43 = vld [vmem:[%s9729_s5 + $0xa8] sm:$0xff]  ;;  %v2965_v16 = vand.u32 2147483648, %v8599_v60  ;;  %v3005_v30 = vld [vmem:[%s9729_s5 + $0x18] sm:$0xff]  ;;  %vm2959_vm10 = vweird.f32 %v8599_v60 }
 0x673   :  { %v2828_v57 = vsel %vm2825_vm0, %v2827_v58, %v2823_v28  ;;  %v2846_v26 = vsel %vm2845_vm2, %v6051_v12, %v2842_v24  ;;  %v2927_v12 = vadd.f32 %v8445_v55, %v2926_v47  ;;  %v2963_v27 = vand.u32 2147483647, %v8599_v60  ;;  %v5755_v24 = vld [vmem:[%s9729_s5 + $0x118] sm:$0xff]  ;;  %3033 = vmatpush.msrb.mxu1 %v3005_v30 }
 0x674   :  { %v6057_v1 = vpop.eup %6056  ;;  %v2856_v8 = vmul.f32 %v2854_v42, %v2828_v57  ;;  %v2851_v23 = vsel %vm2848_vm3, %v2850_v25, %v2846_v26  ;;  %v5732_v57 = vld [vmem:[%s9729_s5 + $0x90] sm:$0xff]  ;;  %3181 = vmatpush.msrb.mxu0 %v5755_v24  ;;  %v8866_v30 = vld [vmem:[%s9731_s7 + $0x58] sm:$0xff]  ;;  %v5767_v42 = vld [vmem:[%s9729_s5 + $0x160] sm:$0xff] }
 0x675   :  { %v2935_v15 = vmul.f32 %v6057_v1, %v8595_v50  ;;  %v8605_v5 = vmul.f32 %v2861_v7, %v2851_v23  ;;  %vm2940_vm4 = vweird.f32 %v6057_v1  ;;  %v2859_v3 = vsub.f32 1.0, %v2851_v23  ;;  %v5745_v50 = vld [vmem:[%s9729_s5 + $0xe0] sm:$0xff]  ;;  %v5743_v26 = vld [vmem:[%s9729_s5 + $0xd0] sm:$0xff]  ;;  %v5731_v7 = vld [vmem:[%s9729_s5 + $0x88] sm:$0xff] }
 0x676   :  { %v2857_v61 = vadd.f32 %v2856_v8, %v8432_v4  ;;  %v5737_v4 = vld [vmem:[%s9729_s5 + $0xb8] sm:$0xff]  ;;  %vm8633_vm6 = vmor %vm2939_vm5, %vm2940_vm4  ;;  %3143 = vmatpush.msrb.mxu3 %v5745_v50  ;;  %v5754_v25 = vld [vmem:[%s9729_s5 + $0x110] sm:$0xff]  ;;  %v2966_v8 = vor.u32 1.1754944e-38, %v2965_v16  ;;  %vm2964_vm13 = vcmp.eq.f32.partialorder %v2963_v27, 8.507059e+37 }
 0x677   :  { %v2936_v10 = vsub.f32 1.0, %v2935_v15  ;;  %3103 = vmatpush.msrb.mxu2 %v5737_v4  ;;  %v3003_v15 = vld [vmem:[%s9729_s5 + $0x8] sm:$0xff]  ;;  %3182 = vmatpush.msrb.mxu0 %v5754_v25  ;;  %v8857_v16 = vld [vmem:[%s9731_s7 + $0x78] sm:$0xff]  ;;  %v8937_v25 = vld [vmem:[%s9731_s7 + $0x40] sm:$0xff] }
 0x678   :  { %6060 = vtanh.f32 %v2857_v61  ;;  %v8608_v38 = vpop.eup %6058  ;;  %3144 = vmatpush.msrb.mxu3 %v5744_v11  ;;  %v5742_v23 = vld [vmem:[%s9729_s5 + $0xc8] sm:$0xff] }
 0x679   :  { %v2937_v35 = vmul.f32 %v6057_v1, %v2936_v10  ;;  %v2955_v48 = vmul.f32 %v8608_v38, %v8599_v60  ;;  %3104 = vmatpush.msrb.mxu2 %v5736_v45  ;;  %vm2960_vm9 = vweird.f32 %v8608_v38  ;;  %v3004_v60 = vld [vmem:[%s9729_s5 + $0x10] sm:$0xff]  ;;  %v5753_v61 = vld [vmem:[%s9729_s5 + $0x108] sm:$0xff] }
 0x67a   :  { %vm8691_vm12 = vmor %vm2959_vm10, %vm2960_vm9  ;;  %3034 = vmatpush.msrb.mxu1 %v3004_v60  ;;  %3145 = vmatpush.msrb.mxu3 %v5743_v26  ;;  %v5725_v45 = vld [vmem:[%s9729_s5 + $0x70] sm:$0xff]  ;;  %v8887_v27 = vld [vmem:[%s9731_s7 + $0x68] sm:$0xff] }
 0x67b   :  { %v2938_v33 = vadd.f32 %v6057_v1, %v2937_v35  ;;  %v2956_v14 = vsub.f32 1.0, %v2955_v48  ;;  %3105 = vmatpush.msrb.mxu2 %v5735_v43  ;;  %3183 = vmatpush.msrb.mxu0 %v5753_v61  ;;  %v2989_v48 = vsel %vm2977_vm11, %v8321_v21, %v8203_v39  ;;  %v8754_v39 = vld [vmem:[%s9731_s7 + $0x18] sm:$0xff]  ;;  %v5721_v43 = vld [vmem:[%s9729_s5 + $0x50] sm:$0xff]  ;;  %v8905_v60 = vld [vmem:[%s9731_s7 + $0x60] sm:$0xff] }
 0x67c   :  { %3035 = vmatpush.msrb.mxu1 %v3003_v15  ;;  %3146 = vmatpush.msrb.mxu3 %v5742_v23  ;;  %v5726_v21 = vld [vmem:[%s9729_s5 + $0x78] sm:$0xff]  ;;  %v9808_v50 = vld [vmem:[#allocation30_spill] sm:$0xff]  ;;  %v9809_v15 = vmov 0.0  }
 0x67d   :  { %v2942_v46 = vsel %vm8633_vm6, %v6057_v1, %v2938_v33  ;;  %v2957_v49 = vmul.f32 %v8608_v38, %v2956_v14  ;;  %3106 = vmatpush.msrb.mxu2 %v5734_v52  ;;  %v8766_v33 = vld [vmem:[%s9731_s7 + $0x10] sm:$0xff]  ;;  %v8786_v14 = vld [vmem:[%s9731_s7 + $0x38] sm:$0xff]  ;;  %v8826_v52 = vld [vmem:[%s9731_s7 + $0x88] sm:$0xff] }
 0x67e   :  { %v6061_v55 = vpop.eup %6060  ;;  %v2947_v62 = vsel %vm2944_vm8, %v2946_v6, %v2942_v46  ;;  %v5722_v6 = vld [vmem:[%s9729_s5 + $0x58] sm:$0xff]  ;;  %v8812_v46 = vld [vmem:[%s9731_s7] sm:$0xff]  ;;  %v5765_v26 = vld [vmem:[%s9729_s5 + $0x150] sm:$0xff] }
 0x67f   :  { %v2969_v40 = vmul.f32 %v2947_v62, %v2927_v12  ;;  %v2860_v51 = vmul.f32 %v6061_v55, %v2859_v3  ;;  %v2958_v58 = vadd.f32 %v8608_v38, %v2957_v49  ;;  %3107 = vmatpush.msrb.mxu2 %v5733_v59  ;;  %v8807_v12 = vld [vmem:[%s9731_s7 + $0x90] sm:$0xff]  ;;  %v5719_v3 = vld [vmem:[%s9729_s5 + $0x40] sm:$0xff]  ;;  %v8957_v23 = vld [vmem:[%s9731_s7 + $0xb8] sm:$0xff] }
 0x680   :  { %v8836_v55 = vld [vmem:[%s9731_s7 + $0x20] sm:$0xff]  ;;  %v5769_v59 = vld [vmem:[%s9729_s5 + $0x170] sm:$0xff] }
 0x681   :  { %v2970_v28 = vadd.f32 %v2969_v40, %v8456_v20  ;;  %v8702_v1 = vadd.f32 %v8605_v5, %v2860_v51  ;;  %v2962_v20 = vsel %vm8691_vm12, %v8608_v38, %v2958_v58  ;;  %3108 = vmatpush.msrb.mxu2 %v5732_v57  ;;  %v8841_v62 = vld [vmem:[%s9731_s7 + $0x80] sm:$0xff]  ;;  %v5770_v40 = vld [vmem:[%s9729_s5 + $0x178] sm:$0xff]  ;;  %v8878_v51 = vld [vmem:[%s9731_s7 + $0x70] sm:$0xff] }
 0x682   :  { %v2967_v10 = vsel %vm2964_vm13, %v2966_v8, %v2962_v20  ;;  %v5768_v58 = vld [vmem:[%s9729_s5 + $0x168] sm:$0xff]  ;;  %v5766_v57 = vld [vmem:[%s9729_s5 + $0x158] sm:$0xff]  ;;  %v8965_v61 = vld [vmem:[%s9731_s7 + $0xb0] sm:$0xff] }
 0x683   :  { %9806 = vst [vmem:[#allocation5_spill] sm:$0xff] %v8702_v1  ;;  %6062 = vtanh.f32 %v2970_v28  ;;  %3109 = vmatpush.msrb.mxu2 %v5731_v7  ;;  %v2972_v5 = vsub.f32 1.0, %v2967_v10  ;;  %v2975_v35 = vmul.f32 %v2967_v10, %v8579_v2  ;;  %v2990_v2 = vsel %vm2979_vm15, %v2989_v48, %v8057_v22  ;;  %v5752_v22 = vld [vmem:[%s9729_s5 + $0x100] sm:$0xff]  ;;  %v8927_v20 = vld [vmem:[%s9731_s7 + $0x48] sm:$0xff] }
 0x684   :  { %v2991_v63 = vsel %vm2981_vm7, %v2990_v2, %v9807_v53  ;;  %3184 = vmatpush.msrb.mxu0 %v5752_v22  ;;  %v2985_v24 = vsel %vm2981_vm7, %v8566_v34, %v8702_v1  ;;  %v8914_v34 = vld [vmem:[%s9731_s7 + $0x50] sm:$0xff]  ;;  %v5764_v8 = vld [vmem:[%s9729_s5 + $0x148] sm:$0xff]  ;;  %v5763_v7 = vld [vmem:[%s9729_s5 + $0x140] sm:$0xff] }
 0x685   :  { %v8973_v10 = vld [vmem:[%s9731_s7 + $0xa8] sm:$0xff] }
 0x686   :  { %3423 = vmatpush.msra.mxu0 %v8792_v9 }
 0x688   :  { %3424 = vmatpush.msra.mxu0 %v8807_v12 }
 0x689   :  { %v6063_v36 = vpop.eup %6062 }
 0x68a   :  { %v2973_v38 = vmul.f32 %v6063_v36, %v2972_v5  ;;  %3425 = vmatpush.msra.mxu0 %v8826_v52  ;;  %v8985_v5 = vld [vmem:[%s9731_s7 + $0xa0] sm:$0xff] }
 0x68b   :  { %v5892_v36 = vld [vmem:[%s9730_s6 + $0x4] ss:$0 sm:$0xff] }
 0x68c   :  { %v2976_v44 = vadd.f32 %v2975_v35, %v2973_v38  ;;  %3426 = vmatpush.msra.mxu0 %v8841_v62 }
 0x68e   :  { %v5186_v41 = vrot.slane %v2976_v44, 2  ;;  %v2986_v4 = vsel %vm2977_vm11, %v2976_v44, %v8576_v32  ;;  %v5741_v32 = vld [vmem:[%s9729_s5 + $0xc0] sm:$0xff]  ;;  %vm3014_vm11 = vcmask 523264  }
 0x68f   :  { %v2987_v19 = vsel %vm2979_vm15, %v2986_v4, %v8532_v0  ;;  %v3002_v0 = vld [vmem:[%s9729_s5] sm:$0xff]  ;;  %3147 = vmatpush.msrb.mxu3 %v5741_v32 }
 0x690   :  { %5187 = vrot.lane.b32.xlu1 %v5186_v41, %s6325_s28  ;;  %v2988_v47 = vsel %vm2981_vm7, %v2987_v19, %v8482_v18  ;;  %v5730_v18 = vld [vmem:[%s9729_s5 + $0x80] sm:$0xff]  ;;  %3036 = vmatpush.msrb.mxu1 %v3002_v0 }
 0x691   :  { %2994 = vrot.lane.b32.xlu0 %v2988_v47, %s6325_s28  ;;  %3110 = vmatpush.msrb.mxu2 %v5730_v18  ;;  %v5894_v41 = vld [vmem:[%s9730_s6 + $0x3] ss:$0 sm:$0xff]  ;;  %v5891_v19 = vld [vmem:[%s9730_s6] ss:$0 sm:$0xff]  ;;  %v9035_v0 = vld [vmem:[%s9730_s6 + $0x2] ss:$0 sm:$0xff] }
 0x692   :  { %3066 = vmatpush.msra.mxu1 %v5726_v21  ;;  %3307 = vmatpush.msra.mxu3 %v8786_v14  ;;  %v9040_v32 = vld [vmem:[%s9732_s8 + $0x4] ss:$0 sm:$0xff] }
 0x693   :  { %3284 = vmatpush.msra.mxu2 %v8754_v39 }
 0x694   :  { %3067 = vmatpush.msra.mxu1 %v5725_v45  ;;  %3308 = vmatpush.msra.mxu3 %v8800_v29 }
 0x695   :  { %3285 = vmatpush.msra.mxu2 %v8766_v33 }
 0x696   :  { %3068 = vmatpush.msra.mxu1 %v5724_v56  ;;  %3309 = vmatpush.msra.mxu3 %v8821_v31 }
 0x697   :  { %3286 = vmatpush.msra.mxu2 %v8778_v13 }
 0x698   :  { %3069 = vmatpush.msra.mxu1 %v5723_v37  ;;  %3310 = vmatpush.msra.mxu3 %v8836_v55 }
 0x699   :  { %2996 = vrot.lane.b32.xlu0 %v2991_v63, %s6325_s28  ;;  %3287 = vmatpush.msra.mxu2 %v8812_v46 }
 0x69a   :  { %3070 = vmatpush.msra.mxu1 %v5722_v6  ;;  %v9049_v6 = vld [vmem:[%s9732_s8] ss:$0 sm:$0xff] }
 0x69c   :  { %3071 = vmatpush.msra.mxu1 %v5721_v43  ;;  %v5895_v43 = vld [vmem:[%s9730_s6 + $0x1] ss:$0 sm:$0xff] }
 0x69e   :  { %3072 = vmatpush.msra.mxu1 %v5720_v17 }
 0x6a0   :  { %3073 = vmatpush.msra.mxu1 %v5719_v3  ;;  %v9057_v3 = vld [vmem:[%s9732_s8 + $0x1] ss:$0 sm:$0xff] }
 0x703   :  { %v2995_v49 = vpop.permute.xlu0 %2994 }
 0x704   :  { %v8849_v54 = vsel %vm1060_vm14, %v9808_v50, %v2995_v49 }
 0x705   :  { %5717 = vmatmul.msk.f32.vlgmr.msrb.gmra.mxu1 %vm3014_vm11, %v8849_v54  ;;  %5739 = vmatmul.msk.f32.vlgmr.msrb.gmra.mxu2 %vm3014_vm11, %v8849_v54 }
 0x706   :  { %5750 = vmatmul.msk.f32.vlgmr.msrb.gmra.mxu3 %vm3014_vm11, %v8849_v54  ;;  %5761 = vmatmul.msk.f32.vlgmr.msrb.gmra.mxu0 %vm3014_vm11, %v8849_v54 }
 0x707   :  { %3214 = vmatpush.msrb.mxu1 %v5770_v40  ;;  %3400 = vmatpush.msrb.mxu3 %v8857_v16 }
 0x708   :  { %3330 = vmatpush.msrb.mxu2 %v8866_v30  ;;  %3565 = vmatpush.msrb.mxu0 %v8866_v30 }
 0x709   :  { %3215 = vmatpush.msrb.mxu1 %v5769_v59  ;;  %3401 = vmatpush.msrb.mxu3 %v8878_v51 }
 0x70a   :  { %3331 = vmatpush.msrb.mxu2 %v8914_v34  ;;  %3566 = vmatpush.msrb.mxu0 %v8914_v34 }
 0x70b   :  { %v2997_v11 = vpop.permute.xlu0 %2996  ;;  %3216 = vmatpush.msrb.mxu1 %v5768_v58  ;;  %3402 = vmatpush.msrb.mxu3 %v8887_v27 }
 0x70c   :  { %v8897_v28 = vsel %vm1060_vm14, %v2985_v24, %v2997_v11  ;;  %3332 = vmatpush.msrb.mxu2 %v8927_v20  ;;  %3567 = vmatpush.msrb.mxu0 %v8927_v20 }
 0x70d   :  { %5718 = vmatmul.msk.f32.gmra.mxu1 %vm3014_vm11, %v8897_v28  ;;  %5740 = vmatmul.msk.f32.gmra.mxu2 %vm3014_vm11, %v8897_v28 }
 0x70e   :  { %5751 = vmatmul.msk.f32.gmra.mxu3 %vm3014_vm11, %v8897_v28  ;;  %5762 = vmatmul.msk.f32.gmra.mxu0 %vm3014_vm11, %v8897_v28 }
 0x70f   :  { %3217 = vmatpush.msrb.mxu1 %v5767_v42  ;;  %3403 = vmatpush.msrb.mxu3 %v8905_v60 }
 0x710   :  { %3333 = vmatpush.msrb.mxu2 %v8937_v25  ;;  %3568 = vmatpush.msrb.mxu0 %v8937_v25 }
 0x711   :  { %3218 = vmatpush.msrb.mxu1 %v5766_v57 }
 0x713   :  { %3219 = vmatpush.msrb.mxu1 %v5765_v26 }
 0x715   :  { %5728 = vmatmul.msk.f32.vlgmr.msra.gmra.mxu1 %vm3014_vm11, %v8849_v54  ;;  %3288 = vmatmul.f32.vlgmr.msra.gmra.mxu2 %v9809_v15 }
 0x716   :  { %3311 = vmatmul.f32.vlgmr.msra.gmra.mxu3 %v9809_v15  ;;  %3427 = vmatmul.f32.vlgmr.msra.gmra.mxu0 %v9809_v15 }
 0x717   :  { %3220 = vmatpush.msrb.mxu1 %v5764_v8  ;;  %3525 = vmatpush.msra.mxu2 %v8754_v39 }
 0x718   :  { %3545 = vmatpush.msra.mxu3 %v8786_v14  ;;  %3769 = vmatpush.msra.mxu0 %v8754_v39 }
 0x719   :  { %3221 = vmatpush.msrb.mxu1 %v5763_v7  ;;  %3526 = vmatpush.msra.mxu2 %v8766_v33 }
 0x71a   :  { %3546 = vmatpush.msra.mxu3 %v8800_v29  ;;  %3770 = vmatpush.msra.mxu0 %v8766_v33 }
 0x71b   :  { %3446 = vmatpush.msra.mxu1 %v8957_v23  ;;  %3527 = vmatpush.msra.mxu2 %v8778_v13 }
 0x71c   :  { %3547 = vmatpush.msra.mxu3 %v8821_v31  ;;  %3771 = vmatpush.msra.mxu0 %v8778_v13 }
 0x71d   :  { %3447 = vmatpush.msra.mxu1 %v8965_v61  ;;  %3334 = vmatmul.f32.vlgmr.msrb.gmra.mxu2 %v9809_v15 }
 0x71e   :  { %5729 = vmatmul.msk.f32.gmra.mxu1 %vm3014_vm11, %v8897_v28  ;;  %3404 = vmatmul.f32.vlgmr.msrb.gmra.mxu3 %v9809_v15 }
 0x71f   :  { %3448 = vmatpush.msra.mxu1 %v8973_v10  ;;  %3528 = vmatpush.msra.mxu2 %v8812_v46 }
 0x720   :  { %3548 = vmatpush.msra.mxu3 %v8836_v55  ;;  %3772 = vmatpush.msra.mxu0 %v8812_v46 }
 0x721   :  { %3449 = vmatpush.msra.mxu1 %v8985_v5  ;;  %3667 = vmatpush.msrb.mxu2 %v8792_v9 }
 0x722   :  { %3687 = vmatpush.msrb.mxu3 %v8957_v23 }
 0x723   :  { %3668 = vmatpush.msrb.mxu2 %v8807_v12 }
 0x724   :  { %3688 = vmatpush.msrb.mxu3 %v8965_v61 }
 0x725   :  { %3669 = vmatpush.msrb.mxu2 %v8826_v52 }
 0x726   :  { %5772 = vmatmul.msk.f32.vlgmr.msrb.gmra.mxu1 %vm3014_vm11, %v8849_v54  ;;  %3689 = vmatpush.msrb.mxu3 %v8973_v10 }
 0x727   :  { %3647 = vmatpush.msrb.mxu1 %v8857_v16  ;;  %3670 = vmatpush.msrb.mxu2 %v8841_v62 }
 0x728   :  { %3690 = vmatpush.msrb.mxu3 %v8985_v5 }
 0x729   :  { %3648 = vmatpush.msrb.mxu1 %v8878_v51 }
 0x72b   :  { %3649 = vmatpush.msrb.mxu1 %v8887_v27 }
 0x72d   :  { %3650 = vmatpush.msrb.mxu1 %v8905_v60 }
 0x72e   :  { %5773 = vmatmul.msk.f32.gmra.mxu1 %vm3014_vm11, %v8897_v28 }
 0x736   :  { %3450 = vmatmul.f32.vlgmr.msra.gmra.mxu1 %v9809_v15 }
 0x737   :  { %3789 = vmatpush.msra.mxu1 %v8786_v14 }
 0x739   :  { %3790 = vmatpush.msra.mxu1 %v8800_v29 }
 0x73b   :  { %3791 = vmatpush.msra.mxu1 %v8821_v31 }
 0x73d   :  { %3792 = vmatpush.msra.mxu1 %v8836_v55 }
 0x782   :  { %v3038_v38 = vpop.f32.mrf.mxu1 }
 0x783   :  { %v3186_v35 = vpop.f32.mrf.mxu0  ;;  %v9061_v54 = vadd.f32 %v5891_v19, %v3038_v38  ;;  %v9080_v38 = vld [vmem:[%s9730_s6 + $0x5] ss:$0 sm:$0xff] }
 0x784   :  { %v9018_v44 = vadd.f32 %v5892_v36, %v3186_v35 }
 0x786   :  { %9810 = vst [vmem:[#allocation8_spill] sm:$0xff] %v9018_v44 }
 0x788   :  { %v9023_v4 = vpop.f32.mrf.mxu2 }
 0x789   :  { %v3149_v47 = vpop.f32.mrf.mxu3 }
 0x78a   :  { %v9028_v48 = vadd.f32 %v5894_v41, %v3149_v47  ;;  %v3041_v2 = vpop.f32.mrf.mxu1 }
 0x78b   :  { %v9030_v53 = vadd.f32 %v5891_v19, %v3041_v2  ;;  %v3189_v63 = vpop.f32.mrf.mxu0 }
 0x78c   :  { %9811 = vst [vmem:[#allocation9_spill] sm:$0xff] %v9028_v48  ;;  %v9059_v49 = vadd.f32 %v5892_v36, %v3189_v63  ;;  %v9075_v36 = vld [vmem:[%s9732_s8 + $0x3] ss:$0 sm:$0xff] }
 0x78d   :  { %9812 = vst [vmem:[#allocation13_spill] sm:$0xff] %v9030_v53 }
 0x790   :  { %v3115_v18 = vpop.f32.mrf.mxu2 }
 0x791   :  { %v9043_v22 = vadd.f32 %v9035_v0, %v3115_v18  ;;  %v3152_v21 = vpop.f32.mrf.mxu3 }
 0x792   :  { %v3075_v45 = vpop.f32.mrf.mxu1  ;;  %v9086_v63 = vadd.f32 %v5894_v41, %v3152_v21 }
 0x793   :  { %9813 = vst [vmem:[#allocation7_spill] sm:$0xff] %v9043_v22  ;;  %v3428_v56 = vpop.f32.mrf.mxu0  ;;  %v9065_v11 = vadd.f32 %v5895_v43, %v3075_v45 }
 0x794   :  { %v3429_v37 = vadd.f32 %v9040_v32, %v3428_v56 }
 0x796   :  { %v3478_v17 = vrot.slane %v3429_v37, 2 }
 0x798   :  { %v3289_v50 = vpop.f32.mrf.mxu2  ;;  %v3480_v40 = vadd.f32 %v3478_v17, %v9059_v49 }
 0x799   :  { %v3290_v59 = vadd.f32 %v9049_v6, %v3289_v50  ;;  %v3312_v58 = vpop.f32.mrf.mxu3 }
 0x79a   :  { %v3313_v24 = vadd.f32 %v9057_v3, %v3312_v58  ;;  %v5802_v8 = vmul.f32 -1.442695, %v3480_v40 }
 0x79b   :  { %v3078_v28 = vpop.f32.mrf.mxu1  ;;  %v3338_v42 = vadd.f32 %v3290_v59, %v9061_v54 }
 0x79c   :  { %v9069_v57 = vadd.f32 %v5895_v43, %v3078_v28  ;;  %v3358_v26 = vadd.f32 %v3313_v24, %v9065_v11 }
 0x79d   :  { %v5799_v15 = vmul.f32 -1.442695, %v3338_v42 }
 0x79e   :  { %9814 = vst [vmem:[#allocation11_spill] sm:$0xff] %v9069_v57  ;;  %v5800_v7 = vmul.f32 -1.442695, %v3358_v26 }
 0x79f   :  { %6064 = vpow2.f32 %v5799_v15 }
 0x7a0   :  { %6066 = vpow2.f32 %v5800_v7 }
 0x7a1   :  { %6068 = vpow2.f32 %v5802_v8  ;;  %v3405_v35 = vpop.f32.mrf.mxu3  ;;  %v9095_v8 = vld [vmem:[%s9732_s8 + $0x2] ss:$0 sm:$0xff] }
 0x7a2   :  { %v3406_v19 = vadd.f32 %v9075_v36, %v3405_v35  ;;  %v3335_v35 = vpop.f32.mrf.mxu2 }
 0x7a3   :  { %v3223_v47 = vpop.f32.mrf.mxu1 }
 0x7a4   :  { %v9084_v2 = vadd.f32 %v9080_v38, %v3223_v47  ;;  %v3455_v18 = vrot.slane %v3406_v19, 2 }
 0x7a5   :  { %v6065_v45 = vpop.eup %6064 }
 0x7a6   :  { %9815 = vst [vmem:[#allocation21_spill] sm:$0xff] %v9084_v2  ;;  %v6067_v56 = vpop.eup %6066  ;;  %v3342_v37 = vadd.f32 1.0, %v6065_v45  ;;  %v3457_v43 = vadd.f32 %v3455_v18, %v9086_v63 }
 0x7a7   :  { %v6069_v17 = vpop.eup %6068  ;;  %v3362_v50 = vadd.f32 1.0, %v6067_v56 }
 0x7a8   :  { %6070 = vrcp.f32 %v3342_v37  ;;  %v5801_v40 = vmul.f32 -1.442695, %v3457_v43  ;;  %v9089_v59 = vadd.f32 1.0, %v6069_v17  ;;  %v3354_v19 = vand.u32 2147483648, %v3342_v37 }
 0x7a9   :  { %6072 = vrcp.f32 %v3362_v50  ;;  %v3352_v18 = vand.u32 2147483647, %v3342_v37  ;;  %v3336_v43 = vadd.f32 %v9095_v8, %v3335_v35  ;;  %vm3348_vm7 = vweird.f32 %v3342_v37 }
 0x7aa   :  { %6074 = vpow2.f32 %v5801_v40  ;;  %v3355_v40 = vor.u32 1.1754944e-38, %v3354_v19  ;;  %v9109_v35 = vadd.f32 %v9035_v0, %v9023_v4  ;;  %vm3368_vm3 = vweird.f32 %v3362_v50 }
 0x7ab   :  { %6076 = vrcp.f32 %v9089_v59  ;;  %v3226_v26 = vpop.f32.mrf.mxu1  ;;  %vm3353_vm1 = vcmp.eq.f32.partialorder %v3352_v18, 8.507059e+37  ;;  %v3372_v2 = vand.u32 2147483647, %v3362_v50  ;;  %vm3490_vm13 = vweird.f32 %v9089_v59 }
 0x7ad   :  { %vm3373_vm5 = vcmp.eq.f32.partialorder %v3372_v2, 8.507059e+37 }
 0x7ae   :  { %v6071_v58 = vpop.eup %6070 }
 0x7af   :  { %v6073_v24 = vpop.eup %6072  ;;  %v3344_v41 = vmul.f32 %v6071_v58, %v3342_v37  ;;  %vm3349_vm15 = vweird.f32 %v6071_v58  ;;  %v3374_v37 = vand.u32 2147483648, %v3362_v50 }
 0x7b0   :  { %v6075_v21 = vpop.eup %6074  ;;  %v3364_v28 = vmul.f32 %v6073_v24, %v3362_v50  ;;  %vm3350_vm0 = vmor %vm3348_vm7, %vm3349_vm15  ;;  %vm3369_vm2 = vweird.f32 %v6073_v24 }
 0x7b1   :  { %v3461_v42 = vadd.f32 1.0, %v6075_v21  ;;  %v3345_v15 = vsub.f32 1.0, %v3344_v41  ;;  %v9097_v45 = vpop.eup %6076  ;;  %vm3370_vm4 = vmor %vm3368_vm3, %vm3369_vm2  ;;  %v3375_v22 = vor.u32 1.1754944e-38, %v3374_v37  ;;  %v3496_v37 = vand.u32 2147483648, %v9089_v59 }
 0x7b2   :  { %v3365_v7 = vsub.f32 1.0, %v3364_v28  ;;  %v3486_v21 = vmul.f32 %v9097_v45, %v9089_v59  ;;  %vm3491_vm12 = vweird.f32 %v9097_v45 }
 0x7b3   :  { %6078 = vrcp.f32 %v3461_v42  ;;  %v3346_v47 = vmul.f32 %v6071_v58, %v3345_v15  ;;  %v9105_v15 = vld [vmem:[%s9732_s8 + $0x5] ss:$0 sm:$0xff]  ;;  %v3473_v48 = vand.u32 2147483648, %v3461_v42  ;;  %v3471_v0 = vand.u32 2147483647, %v3461_v42  ;;  %vm3492_vm15 = vmor %vm3490_vm13, %vm3491_vm12 }
 0x7b4   :  { %v3366_v56 = vmul.f32 %v6073_v24, %v3365_v7  ;;  %v3487_v18 = vsub.f32 1.0, %v3486_v21  ;;  %vm3467_vm8 = vweird.f32 %v3461_v42 }
 0x7b5   :  { %v3347_v17 = vadd.f32 %v6071_v58, %v3346_v47  ;;  %v3451_v47 = vpop.f32.mrf.mxu1  ;;  %v3474_v44 = vor.u32 1.1754944e-38, %v3473_v48  ;;  %vm3472_vm10 = vcmp.eq.f32.partialorder %v3471_v0, 8.507059e+37  ;;  %v3494_v48 = vand.u32 2147483647, %v9089_v59 }
 0x7b6   :  { %v3367_v1 = vadd.f32 %v6073_v24, %v3366_v56 }
 0x7b7   :  { %v3351_v41 = vsel %vm3350_vm0, %v6071_v58, %v3347_v17  ;;  %vm3495_vm7 = vcmp.eq.f32.partialorder %v3494_v48, 8.507059e+37 }
 0x7b8   :  { %v3356_v28 = vsel %vm3353_vm1, %v3355_v40, %v3351_v41  ;;  %v3371_v17 = vsel %vm3370_vm4, %v6073_v24, %v3367_v1  ;;  %v3452_v40 = vadd.f32 %v9105_v15, %v3451_v47 }
 0x7b9   :  { %v6079_v7 = vpop.eup %6078  ;;  %v3378_v19 = vmul.f32 %v3356_v28, %v3336_v43  ;;  %v3488_v43 = vmul.f32 %v9097_v45, %v3487_v18  ;;  %v3376_v28 = vsel %vm3373_vm5, %v3375_v22, %v3371_v17 }
 0x7ba   :  { %v3463_v58 = vmul.f32 %v6079_v7, %v3461_v42  ;;  %vm3468_vm6 = vweird.f32 %v6079_v7  ;;  %v3501_v21 = vrot.slane %v3452_v40, 2  ;;  %v3383_v18 = vmul.f32 0.0, %v3376_v28 }
 0x7bb   :  { %v3379_v56 = vadd.f32 %v3378_v19, %v9109_v35  ;;  %vm3469_vm9 = vmor %vm3467_vm8, %vm3468_vm6  ;;  %v3381_v19 = vsub.f32 1.0, %v3376_v28  ;;  %v3489_v47 = vadd.f32 %v9097_v45, %v3488_v43 }
 0x7bc   :  { %v3464_v41 = vsub.f32 1.0, %v3463_v58  ;;  %v9118_v58 = vadd.f32 %v9080_v38, %v3226_v26 }
 0x7bd   :  { %6080 = vtanh.f32 %v3379_v56  ;;  %v3493_v17 = vsel %vm3492_vm15, %v9097_v45, %v3489_v47 }
 0x7be   :  { %v3465_v4 = vmul.f32 %v6079_v7, %v3464_v41 }
 0x7c0   :  { %v3466_v50 = vadd.f32 %v6079_v7, %v3465_v4 }
 0x7c2   :  { %v3470_v1 = vsel %vm3469_vm9, %v6079_v7, %v3466_v50 }
 0x7c3   :  { %v6081_v24 = vpop.eup %6080  ;;  %v3475_v2 = vsel %vm3472_vm10, %v3474_v44, %v3470_v1  ;;  %v3497_v44 = vor.u32 1.1754944e-38, %v3496_v37 }
 0x7c4   :  { %v3382_v22 = vmul.f32 %v6081_v24, %v3381_v19  ;;  %v3503_v42 = vmul.f32 %v3501_v21, %v3475_v2 }
 0x7c5   :  { %v3498_v38 = vsel %vm3495_vm7, %v3497_v44, %v3493_v17 }
 0x7c6   :  { %v9122_v7 = vadd.f32 %v3383_v18, %v3382_v22  ;;  %v3504_v56 = vadd.f32 %v3503_v42, %v9118_v58  ;;  %v3506_v59 = vsub.f32 1.0, %v3498_v38  ;;  %v3508_v40 = vmul.f32 0.0, %v3498_v38 }
 0x7c8   :  { %6082 = vtanh.f32 %v3504_v56  ;;  %5803 = vmatmul.msk.f32.vlgmr.msra.gmra.mxu2 %vm1060_vm14, %v9122_v7  ;;  %5804 = vmatmul.msk.f32.vlgmr.msra.gmra.mxu3 %vm1060_vm14, %v9122_v7 }
 0x7c9   :  { %5805 = vmatmul.msk.f32.vlgmr.msrb.gmra.mxu0 %vm1060_vm14, %v9122_v7  ;;  %3809 = vmatpush.msra.mxu2 %v8866_v30 }
 0x7ca   :  { %3891 = vmatpush.msra.mxu3 %v8857_v16  ;;  %3911 = vmatpush.msrb.mxu0 %v8792_v9 }
 0x7cb   :  { %3810 = vmatpush.msra.mxu2 %v8914_v34 }
 0x7cc   :  { %3892 = vmatpush.msra.mxu3 %v8878_v51  ;;  %3912 = vmatpush.msrb.mxu0 %v8807_v12 }
 0x7cd   :  { %3811 = vmatpush.msra.mxu2 %v8927_v20 }
 0x7ce   :  { %v6083_v26 = vpop.eup %6082  ;;  %3893 = vmatpush.msra.mxu3 %v8887_v27  ;;  %3913 = vmatpush.msrb.mxu0 %v8826_v52 }
 0x7cf   :  { %v3507_v45 = vmul.f32 %v6083_v26, %v3506_v59  ;;  %3812 = vmatpush.msra.mxu2 %v8937_v25 }
 0x7d0   :  { %3894 = vmatpush.msra.mxu3 %v8905_v60  ;;  %3914 = vmatpush.msrb.mxu0 %v8841_v62 }
 0x7d1   :  { %v9144_v41 = vadd.f32 %v3508_v40, %v3507_v45 }
 0x7d3   :  { %v3632_v4 = vrot.slane %v9144_v41, 6 }
 0x7d5   :  { %5808 = vmatmul.msk.f32.vlgmr.msrb.gmra.mxu1 %vm1060_vm14, %v3632_v4  ;;  %5809 = vmatmul.msk.f32.vlgmr.msrb.gmra.mxu2 %vm1060_vm14, %v3632_v4 }
 0x7d6   :  { %5810 = vmatmul.msk.f32.vlgmr.msrb.gmra.mxu3 %vm1060_vm14, %v3632_v4  ;;  %3931 = vmatpush.msrb.mxu1 %v8957_v23 }
 0x7d7   :  { %4013 = vmatpush.msrb.mxu2 %v8754_v39  ;;  %4033 = vmatpush.msrb.mxu3 %v8786_v14 }
 0x7d8   :  { %3932 = vmatpush.msrb.mxu1 %v8965_v61 }
 0x7d9   :  { %4014 = vmatpush.msrb.mxu2 %v8766_v33  ;;  %4034 = vmatpush.msrb.mxu3 %v8800_v29 }
 0x7da   :  { %3933 = vmatpush.msrb.mxu1 %v8973_v10 }
 0x7db   :  { %4015 = vmatpush.msrb.mxu2 %v8778_v13  ;;  %4035 = vmatpush.msrb.mxu3 %v8821_v31 }
 0x7dc   :  { %3934 = vmatpush.msrb.mxu1 %v8985_v5 }
 0x7dd   :  { %4016 = vmatpush.msrb.mxu2 %v8812_v46  ;;  %4036 = vmatpush.msrb.mxu3 %v8836_v55 }
 0x84b   :  { %v3530_v0 = vpop.f32.mrf.mxu2  ;;  %v3550_v43 = vpop.f32.mrf.mxu3 }
 0x84c   :  { %v3531_v28 = vadd.f32 %v9049_v6, %v3530_v0  ;;  %v3551_v50 = vadd.f32 %v9057_v3, %v3550_v43 }
 0x84e   :  { %v3574_v21 = vrot.slane %v3531_v28, 6  ;;  %v3597_v19 = vrot.slane %v3551_v50, 6 }
 0x850   :  { %v3576_v1 = vadd.f32 %v3574_v21, %v9061_v54  ;;  %v3599_v24 = vadd.f32 %v3597_v19, %v9065_v11  ;;  %v3570_v21 = vpop.f32.mrf.mxu0 }
 0x852   :  { %v5806_v37 = vmul.f32 -1.442695, %v3576_v1  ;;  %v5807_v2 = vmul.f32 -1.442695, %v3599_v24  ;;  %v3652_v47 = vpop.f32.mrf.mxu1 }
 0x853   :  { %v3653_v22 = vadd.f32 %v9075_v36, %v3652_v47 }
 0x854   :  { %6084 = vpow2.f32 %v5806_v37  ;;  %v3571_v37 = vadd.f32 %v9095_v8, %v3570_v21 }
 0x855   :  { %6086 = vpow2.f32 %v5807_v2  ;;  %v3696_v18 = vrot.slane %v3653_v22, 4 }
 0x857   :  { %v3698_v42 = vadd.f32 %v3696_v18, %v9086_v63 }
 0x858   :  { %v3672_v48 = vpop.f32.mrf.mxu2 }
 0x859   :  { %v5811_v56 = vmul.f32 -1.442695, %v3698_v42  ;;  %v3673_v17 = vadd.f32 %v9040_v32, %v3672_v48 }
 0x85a   :  { %v6085_v44 = vpop.eup %6084 }
 0x85b   :  { %v6087_v38 = vpop.eup %6086  ;;  %v3580_v59 = vadd.f32 1.0, %v6085_v44  ;;  %6088 = vpow2.f32 %v5811_v56  ;;  %v3719_v26 = vrot.slane %v3673_v17, 4  ;;  %v3692_v56 = vpop.f32.mrf.mxu3 }
 0x85c   :  { %v3603_v45 = vadd.f32 1.0, %v6087_v38  ;;  %v3693_v21 = vadd.f32 %v9105_v15, %v3692_v56 }
 0x85d   :  { %6090 = vrcp.f32 %v3580_v59  ;;  %v3721_v40 = vadd.f32 %v3719_v26, %v9059_v49  ;;  %v3592_v2 = vand.u32 2147483648, %v3580_v59  ;;  %v3590_v18 = vand.u32 2147483647, %v3580_v59 }
 0x85e   :  { %6092 = vrcp.f32 %v3603_v45  ;;  %vm3586_vm1 = vweird.f32 %v3580_v59  ;;  %v3620_v26 = vrot.slane %v3571_v37, 6  ;;  %vm3609_vm5 = vweird.f32 %v3603_v45 }
 0x85f   :  { %v5812_v0 = vmul.f32 -1.442695, %v3721_v40  ;;  %v3593_v40 = vor.u32 1.1754944e-38, %v3592_v2  ;;  %vm3591_vm3 = vcmp.eq.f32.partialorder %v3590_v18, 8.507059e+37 }
 0x861   :  { %v6089_v4 = vpop.eup %6088  ;;  %6094 = vpow2.f32 %v5812_v0 }
 0x862   :  { %v3702_v43 = vadd.f32 1.0, %v6089_v4 }
 0x863   :  { %v6091_v28 = vpop.eup %6090 }
 0x864   :  { %v6093_v50 = vpop.eup %6092  ;;  %v3582_v19 = vmul.f32 %v6091_v28, %v3580_v59  ;;  %6096 = vrcp.f32 %v3702_v43  ;;  %vm3587_vm0 = vweird.f32 %v6091_v28  ;;  %v3714_v53 = vand.u32 2147483648, %v3702_v43 }
 0x865   :  { %v3605_v1 = vmul.f32 %v6093_v50, %v3603_v45  ;;  %vm3588_vm2 = vmor %vm3586_vm1, %vm3587_vm0  ;;  %vm3610_vm4 = vweird.f32 %v6093_v50  ;;  %v3712_v37 = vand.u32 2147483647, %v3702_v43  ;;  %vm3708_vm9 = vweird.f32 %v3702_v43 }
 0x866   :  { %v3583_v24 = vsub.f32 1.0, %v3582_v19  ;;  %vm3611_vm8 = vmor %vm3609_vm5, %vm3610_vm4 }
 0x867   :  { %v3606_v47 = vsub.f32 1.0, %v3605_v1  ;;  %v6095_v42 = vpop.eup %6094  ;;  %vm3713_vm13 = vcmp.eq.f32.partialorder %v3712_v37, 8.507059e+37 }
 0x868   :  { %v3584_v22 = vmul.f32 %v6091_v28, %v3583_v24  ;;  %v3725_v38 = vadd.f32 1.0, %v6095_v42 }
 0x869   :  { %v3607_v48 = vmul.f32 %v6093_v50, %v3606_v47  ;;  %v3615_v47 = vand.u32 2147483648, %v3603_v45 }
 0x86a   :  { %v6097_v17 = vpop.eup %6096  ;;  %v3585_v44 = vadd.f32 %v6091_v28, %v3584_v22  ;;  %6098 = vrcp.f32 %v3725_v38  ;;  %v3613_v22 = vand.u32 2147483647, %v3603_v45  ;;  %vm3731_vm7 = vweird.f32 %v3725_v38 }
 0x86b   :  { %v3704_v4 = vmul.f32 %v6097_v17, %v3702_v43  ;;  %v3608_v1 = vadd.f32 %v6093_v50, %v3607_v48  ;;  %vm3709_vm6 = vweird.f32 %v6097_v17  ;;  %v3616_v56 = vor.u32 1.1754944e-38, %v3615_v47 }
 0x86c   :  { %v3589_v0 = vsel %vm3588_vm2, %v6091_v28, %v3585_v44  ;;  %vm3710_vm10 = vmor %vm3708_vm9, %vm3709_vm6  ;;  %v3715_v48 = vor.u32 1.1754944e-38, %v3714_v53  ;;  %v3742_v44 = vrot.slane %v3693_v21, 4  ;;  %vm3614_vm12 = vcmp.eq.f32.partialorder %v3613_v22, 8.507059e+37 }
 0x86d   :  { %v3594_v19 = vsel %vm3591_vm3, %v3593_v40, %v3589_v0  ;;  %v3705_v24 = vsub.f32 1.0, %v3704_v4  ;;  %v3612_v28 = vsel %vm3611_vm8, %v6093_v50, %v3608_v1  ;;  %v3735_v50 = vand.u32 2147483647, %v3725_v38 }
 0x86e   :  { %v3622_v57 = vmul.f32 %v3620_v26, %v3594_v19  ;;  %v3617_v45 = vsel %vm3614_vm12, %v3616_v56, %v3612_v28 }
 0x86f   :  { %v3706_v59 = vmul.f32 %v6097_v17, %v3705_v24  ;;  %v3737_v24 = vand.u32 2147483648, %v3725_v38  ;;  %v3625_v1 = vsub.f32 1.0, %v3617_v45  ;;  %vm3736_vm1 = vcmp.eq.f32.partialorder %v3735_v50, 8.507059e+37 }
 0x870   :  { %v3623_v2 = vadd.f32 %v3622_v57, %v9109_v35  ;;  %v6099_v42 = vpop.eup %6098  ;;  %v3627_v57 = vrot.slane %v9122_v7, 6 }
 0x871   :  { %v3707_v18 = vadd.f32 %v6097_v17, %v3706_v59  ;;  %v3727_v26 = vmul.f32 %v6099_v42, %v3725_v38  ;;  %vm3732_vm15 = vweird.f32 %v6099_v42  ;;  %v3738_v22 = vor.u32 1.1754944e-38, %v3737_v24 }
 0x872   :  { %6100 = vtanh.f32 %v3623_v2  ;;  %vm3733_vm0 = vmor %vm3731_vm7, %vm3732_vm15 }
 0x873   :  { %v3711_v40 = vsel %vm3710_vm10, %v6097_v17, %v3707_v18  ;;  %v3728_v0 = vsub.f32 1.0, %v3727_v26  ;;  %v3629_v17 = vmul.f32 %v3627_v57, %v3617_v45  ;;  %v3749_v18 = vrot.slane %v9144_v41, 2 }
 0x874   :  { %v3716_v4 = vsel %vm3713_vm13, %v3715_v48, %v3711_v40 }
 0x875   :  { %v3744_v19 = vmul.f32 %v3742_v44, %v3716_v4  ;;  %v3729_v43 = vmul.f32 %v6099_v42, %v3728_v0 }
 0x877   :  { %v3745_v47 = vadd.f32 %v3744_v19, %v9118_v58  ;;  %v3730_v53 = vadd.f32 %v6099_v42, %v3729_v43 }
 0x878   :  { %v6101_v59 = vpop.eup %6100 }
 0x879   :  { %6102 = vtanh.f32 %v3745_v47  ;;  %v3626_v21 = vmul.f32 %v6101_v59, %v3625_v1  ;;  %v3734_v37 = vsel %vm3733_vm0, %v6099_v42, %v3730_v53 }
 0x87a   :  { %v3739_v7 = vsel %vm3736_vm1, %v3738_v22, %v3734_v37 }
 0x87b   :  { %v9175_v2 = vadd.f32 %v3629_v17, %v3626_v21  ;;  %v3747_v56 = vsub.f32 1.0, %v3739_v7  ;;  %v3751_v44 = vmul.f32 %v3749_v18, %v3739_v7 }
 0x87d   :  { %v3754_v28 = vrot.slane %v9175_v2, 2 }
 0x87f   :  { %v6103_v48 = vpop.eup %6102  ;;  %5813 = vmatmul.msk.f32.vlgmr.msra.gmra.mxu0 %vm1060_vm14, %v3754_v28  ;;  %5814 = vmatmul.msk.f32.vlgmr.msra.gmra.mxu1 %vm1060_vm14, %v3754_v28 }
 0x880   :  { %v3748_v38 = vmul.f32 %v6103_v48, %v3747_v56  ;;  %5815 = vmatmul.msk.f32.vlgmr.msra.gmra.mxu2 %vm1060_vm14, %v3754_v28  ;;  %4053 = vmatpush.msra.mxu0 %v8866_v30 }
 0x881   :  { %4135 = vmatpush.msra.mxu1 %v8857_v16  ;;  %4155 = vmatpush.msra.mxu2 %v8792_v9 }
 0x882   :  { %v9185_v42 = vadd.f32 %v3751_v44, %v3748_v38  ;;  %4054 = vmatpush.msra.mxu0 %v8914_v34 }
 0x883   :  { %4136 = vmatpush.msra.mxu1 %v8878_v51  ;;  %4156 = vmatpush.msra.mxu2 %v8807_v12 }
 0x884   :  { %v3876_v41 = vrot.slane %v9185_v42, 4  ;;  %4055 = vmatpush.msra.mxu0 %v8927_v20 }
 0x885   :  { %4137 = vmatpush.msra.mxu1 %v8887_v27  ;;  %4157 = vmatpush.msra.mxu2 %v8826_v52 }
 0x886   :  { %5818 = vmatmul.msk.f32.vlgmr.msra.gmra.mxu3 %vm1060_vm14, %v3876_v41  ;;  %4056 = vmatpush.msra.mxu0 %v8937_v25 }
 0x887   :  { %5819 = vmatmul.msk.f32.vlgmr.msrb.gmra.mxu0 %vm1060_vm14, %v3876_v41  ;;  %5820 = vmatmul.msk.f32.vlgmr.msrb.gmra.mxu1 %vm1060_vm14, %v3876_v41 }
 0x888   :  { %4175 = vmatpush.msra.mxu3 %v8957_v23  ;;  %4138 = vmatpush.msra.mxu1 %v8905_v60 }
 0x889   :  { %4158 = vmatpush.msra.mxu2 %v8841_v62  ;;  %4247 = vmatpush.msrb.mxu0 %v8754_v39 }
 0x88a   :  { %4176 = vmatpush.msra.mxu3 %v8965_v61  ;;  %4267 = vmatpush.msrb.mxu1 %v8786_v14 }
 0x88b   :  { %4248 = vmatpush.msrb.mxu0 %v8766_v33 }
 0x88c   :  { %4177 = vmatpush.msra.mxu3 %v8973_v10  ;;  %4268 = vmatpush.msrb.mxu1 %v8800_v29 }
 0x88d   :  { %4249 = vmatpush.msrb.mxu0 %v8778_v13 }
 0x88e   :  { %4178 = vmatpush.msra.mxu3 %v8985_v5  ;;  %4269 = vmatpush.msrb.mxu1 %v8821_v31 }
 0x88f   :  { %4250 = vmatpush.msrb.mxu0 %v8812_v46 }
 0x890   :  { %4270 = vmatpush.msrb.mxu1 %v8836_v55 }
 0x8fc   :  { %v3774_v39 = vpop.f32.mrf.mxu0  ;;  %v3794_v9 = vpop.f32.mrf.mxu1 }
 0x8fd   :  { %v3775_v14 = vadd.f32 %v9049_v6, %v3774_v39  ;;  %v3795_v33 = vadd.f32 %v9057_v3, %v3794_v9 }
 0x8ff   :  { %v3818_v12 = vrot.slane %v3775_v14, 4  ;;  %v3841_v52 = vrot.slane %v3795_v33, 4 }
 0x901   :  { %v3820_v29 = vadd.f32 %v3818_v12, %v9061_v54  ;;  %v3843_v13 = vadd.f32 %v3841_v52, %v9065_v11 }
 0x903   :  { %v5816_v62 = vmul.f32 -1.442695, %v3820_v29  ;;  %v5817_v16 = vmul.f32 -1.442695, %v3843_v13  ;;  %v3814_v53 = vpop.f32.mrf.mxu2 }
 0x904   :  { %v3916_v30 = vpop.f32.mrf.mxu0  ;;  %v3815_v37 = vadd.f32 %v9095_v8, %v3814_v53 }
 0x905   :  { %6104 = vpow2.f32 %v5816_v62  ;;  %v3917_v46 = vadd.f32 %v9040_v32, %v3916_v30 }
 0x906   :  { %6106 = vpow2.f32 %v5817_v16  ;;  %v3864_v39 = vrot.slane %v3815_v37, 4 }
 0x907   :  { %v3963_v31 = vrot.slane %v3917_v46, 6 }
 0x909   :  { %v3965_v55 = vadd.f32 %v3963_v31, %v9059_v49  ;;  %v3896_v51 = vpop.f32.mrf.mxu3  ;;  %v3936_v31 = vpop.f32.mrf.mxu1 }
 0x90a   :  { %v3897_v27 = vadd.f32 %v9075_v36, %v3896_v51 }
 0x90b   :  { %v6105_v60 = vpop.eup %6104  ;;  %v5822_v26 = vmul.f32 -1.442695, %v3965_v55 }
 0x90c   :  { %v6107_v40 = vpop.eup %6106  ;;  %v3824_v45 = vadd.f32 1.0, %v6105_v60  ;;  %v3940_v4 = vrot.slane %v3897_v27, 6 }
 0x90d   :  { %v3847_v0 = vadd.f32 1.0, %v6107_v40  ;;  %6108 = vpow2.f32 %v5822_v26  ;;  %v3871_v26 = vrot.slane %v9175_v2, 6  ;;  %v3937_v40 = vadd.f32 %v9105_v15, %v3936_v31  ;;  %v9327_v31 = vld [vmem:[%s9731_s7 + $0x38] sm:$0xff] }
 0x90e   :  { %6110 = vrcp.f32 %v3824_v45  ;;  %v3942_v19 = vadd.f32 %v3940_v4, %v9086_v63  ;;  %v3836_v22 = vand.u32 2147483648, %v3824_v45  ;;  %v3834_v28 = vand.u32 2147483647, %v3824_v45 }
 0x90f   :  { %6112 = vrcp.f32 %v3847_v0  ;;  %vm3830_vm3 = vweird.f32 %v3824_v45  ;;  %v3859_v12 = vand.u32 2147483648, %v3847_v0  ;;  %vm3853_vm8 = vweird.f32 %v3847_v0 }
 0x910   :  { %v5821_v57 = vmul.f32 -1.442695, %v3942_v19  ;;  %v3837_v44 = vor.u32 1.1754944e-38, %v3836_v22  ;;  %vm3835_vm5 = vcmp.eq.f32.partialorder %v3834_v28, 8.507059e+37  ;;  %v3857_v29 = vand.u32 2147483647, %v3847_v0 }
 0x911   :  { %v3860_v46 = vor.u32 1.1754944e-38, %v3859_v12  ;;  %v9292_v12 = vld [vmem:[%s9731_s7 + $0x88] sm:$0xff] }
 0x912   :  { %6114 = vpow2.f32 %v5821_v57  ;;  %vm3858_vm10 = vcmp.eq.f32.partialorder %v3857_v29, 8.507059e+37 }
 0x913   :  { %v6109_v24 = vpop.eup %6108 }
 0x914   :  { %v6111_v50 = vpop.eup %6110  ;;  %v9220_v1 = vadd.f32 1.0, %v6109_v24 }
 0x915   :  { %v6113_v43 = vpop.eup %6112  ;;  %v3826_v47 = vmul.f32 %v6111_v50, %v3824_v45  ;;  %vm3831_vm2 = vweird.f32 %v6111_v50 }
 0x916   :  { %v3849_v59 = vmul.f32 %v6113_v43, %v3847_v0  ;;  %6116 = vrcp.f32 %v9220_v1  ;;  %vm3832_vm4 = vmor %vm3830_vm3, %vm3831_vm2  ;;  %vm3854_vm6 = vweird.f32 %v6113_v43  ;;  %vm3975_vm1 = vweird.f32 %v9220_v1 }
 0x917   :  { %v3827_v21 = vsub.f32 1.0, %v3826_v47  ;;  %vm3855_vm9 = vmor %vm3853_vm8, %vm3854_vm6 }
 0x918   :  { %v3850_v17 = vsub.f32 1.0, %v3849_v59  ;;  %v6115_v18 = vpop.eup %6114 }
 0x919   :  { %v3828_v7 = vmul.f32 %v6111_v50, %v3827_v21  ;;  %v3946_v38 = vadd.f32 1.0, %v6115_v18  ;;  %v3986_v21 = vrot.slane %v3937_v40, 6  ;;  %v3979_v18 = vand.u32 2147483647, %v9220_v1 }
 0x91a   :  { %v3851_v56 = vmul.f32 %v6113_v43, %v3850_v17 }
 0x91b   :  { %v3829_v48 = vadd.f32 %v6111_v50, %v3828_v7  ;;  %6118 = vrcp.f32 %v3946_v38  ;;  %v3958_v45 = vand.u32 2147483648, %v3946_v38  ;;  %v3956_v19 = vand.u32 2147483647, %v3946_v38 }
 0x91c   :  { %v9224_v9 = vpop.eup %6116  ;;  %v3852_v33 = vadd.f32 %v6113_v43, %v3851_v56  ;;  %vm3952_vm13 = vweird.f32 %v3946_v38  ;;  %v3981_v7 = vand.u32 2147483648, %v9220_v1  ;;  %vm3980_vm3 = vcmp.eq.f32.partialorder %v3979_v18, 8.507059e+37 }
 0x91d   :  { %v3833_v41 = vsel %vm3832_vm4, %v6111_v50, %v3829_v48  ;;  %v3971_v62 = vmul.f32 %v9224_v9, %v9220_v1  ;;  %v3959_v59 = vor.u32 1.1754944e-38, %v3958_v45  ;;  %vm3957_vm7 = vcmp.eq.f32.partialorder %v3956_v19, 8.507059e+37  ;;  %v9254_v1 = vld [vmem:[%s9731_s7 + $0x58] sm:$0xff] }
 0x91e   :  { %v3838_v14 = vsel %vm3835_vm5, %v3837_v44, %v3833_v41  ;;  %v3856_v16 = vsel %vm3855_vm9, %v6113_v43, %v3852_v33  ;;  %vm3976_vm0 = vweird.f32 %v9224_v9  ;;  %v3982_v44 = vor.u32 1.1754944e-38, %v3981_v7  ;;  %v9260_v41 = vld [vmem:[%s9731_s7 + $0x78] sm:$0xff]  ;;  %v9279_v33 = vld [vmem:[%s9731_s7 + $0x90] sm:$0xff] }
 0x91f   :  { %v3866_v52 = vmul.f32 %v3864_v39, %v3838_v14  ;;  %v3861_v51 = vsel %vm3858_vm10, %v3860_v46, %v3856_v16  ;;  %v3972_v27 = vsub.f32 1.0, %v3971_v62  ;;  %vm9240_vm2 = vmor %vm3975_vm1, %vm3976_vm0  ;;  %v9266_v39 = vld [vmem:[%s9731_s7 + $0x98] sm:$0xff]  ;;  %v9273_v14 = vld [vmem:[%s9731_s7 + $0x70] sm:$0xff] }
 0x920   :  { %v3869_v4 = vsub.f32 1.0, %v3861_v51  ;;  %v3873_v43 = vmul.f32 %v3871_v26, %v3861_v51  ;;  %v9306_v62 = vld [vmem:[%s9731_s7 + $0x80] sm:$0xff]  ;;  %v9353_v51 = vld [vmem:[%s9731_s7 + $0x28] sm:$0xff] }
 0x921   :  { %v3867_v13 = vadd.f32 %v3866_v52, %v9109_v35  ;;  %v6119_v30 = vpop.eup %6118  ;;  %v3973_v24 = vmul.f32 %v9224_v9, %v3972_v27  ;;  %v3993_v52 = vrot.slane %v9185_v42, 2  ;;  %v9366_v27 = vld [vmem:[%s9731_s7 + $0x20] sm:$0xff] }
 0x922   :  { %v3948_v55 = vmul.f32 %v6119_v30, %v3946_v38  ;;  %vm3953_vm12 = vweird.f32 %v6119_v30 }
 0x923   :  { %6120 = vtanh.f32 %v3867_v13  ;;  %vm3954_vm15 = vmor %vm3952_vm13, %vm3953_vm12  ;;  %v3974_v17 = vadd.f32 %v9224_v9, %v3973_v24  ;;  %v9300_v13 = vld [vmem:[%s9731_s7 + $0x60] sm:$0xff] }
 0x924   :  { %v3949_v60 = vsub.f32 1.0, %v3948_v55  ;;  %v9340_v55 = vld [vmem:[%s9731_s7 + $0x30] sm:$0xff] }
 0x925   :  { %v3978_v38 = vsel %vm9240_vm2, %v9224_v9, %v3974_v17 }
 0x926   :  { %v3950_v0 = vmul.f32 %v6119_v30, %v3949_v60  ;;  %v3983_v9 = vsel %vm3980_vm3, %v3982_v44, %v3978_v38 }
 0x927   :  { %v3991_v29 = vsub.f32 1.0, %v3983_v9  ;;  %v3995_v42 = vmul.f32 %v3993_v52, %v3983_v9 }
 0x928   :  { %v3951_v47 = vadd.f32 %v6119_v30, %v3950_v0 }
 0x929   :  { %v6121_v57 = vpop.eup %6120 }
 0x92a   :  { %v3870_v50 = vmul.f32 %v6121_v57, %v3869_v4  ;;  %v3955_v2 = vsel %vm3954_vm15, %v6119_v30, %v3951_v47 }
 0x92b   :  { %v3960_v22 = vsel %vm3957_vm7, %v3959_v59, %v3955_v2 }
 0x92c   :  { %v9232_v53 = vadd.f32 %v3873_v43, %v3870_v50  ;;  %v3988_v28 = vmul.f32 %v3986_v21, %v3960_v22 }
 0x92e   :  { %v3998_v37 = vrot.slane %v9232_v53, 4  ;;  %v3989_v48 = vadd.f32 %v3988_v28, %v9118_v58 }
 0x930   :  { %5823 = vmatmul.msk.f32.vlgmr.msrb.gmra.mxu2 %vm1060_vm14, %v3998_v37  ;;  %5824 = vmatmul.msk.f32.vlgmr.msrb.gmra.mxu3 %vm1060_vm14, %v3998_v37  ;;  %6122 = vtanh.f32 %v3989_v48 }
 0x931   :  { %5825 = vmatmul.msk.f32.vlgmr.msra.gmra.mxu0 %vm1060_vm14, %v3998_v37  ;;  %4287 = vmatpush.msrb.mxu2 %v9254_v1 }
 0x932   :  { %4358 = vmatpush.msrb.mxu3 %v9260_v41  ;;  %4378 = vmatpush.msra.mxu0 %v9266_v39 }
 0x933   :  { %4288 = vmatpush.msrb.mxu2 %v8914_v34  ;;  %v9286_v34 = vld [vmem:[%s9731_s7 + $0x68] sm:$0xff] }
 0x934   :  { %4359 = vmatpush.msrb.mxu3 %v9273_v14  ;;  %4379 = vmatpush.msra.mxu0 %v9279_v33 }
 0x935   :  { %4289 = vmatpush.msrb.mxu2 %v8927_v20 }
 0x936   :  { %4360 = vmatpush.msrb.mxu3 %v9286_v34  ;;  %4380 = vmatpush.msra.mxu0 %v9292_v12  ;;  %v6123_v20 = vpop.eup %6122 }
 0x937   :  { %4290 = vmatpush.msrb.mxu2 %v8937_v25  ;;  %v3992_v16 = vmul.f32 %v6123_v20, %v3991_v29  ;;  %v9321_v25 = vld [vmem:[%s9731_s7 + $0x18] sm:$0xff] }
 0x938   :  { %4361 = vmatpush.msrb.mxu3 %v9300_v13  ;;  %4381 = vmatpush.msra.mxu0 %v9306_v62 }
 0x939   :  { %v3996_v30 = vadd.f32 %v3995_v42, %v3992_v16 }
 0x93b   :  { %v9309_v46 = vrot.slane %v3996_v30, 2 }
 0x93d   :  { %5828 = vmatmul.msk.f32.vlgmr.msra.gmra.mxu1 %vm1060_vm14, %v9309_v46  ;;  %5829 = vmatmul.msk.f32.vlgmr.msra.gmra.mxu2 %vm1060_vm14, %v9309_v46 }
 0x93e   :  { %5830 = vmatmul.msk.f32.vlgmr.msra.gmra.mxu3 %vm1060_vm14, %v9309_v46  ;;  %4398 = vmatpush.msra.mxu1 %v8957_v23  ;;  %v9334_v23 = vld [vmem:[%s9731_s7 + $0x10] sm:$0xff] }
 0x93f   :  { %4479 = vmatpush.msra.mxu2 %v9321_v25  ;;  %4499 = vmatpush.msra.mxu3 %v9327_v31 }
 0x940   :  { %4399 = vmatpush.msra.mxu1 %v8965_v61  ;;  %v9347_v61 = vld [vmem:[%s9731_s7 + $0x8] sm:$0xff] }
 0x941   :  { %4480 = vmatpush.msra.mxu2 %v9334_v23  ;;  %4500 = vmatpush.msra.mxu3 %v9340_v55 }
 0x942   :  { %4400 = vmatpush.msra.mxu1 %v8973_v10  ;;  %v9360_v10 = vld [vmem:[%s9731_s7] sm:$0xff] }
 0x943   :  { %4481 = vmatpush.msra.mxu2 %v9347_v61  ;;  %4501 = vmatpush.msra.mxu3 %v9353_v51 }
 0x944   :  { %4401 = vmatpush.msra.mxu1 %v8985_v5 }
 0x945   :  { %4482 = vmatpush.msra.mxu2 %v9360_v10  ;;  %4502 = vmatpush.msra.mxu3 %v9366_v27 }
 0x9ae   :  { %v4058_v18 = vpop.f32.mrf.mxu0 }
 0x9b3   :  { %v4018_v60 = vpop.f32.mrf.mxu2  ;;  %v4038_v26 = vpop.f32.mrf.mxu3 }
 0x9b4   :  { %v4019_v40 = vadd.f32 %v9049_v6, %v4018_v60  ;;  %v4039_v5 = vadd.f32 %v9057_v3, %v4038_v26 }
 0x9b6   :  { %v4062_v45 = vrot.slane %v4019_v40, 2  ;;  %v4085_v4 = vrot.slane %v4039_v5, 2 }
 0x9b8   :  { %v4064_v0 = vadd.f32 %v4062_v45, %v9061_v54  ;;  %v4087_v19 = vadd.f32 %v4085_v4, %v9065_v11 }
 0x9ba   :  { %v5826_v57 = vmul.f32 -1.442695, %v4064_v0  ;;  %v5827_v24 = vmul.f32 -1.442695, %v4087_v19  ;;  %v4140_v50 = vpop.f32.mrf.mxu1 }
 0x9bb   :  { %v4141_v43 = vadd.f32 %v9075_v36, %v4140_v50 }
 0x9bc   :  { %6124 = vpow2.f32 %v5826_v57 }
 0x9bd   :  { %6126 = vpow2.f32 %v5827_v24  ;;  %v4183_v47 = vadd.f32 %v4141_v43, %v9086_v63 }
 0x9bf   :  { %v5831_v59 = vmul.f32 -1.442695, %v4183_v47 }
 0x9c0   :  { %v4160_v6 = vpop.f32.mrf.mxu2 }
 0x9c1   :  { %6128 = vpow2.f32 %v5831_v59  ;;  %v4161_v17 = vadd.f32 %v9040_v32, %v4160_v6  ;;  %v4059_v32 = vadd.f32 %v9095_v8, %v4058_v18  ;;  %v4180_v24 = vpop.f32.mrf.mxu3  ;;  %v4115_v18 = vrot.slane %v9232_v53, 6 }
 0x9c2   :  { %v6125_v21 = vpop.eup %6124 }
 0x9c3   :  { %v6127_v2 = vpop.eup %6126  ;;  %v4068_v3 = vadd.f32 1.0, %v6125_v21  ;;  %v4203_v11 = vadd.f32 %v4161_v17, %v9059_v49  ;;  %v4108_v26 = vrot.slane %v4059_v32, 2  ;;  %v4181_v17 = vadd.f32 %v9105_v15, %v4180_v24 }
 0x9c4   :  { %v4091_v54 = vadd.f32 1.0, %v6127_v2 }
 0x9c5   :  { %6130 = vrcp.f32 %v4068_v3  ;;  %v5832_v37 = vmul.f32 -1.442695, %v4203_v11  ;;  %v4080_v38 = vand.u32 2147483648, %v4068_v3  ;;  %v4078_v52 = vand.u32 2147483647, %v4068_v3 }
 0x9c6   :  { %6132 = vrcp.f32 %v4091_v54  ;;  %vm4074_vm5 = vweird.f32 %v4068_v3  ;;  %vm4097_vm10 = vweird.f32 %v4091_v54  ;;  %v4103_v0 = vand.u32 2147483648, %v4091_v54 }
 0x9c7   :  { %v6129_v22 = vpop.eup %6128  ;;  %6134 = vpow2.f32 %v5832_v37  ;;  %v4081_v30 = vor.u32 1.1754944e-38, %v4080_v38  ;;  %vm4079_vm8 = vcmp.eq.f32.partialorder %v4078_v52, 8.507059e+37  ;;  %v4101_v57 = vand.u32 2147483647, %v4091_v54 }
 0x9c8   :  { %v4187_v7 = vadd.f32 1.0, %v6129_v22 }
 0x9c9   :  { %vm4102_vm0 = vcmp.eq.f32.partialorder %v4101_v57, 8.507059e+37  ;;  %v9467_v57 = vld [vmem:[%s9732_s8] ss:$0 sm:$0xff] }
 0x9ca   :  { %6136 = vrcp.f32 %v4187_v7  ;;  %v4199_v19 = vand.u32 2147483648, %v4187_v7  ;;  %v4197_v43 = vand.u32 2147483647, %v4187_v7  ;;  %vm4193_vm15 = vweird.f32 %v4187_v7 }
 0x9cb   :  { %v6131_v28 = vpop.eup %6130 }
 0x9cc   :  { %v6133_v36 = vpop.eup %6132  ;;  %v4070_v63 = vmul.f32 %v6131_v28, %v4068_v3  ;;  %vm4075_vm4 = vweird.f32 %v6131_v28  ;;  %v4104_v3 = vor.u32 1.1754944e-38, %v4103_v0  ;;  %vm4198_vm1 = vcmp.eq.f32.partialorder %v4197_v43, 8.507059e+37 }
 0x9cd   :  { %v4093_v56 = vmul.f32 %v6133_v36, %v4091_v54  ;;  %v6135_v29 = vpop.eup %6134  ;;  %vm4076_vm6 = vmor %vm4074_vm5, %vm4075_vm4  ;;  %vm4098_vm9 = vweird.f32 %v6133_v36  ;;  %v4200_v54 = vor.u32 1.1754944e-38, %v4199_v19 }
 0x9ce   :  { %v4071_v48 = vsub.f32 1.0, %v4070_v63  ;;  %v4207_v42 = vadd.f32 1.0, %v6135_v29  ;;  %vm9379_vm13 = vmor %vm4097_vm10, %vm4098_vm9 }
 0x9cf   :  { %v4094_v44 = vsub.f32 1.0, %v4093_v56 }
 0x9d0   :  { %v4072_v9 = vmul.f32 %v6131_v28, %v4071_v48  ;;  %v6137_v20 = vpop.eup %6136  ;;  %6138 = vrcp.f32 %v4207_v42  ;;  %v4217_v56 = vand.u32 2147483647, %v4207_v42  ;;  %vm4213_vm3 = vweird.f32 %v4207_v42 }
 0x9d1   :  { %v4095_v49 = vmul.f32 %v6133_v36, %v4094_v44  ;;  %v4189_v60 = vmul.f32 %v6137_v20, %v4187_v7  ;;  %vm4194_vm12 = vweird.f32 %v6137_v20 }
 0x9d2   :  { %v4073_v16 = vadd.f32 %v6131_v28, %v4072_v9  ;;  %vm4195_vm7 = vmor %vm4193_vm15, %vm4194_vm12  ;;  %vm4218_vm5 = vcmp.eq.f32.partialorder %v4217_v56, 8.507059e+37 }
 0x9d3   :  { %v4096_v45 = vadd.f32 %v6133_v36, %v4095_v49  ;;  %v4190_v8 = vsub.f32 1.0, %v4189_v60 }
 0x9d4   :  { %v4077_v40 = vsel %vm4076_vm6, %v6131_v28, %v4073_v16 }
 0x9d5   :  { %v4082_v5 = vsel %vm4079_vm8, %v4081_v30, %v4077_v40  ;;  %v4191_v50 = vmul.f32 %v6137_v20, %v4190_v8  ;;  %v4100_v21 = vsel %vm9379_vm13, %v6133_v36, %v4096_v45  ;;  %v4219_v36 = vand.u32 2147483648, %v4207_v42  ;;  %v9421_v40 = vld [vmem:[%s9731_s7 + $0xb8] sm:$0xff]  ;;  %v9439_v45 = vld [vmem:[%s9731_s7 + $0xb0] sm:$0xff]  ;;  %v9448_v8 = vld [vmem:[%s9731_s7 + $0xa8] sm:$0xff] }
 0x9d6   :  { %v4110_v4 = vmul.f32 %v4108_v26, %v4082_v5  ;;  %v6139_v2 = vpop.eup %6138  ;;  %v4105_v37 = vsel %vm4102_vm0, %v4104_v3, %v4100_v21  ;;  %v9405_v26 = vld [vmem:[%s9731_s7 + $0x50] sm:$0xff]  ;;  %v9428_v5 = vld [vmem:[%s9731_s7 + $0x40] sm:$0xff] }
 0x9d7   :  { %v4192_v6 = vadd.f32 %v6137_v20, %v4191_v50  ;;  %v4209_v11 = vmul.f32 %v6139_v2, %v4207_v42  ;;  %vm4214_vm2 = vweird.f32 %v6139_v2  ;;  %v4113_v38 = vsub.f32 1.0, %v4105_v37  ;;  %v9473_v50 = vld [vmem:[%s9732_s8 + $0x1] ss:$0 sm:$0xff]  ;;  %v9821_v21 = vld [vmem:[#allocation11_spill] sm:$0xff] }
 0x9d8   :  { %v4111_v47 = vadd.f32 %v4110_v4, %v9109_v35  ;;  %v4117_v9 = vmul.f32 %v4115_v18, %v4105_v37  ;;  %vm4215_vm4 = vmor %vm4213_vm3, %vm4214_vm2  ;;  %v4220_v52 = vor.u32 1.1754944e-38, %v4219_v36  ;;  %v9456_v4 = vld [vmem:[%s9731_s7 + $0xa0] sm:$0xff] }
 0x9d9   :  { %v4196_v22 = vsel %vm4195_vm7, %v6137_v20, %v4192_v6  ;;  %v4210_v28 = vsub.f32 1.0, %v4209_v11  ;;  %v9487_v37 = vld [vmem:[%s9732_s8 + $0x3] ss:$0 sm:$0xff]  ;;  %v9822_v18 = vld [vmem:[#allocation8_spill] sm:$0xff] }
 0x9da   :  { %6140 = vtanh.f32 %v4111_v47  ;;  %v4201_v35 = vsel %vm4198_vm1, %v4200_v54, %v4196_v22  ;;  %v9820_v47 = vld [vmem:[#allocation13_spill] sm:$0xff] }
 0x9db   :  { %v4223_v63 = vmul.f32 %v4201_v35, %v4181_v17  ;;  %v4211_v7 = vmul.f32 %v6139_v2, %v4210_v28  ;;  %v9481_v54 = vld [vmem:[%s9732_s8 + $0x4] ss:$0 sm:$0xff] }
 0x9dd   :  { %v4224_v48 = vadd.f32 %v4223_v63, %v9118_v58  ;;  %v4212_v44 = vadd.f32 %v6139_v2, %v4211_v7 }
 0x9df   :  { %6142 = vtanh.f32 %v4224_v48  ;;  %v4216_v29 = vsel %vm4215_vm4, %v6139_v2, %v4212_v44  ;;  %v9823_v44 = vld [vmem:[#allocation9_spill] sm:$0xff] }
 0x9e0   :  { %v6141_v15 = vpop.eup %6140  ;;  %v4221_v20 = vsel %vm4218_vm5, %v4220_v52, %v4216_v29 }
 0x9e1   :  { %v4114_v32 = vmul.f32 %v6141_v15, %v4113_v38  ;;  %v4226_v16 = vsub.f32 1.0, %v4221_v20  ;;  %v4229_v42 = vmul.f32 %v4221_v20, %v9309_v46  ;;  %v9415_v46 = vld [vmem:[%s9731_s7 + $0x48] sm:$0xff] }
 0x9e3   :  { %v4118_v49 = vadd.f32 %v4117_v9, %v4114_v32 }
 0x9e5   :  { %v9388_v53 = vrot.slane %v4118_v49, 6  ;;  %v6143_v30 = vpop.eup %6142 }
 0x9e6   :  { %v4227_v58 = vmul.f32 %v6143_v30, %v4226_v16 }
 0x9e7   :  { %5833 = vmatmul.msk.f32.vlgmr.msrb.gmra.mxu0 %vm1060_vm14, %v9388_v53  ;;  %5834 = vmatmul.msk.f32.vlgmr.msrb.gmra.mxu1 %vm1060_vm14, %v9388_v53 }
 0x9e8   :  { %5835 = vmatmul.msk.f32.vlgmr.msrb.gmra.mxu2 %vm1060_vm14, %v9388_v53  ;;  %4519 = vmatpush.msrb.mxu0 %v9254_v1  ;;  %v9400_v60 = vadd.f32 %v4229_v42, %v4227_v58 }
 0x9e9   :  { %4601 = vmatpush.msrb.mxu1 %v9260_v41  ;;  %4621 = vmatpush.msrb.mxu2 %v9266_v39 }
 0x9ea   :  { %4520 = vmatpush.msrb.mxu0 %v9405_v26  ;;  %5838 = vmatmul.msk.f32.vlgmr.msrb.gmra.mxu3 %vm1060_vm14, %v9400_v60 }
 0x9eb   :  { %4602 = vmatpush.msrb.mxu1 %v9273_v14  ;;  %4622 = vmatpush.msrb.mxu2 %v9279_v33 }
 0x9ec   :  { %4521 = vmatpush.msrb.mxu0 %v9415_v46  ;;  %4641 = vmatpush.msrb.mxu3 %v9421_v40 }
 0x9ed   :  { %4603 = vmatpush.msrb.mxu1 %v9286_v34  ;;  %4623 = vmatpush.msrb.mxu2 %v9292_v12 }
 0x9ee   :  { %4522 = vmatpush.msrb.mxu0 %v9428_v5  ;;  %4642 = vmatpush.msrb.mxu3 %v9439_v45 }
 0x9ef   :  { %5839 = vmatmul.msk.f32.vlgmr.msra.gmra.mxu0 %vm1060_vm14, %v9400_v60  ;;  %5840 = vmatmul.msk.f32.vlgmr.msra.gmra.mxu1 %vm1060_vm14, %v9400_v60 }
 0x9f0   :  { %4604 = vmatpush.msrb.mxu1 %v9300_v13  ;;  %4624 = vmatpush.msrb.mxu2 %v9306_v62 }
 0x9f1   :  { %4723 = vmatpush.msra.mxu0 %v9321_v25  ;;  %4643 = vmatpush.msrb.mxu3 %v9448_v8 }
 0x9f2   :  { %4743 = vmatpush.msra.mxu1 %v9327_v31 }
 0x9f3   :  { %4724 = vmatpush.msra.mxu0 %v9334_v23  ;;  %4644 = vmatpush.msrb.mxu3 %v9456_v4 }
 0x9f4   :  { %4744 = vmatpush.msra.mxu1 %v9340_v55 }
 0x9f5   :  { %4725 = vmatpush.msra.mxu0 %v9347_v61 }
 0x9f6   :  { %4745 = vmatpush.msra.mxu1 %v9353_v51 }
 0x9f7   :  { %4726 = vmatpush.msra.mxu0 %v9360_v10 }
 0x9f8   :  { %4746 = vmatpush.msra.mxu1 %v9366_v27 }
 0xa64   :  { %v4252_v0 = vpop.f32.mrf.mxu0  ;;  %v4272_v19 = vpop.f32.mrf.mxu1 }
 0xa65   :  { %v4253_v24 = vadd.f32 %v9467_v57, %v4252_v0  ;;  %v4273_v43 = vadd.f32 %v9473_v50, %v4272_v19 }
 0xa67   :  { %v4295_v59 = vadd.f32 %v4253_v24, %v9820_v47  ;;  %v4315_v6 = vadd.f32 %v4273_v43, %v9821_v21 }
 0xa69   :  { %v5836_v2 = vmul.f32 -1.442695, %v4295_v59  ;;  %v5837_v3 = vmul.f32 -1.442695, %v4315_v6 }
 0xa6b   :  { %6144 = vpow2.f32 %v5836_v2  ;;  %v4292_v6 = vpop.f32.mrf.mxu2 }
 0xa6c   :  { %6146 = vpow2.f32 %v5837_v3  ;;  %v4383_v17 = vpop.f32.mrf.mxu0 }
 0xa6d   :  { %v4384_v11 = vadd.f32 %v9481_v54, %v4383_v17  ;;  %v4363_v22 = vpop.f32.mrf.mxu3 }
 0xa6e   :  { %v4364_v28 = vadd.f32 %v9487_v37, %v4363_v22 }
 0xa6f   :  { %v4430_v35 = vrot.slane %v4384_v11, 2  ;;  %v9498_v11 = vld [vmem:[%s9732_s8 + $0x2] ss:$0 sm:$0xff] }
 0xa70   :  { %v4407_v48 = vrot.slane %v4364_v28, 2  ;;  %v4293_v22 = vadd.f32 %v9498_v11, %v4292_v6 }
 0xa71   :  { %v6145_v63 = vpop.eup %6144  ;;  %v4432_v36 = vadd.f32 %v4430_v35, %v9822_v18 }
 0xa72   :  { %v6147_v56 = vpop.eup %6146  ;;  %v4299_v7 = vadd.f32 1.0, %v6145_v63  ;;  %v4409_v32 = vadd.f32 %v4407_v48, %v9823_v44 }
 0xa73   :  { %v4319_v38 = vadd.f32 1.0, %v6147_v56  ;;  %v5842_v15 = vmul.f32 -1.442695, %v4432_v36 }
 0xa74   :  { %6148 = vrcp.f32 %v4299_v7  ;;  %v5841_v9 = vmul.f32 -1.442695, %v4409_v32  ;;  %v4311_v0 = vand.u32 2147483648, %v4299_v7  ;;  %v4309_v24 = vand.u32 2147483647, %v4299_v7 }
 0xa75   :  { %6150 = vrcp.f32 %v4319_v38  ;;  %vm4305_vm8 = vweird.f32 %v4299_v7  ;;  %v4331_v56 = vand.u32 2147483648, %v4319_v38  ;;  %vm4325_vm13 = vweird.f32 %v4319_v38 }
 0xa76   :  { %6152 = vpow2.f32 %v5842_v15  ;;  %v4312_v17 = vor.u32 1.1754944e-38, %v4311_v0  ;;  %vm4310_vm10 = vcmp.eq.f32.partialorder %v4309_v24, 8.507059e+37  ;;  %v9824_v15 = vld [vmem:[#allocation7_spill] sm:$0xff]  ;;  %v9506_v24 = vld [vmem:[%s9732_s8 + $0x5] ss:$0 sm:$0xff] }
 0xa77   :  { %6154 = vpow2.f32 %v5841_v9 }
 0xa7a   :  { %v6149_v52 = vpop.eup %6148 }
 0xa7b   :  { %v6151_v29 = vpop.eup %6150  ;;  %v4301_v49 = vmul.f32 %v6149_v52, %v4299_v7  ;;  %vm4306_vm6 = vweird.f32 %v6149_v52  ;;  %v4329_v7 = vand.u32 2147483647, %v4319_v38 }
 0xa7c   :  { %v6153_v20 = vpop.eup %6152  ;;  %v4321_v16 = vmul.f32 %v6151_v29, %v4319_v38  ;;  %vm4307_vm9 = vmor %vm4305_vm8, %vm4306_vm6  ;;  %vm4326_vm12 = vweird.f32 %v6151_v29 }
 0xa7d   :  { %v4302_v30 = vsub.f32 1.0, %v4301_v49  ;;  %v9492_v58 = vadd.f32 1.0, %v6153_v20  ;;  %v6155_v43 = vpop.eup %6154  ;;  %vm4327_vm15 = vmor %vm4325_vm13, %vm4326_vm12  ;;  %vm4330_vm7 = vcmp.eq.f32.partialorder %v4329_v7, 8.507059e+37 }
 0xa7e   :  { %v4322_v42 = vsub.f32 1.0, %v4321_v16  ;;  %v4413_v3 = vadd.f32 1.0, %v6155_v43  ;;  %v4332_v16 = vor.u32 1.1754944e-38, %v4331_v56 }
 0xa7f   :  { %v4303_v19 = vmul.f32 %v6149_v52, %v4302_v30  ;;  %6156 = vrcp.f32 %v9492_v58  ;;  %vm4442_vm5 = vweird.f32 %v9492_v58 }
 0xa80   :  { %v4323_v59 = vmul.f32 %v6151_v29, %v4322_v42  ;;  %6158 = vrcp.f32 %v4413_v3  ;;  %v4425_v43 = vand.u32 2147483648, %v4413_v3  ;;  %vm4419_vm1 = vweird.f32 %v4413_v3 }
 0xa81   :  { %v4304_v2 = vadd.f32 %v6149_v52, %v4303_v19 }
 0xa82   :  { %v4324_v63 = vadd.f32 %v6151_v29, %v4323_v59 }
 0xa83   :  { %v4308_v35 = vsel %vm4307_vm9, %v6149_v52, %v4304_v2  ;;  %v4403_v52 = vpop.f32.mrf.mxu1 }
 0xa84   :  { %v4313_v28 = vsel %vm4310_vm10, %v4312_v17, %v4308_v35  ;;  %v4328_v49 = vsel %vm4327_vm15, %v6151_v29, %v4324_v63  ;;  %v4404_v38 = vadd.f32 %v9506_v24, %v4403_v52  ;;  %v4423_v29 = vand.u32 2147483647, %v4413_v3 }
 0xa85   :  { %v6157_v36 = vpop.eup %6156  ;;  %v4335_v48 = vmul.f32 %v4313_v28, %v4293_v22  ;;  %v4333_v42 = vsel %vm4330_vm7, %v4332_v16, %v4328_v49  ;;  %v4426_v63 = vor.u32 1.1754944e-38, %v4425_v43  ;;  %v4448_v49 = vand.u32 2147483648, %v9492_v58 }
 0xa86   :  { %v4438_v9 = vmul.f32 %v6157_v36, %v9492_v58  ;;  %v6159_v20 = vpop.eup %6158  ;;  %v4338_v59 = vsub.f32 1.0, %v4333_v42  ;;  %v4341_v35 = vmul.f32 %v4333_v42, %v9388_v53  ;;  %vm4424_vm3 = vcmp.eq.f32.partialorder %v4423_v29, 8.507059e+37 }
 0xa87   :  { %v4336_v32 = vadd.f32 %v4335_v48, %v9824_v15  ;;  %v4415_v30 = vmul.f32 %v6159_v20, %v4413_v3  ;;  %vm4420_vm0 = vweird.f32 %v6159_v20  ;;  %v4453_v7 = vrot.slane %v4404_v38, 2  ;;  %v9825_v3 = vld [vmem:[#allocation21_spill] sm:$0xff] }
 0xa88   :  { %v4439_v0 = vsub.f32 1.0, %v4438_v9  ;;  %vm4421_vm2 = vmor %vm4419_vm1, %vm4420_vm0  ;;  %vm4443_vm4 = vweird.f32 %v6157_v36  ;;  %v4446_v53 = vand.u32 2147483647, %v9492_v58  ;;  %v4460_v42 = vrot.slane %v9400_v60, 2 }
 0xa89   :  { %6160 = vtanh.f32 %v4336_v32  ;;  %v4416_v19 = vsub.f32 1.0, %v4415_v30  ;;  %vm4444_vm6 = vmor %vm4442_vm5, %vm4443_vm4  ;;  %v4449_v30 = vor.u32 1.1754944e-38, %v4448_v49 }
 0xa8a   :  { %v4440_v17 = vmul.f32 %v6157_v36, %v4439_v0  ;;  %vm4447_vm8 = vcmp.eq.f32.partialorder %v4446_v53, 8.507059e+37 }
 0xa8b   :  { %v4417_v6 = vmul.f32 %v6159_v20, %v4416_v19 }
 0xa8c   :  { %v4441_v9 = vadd.f32 %v6157_v36, %v4440_v17 }
 0xa8d   :  { %v4418_v28 = vadd.f32 %v6159_v20, %v4417_v6 }
 0xa8e   :  { %v4445_v52 = vsel %vm4444_vm6, %v6157_v36, %v4441_v9 }
 0xa8f   :  { %v6161_v2 = vpop.eup %6160  ;;  %v4422_v48 = vsel %vm4421_vm2, %v6159_v20, %v4418_v28  ;;  %v4450_v58 = vsel %vm4447_vm8, %v4449_v30, %v4445_v52 }
 0xa90   :  { %v4339_v22 = vmul.f32 %v6161_v2, %v4338_v59  ;;  %v4427_v32 = vsel %vm4424_vm3, %v4426_v63, %v4422_v48  ;;  %v4458_v36 = vsub.f32 1.0, %v4450_v58  ;;  %v4462_v38 = vmul.f32 %v4460_v42, %v4450_v58 }
 0xa91   :  { %v4455_v16 = vmul.f32 %v4453_v7, %v4427_v32 }
 0xa92   :  { %v9510_v56 = vadd.f32 %v4341_v35, %v4339_v22 }
 0xa93   :  { %v4456_v20 = vadd.f32 %v4455_v16, %v9825_v3 }
 0xa94   :  { %5843 = vmatmul.msk.f32.vlgmr.msra.gmra.mxu2 %vm1060_vm14, %v9510_v56  ;;  %5844 = vmatmul.msk.f32.vlgmr.msra.gmra.mxu3 %vm1060_vm14, %v9510_v56 }
 0xa95   :  { %5845 = vmatmul.msk.f32.vlgmr.msrb.gmra.mxu0 %vm1060_vm14, %v9510_v56  ;;  %4763 = vmatpush.msra.mxu2 %v9254_v1  ;;  %6162 = vtanh.f32 %v4456_v20 }
 0xa96   :  { %4845 = vmatpush.msra.mxu3 %v9260_v41  ;;  %4865 = vmatpush.msrb.mxu0 %v9266_v39 }
 0xa97   :  { %4764 = vmatpush.msra.mxu2 %v9405_v26 }
 0xa98   :  { %4846 = vmatpush.msra.mxu3 %v9273_v14  ;;  %4866 = vmatpush.msrb.mxu0 %v9279_v33 }
 0xa99   :  { %4765 = vmatpush.msra.mxu2 %v9415_v46 }
 0xa9a   :  { %4847 = vmatpush.msra.mxu3 %v9286_v34  ;;  %4867 = vmatpush.msrb.mxu0 %v9292_v12 }
 0xa9b   :  { %4766 = vmatpush.msra.mxu2 %v9428_v5  ;;  %v6163_v0 = vpop.eup %6162 }
 0xa9c   :  { %4848 = vmatpush.msra.mxu3 %v9300_v13  ;;  %4868 = vmatpush.msrb.mxu0 %v9306_v62  ;;  %v4459_v19 = vmul.f32 %v6163_v0, %v4458_v36 }
 0xa9e   :  { %v9535_v43 = vadd.f32 %v4462_v38, %v4459_v19 }
 0xaa0   :  { %v4586_v59 = vrot.slane %v9535_v43, 6 }
 0xaa2   :  { %5848 = vmatmul.msk.f32.vlgmr.msrb.gmra.mxu1 %vm1060_vm14, %v4586_v59  ;;  %5849 = vmatmul.msk.f32.vlgmr.msrb.gmra.mxu2 %vm1060_vm14, %v4586_v59 }
 0xaa3   :  { %5850 = vmatmul.msk.f32.vlgmr.msrb.gmra.mxu3 %vm1060_vm14, %v4586_v59  ;;  %4885 = vmatpush.msrb.mxu1 %v9421_v40 }
 0xaa4   :  { %4967 = vmatpush.msrb.mxu2 %v9321_v25  ;;  %4987 = vmatpush.msrb.mxu3 %v9327_v31 }
 0xaa5   :  { %4886 = vmatpush.msrb.mxu1 %v9439_v45 }
 0xaa6   :  { %4968 = vmatpush.msrb.mxu2 %v9334_v23  ;;  %4988 = vmatpush.msrb.mxu3 %v9340_v55 }
 0xaa7   :  { %4887 = vmatpush.msrb.mxu1 %v9448_v8 }
 0xaa8   :  { %4969 = vmatpush.msrb.mxu2 %v9347_v61  ;;  %4989 = vmatpush.msrb.mxu3 %v9353_v51 }
 0xaa9   :  { %4888 = vmatpush.msrb.mxu1 %v9456_v4 }
 0xaaa   :  { %4970 = vmatpush.msrb.mxu2 %v9360_v10  ;;  %4990 = vmatpush.msrb.mxu3 %v9366_v27 }
 0xb12   :  { %v4524_v52 = vpop.f32.mrf.mxu0 }
 0xb13   :  { %v4525_v19 = vadd.f32 %v9498_v11, %v4524_v52 }
 0xb17   :  { %v4484_v25 = vpop.f32.mrf.mxu2  ;;  %v4504_v31 = vpop.f32.mrf.mxu3 }
 0xb18   :  { %v4485_v60 = vadd.f32 %v9467_v57, %v4484_v25  ;;  %v4505_v23 = vadd.f32 %v9473_v50, %v4504_v31 }
 0xb1a   :  { %v4528_v6 = vrot.slane %v4485_v60, 6  ;;  %v4551_v55 = vrot.slane %v4505_v23, 6 }
 0xb1c   :  { %v4530_v29 = vadd.f32 %v4528_v6, %v9820_v47  ;;  %v4553_v61 = vadd.f32 %v4551_v55, %v9821_v21 }
 0xb1e   :  { %v5846_v2 = vmul.f32 -1.442695, %v4530_v29  ;;  %v5847_v51 = vmul.f32 -1.442695, %v4553_v61  ;;  %v4574_v29 = vrot.slane %v4525_v19, 6 }
 0xb1f   :  { %v4606_v17 = vpop.f32.mrf.mxu1 }
 0xb20   :  { %6164 = vpow2.f32 %v5846_v2  ;;  %v4607_v10 = vadd.f32 %v9487_v37, %v4606_v17 }
 0xb21   :  { %6166 = vpow2.f32 %v5847_v51 }
 0xb22   :  { %v4650_v27 = vrot.slane %v4607_v10, 4 }
 0xb24   :  { %v4652_v63 = vadd.f32 %v4650_v27, %v9823_v44 }
 0xb25   :  { %v4626_v7 = vpop.f32.mrf.mxu2 }
 0xb26   :  { %v6165_v22 = vpop.eup %6164  ;;  %v5851_v32 = vmul.f32 -1.442695, %v4652_v63  ;;  %v4627_v9 = vadd.f32 %v9481_v54, %v4626_v7 }
 0xb27   :  { %v6167_v35 = vpop.eup %6166  ;;  %v4534_v28 = vadd.f32 1.0, %v6165_v22 }
 0xb28   :  { %v4557_v48 = vadd.f32 1.0, %v6167_v35  ;;  %v4673_v49 = vrot.slane %v4627_v9, 4 }
 0xb29   :  { %6168 = vrcp.f32 %v4534_v28  ;;  %v4546_v38 = vand.u32 2147483648, %v4534_v28  ;;  %v4544_v31 = vand.u32 2147483647, %v4534_v28  ;;  %vm4540_vm10 = vweird.f32 %v4534_v28 }
 0xb2a   :  { %6170 = vrcp.f32 %v4557_v48  ;;  %v4675_v53 = vadd.f32 %v4673_v49, %v9822_v18  ;;  %v4569_v27 = vand.u32 2147483648, %v4557_v48  ;;  %vm4563_vm7 = vweird.f32 %v4557_v48 }
 0xb2b   :  { %6172 = vpow2.f32 %v5851_v32  ;;  %v4547_v55 = vor.u32 1.1754944e-38, %v4546_v38  ;;  %vm4545_vm13 = vcmp.eq.f32.partialorder %v4544_v31, 8.507059e+37  ;;  %v4567_v35 = vand.u32 2147483647, %v4557_v48  ;;  %v4646_v32 = vpop.f32.mrf.mxu3 }
 0xb2c   :  { %v5852_v36 = vmul.f32 -1.442695, %v4675_v53  ;;  %v4570_v49 = vor.u32 1.1754944e-38, %v4569_v27  ;;  %v4647_v52 = vadd.f32 %v9506_v24, %v4646_v32 }
 0xb2d   :  { %vm4568_vm1 = vcmp.eq.f32.partialorder %v4567_v35, 8.507059e+37 }
 0xb2e   :  { %6174 = vpow2.f32 %v5852_v36 }
 0xb2f   :  { %v6169_v16 = vpop.eup %6168 }
 0xb30   :  { %v6171_v20 = vpop.eup %6170  ;;  %v4536_v30 = vmul.f32 %v6169_v16, %v4534_v28  ;;  %vm4541_vm9 = vweird.f32 %v6169_v16 }
 0xb31   :  { %v4559_v58 = vmul.f32 %v6171_v20, %v4557_v48  ;;  %v6173_v0 = vpop.eup %6172  ;;  %vm4542_vm12 = vmor %vm4540_vm10, %vm4541_vm9  ;;  %vm4564_vm15 = vweird.f32 %v6171_v20 }
 0xb32   :  { %v4537_v42 = vsub.f32 1.0, %v4536_v30  ;;  %v4656_v60 = vadd.f32 1.0, %v6173_v0  ;;  %vm4565_vm0 = vmor %vm4563_vm7, %vm4564_vm15 }
 0xb33   :  { %v4560_v59 = vsub.f32 1.0, %v4559_v58 }
 0xb34   :  { %v4538_v25 = vmul.f32 %v6169_v16, %v4537_v42  ;;  %6176 = vrcp.f32 %v4656_v60  ;;  %v6175_v2 = vpop.eup %6174  ;;  %v4666_v30 = vand.u32 2147483647, %v4656_v60  ;;  %v4668_v58 = vand.u32 2147483648, %v4656_v60 }
 0xb35   :  { %v4561_v23 = vmul.f32 %v6171_v20, %v4560_v59  ;;  %v4679_v22 = vadd.f32 1.0, %v6175_v2  ;;  %v4581_v42 = vrot.slane %v9510_v56, 6  ;;  %vm4662_vm3 = vweird.f32 %v4656_v60 }
 0xb36   :  { %v4539_v6 = vadd.f32 %v6169_v16, %v4538_v25  ;;  %vm4667_vm5 = vcmp.eq.f32.partialorder %v4666_v30, 8.507059e+37  ;;  %v4669_v59 = vor.u32 1.1754944e-38, %v4668_v58  ;;  %v4696_v25 = vrot.slane %v4647_v52, 4 }
 0xb37   :  { %v4562_v17 = vadd.f32 %v6171_v20, %v4561_v23  ;;  %6178 = vrcp.f32 %v4679_v22  ;;  %v4689_v56 = vand.u32 2147483647, %v4679_v22  ;;  %vm4685_vm8 = vweird.f32 %v4679_v22 }
 0xb38   :  { %v4543_v61 = vsel %vm4542_vm12, %v6169_v16, %v4539_v6 }
 0xb39   :  { %v4548_v51 = vsel %vm4545_vm13, %v4547_v55, %v4543_v61  ;;  %v4566_v28 = vsel %vm4565_vm0, %v6171_v20, %v4562_v17  ;;  %vm4690_vm10 = vcmp.eq.f32.partialorder %v4689_v56, 8.507059e+37 }
 0xb3a   :  { %v4576_v10 = vmul.f32 %v4574_v29, %v4548_v51  ;;  %v6177_v63 = vpop.eup %6176  ;;  %v4571_v53 = vsel %vm4568_vm1, %v4570_v49, %v4566_v28  ;;  %v4691_v29 = vand.u32 2147483648, %v4679_v22 }
 0xb3b   :  { %v4658_v9 = vmul.f32 %v6177_v63, %v4656_v60  ;;  %vm4663_vm2 = vweird.f32 %v6177_v63  ;;  %v4579_v0 = vsub.f32 1.0, %v4571_v53  ;;  %v4583_v55 = vmul.f32 %v4581_v42, %v4571_v53 }
 0xb3c   :  { %v4577_v7 = vadd.f32 %v4576_v10, %v9824_v15  ;;  %vm4664_vm4 = vmor %vm4662_vm3, %vm4663_vm2  ;;  %v4692_v35 = vor.u32 1.1754944e-38, %v4691_v29 }
 0xb3d   :  { %v4659_v16 = vsub.f32 1.0, %v4658_v9  ;;  %v6179_v48 = vpop.eup %6178 }
 0xb3e   :  { %6180 = vtanh.f32 %v4577_v7  ;;  %v4681_v19 = vmul.f32 %v6179_v48, %v4679_v22  ;;  %vm4686_vm6 = vweird.f32 %v6179_v48  ;;  %v4703_v22 = vrot.slane %v9535_v43, 2 }
 0xb3f   :  { %v4660_v36 = vmul.f32 %v6177_v63, %v4659_v16  ;;  %vm4687_vm9 = vmor %vm4685_vm8, %vm4686_vm6 }
 0xb40   :  { %v4682_v31 = vsub.f32 1.0, %v4681_v19 }
 0xb41   :  { %v4661_v38 = vadd.f32 %v6177_v63, %v4660_v36 }
 0xb42   :  { %v4683_v2 = vmul.f32 %v6179_v48, %v4682_v31 }
 0xb43   :  { %v4665_v23 = vsel %vm4664_vm4, %v6177_v63, %v4661_v38 }
 0xb44   :  { %v6181_v20 = vpop.eup %6180  ;;  %v4670_v61 = vsel %vm4667_vm5, %v4669_v59, %v4665_v23  ;;  %v4684_v10 = vadd.f32 %v6179_v48, %v4683_v2 }
 0xb45   :  { %v4580_v6 = vmul.f32 %v6181_v20, %v4579_v0  ;;  %v4698_v51 = vmul.f32 %v4696_v25, %v4670_v61 }
 0xb46   :  { %v4688_v7 = vsel %vm4687_vm9, %v6179_v48, %v4684_v10 }
 0xb47   :  { %v9565_v17 = vadd.f32 %v4583_v55, %v4580_v6  ;;  %v4699_v60 = vadd.f32 %v4698_v51, %v9825_v3  ;;  %v4693_v63 = vsel %vm4690_vm10, %v4692_v35, %v4688_v7 }
 0xb48   :  { %v4701_v28 = vsub.f32 1.0, %v4693_v63 }
 0xb49   :  { %v4708_v27 = vrot.slane %v9565_v17, 2  ;;  %6182 = vtanh.f32 %v4699_v60 }
 0xb4b   :  { %5853 = vmatmul.msk.f32.vlgmr.msra.gmra.mxu0 %vm1060_vm14, %v4708_v27  ;;  %5854 = vmatmul.msk.f32.vlgmr.msra.gmra.mxu1 %vm1060_vm14, %v4708_v27 }
 0xb4c   :  { %5855 = vmatmul.msk.f32.vlgmr.msra.gmra.mxu2 %vm1060_vm14, %v4708_v27  ;;  %5007 = vmatpush.msra.mxu0 %v9254_v1 }
 0xb4d   :  { %5089 = vmatpush.msra.mxu1 %v9260_v41  ;;  %5109 = vmatpush.msra.mxu2 %v9266_v39  ;;  %v4705_v41 = vmul.f32 %v4703_v22, %v4693_v63 }
 0xb4e   :  { %5008 = vmatpush.msra.mxu0 %v9405_v26 }
 0xb4f   :  { %5090 = vmatpush.msra.mxu1 %v9273_v14  ;;  %5110 = vmatpush.msra.mxu2 %v9279_v33  ;;  %v6183_v32 = vpop.eup %6182 }
 0xb50   :  { %5009 = vmatpush.msra.mxu0 %v9415_v46  ;;  %v4702_v1 = vmul.f32 %v6183_v32, %v4701_v28 }
 0xb51   :  { %5091 = vmatpush.msra.mxu1 %v9286_v34  ;;  %5111 = vmatpush.msra.mxu2 %v9292_v12 }
 0xb52   :  { %5010 = vmatpush.msra.mxu0 %v9428_v5  ;;  %v9585_v39 = vadd.f32 %v4705_v41, %v4702_v1 }
 0xb53   :  { %5092 = vmatpush.msra.mxu1 %v9300_v13  ;;  %5112 = vmatpush.msra.mxu2 %v9306_v62 }
 0xb54   :  { %v4830_v14 = vrot.slane %v9585_v39, 4 }
 0xb56   :  { %5858 = vmatmul.msk.f32.vlgmr.msra.gmra.mxu3 %vm1060_vm14, %v4830_v14  ;;  %5859 = vmatmul.msk.f32.vlgmr.msrb.gmra.mxu0 %vm1060_vm14, %v4830_v14 }
 0xb57   :  { %5860 = vmatmul.msk.f32.vlgmr.msrb.gmra.mxu1 %vm1060_vm14, %v4830_v14  ;;  %5129 = vmatpush.msra.mxu3 %v9421_v40 }
 0xb59   :  { %5130 = vmatpush.msra.mxu3 %v9439_v45 }
 0xb5b   :  { %5131 = vmatpush.msra.mxu3 %v9448_v8 }
 0xb5d   :  { %5132 = vmatpush.msra.mxu3 %v9456_v4 }
 0xbc8   :  { %v4728_v33 = vpop.f32.mrf.mxu0  ;;  %v4748_v34 = vpop.f32.mrf.mxu1 }
 0xbc9   :  { %v4729_v12 = vadd.f32 %v9467_v57, %v4728_v33  ;;  %v4749_v13 = vadd.f32 %v9473_v50, %v4748_v34 }
 0xbcb   :  { %v4772_v62 = vrot.slane %v4729_v12, 4  ;;  %v4795_v26 = vrot.slane %v4749_v13, 4 }
 0xbcd   :  { %v4774_v46 = vadd.f32 %v4772_v62, %v9820_v47  ;;  %v4797_v5 = vadd.f32 %v4795_v26, %v9821_v21 }
 0xbcf   :  { %v5856_v43 = vmul.f32 -1.442695, %v4774_v46  ;;  %v5857_v40 = vmul.f32 -1.442695, %v4797_v5  ;;  %v4768_v59 = vpop.f32.mrf.mxu2  ;;  %v4825_v5 = vrot.slane %v9565_v17, 6 }
 0xbd0   :  { %v4769_v55 = vadd.f32 %v9498_v11, %v4768_v59 }
 0xbd1   :  { %6184 = vpow2.f32 %v5856_v43 }
 0xbd2   :  { %6186 = vpow2.f32 %v5857_v40  ;;  %v4818_v35 = vrot.slane %v4769_v55, 4 }
 0xbd3   :  { %v4870_v45 = vpop.f32.mrf.mxu0 }
 0xbd4   :  { %v4871_v8 = vadd.f32 %v9481_v54, %v4870_v45  ;;  %v4890_v43 = vpop.f32.mrf.mxu1 }
 0xbd6   :  { %v4917_v16 = vrot.slane %v4871_v8, 6 }
 0xbd7   :  { %v6185_v4 = vpop.eup %6184 }
 0xbd8   :  { %v6187_v9 = vpop.eup %6186  ;;  %v4778_v49 = vadd.f32 1.0, %v6185_v4  ;;  %v4919_v30 = vadd.f32 %v4917_v16, %v9822_v18  ;;  %v4891_v16 = vadd.f32 %v9506_v24, %v4890_v43 }
 0xbd9   :  { %v4801_v53 = vadd.f32 1.0, %v6187_v9  ;;  %v4850_v52 = vpop.f32.mrf.mxu3 }
 0xbda   :  { %6188 = vrcp.f32 %v4778_v49  ;;  %v4851_v58 = vadd.f32 %v9487_v37, %v4850_v52  ;;  %v5862_v36 = vmul.f32 -1.442695, %v4919_v30  ;;  %v4790_v6 = vand.u32 2147483648, %v4778_v49 }
 0xbdb   :  { %6190 = vrcp.f32 %v4801_v53  ;;  %v4788_v61 = vand.u32 2147483647, %v4778_v49  ;;  %vm4784_vm13 = vweird.f32 %v4778_v49  ;;  %v4813_v28 = vand.u32 2147483648, %v4801_v53 }
 0xbdc   :  { %v4894_v48 = vrot.slane %v4851_v58, 6  ;;  %6192 = vpow2.f32 %v5862_v36  ;;  %v4791_v60 = vor.u32 1.1754944e-38, %v4790_v6  ;;  %vm4807_vm1 = vweird.f32 %v4801_v53 }
 0xbdd   :  { %vm4789_vm7 = vcmp.eq.f32.partialorder %v4788_v61, 8.507059e+37  ;;  %v4811_v41 = vand.u32 2147483647, %v4801_v53  ;;  %v4814_v12 = vor.u32 1.1754944e-38, %v4813_v28  ;;  %v4947_v61 = vrot.slane %v9585_v39, 2 }
 0xbde   :  { %v4896_v0 = vadd.f32 %v4894_v48, %v9823_v44 }
 0xbdf   :  { %vm4812_vm3 = vcmp.eq.f32.partialorder %v4811_v41, 8.507059e+37 }
 0xbe0   :  { %v6189_v42 = vpop.eup %6188  ;;  %v5861_v25 = vmul.f32 -1.442695, %v4896_v0  ;;  %v4940_v0 = vrot.slane %v4891_v16, 6 }
 0xbe1   :  { %v6191_v19 = vpop.eup %6190  ;;  %v4780_v38 = vmul.f32 %v6189_v42, %v4778_v49  ;;  %vm4785_vm12 = vweird.f32 %v6189_v42 }
 0xbe2   :  { %v4803_v20 = vmul.f32 %v6191_v19, %v4801_v53  ;;  %6194 = vpow2.f32 %v5861_v25  ;;  %v6193_v2 = vpop.eup %6192  ;;  %vm4786_vm15 = vmor %vm4784_vm13, %vm4785_vm12  ;;  %vm4808_vm0 = vweird.f32 %v6191_v19 }
 0xbe3   :  { %v4781_v31 = vsub.f32 1.0, %v4780_v38  ;;  %v9604_v10 = vadd.f32 1.0, %v6193_v2  ;;  %vm4809_vm2 = vmor %vm4807_vm1, %vm4808_vm0 }
 0xbe4   :  { %v4804_v23 = vsub.f32 1.0, %v4803_v20 }
 0xbe5   :  { %v4782_v29 = vmul.f32 %v6189_v42, %v4781_v31  ;;  %6196 = vrcp.f32 %v9604_v10  ;;  %v4935_v59 = vand.u32 2147483648, %v9604_v10  ;;  %vm4929_vm10 = vweird.f32 %v9604_v10 }
 0xbe6   :  { %v4805_v51 = vmul.f32 %v6191_v19, %v4804_v23  ;;  %v4933_v31 = vand.u32 2147483647, %v9604_v10 }
 0xbe7   :  { %v4783_v56 = vadd.f32 %v6189_v42, %v4782_v29  ;;  %v4936_v55 = vor.u32 1.1754944e-38, %v4935_v59  ;;  %v5216_v59 = vld [vmem:[%s9733_s9 + $0x68] sm:$0xff] }
 0xbe8   :  { %v6195_v7 = vpop.eup %6194  ;;  %v4806_v22 = vadd.f32 %v6191_v19, %v4805_v51  ;;  %vm4934_vm13 = vcmp.eq.f32.partialorder %v4933_v31, 8.507059e+37 }
 0xbe9   :  { %v4787_v27 = vsel %vm4786_vm15, %v6189_v42, %v4783_v56  ;;  %v4900_v1 = vadd.f32 1.0, %v6195_v7 }
 0xbea   :  { %v4792_v63 = vsel %vm4789_vm7, %v4791_v60, %v4787_v27  ;;  %v4810_v33 = vsel %vm4809_vm2, %v6191_v19, %v4806_v22 }
 0xbeb   :  { %v4820_v32 = vmul.f32 %v4818_v35, %v4792_v63  ;;  %6198 = vrcp.f32 %v4900_v1  ;;  %v6197_v34 = vpop.eup %6196  ;;  %v4815_v13 = vsel %vm4812_vm3, %v4814_v12, %v4810_v33  ;;  %v4912_v53 = vand.u32 2147483648, %v4900_v1 }
 0xbec   :  { %v4925_v62 = vmul.f32 %v6197_v34, %v9604_v10  ;;  %v4823_v46 = vsub.f32 1.0, %v4815_v13  ;;  %v4827_v9 = vmul.f32 %v4825_v5, %v4815_v13  ;;  %v4910_v58 = vand.u32 2147483647, %v4900_v1 }
 0xbed   :  { %v4821_v14 = vadd.f32 %v4820_v32, %v9824_v15  ;;  %vm4906_vm5 = vweird.f32 %v4900_v1  ;;  %v4913_v17 = vor.u32 1.1754944e-38, %v4912_v53  ;;  %vm4930_vm9 = vweird.f32 %v6197_v34 }
 0xbee   :  { %v4926_v8 = vsub.f32 1.0, %v4925_v62  ;;  %vm4911_vm8 = vcmp.eq.f32.partialorder %v4910_v58, 8.507059e+37  ;;  %vm4931_vm12 = vmor %vm4929_vm10, %vm4930_vm9 }
 0xbef   :  { %6200 = vtanh.f32 %v4821_v14 }
 0xbf0   :  { %v4927_v36 = vmul.f32 %v6197_v34, %v4926_v8 }
 0xbf1   :  { %v6199_v26 = vpop.eup %6198 }
 0xbf2   :  { %v4902_v40 = vmul.f32 %v6199_v26, %v4900_v1  ;;  %vm4907_vm4 = vweird.f32 %v6199_v26  ;;  %v4928_v38 = vadd.f32 %v6197_v34, %v4927_v36 }
 0xbf3   :  { %vm4908_vm6 = vmor %vm4906_vm5, %vm4907_vm4 }
 0xbf4   :  { %v4903_v49 = vsub.f32 1.0, %v4902_v40  ;;  %v4932_v6 = vsel %vm4931_vm12, %v6197_v34, %v4928_v38 }
 0xbf5   :  { %v6201_v45 = vpop.eup %6200  ;;  %v4937_v29 = vsel %vm4934_vm13, %v4936_v55, %v4932_v6  ;;  %v5215_v55 = vld [vmem:[%s9733_s9 + $0x60] sm:$0xff] }
 0xbf6   :  { %v4824_v4 = vmul.f32 %v6201_v45, %v4823_v46  ;;  %v4904_v30 = vmul.f32 %v6199_v26, %v4903_v49  ;;  %v4945_v2 = vsub.f32 1.0, %v4937_v29  ;;  %v4949_v60 = vmul.f32 %v4947_v61, %v4937_v29 }
 0xbf8   :  { %v9611_v52 = vadd.f32 %v4827_v9, %v4824_v4  ;;  %v4905_v42 = vadd.f32 %v6199_v26, %v4904_v30 }
 0xbfa   :  { %v4952_v48 = vrot.slane %v9611_v52, 4  ;;  %v4909_v19 = vsel %vm4908_vm6, %v6199_v26, %v4905_v42  ;;  %v5218_v42 = vld [vmem:[%s9733_s9 + $0x78] sm:$0xff] }
 0xbfb   :  { %v4914_v20 = vsel %vm4911_vm8, %v4913_v17, %v4909_v19  ;;  %v5217_v17 = vld [vmem:[%s9733_s9 + $0x70] sm:$0xff]  ;;  %5226 = vmatpush.msrb.mxu0 %v5218_v42  ;;  %v5203_v42 = vld [vmem:[%s9733_s9] sm:$0xff] }
 0xbfc   :  { %5863 = vmatmul.msk.f32.vlgmr.msrb.gmra.mxu2 %vm1060_vm14, %v4952_v48  ;;  %5864 = vmatmul.msk.f32.vlgmr.msrb.gmra.mxu3 %vm1060_vm14, %v4952_v48  ;;  %v4942_v25 = vmul.f32 %v4940_v0, %v4914_v20 }
 0xbfd   :  { %5865 = vmatmul.msk.f32.vlgmr.msra.gmra.mxu0 %vm1060_vm14, %v4952_v48 }
 0xbfe   :  { %v4943_v23 = vadd.f32 %v4942_v25, %v9825_v3  ;;  %5227 = vmatpush.msrb.mxu0 %v5217_v17  ;;  %v5188_v17 = vpop.permute.xlu1 %5187 }
 0xc00   :  { %6202 = vtanh.f32 %v4943_v23  ;;  %5228 = vmatpush.msrb.mxu0 %v5216_v59 }
 0xc02   :  { %5229 = vmatpush.msrb.mxu0 %v5215_v55 }
 0xc06   :  { %v6203_v51 = vpop.eup %6202 }
 0xc07   :  { %v4946_v56 = vmul.f32 %v6203_v51, %v4945_v2 }
 0xc09   :  { %v4950_v27 = vadd.f32 %v4949_v60, %v4946_v56  ;;  %v5214_v56 = vld [vmem:[%s9733_s9 + $0x58] sm:$0xff] }
 0xc0a   :  { %5230 = vmatpush.msrb.mxu0 %v5214_v56 }
 0xc0b   :  { %v9622_v35 = vrot.slane %v4950_v27, 2 }
 0xc0d   :  { %5868 = vmatmul.msk.f32.vlgmr.msra.gmra.mxu1 %vm1060_vm14, %v9622_v35  ;;  %5869 = vmatmul.msk.f32.vlgmr.msra.gmra.mxu2 %vm1060_vm14, %v9622_v35 }
 0xc0e   :  { %5870 = vmatmul.msk.f32.vlgmr.msra.gmra.mxu3 %vm1060_vm14, %v9622_v35 }
 0xc7f   :  { %v4972_v10 = vpop.f32.mrf.mxu2  ;;  %v4992_v7 = vpop.f32.mrf.mxu3 }
 0xc80   :  { %v4973_v39 = vadd.f32 %v9467_v57, %v4972_v10  ;;  %v4993_v63 = vadd.f32 %v9473_v50, %v4992_v7 }
 0xc82   :  { %v5016_v22 = vrot.slane %v4973_v39, 2  ;;  %v5039_v28 = vrot.slane %v4993_v63, 2 }
 0xc84   :  { %v5018_v32 = vadd.f32 %v5016_v22, %v9820_v47  ;;  %v5041_v1 = vadd.f32 %v5039_v28, %v9821_v21 }
 0xc86   :  { %v5866_v41 = vmul.f32 -1.442695, %v5018_v32  ;;  %v5867_v14 = vmul.f32 -1.442695, %v5041_v1  ;;  %v5069_v1 = vrot.slane %v9611_v52, 6 }
 0xc88   :  { %6204 = vpow2.f32 %v5866_v41 }
 0xc89   :  { %6206 = vpow2.f32 %v5867_v14 }
 0xc8a   :  { %v5094_v33 = vpop.f32.mrf.mxu1 }
 0xc8b   :  { %v5095_v34 = vadd.f32 %v9487_v37, %v5094_v33  ;;  %v5012_v37 = vpop.f32.mrf.mxu0 }
 0xc8c   :  { %v5013_v53 = vadd.f32 %v9498_v11, %v5012_v37 }
 0xc8d   :  { %v5137_v57 = vadd.f32 %v5095_v34, %v9823_v44 }
 0xc8e   :  { %v6205_v12 = vpop.eup %6204  ;;  %v5062_v11 = vrot.slane %v5013_v53, 2  ;;  %v5211_v53 = vld [vmem:[%s9733_s9 + $0x40] sm:$0xff] }
 0xc8f   :  { %v6207_v13 = vpop.eup %6206  ;;  %v5022_v62 = vadd.f32 1.0, %v6205_v12  ;;  %v5871_v50 = vmul.f32 -1.442695, %v5137_v57 }
 0xc90   :  { %v5045_v26 = vadd.f32 1.0, %v6207_v13  ;;  %v5114_v46 = vpop.f32.mrf.mxu2 }
 0xc91   :  { %6208 = vrcp.f32 %v5022_v62  ;;  %v5115_v47 = vadd.f32 %v9481_v54, %v5114_v46  ;;  %v5034_v44 = vand.u32 2147483648, %v5022_v62  ;;  %v5032_v54 = vand.u32 2147483647, %v5022_v62  ;;  %v5134_v22 = vpop.f32.mrf.mxu3 }
 0xc92   :  { %6210 = vrcp.f32 %v5045_v26  ;;  %vm5028_vm7 = vweird.f32 %v5022_v62  ;;  %v5057_v25 = vand.u32 2147483648, %v5045_v26  ;;  %vm5051_vm3 = vweird.f32 %v5045_v26 }
 0xc93   :  { %6212 = vpow2.f32 %v5871_v50  ;;  %v5157_v21 = vadd.f32 %v5115_v47, %v9822_v18  ;;  %v5035_v48 = vor.u32 1.1754944e-38, %v5034_v44  ;;  %vm5033_vm1 = vcmp.eq.f32.partialorder %v5032_v54, 8.507059e+37  ;;  %v5208_v54 = vld [vmem:[%s9733_s9 + $0x28] sm:$0xff] }
 0xc94   :  { %v5055_v6 = vand.u32 2147483647, %v5045_v26  ;;  %v5058_v27 = vor.u32 1.1754944e-38, %v5057_v25  ;;  %v5135_v12 = vadd.f32 %v9506_v24, %v5134_v22 }
 0xc95   :  { %v5872_v43 = vmul.f32 -1.442695, %v5157_v21 }
 0xc96   :  { %vm5056_vm5 = vcmp.eq.f32.partialorder %v5055_v6, 8.507059e+37 }
 0xc97   :  { %v6209_v5 = vpop.eup %6208  ;;  %6214 = vpow2.f32 %v5872_v43 }
 0xc98   :  { %v6211_v40 = vpop.eup %6210  ;;  %v5024_v45 = vmul.f32 %v6209_v5, %v5022_v62  ;;  %vm5029_vm15 = vweird.f32 %v6209_v5 }
 0xc99   :  { %v5047_v8 = vmul.f32 %v6211_v40, %v5045_v26  ;;  %v6213_v4 = vpop.eup %6212  ;;  %vm5030_vm0 = vmor %vm5028_vm7, %vm5029_vm15  ;;  %vm5052_vm2 = vweird.f32 %v6211_v40 }
 0xc9a   :  { %v5025_v9 = vsub.f32 1.0, %v5024_v45  ;;  %v9638_v49 = vadd.f32 1.0, %v6213_v4  ;;  %vm9658_vm4 = vmor %vm5051_vm3, %vm5052_vm2 }
 0xc9b   :  { %v5048_v16 = vsub.f32 1.0, %v5047_v8 }
 0xc9c   :  { %v5026_v30 = vmul.f32 %v6209_v5, %v5025_v9  ;;  %6216 = vrcp.f32 %v9638_v49  ;;  %v5153_v10 = vand.u32 2147483648, %v9638_v49  ;;  %vm5147_vm8 = vweird.f32 %v9638_v49 }
 0xc9d   :  { %v5049_v58 = vmul.f32 %v6211_v40, %v5048_v16  ;;  %v6215_v36 = vpop.eup %6214  ;;  %v5212_v16 = vld [vmem:[%s9733_s9 + $0x48] sm:$0xff] }
 0xc9e   :  { %v5027_v18 = vadd.f32 %v6209_v5, %v5026_v30  ;;  %v9648_v0 = vadd.f32 1.0, %v6215_v36  ;;  %v5154_v41 = vor.u32 1.1754944e-38, %v5153_v10  ;;  %v5209_v30 = vld [vmem:[%s9733_s9 + $0x30] sm:$0xff] }
 0xc9f   :  { %v5050_v20 = vadd.f32 %v6211_v40, %v5049_v58  ;;  %v5206_v58 = vld [vmem:[%s9733_s9 + $0x18] sm:$0xff]  ;;  %v5205_v36 = vld [vmem:[%s9733_s9 + $0x10] sm:$0xff] }
 0xca0   :  { %v5031_v19 = vsel %vm5030_vm0, %v6209_v5, %v5027_v18  ;;  %6218 = vrcp.f32 %v9648_v0  ;;  %v5173_v47 = vand.u32 2147483648, %v9648_v0  ;;  %vm5167_vm13 = vweird.f32 %v9648_v0  ;;  %v5207_v18 = vld [vmem:[%s9733_s9 + $0x20] sm:$0xff] }
 0xca1   :  { %v5036_v38 = vsel %vm5033_vm1, %v5035_v48, %v5031_v19  ;;  %v5054_v51 = vsel %vm9658_vm4, %v6211_v40, %v5050_v20  ;;  %v5171_v52 = vand.u32 2147483647, %v9648_v0  ;;  %v5204_v48 = vld [vmem:[%s9733_s9 + $0x8] sm:$0xff]  ;;  %vm5201_vm0 = vcmask 785408  }
 0xca2   :  { %v5064_v31 = vmul.f32 %v5062_v11, %v5036_v38  ;;  %v6217_v23 = vpop.eup %6216  ;;  %v5059_v63 = vsel %vm5056_vm5, %v5058_v27, %v5054_v51  ;;  %v5174_v40 = vor.u32 1.1754944e-38, %v5173_v47  ;;  %v9828_v11 = vld [vmem:[#allocation5_spill] sm:$0xff]  ;;  %vm5246_vm1 = vcmask 517120  }
 0xca3   :  { %v5143_v29 = vmul.f32 %v6217_v23, %v9638_v49  ;;  %vm5148_vm6 = vweird.f32 %v6217_v23  ;;  %v5067_v14 = vsub.f32 1.0, %v5059_v63  ;;  %v5071_v62 = vmul.f32 %v5069_v1, %v5059_v63 }
 0xca4   :  { %v5065_v2 = vadd.f32 %v5064_v31, %v9824_v15  ;;  %v5151_v15 = vand.u32 2147483647, %v9638_v49  ;;  %vm5149_vm9 = vmor %vm5147_vm8, %vm5148_vm6  ;;  %vm5172_vm7 = vcmp.eq.f32.partialorder %v5171_v52, 8.507059e+37  ;;  %v5903_v31 = vld [vmem:[%s9734_s10] ss:$0 sm:$0xff] }
 0xca5   :  { %v5144_v60 = vsub.f32 1.0, %v5143_v29  ;;  %v6328_v29 = vmov 64.0  }
 0xca6   :  { %6220 = vtanh.f32 %v5065_v2  ;;  %v6219_v7 = vpop.eup %6218  ;;  %vm5152_vm10 = vcmp.eq.f32.partialorder %v5151_v15, 8.507059e+37 }
 0xca7   :  { %v5145_v39 = vmul.f32 %v6217_v23, %v5144_v60  ;;  %v5163_v28 = vmul.f32 %v6219_v7, %v9648_v0  ;;  %vm5168_vm12 = vweird.f32 %v6219_v7  ;;  %v5199_v0 = vsel %vm1060_vm14, %v9828_v11, %v5188_v17 }
 0xca8   :  { %vm5169_vm15 = vmor %vm5167_vm13, %vm5168_vm12 }
 0xca9   :  { %v5146_v32 = vadd.f32 %v6217_v23, %v5145_v39  ;;  %v5164_v33 = vsub.f32 1.0, %v5163_v28 }
 0xcab   :  { %v5150_v13 = vsel %vm5149_vm9, %v6217_v23, %v5146_v32  ;;  %v5165_v50 = vmul.f32 %v6219_v7, %v5164_v33 }
 0xcac   :  { %v6221_v34 = vpop.eup %6220  ;;  %v5155_v57 = vsel %vm5152_vm10, %v5154_v41, %v5150_v13 }
 0xcad   :  { %v5068_v26 = vmul.f32 %v6221_v34, %v5067_v14  ;;  %v5177_v46 = vmul.f32 %v5155_v57, %v5135_v12  ;;  %v5166_v5 = vadd.f32 %v6219_v7, %v5165_v50 }
 0xcaf   :  { %v5072_v21 = vadd.f32 %v5071_v62, %v5068_v26  ;;  %v5178_v43 = vadd.f32 %v5177_v46, %v9825_v3  ;;  %v5170_v24 = vsel %vm5169_vm15, %v6219_v7, %v5166_v5  ;;  %v5213_v3 = vld [vmem:[%s9733_s9 + $0x50] sm:$0xff] }
 0xcb0   :  { %v5175_v45 = vsel %vm5172_vm7, %v5174_v40, %v5170_v24  ;;  %5231 = vmatpush.msrb.mxu0 %v5213_v3 }
 0xcb1   :  { %5191 = vrot.lane.b32.xlu1 %v5072_v21, %s6326_s15  ;;  %6222 = vtanh.f32 %v5178_v43  ;;  %v5180_v37 = vsub.f32 1.0, %v5175_v45  ;;  %v5183_v9 = vmul.f32 %v5175_v45, %v9622_v35  ;;  %v5210_v35 = vld [vmem:[%s9733_s9 + $0x38] sm:$0xff]  ;;  %s6329_s9 = smov [#allocation2]   ;;  %s5284_s15 = sshll.u32 %s9735_s11, 4  ;;  %s5285_s15 = int_to_ptr.hbm [resolvable:$true] %s5284_s15 }
 0xcb2   :  { %5232 = vmatpush.msrb.mxu0 %v5212_v16  ;;  %6224 = vrcp.f32 %v6328_v29  ;;  %s5282_s10 = sshll.u32 %s6329_s9, 4  ;;  %s5283_s10 = int_to_ptr.vmem [resolvable:$true] %s5282_s10 }
 0xcb4   :  { %5233 = vmatpush.msrb.mxu0 %v5211_v53 }
 0xcb6   :  { %5234 = vmatpush.msrb.mxu0 %v5210_v35 }
 0xcb7   :  { %v6223_v8 = vpop.eup %6222 }
 0xcb8   :  { %v5181_v4 = vmul.f32 %v6223_v8, %v5180_v37  ;;  %5235 = vmatpush.msrb.mxu0 %v5209_v30  ;;  %v6225_v61 = vpop.eup %6224 }
 0xcb9   :  { %v5251_v2 = vmul.f32 64.0, %v6225_v61  ;;  %vm5255_vm14 = vweird.f32 %v6225_v61 }
 0xcba   :  { %v5184_v44 = vadd.f32 %v5183_v9, %v5181_v4  ;;  %5236 = vmatpush.msrb.mxu0 %v5208_v54 }
 0xcbb   :  { %v5252_v51 = vsub.f32 1.0, %v5251_v2 }
 0xcbc   :  { %v5195_v49 = vrot.slane %v5184_v44, 2  ;;  %5237 = vmatpush.msrb.mxu0 %v5207_v18 }
 0xcbd   :  { %v5253_v56 = vmul.f32 %v6225_v61, %v5252_v51 }
 0xcbe   :  { %5196 = vrot.lane.b32.xlu2 %v5195_v49, %s6327_s16  ;;  %5238 = vmatpush.msrb.mxu0 %v5206_v58 }
 0xcbf   :  { %v5254_v60 = vadd.f32 %v6225_v61, %v5253_v56 }
 0xcc0   :  { %5239 = vmatpush.msrb.mxu0 %v5205_v36 }
 0xcc1   :  { %v5256_v27 = vsel %vm5255_vm14, %v6225_v61, %v5254_v60 }
 0xcc2   :  { %5240 = vmatpush.msrb.mxu0 %v5204_v48 }
 0xcc4   :  { %5241 = vmatpush.msrb.mxu0 %v5203_v42 }
 0xd18   :  { %v5197_v38 = vpop.permute.xlu2 %5196 }
 0xd23   :  { %v5192_v19 = vpop.permute.xlu1 %5191 }
 0xd24   :  { %v5200_v20 = vsel %vm3014_vm11, %v5199_v0, %v5192_v19 }
 0xd25   :  { %v5202_v59 = vsel %vm5201_vm0, %v5200_v20, %v5197_v38 }
 0xd26   :  { %v5224_v25 = vrot.slane %v5202_v59, 6 }
 0xd28   :  { %5242 = vmatmul.f32.vlgmr.msrb.gmra.mxu0 %v5224_v25 }
 0xda5   :  { %v5243_v23 = vpop.f32.mrf.mxu0 }
 0xda6   :  { %v5244_v6 = vadd.f32 %v5903_v31, %v5243_v23 }
 0xda8   :  { %v5247_v55 = vsel %vm5246_vm1, %v5244_v6, 0.0 }
 0xda9   :  { %5248 = vadd.xlane.f32.xlu2 %v5247_v55 }
 0xe1c   :  { %v5249_v10 = vpop.xlane.xlu2 %5248 }
 0xe1d   :  { %v5257_v7 = vmul.f32 %v5256_v27, %v5249_v10 }
 0xe1f   :  { %v5258_v39 = vsub.f32 %v5244_v6, %v5257_v7 }
 0xe21   :  { %v5259_v15 = vmul.f32 %v5258_v39, %v5258_v39 }
 0xe23   :  { %v5260_v63 = vsel %vm5246_vm1, %v5259_v15, 0.0 }
 0xe24   :  { %5261 = vadd.xlane.f32.xlu0 %v5260_v63 }
 0xe97   :  { %v5262_v22 = vpop.xlane.xlu0 %5261 }
 0xe98   :  { %v5263_v28 = vmul.f32 %v5262_v22, %v5256_v27 }
 0xe9a   :  { %v5264_v32 = vadd.f32 1e-05, %v5263_v28 }
 0xe9c   :  { %6226 = vrsqrt.f32 %v5264_v32  ;;  %vm5271_vm2 = vweird.f32 %v5264_v32 }
 0xea2   :  { %v6227_v1 = vpop.eup %6226 }
 0xea3   :  { %v5266_v41 = vmul.f32 %v6227_v1, %v5264_v32  ;;  %vm5272_vm11 = vweird.f32 %v6227_v1 }
 0xea4   :  { %vm5273_vm3 = vmor %vm5271_vm2, %vm5272_vm11 }
 0xea5   :  { %v5267_v14 = vmul.f32 %v6227_v1, %v5266_v41 }
 0xea7   :  { %v5268_v33 = vmul.f32 0.5, %v5267_v14 }
 0xea9   :  { %v5269_v34 = vsub.f32 1.5, %v5268_v33 }
 0xeab   :  { %v5270_v12 = vmul.f32 %v6227_v1, %v5269_v34 }
 0xead   :  { %v5274_v13 = vsel %vm5273_vm3, %v6227_v1, %v5270_v12 }
 0xeae   :  { %v5275_v62 = vmul.f32 %v5274_v13, %v5258_v39 }
 0xeb0   :  { %5276 = vst.msk [vmem:[#allocation2] sm:$0x3] %vm5246_vm1, %v5275_v62 }
 0xeb1   :  { %5287 = dma.vmem_to_hbm [thread:$0]  %s5283_s10, 32, %s5285_s15, [#allocation3]  }
 0xeb2   :  { %6322 = dma.done.wait [#allocation3], 32  }
 0xeb3   :  { %6323 = vsyncadd [#allocation3], 4294967264 }
 0xeb4   :  { %5292 = vsyncpa [#allocation3], 1 }

</bundles_post_ra>
